<compile_context>
chip_gen: v6e
topology: v6e:2x2x1
jax: 0.10.0
libtpu: 0.0.40
codegen_flags: <defaults>
</compile_context>

<pallas_src>
import jax
import jax.numpy as jnp
from jax import lax
from jax.experimental import pallas as pl
from jax.experimental.pallas import tpu as pltpu


# ---------------------------------------------------------------------------
# Fused kernel: one grid step == NB images, everything stays in VMEM.
# ---------------------------------------------------------------------------
def _make_kernel(H, Wp, pt, NB):
    Mb = H * Wp                    # rows of one output band (all Wp columns)
    base = pt * Wp                 # flat row of the first real output row
    # tap -> (flat row offset of the shifted band, index into the (9,Cp,Cp) weights)
    taps = tuple(((pt + kh - 1) * Wp + (kw - 1), 3 * kh + kw)
                 for kh in range(3) for kw in range(3))
    center = 4                     # kh = kw = 1

    def kernel(x_ref, w1_ref, s1_ref, b1_ref, w2_ref, s2_ref, b2_ref, mask_ref,
               o_ref, h1_ref, acc_ref):
        Cp = o_ref.shape[-1]
        Rp = h1_ref.shape[1]

        s1 = s1_ref[...]
        b1 = b1_ref[...]
        s2 = s2_ref[...]
        b2 = b2_ref[...]
        mask = mask_ref[...]                          # (Mb, 1): 1 on real columns
        zeros_halo = jnp.zeros((base, Cp), h1_ref.dtype)   # hoisted (2*Wp rows)

        for img in range(NB):
            # conv2's zero padding: keep the halo rows of the staged h1 frame zero.
            # Only 2*2*Wp rows of dense, tile-aligned bf16 stores per image.
            h1_ref[img, 0:base, :] = zeros_halo
            h1_ref[img, base + Mb:Rp, :] = zeros_halo

            # ---- conv1: 9 contiguous band slices -> bf16 MXU dots, f32 VMEM acc --
            x_center = x_ref[img, base:base + Mb, :]        # reused as the residual
            acc_ref[...] = jnp.dot(x_center, w1_ref[center],
                                   preferred_element_type=jnp.float32)
            for s, t in taps:
                if t == center:
                    continue
                acc_ref[...] += jnp.dot(x_ref[img, s:s + Mb, :], w1_ref[t],
                                        preferred_element_type=jnp.float32)

            # bn1 + relu; zero the non-image columns so conv2 sees proper padding;
            # stage as bf16 with a tile-aligned dense store (offset base % 16 == 0).
            h1 = (jnp.maximum(acc_ref[...] * s1 + b1, 0.0) * mask).astype(jnp.bfloat16)
            h1_ref[img, base:base + Mb, :] = h1

            # ---- conv2 ----------------------------------------------------------
            acc_ref[...] = jnp.dot(h1, w2_ref[center],          # reuse in-reg value
                                   preferred_element_type=jnp.float32)
            for s, t in taps:
                if t == center:
                    continue
                acc_ref[...] += jnp.dot(h1_ref[img, s:s + Mb, :], w2_ref[t],
                                        preferred_element_type=jnp.float32)

            # bn2 + identity residual + relu, store bf16 in the flat padded layout.
            y = acc_ref[...] * s2 + b2 + x_center.astype(jnp.float32)
            o_ref[img] = jnp.maximum(y, 0.0).astype(o_ref.dtype)

    return kernel


# ---------------------------------------------------------------------------
# Wrapper / glue
# ---------------------------------------------------------------------------
def _fold_bn(gamma, beta, mean, var, eps=1e-5):
    scale = gamma / jnp.sqrt(var + eps)
    bias = beta - mean * scale
    return scale, bias


def _round_up(x, m):
    return (x + m - 1) // m * m


def _pick_nb(n):
    # Block several images per grid step, but keep >= 2 grid steps when possible
    # (v7x has two TensorCores that split a "parallel" grid axis).
    for nb in (8, 4, 2):
        if n % nb == 0 and n // nb >= 2:
            return nb
    return 1


def basic_block_forward(x_nchw, p):
    """BasicBlock(inplanes, planes, stride=1, downsample=None, use_cbam=False)."""
    N, C, H, W = x_nchw.shape
    planes = p["conv1_w"].shape[0]
    assert planes == C, "identity residual (downsample=None) requires inplanes == planes"

    Cp = _round_up(C, 128)                  # lane-dense channels
    Wp = _round_up(W + 2, 8)                # frame width (>= 1 halo column each side)
    if (H * Wp) % 16 or ((H + 4) * Wp) % 16:
        Wp = _round_up(W + 2, 16)           # keep bf16 (16,128) tiles aligned
    Hp, pt, cl = H + 4, 2, 1                # 2 halo rows top/bottom, 1 halo col left
    Rp, Mb = Hp * Wp, H * Wp
    NB = _pick_nb(N)

    # NCHW f32 -> flat padded frame (N, Rp, Cp) bf16.  When chaining BasicBlocks,
    # keep activations in this layout and skip the NCHW glue below.
    x_nhwc = jnp.transpose(x_nchw, (0, 2, 3, 1))
    xp = jnp.pad(x_nhwc, ((0, 0), (pt, Hp - pt - H), (cl, Wp - cl - W), (0, Cp - C)))
    xflat = xp.reshape(N, Rp, Cp).astype(jnp.bfloat16)

    # 0/1 mask of the real image columns inside one band row-group (broadcast over Cp).
    col = jnp.arange(Wp)
    mask = jnp.tile(((col >= cl) & (col < cl + W)).astype(jnp.float32), (H,))
    mask = mask.reshape(Mb, 1)

    def prep_w(w_oihw):                     # (Cout, Cin, 3, 3) -> (9, Cp, Cp) bf16
        w = jnp.transpose(w_oihw, (2, 3, 1, 0))          # (kh, kw, cin, cout)
        w = jnp.pad(w, ((0, 0), (0, 0),
                        (0, Cp - w.shape[2]), (0, Cp - w.shape[3])))
        return w.reshape(9, Cp, Cp).astype(jnp.bfloat16)

    def prep_bn(g, b, m, v):
        s, bb = _fold_bn(g, b, m, v)
        s = jnp.pad(s, (0, Cp - s.shape[0])).reshape(1, Cp).astype(jnp.float32)
        bb = jnp.pad(bb, (0, Cp - bb.shape[0])).reshape(1, Cp).astype(jnp.float32)
        return s, bb

    w1 = prep_w(p["conv1_w"])
    s1, b1 = prep_bn(p["bn1_g"], p["bn1_b"], p["bn1_m"], p["bn1_v"])
    w2 = prep_w(p["conv2_w"])
    s2, b2 = prep_bn(p["bn2_g"], p["bn2_b"], p["bn2_m"], p["bn2_v"])

    out_flat = pl.pallas_call(
        _make_kernel(H, Wp, pt, NB),
        out_shape=jax.ShapeDtypeStruct((N, Mb, Cp), jnp.bfloat16),
        grid_spec=pltpu.PrefetchScalarGridSpec(
            num_scalar_prefetch=0,
            grid=(N // NB,),
            in_specs=[
                pl.BlockSpec((NB, Rp, Cp), lambda n: (n, 0, 0)),     # x frames
                pl.BlockSpec((9, Cp, Cp), lambda n: (0, 0, 0)),      # conv1 weights
                pl.BlockSpec((1, Cp), lambda n: (0, 0)),             # bn1 scale
                pl.BlockSpec((1, Cp), lambda n: (0, 0)),             # bn1 bias
                pl.BlockSpec((9, Cp, Cp), lambda n: (0, 0, 0)),      # conv2 weights
                pl.BlockSpec((1, Cp), lambda n: (0, 0)),             # bn2 scale
                pl.BlockSpec((1, Cp), lambda n: (0, 0)),             # bn2 bias
                pl.BlockSpec((Mb, 1), lambda n: (0, 0)),             # column mask
            ],
            out_specs=pl.BlockSpec((NB, Mb, Cp), lambda n: (n, 0, 0)),
            scratch_shapes=[
                pltpu.VMEM((NB, Rp, Cp), jnp.bfloat16),   # staged h1 frame
                pltpu.VMEM((Mb, Cp), jnp.float32),        # shared f32 accumulator
            ],
        ),
        compiler_params=pltpu.CompilerParams(
            dimension_semantics=("parallel",),
            vmem_limit_bytes=64 * 1024 * 1024,
        ),
    )(xflat, w1, s1, b1, w2, s2, b2, mask)

    # Flat padded bf16 -> NCHW f32 (demo/interface glue only; skip when chaining).
    out = out_flat.reshape(N, H, Wp, Cp)[:, :, cl:cl + W, :C]
    return jnp.transpose(out, (0, 3, 1, 2)).astype(jnp.float32)


# ---------------------------------------------------------------------------
# References (pure JAX, NCHW lax conv)
# ---------------------------------------------------------------------------
def _bn_ref(x, g, b, m, v, eps=1e-5):
    shp = (1, -1, 1, 1)
    return (x - m.reshape(shp)) / jnp.sqrt(v.reshape(shp) + eps) * g.reshape(shp) + b.reshape(shp)


def reference_forward(x, p):
    """Exact module semantics (f32)."""
    dn = ("NCHW", "OIHW", "NCHW")
    h = lax.conv_general_dilated(x, p["conv1_w"], (1, 1), ((1, 1), (1, 1)),
                                 dimension_numbers=dn)
    h = jax.nn.relu(_bn_ref(h, p["bn1_g"], p["bn1_b"], p["bn1_m"], p["bn1_v"]))
    h = lax.conv_general_dilated(h, p["conv2_w"], (1, 1), ((1, 1), (1, 1)),
                                 dimension_numbers=dn)
    h = _bn_ref(h, p["bn2_g"], p["bn2_b"], p["bn2_m"], p["bn2_v"])
    return jax.nn.relu(h + x)


def reference_forward_matched(x, p):
    """Mirrors the kernel's precision: bf16 inputs/weights/intermediate/output,
    f32 accumulation, folded BN."""
    dn = ("NCHW", "OIHW", "NCHW")
    bf = lambda a: a.astype(jnp.bfloat16).astype(jnp.float32)
    shp = (1, -1, 1, 1)
    xb = bf(x)
    s1, b1 = _fold_bn(p["bn1_g"], p["bn1_b"], p["bn1_m"], p["bn1_v"])
    s2, b2 = _fold_bn(p["bn2_g"], p["bn2_b"], p["bn2_m"], p["bn2_v"])
    h = lax.conv_general_dilated(xb, bf(p["conv1_w"]), (1, 1), ((1, 1), (1, 1)),
                                 dimension_numbers=dn)
    h = jax.nn.relu(h * s1.reshape(shp) + b1.reshape(shp))
    h = bf(h)
    h = lax.conv_general_dilated(h, bf(p["conv2_w"]), (1, 1), ((1, 1), (1, 1)),
                                 dimension_numbers=dn)
    h = h * s2.reshape(shp) + b2.reshape(shp)
    return bf(jax.nn.relu(h + xb))


# ---------------------------------------------------------------------------
# Deterministic parameter init (shapes from BasicBlock.__init__)
# ---------------------------------------------------------------------------
def init_params(key, inplanes, planes):
    ks = jax.random.split(key, 10)
    f32 = jnp.float32

    def bn(kg, kb, km, kv, c):
        return (jax.random.uniform(kg, (c,), f32, 0.8, 1.2),
                0.1 * jax.random.normal(kb, (c,), f32),
                0.1 * jax.random.normal(km, (c,), f32),
                jax.random.uniform(kv, (c,), f32, 0.5, 1.5))

    p = {}
    p["conv1_w"] = 0.2 * jax.random.normal(ks[0], (planes, inplanes, 3, 3), f32)
    p["bn1_g"], p["bn1_b"], p["bn1_m"], p["bn1_v"] = bn(ks[1], ks[2], ks[3], ks[4], planes)
    p["conv2_w"] = 0.2 * jax.random.normal(ks[5], (planes, planes, 3, 3), f32)
    p["bn2_g"], p["bn2_b"], p["bn2_m"], p["bn2_v"] = bn(ks[6], ks[7], ks[8], ks[9], planes)
    return p


if __name__ == "__main__":
    key = jax.random.PRNGKey(0)
    k_x, k_p = jax.random.split(key)

    planes = 16
    inplanes = planes                      # expansion=1, identity residual
    N, H, W = 2, 16, 16

    x = jax.random.normal(k_x, (N, inplanes, H, W), jnp.float32)
    params = init_params(k_p, inplanes, planes)

    fwd = jax.jit(basic_block_forward)
    out = jax.block_until_ready(fwd(x, params))
    assert out.shape == (N, inplanes, H, W)

    # Check vs a precision-matched reference (bf16 in/weights/intermediate/out,
    # f32 accumulation).  Norm-relative metric is robust to isolated bf16
    # rounding-boundary flips caused by different accumulation orders.
    ref_m = jax.block_until_ready(reference_forward_matched(x, params))
    rel_m = float(jnp.linalg.norm(out - ref_m) / (jnp.linalg.norm(ref_m) + 1e-6))
    assert rel_m < 1e-2, rel_m

    # Loose sanity check vs the pure-f32 module semantics.
    ref_f = jax.block_until_ready(reference_forward(x, params))
    rel_f = float(jnp.linalg.norm(out - ref_f) / (jnp.linalg.norm(ref_f) + 1e-6))
    assert rel_f < 5e-2, rel_f

    print("KERNEL_OK")
</pallas_src>

<mosaic_0001>
module attributes {stable_mosaic.version = 11 : i64} {
  func.func @kernel(%arg0: i32, %arg1: memref<1x480x128xbf16, #tpu.memory_space<vmem>>, %arg2: memref<9x128x128xbf16, #tpu.memory_space<vmem>>, %arg3: memref<1x128xf32, #tpu.memory_space<vmem>>, %arg4: memref<1x128xf32, #tpu.memory_space<vmem>>, %arg5: memref<9x128x128xbf16, #tpu.memory_space<vmem>>, %arg6: memref<1x128xf32, #tpu.memory_space<vmem>>, %arg7: memref<1x128xf32, #tpu.memory_space<vmem>>, %arg8: memref<384x1xf32, #tpu.memory_space<vmem>>, %arg9: memref<1x384x128xbf16, #tpu.memory_space<vmem>>, %arg10: memref<1x480x128xbf16, #tpu.memory_space<vmem>>, %arg11: memref<384x128xf32, #tpu.memory_space<vmem>>) attributes {dimension_semantics = [#tpu.dimension_semantics<parallel>], iteration_bounds = array<i64: 2>, scalar_prefetch = 0 : i64, scratch_operands = 2 : i64, tpu.core_type = #tpu.core_type<tc>, window_params = [{transform_indices = @transform_0, window_bounds = array<i64: 1, 480, 128>}, {pipeline_mode = #tpu.pipeline_mode<synchronous>, transform_indices = @transform_1, window_bounds = array<i64: 9, 128, 128>}, {pipeline_mode = #tpu.pipeline_mode<synchronous>, transform_indices = @transform_2, window_bounds = array<i64: 1, 128>}, {pipeline_mode = #tpu.pipeline_mode<synchronous>, transform_indices = @transform_3, window_bounds = array<i64: 1, 128>}, {pipeline_mode = #tpu.pipeline_mode<synchronous>, transform_indices = @transform_4, window_bounds = array<i64: 9, 128, 128>}, {pipeline_mode = #tpu.pipeline_mode<synchronous>, transform_indices = @transform_5, window_bounds = array<i64: 1, 128>}, {pipeline_mode = #tpu.pipeline_mode<synchronous>, transform_indices = @transform_6, window_bounds = array<i64: 1, 128>}, {pipeline_mode = #tpu.pipeline_mode<synchronous>, transform_indices = @transform_7, window_bounds = array<i64: 384, 1>}, {transform_indices = @transform_8, window_bounds = array<i64: 1, 384, 128>}]} {
    %c0 = arith.constant 0 : index
    %c0_0 = arith.constant 0 : index
    %0 = vector.load %arg3[%c0, %c0_0] : memref<1x128xf32, #tpu.memory_space<vmem>>, vector<1x128xf32>
    %c0_1 = arith.constant 0 : index
    %c0_2 = arith.constant 0 : index
    %1 = vector.load %arg4[%c0_1, %c0_2] : memref<1x128xf32, #tpu.memory_space<vmem>>, vector<1x128xf32>
    %c0_3 = arith.constant 0 : index
    %c0_4 = arith.constant 0 : index
    %2 = vector.load %arg6[%c0_3, %c0_4] : memref<1x128xf32, #tpu.memory_space<vmem>>, vector<1x128xf32>
    %c0_5 = arith.constant 0 : index
    %c0_6 = arith.constant 0 : index
    %3 = vector.load %arg7[%c0_5, %c0_6] : memref<1x128xf32, #tpu.memory_space<vmem>>, vector<1x128xf32>
    %c0_7 = arith.constant 0 : index
    %c0_8 = arith.constant 0 : index
    %4 = vector.load %arg8[%c0_7, %c0_8] : memref<384x1xf32, #tpu.memory_space<vmem>>, vector<384x1xf32>
    %cst = arith.constant 0.000000e+00 : bf16
    %5 = vector.broadcast %cst : bf16 to vector<48x128xbf16>
    %c0_9 = arith.constant 0 : index
    %c0_10 = arith.constant 0 : index
    %c0_11 = arith.constant 0 : index
    %6 = vector.load %arg10[%c0_9, %c0_10, %c0_11] : memref<1x480x128xbf16, #tpu.memory_space<vmem>>, vector<1x48x128xbf16>
    %7 = vector.shape_cast %6 : vector<1x48x128xbf16> to vector<48x128xbf16>
    %8 = vector.shape_cast %5 : vector<48x128xbf16> to vector<1x48x128xbf16>
    tpu.vector_store %arg10[%c0_9, %c0_10, %c0_11], %8 {strides = array<i32>} : memref<1x480x128xbf16, #tpu.memory_space<vmem>>, vector<1x48x128xbf16>,
    %c0_12 = arith.constant 0 : index
    %c432 = arith.constant 432 : index
    %c0_13 = arith.constant 0 : index
    %9 = vector.load %arg10[%c0_12, %c432, %c0_13] : memref<1x480x128xbf16, #tpu.memory_space<vmem>>, vector<1x48x128xbf16>
    %10 = vector.shape_cast %9 : vector<1x48x128xbf16> to vector<48x128xbf16>
    %11 = vector.shape_cast %5 : vector<48x128xbf16> to vector<1x48x128xbf16>
    tpu.vector_store %arg10[%c0_12, %c432, %c0_13], %11 {strides = array<i32>} : memref<1x480x128xbf16, #tpu.memory_space<vmem>>, vector<1x48x128xbf16>,
    %c0_14 = arith.constant 0 : index
    %c48 = arith.constant 48 : index
    %c0_15 = arith.constant 0 : index
    %12 = vector.load %arg1[%c0_14, %c48, %c0_15] : memref<1x480x128xbf16, #tpu.memory_space<vmem>>, vector<1x384x128xbf16>
    %13 = vector.shape_cast %12 : vector<1x384x128xbf16> to vector<384x128xbf16>
    %c4 = arith.constant 4 : index
    %c0_16 = arith.constant 0 : index
    %c0_17 = arith.constant 0 : index
    %14 = vector.load %arg2[%c4, %c0_16, %c0_17] : memref<9x128x128xbf16, #tpu.memory_space<vmem>>, vector<1x128x128xbf16>
    %15 = vector.shape_cast %14 : vector<1x128x128xbf16> to vector<128x128xbf16>
    %cst_18 = arith.constant dense<0.000000e+00> : vector<384x128xf32>
    %16 = tpu.matmul %13, %15, %cst_18 {dimension_numbers = #tpu.dot_dimension_numbers<[1], [0], [0], [1], [0, 0, 1, 1], [], []>} : vector<384x128xbf16>, vector<128x128xbf16>, vector<384x128xf32> -> vector<384x128xf32>
    %c0_19 = arith.constant 0 : index
    %c0_20 = arith.constant 0 : index
    %17 = vector.load %arg11[%c0_19, %c0_20] : memref<384x128xf32, #tpu.memory_space<vmem>>, vector<384x128xf32>
    tpu.vector_store %arg11[%c0_19, %c0_20], %16 {strides = array<i32>} : memref<384x128xf32, #tpu.memory_space<vmem>>, vector<384x128xf32>,
    %c0_21 = arith.constant 0 : index
    %c0_22 = arith.constant 0 : index
    %18 = vector.load %arg11[%c0_21, %c0_22] : memref<384x128xf32, #tpu.memory_space<vmem>>, vector<384x128xf32>
    %c0_23 = arith.constant 0 : index
    %c23 = arith.constant 23 : index
    %c0_24 = arith.constant 0 : index
    %19 = vector.load %arg1[%c0_23, %c23, %c0_24] : memref<1x480x128xbf16, #tpu.memory_space<vmem>>, vector<1x384x128xbf16>
    %20 = vector.shape_cast %19 : vector<1x384x128xbf16> to vector<384x128xbf16>
    %c0_25 = arith.constant 0 : index
    %c0_26 = arith.constant 0 : index
    %c0_27 = arith.constant 0 : index
    %21 = vector.load %arg2[%c0_25, %c0_26, %c0_27] : memref<9x128x128xbf16, #tpu.memory_space<vmem>>, vector<1x128x128xbf16>
    %22 = vector.shape_cast %21 : vector<1x128x128xbf16> to vector<128x128xbf16>
    %cst_28 = arith.constant dense<0.000000e+00> : vector<384x128xf32>
    %23 = tpu.matmul %20, %22, %cst_28 {dimension_numbers = #tpu.dot_dimension_numbers<[1], [0], [0], [1], [0, 0, 1, 1], [], []>} : vector<384x128xbf16>, vector<128x128xbf16>, vector<384x128xf32> -> vector<384x128xf32>
    %24 = arith.addf %18, %23 : vector<384x128xf32>
    %c0_29 = arith.constant 0 : index
    %c0_30 = arith.constant 0 : index
    %25 = vector.load %arg11[%c0_29, %c0_30] : memref<384x128xf32, #tpu.memory_space<vmem>>, vector<384x128xf32>
    tpu.vector_store %arg11[%c0_29, %c0_30], %24 {strides = array<i32>} : memref<384x128xf32, #tpu.memory_space<vmem>>, vector<384x128xf32>,
    %c0_31 = arith.constant 0 : index
    %c0_32 = arith.constant 0 : index
    %26 = vector.load %arg11[%c0_31, %c0_32] : memref<384x128xf32, #tpu.memory_space<vmem>>, vector<384x128xf32>
    %c0_33 = arith.constant 0 : index
    %c24 = arith.constant 24 : index
    %c0_34 = arith.constant 0 : index
    %27 = vector.load %arg1[%c0_33, %c24, %c0_34] : memref<1x480x128xbf16, #tpu.memory_space<vmem>>, vector<1x384x128xbf16>
    %28 = vector.shape_cast %27 : vector<1x384x128xbf16> to vector<384x128xbf16>
    %c1 = arith.constant 1 : index
    %c0_35 = arith.constant 0 : index
    %c0_36 = arith.constant 0 : index
    %29 = vector.load %arg2[%c1, %c0_35, %c0_36] : memref<9x128x128xbf16, #tpu.memory_space<vmem>>, vector<1x128x128xbf16>
    %30 = vector.shape_cast %29 : vector<1x128x128xbf16> to vector<128x128xbf16>
    %cst_37 = arith.constant dense<0.000000e+00> : vector<384x128xf32>
    %31 = tpu.matmul %28, %30, %cst_37 {dimension_numbers = #tpu.dot_dimension_numbers<[1], [0], [0], [1], [0, 0, 1, 1], [], []>} : vector<384x128xbf16>, vector<128x128xbf16>, vector<384x128xf32> -> vector<384x128xf32>
    %32 = arith.addf %26, %31 : vector<384x128xf32>
    %c0_38 = arith.constant 0 : index
    %c0_39 = arith.constant 0 : index
    %33 = vector.load %arg11[%c0_38, %c0_39] : memref<384x128xf32, #tpu.memory_space<vmem>>, vector<384x128xf32>
    tpu.vector_store %arg11[%c0_38, %c0_39], %32 {strides = array<i32>} : memref<384x128xf32, #tpu.memory_space<vmem>>, vector<384x128xf32>,
    %c0_40 = arith.constant 0 : index
    %c0_41 = arith.constant 0 : index
    %34 = vector.load %arg11[%c0_40, %c0_41] : memref<384x128xf32, #tpu.memory_space<vmem>>, vector<384x128xf32>
    %c0_42 = arith.constant 0 : index
    %c25 = arith.constant 25 : index
    %c0_43 = arith.constant 0 : index
    %35 = vector.load %arg1[%c0_42, %c25, %c0_43] : memref<1x480x128xbf16, #tpu.memory_space<vmem>>, vector<1x384x128xbf16>
    %36 = vector.shape_cast %35 : vector<1x384x128xbf16> to vector<384x128xbf16>
    %c2 = arith.constant 2 : index
    %c0_44 = arith.constant 0 : index
    %c0_45 = arith.constant 0 : index
    %37 = vector.load %arg2[%c2, %c0_44, %c0_45] : memref<9x128x128xbf16, #tpu.memory_space<vmem>>, vector<1x128x128xbf16>
    %38 = vector.shape_cast %37 : vector<1x128x128xbf16> to vector<128x128xbf16>
    %cst_46 = arith.constant dense<0.000000e+00> : vector<384x128xf32>
    %39 = tpu.matmul %36, %38, %cst_46 {dimension_numbers = #tpu.dot_dimension_numbers<[1], [0], [0], [1], [0, 0, 1, 1], [], []>} : vector<384x128xbf16>, vector<128x128xbf16>, vector<384x128xf32> -> vector<384x128xf32>
    %40 = arith.addf %34, %39 : vector<384x128xf32>
    %c0_47 = arith.constant 0 : index
    %c0_48 = arith.constant 0 : index
    %41 = vector.load %arg11[%c0_47, %c0_48] : memref<384x128xf32, #tpu.memory_space<vmem>>, vector<384x128xf32>
    tpu.vector_store %arg11[%c0_47, %c0_48], %40 {strides = array<i32>} : memref<384x128xf32, #tpu.memory_space<vmem>>, vector<384x128xf32>,
    %c0_49 = arith.constant 0 : index
    %c0_50 = arith.constant 0 : index
    %42 = vector.load %arg11[%c0_49, %c0_50] : memref<384x128xf32, #tpu.memory_space<vmem>>, vector<384x128xf32>
    %c0_51 = arith.constant 0 : index
    %c47 = arith.constant 47 : index
    %c0_52 = arith.constant 0 : index
    %43 = vector.load %arg1[%c0_51, %c47, %c0_52] : memref<1x480x128xbf16, #tpu.memory_space<vmem>>, vector<1x384x128xbf16>
    %44 = vector.shape_cast %43 : vector<1x384x128xbf16> to vector<384x128xbf16>
    %c3 = arith.constant 3 : index
    %c0_53 = arith.constant 0 : index
    %c0_54 = arith.constant 0 : index
    %45 = vector.load %arg2[%c3, %c0_53, %c0_54] : memref<9x128x128xbf16, #tpu.memory_space<vmem>>, vector<1x128x128xbf16>
    %46 = vector.shape_cast %45 : vector<1x128x128xbf16> to vector<128x128xbf16>
    %cst_55 = arith.constant dense<0.000000e+00> : vector<384x128xf32>
    %47 = tpu.matmul %44, %46, %cst_55 {dimension_numbers = #tpu.dot_dimension_numbers<[1], [0], [0], [1], [0, 0, 1, 1], [], []>} : vector<384x128xbf16>, vector<128x128xbf16>, vector<384x128xf32> -> vector<384x128xf32>
    %48 = arith.addf %42, %47 : vector<384x128xf32>
    %c0_56 = arith.constant 0 : index
    %c0_57 = arith.constant 0 : index
    %49 = vector.load %arg11[%c0_56, %c0_57] : memref<384x128xf32, #tpu.memory_space<vmem>>, vector<384x128xf32>
    tpu.vector_store %arg11[%c0_56, %c0_57], %48 {strides = array<i32>} : memref<384x128xf32, #tpu.memory_space<vmem>>, vector<384x128xf32>,
    %c0_58 = arith.constant 0 : index
    %c0_59 = arith.constant 0 : index
    %50 = vector.load %arg11[%c0_58, %c0_59] : memref<384x128xf32, #tpu.memory_space<vmem>>, vector<384x128xf32>
    %c0_60 = arith.constant 0 : index
    %c49 = arith.constant 49 : index
    %c0_61 = arith.constant 0 : index
    %51 = vector.load %arg1[%c0_60, %c49, %c0_61] : memref<1x480x128xbf16, #tpu.memory_space<vmem>>, vector<1x384x128xbf16>
    %52 = vector.shape_cast %51 : vector<1x384x128xbf16> to vector<384x128xbf16>
    %c5 = arith.constant 5 : index
    %c0_62 = arith.constant 0 : index
    %c0_63 = arith.constant 0 : index
    %53 = vector.load %arg2[%c5, %c0_62, %c0_63] : memref<9x128x128xbf16, #tpu.memory_space<vmem>>, vector<1x128x128xbf16>
    %54 = vector.shape_cast %53 : vector<1x128x128xbf16> to vector<128x128xbf16>
    %cst_64 = arith.constant dense<0.000000e+00> : vector<384x128xf32>
    %55 = tpu.matmul %52, %54, %cst_64 {dimension_numbers = #tpu.dot_dimension_numbers<[1], [0], [0], [1], [0, 0, 1, 1], [], []>} : vector<384x128xbf16>, vector<128x128xbf16>, vector<384x128xf32> -> vector<384x128xf32>
    %56 = arith.addf %50, %55 : vector<384x128xf32>
    %c0_65 = arith.constant 0 : index
    %c0_66 = arith.constant 0 : index
    %57 = vector.load %arg11[%c0_65, %c0_66] : memref<384x128xf32, #tpu.memory_space<vmem>>, vector<384x128xf32>
    tpu.vector_store %arg11[%c0_65, %c0_66], %56 {strides = array<i32>} : memref<384x128xf32, #tpu.memory_space<vmem>>, vector<384x128xf32>,
    %c0_67 = arith.constant 0 : index
    %c0_68 = arith.constant 0 : index
    %58 = vector.load %arg11[%c0_67, %c0_68] : memref<384x128xf32, #tpu.memory_space<vmem>>, vector<384x128xf32>
    %c0_69 = arith.constant 0 : index
    %c71 = arith.constant 71 : index
    %c0_70 = arith.constant 0 : index
    %59 = vector.load %arg1[%c0_69, %c71, %c0_70] : memref<1x480x128xbf16, #tpu.memory_space<vmem>>, vector<1x384x128xbf16>
    %60 = vector.shape_cast %59 : vector<1x384x128xbf16> to vector<384x128xbf16>
    %c6 = arith.constant 6 : index
    %c0_71 = arith.constant 0 : index
    %c0_72 = arith.constant 0 : index
    %61 = vector.load %arg2[%c6, %c0_71, %c0_72] : memref<9x128x128xbf16, #tpu.memory_space<vmem>>, vector<1x128x128xbf16>
    %62 = vector.shape_cast %61 : vector<1x128x128xbf16> to vector<128x128xbf16>
    %cst_73 = arith.constant dense<0.000000e+00> : vector<384x128xf32>
    %63 = tpu.matmul %60, %62, %cst_73 {dimension_numbers = #tpu.dot_dimension_numbers<[1], [0], [0], [1], [0, 0, 1, 1], [], []>} : vector<384x128xbf16>, vector<128x128xbf16>, vector<384x128xf32> -> vector<384x128xf32>
    %64 = arith.addf %58, %63 : vector<384x128xf32>
    %c0_74 = arith.constant 0 : index
    %c0_75 = arith.constant 0 : index
    %65 = vector.load %arg11[%c0_74, %c0_75] : memref<384x128xf32, #tpu.memory_space<vmem>>, vector<384x128xf32>
    tpu.vector_store %arg11[%c0_74, %c0_75], %64 {strides = array<i32>} : memref<384x128xf32, #tpu.memory_space<vmem>>, vector<384x128xf32>,
    %c0_76 = arith.constant 0 : index
    %c0_77 = arith.constant 0 : index
    %66 = vector.load %arg11[%c0_76, %c0_77] : memref<384x128xf32, #tpu.memory_space<vmem>>, vector<384x128xf32>
    %c0_78 = arith.constant 0 : index
    %c72 = arith.constant 72 : index
    %c0_79 = arith.constant 0 : index
    %67 = vector.load %arg1[%c0_78, %c72, %c0_79] : memref<1x480x128xbf16, #tpu.memory_space<vmem>>, vector<1x384x128xbf16>
    %68 = vector.shape_cast %67 : vector<1x384x128xbf16> to vector<384x128xbf16>
    %c7 = arith.constant 7 : index
    %c0_80 = arith.constant 0 : index
    %c0_81 = arith.constant 0 : index
    %69 = vector.load %arg2[%c7, %c0_80, %c0_81] : memref<9x128x128xbf16, #tpu.memory_space<vmem>>, vector<1x128x128xbf16>
    %70 = vector.shape_cast %69 : vector<1x128x128xbf16> to vector<128x128xbf16>
    %cst_82 = arith.constant dense<0.000000e+00> : vector<384x128xf32>
    %71 = tpu.matmul %68, %70, %cst_82 {dimension_numbers = #tpu.dot_dimension_numbers<[1], [0], [0], [1], [0, 0, 1, 1], [], []>} : vector<384x128xbf16>, vector<128x128xbf16>, vector<384x128xf32> -> vector<384x128xf32>
    %72 = arith.addf %66, %71 : vector<384x128xf32>
    %c0_83 = arith.constant 0 : index
    %c0_84 = arith.constant 0 : index
    %73 = vector.load %arg11[%c0_83, %c0_84] : memref<384x128xf32, #tpu.memory_space<vmem>>, vector<384x128xf32>
    tpu.vector_store %arg11[%c0_83, %c0_84], %72 {strides = array<i32>} : memref<384x128xf32, #tpu.memory_space<vmem>>, vector<384x128xf32>,
    %c0_85 = arith.constant 0 : index
    %c0_86 = arith.constant 0 : index
    %74 = vector.load %arg11[%c0_85, %c0_86] : memref<384x128xf32, #tpu.memory_space<vmem>>, vector<384x128xf32>
    %c0_87 = arith.constant 0 : index
    %c73 = arith.constant 73 : index
    %c0_88 = arith.constant 0 : index
    %75 = vector.load %arg1[%c0_87, %c73, %c0_88] : memref<1x480x128xbf16, #tpu.memory_space<vmem>>, vector<1x384x128xbf16>
    %76 = vector.shape_cast %75 : vector<1x384x128xbf16> to vector<384x128xbf16>
    %c8 = arith.constant 8 : index
    %c0_89 = arith.constant 0 : index
    %c0_90 = arith.constant 0 : index
    %77 = vector.load %arg2[%c8, %c0_89, %c0_90] : memref<9x128x128xbf16, #tpu.memory_space<vmem>>, vector<1x128x128xbf16>
    %78 = vector.shape_cast %77 : vector<1x128x128xbf16> to vector<128x128xbf16>
    %cst_91 = arith.constant dense<0.000000e+00> : vector<384x128xf32>
    %79 = tpu.matmul %76, %78, %cst_91 {dimension_numbers = #tpu.dot_dimension_numbers<[1], [0], [0], [1], [0, 0, 1, 1], [], []>} : vector<384x128xbf16>, vector<128x128xbf16>, vector<384x128xf32> -> vector<384x128xf32>
    %80 = arith.addf %74, %79 : vector<384x128xf32>
    %c0_92 = arith.constant 0 : index
    %c0_93 = arith.constant 0 : index
    %81 = vector.load %arg11[%c0_92, %c0_93] : memref<384x128xf32, #tpu.memory_space<vmem>>, vector<384x128xf32>
    tpu.vector_store %arg11[%c0_92, %c0_93], %80 {strides = array<i32>} : memref<384x128xf32, #tpu.memory_space<vmem>>, vector<384x128xf32>,
    %c0_94 = arith.constant 0 : index
    %c0_95 = arith.constant 0 : index
    %82 = vector.load %arg11[%c0_94, %c0_95] : memref<384x128xf32, #tpu.memory_space<vmem>>, vector<384x128xf32>
    %83 = vector.broadcast %0 : vector<1x128xf32> to vector<384x128xf32>
    %84 = arith.mulf %82, %83 : vector<384x128xf32>
    %85 = vector.broadcast %1 : vector<1x128xf32> to vector<384x128xf32>
    %86 = arith.addf %84, %85 : vector<384x128xf32>
    %cst_96 = arith.constant 0.000000e+00 : f32
    %87 = vector.broadcast %cst_96 : f32 to vector<384x128xf32>
    %88 = arith.maximumf %86, %87 : vector<384x128xf32>
    %89 = vector.broadcast %4 : vector<384x1xf32> to vector<384x128xf32>
    %90 = arith.mulf %88, %89 : vector<384x128xf32>
    %91 = arith.truncf %90 : vector<384x128xf32> to vector<384x128xbf16>
    %c0_97 = arith.constant 0 : index
    %c48_98 = arith.constant 48 : index
    %c0_99 = arith.constant 0 : index
    %92 = vector.load %arg10[%c0_97, %c48_98, %c0_99] : memref<1x480x128xbf16, #tpu.memory_space<vmem>>, vector<1x384x128xbf16>
    %93 = vector.shape_cast %92 : vector<1x384x128xbf16> to vector<384x128xbf16>
    %94 = vector.shape_cast %91 : vector<384x128xbf16> to vector<1x384x128xbf16>
    tpu.vector_store %arg10[%c0_97, %c48_98, %c0_99], %94 {strides = array<i32>} : memref<1x480x128xbf16, #tpu.memory_space<vmem>>, vector<1x384x128xbf16>,
    %c4_100 = arith.constant 4 : index
    %c0_101 = arith.constant 0 : index
    %c0_102 = arith.constant 0 : index
    %95 = vector.load %arg5[%c4_100, %c0_101, %c0_102] : memref<9x128x128xbf16, #tpu.memory_space<vmem>>, vector<1x128x128xbf16>
    %96 = vector.shape_cast %95 : vector<1x128x128xbf16> to vector<128x128xbf16>
    %cst_103 = arith.constant dense<0.000000e+00> : vector<384x128xf32>
    %97 = tpu.matmul %91, %96, %cst_103 {dimension_numbers = #tpu.dot_dimension_numbers<[1], [0], [0], [1], [0, 0, 1, 1], [], []>} : vector<384x128xbf16>, vector<128x128xbf16>, vector<384x128xf32> -> vector<384x128xf32>
    %c0_104 = arith.constant 0 : index
    %c0_105 = arith.constant 0 : index
    %98 = vector.load %arg11[%c0_104, %c0_105] : memref<384x128xf32, #tpu.memory_space<vmem>>, vector<384x128xf32>
    tpu.vector_store %arg11[%c0_104, %c0_105], %97 {strides = array<i32>} : memref<384x128xf32, #tpu.memory_space<vmem>>, vector<384x128xf32>,
    %c0_106 = arith.constant 0 : index
    %c0_107 = arith.constant 0 : index
    %99 = vector.load %arg11[%c0_106, %c0_107] : memref<384x128xf32, #tpu.memory_space<vmem>>, vector<384x128xf32>
    %c0_108 = arith.constant 0 : index
    %c23_109 = arith.constant 23 : index
    %c0_110 = arith.constant 0 : index
    %100 = vector.load %arg10[%c0_108, %c23_109, %c0_110] : memref<1x480x128xbf16, #tpu.memory_space<vmem>>, vector<1x384x128xbf16>
    %101 = vector.shape_cast %100 : vector<1x384x128xbf16> to vector<384x128xbf16>
    %c0_111 = arith.constant 0 : index
    %c0_112 = arith.constant 0 : index
    %c0_113 = arith.constant 0 : index
    %102 = vector.load %arg5[%c0_111, %c0_112, %c0_113] : memref<9x128x128xbf16, #tpu.memory_space<vmem>>, vector<1x128x128xbf16>
    %103 = vector.shape_cast %102 : vector<1x128x128xbf16> to vector<128x128xbf16>
    %cst_114 = arith.constant dense<0.000000e+00> : vector<384x128xf32>
    %104 = tpu.matmul %101, %103, %cst_114 {dimension_numbers = #tpu.dot_dimension_numbers<[1], [0], [0], [1], [0, 0, 1, 1], [], []>} : vector<384x128xbf16>, vector<128x128xbf16>, vector<384x128xf32> -> vector<384x128xf32>
    %105 = arith.addf %99, %104 : vector<384x128xf32>
    %c0_115 = arith.constant 0 : index
    %c0_116 = arith.constant 0 : index
    %106 = vector.load %arg11[%c0_115, %c0_116] : memref<384x128xf32, #tpu.memory_space<vmem>>, vector<384x128xf32>
    tpu.vector_store %arg11[%c0_115, %c0_116], %105 {strides = array<i32>} : memref<384x128xf32, #tpu.memory_space<vmem>>, vector<384x128xf32>,
    %c0_117 = arith.constant 0 : index
    %c0_118 = arith.constant 0 : index
    %107 = vector.load %arg11[%c0_117, %c0_118] : memref<384x128xf32, #tpu.memory_space<vmem>>, vector<384x128xf32>
    %c0_119 = arith.constant 0 : index
    %c24_120 = arith.constant 24 : index
    %c0_121 = arith.constant 0 : index
    %108 = vector.load %arg10[%c0_119, %c24_120, %c0_121] : memref<1x480x128xbf16, #tpu.memory_space<vmem>>, vector<1x384x128xbf16>
    %109 = vector.shape_cast %108 : vector<1x384x128xbf16> to vector<384x128xbf16>
    %c1_122 = arith.constant 1 : index
    %c0_123 = arith.constant 0 : index
    %c0_124 = arith.constant 0 : index
    %110 = vector.load %arg5[%c1_122, %c0_123, %c0_124] : memref<9x128x128xbf16, #tpu.memory_space<vmem>>, vector<1x128x128xbf16>
    %111 = vector.shape_cast %110 : vector<1x128x128xbf16> to vector<128x128xbf16>
    %cst_125 = arith.constant dense<0.000000e+00> : vector<384x128xf32>
    %112 = tpu.matmul %109, %111, %cst_125 {dimension_numbers = #tpu.dot_dimension_numbers<[1], [0], [0], [1], [0, 0, 1, 1], [], []>} : vector<384x128xbf16>, vector<128x128xbf16>, vector<384x128xf32> -> vector<384x128xf32>
    %113 = arith.addf %107, %112 : vector<384x128xf32>
    %c0_126 = arith.constant 0 : index
    %c0_127 = arith.constant 0 : index
    %114 = vector.load %arg11[%c0_126, %c0_127] : memref<384x128xf32, #tpu.memory_space<vmem>>, vector<384x128xf32>
    tpu.vector_store %arg11[%c0_126, %c0_127], %113 {strides = array<i32>} : memref<384x128xf32, #tpu.memory_space<vmem>>, vector<384x128xf32>,
    %c0_128 = arith.constant 0 : index
    %c0_129 = arith.constant 0 : index
    %115 = vector.load %arg11[%c0_128, %c0_129] : memref<384x128xf32, #tpu.memory_space<vmem>>, vector<384x128xf32>
    %c0_130 = arith.constant 0 : index
    %c25_131 = arith.constant 25 : index
    %c0_132 = arith.constant 0 : index
    %116 = vector.load %arg10[%c0_130, %c25_131, %c0_132] : memref<1x480x128xbf16, #tpu.memory_space<vmem>>, vector<1x384x128xbf16>
    %117 = vector.shape_cast %116 : vector<1x384x128xbf16> to vector<384x128xbf16>
    %c2_133 = arith.constant 2 : index
    %c0_134 = arith.constant 0 : index
    %c0_135 = arith.constant 0 : index
    %118 = vector.load %arg5[%c2_133, %c0_134, %c0_135] : memref<9x128x128xbf16, #tpu.memory_space<vmem>>, vector<1x128x128xbf16>
    %119 = vector.shape_cast %118 : vector<1x128x128xbf16> to vector<128x128xbf16>
    %cst_136 = arith.constant dense<0.000000e+00> : vector<384x128xf32>
    %120 = tpu.matmul %117, %119, %cst_136 {dimension_numbers = #tpu.dot_dimension_numbers<[1], [0], [0], [1], [0, 0, 1, 1], [], []>} : vector<384x128xbf16>, vector<128x128xbf16>, vector<384x128xf32> -> vector<384x128xf32>
    %121 = arith.addf %115, %120 : vector<384x128xf32>
    %c0_137 = arith.constant 0 : index
    %c0_138 = arith.constant 0 : index
    %122 = vector.load %arg11[%c0_137, %c0_138] : memref<384x128xf32, #tpu.memory_space<vmem>>, vector<384x128xf32>
    tpu.vector_store %arg11[%c0_137, %c0_138], %121 {strides = array<i32>} : memref<384x128xf32, #tpu.memory_space<vmem>>, vector<384x128xf32>,
    %c0_139 = arith.constant 0 : index
    %c0_140 = arith.constant 0 : index
    %123 = vector.load %arg11[%c0_139, %c0_140] : memref<384x128xf32, #tpu.memory_space<vmem>>, vector<384x128xf32>
    %c0_141 = arith.constant 0 : index
    %c47_142 = arith.constant 47 : index
    %c0_143 = arith.constant 0 : index
    %124 = vector.load %arg10[%c0_141, %c47_142, %c0_143] : memref<1x480x128xbf16, #tpu.memory_space<vmem>>, vector<1x384x128xbf16>
    %125 = vector.shape_cast %124 : vector<1x384x128xbf16> to vector<384x128xbf16>
    %c3_144 = arith.constant 3 : index
    %c0_145 = arith.constant 0 : index
    %c0_146 = arith.constant 0 : index
    %126 = vector.load %arg5[%c3_144, %c0_145, %c0_146] : memref<9x128x128xbf16, #tpu.memory_space<vmem>>, vector<1x128x128xbf16>
    %127 = vector.shape_cast %126 : vector<1x128x128xbf16> to vector<128x128xbf16>
    %cst_147 = arith.constant dense<0.000000e+00> : vector<384x128xf32>
    %128 = tpu.matmul %125, %127, %cst_147 {dimension_numbers = #tpu.dot_dimension_numbers<[1], [0], [0], [1], [0, 0, 1, 1], [], []>} : vector<384x128xbf16>, vector<128x128xbf16>, vector<384x128xf32> -> vector<384x128xf32>
    %129 = arith.addf %123, %128 : vector<384x128xf32>
    %c0_148 = arith.constant 0 : index
    %c0_149 = arith.constant 0 : index
    %130 = vector.load %arg11[%c0_148, %c0_149] : memref<384x128xf32, #tpu.memory_space<vmem>>, vector<384x128xf32>
    tpu.vector_store %arg11[%c0_148, %c0_149], %129 {strides = array<i32>} : memref<384x128xf32, #tpu.memory_space<vmem>>, vector<384x128xf32>,
    %c0_150 = arith.constant 0 : index
    %c0_151 = arith.constant 0 : index
    %131 = vector.load %arg11[%c0_150, %c0_151] : memref<384x128xf32, #tpu.memory_space<vmem>>, vector<384x128xf32>
    %c0_152 = arith.constant 0 : index
    %c49_153 = arith.constant 49 : index
    %c0_154 = arith.constant 0 : index
    %132 = vector.load %arg10[%c0_152, %c49_153, %c0_154] : memref<1x480x128xbf16, #tpu.memory_space<vmem>>, vector<1x384x128xbf16>
    %133 = vector.shape_cast %132 : vector<1x384x128xbf16> to vector<384x128xbf16>
    %c5_155 = arith.constant 5 : index
    %c0_156 = arith.constant 0 : index
    %c0_157 = arith.constant 0 : index
    %134 = vector.load %arg5[%c5_155, %c0_156, %c0_157] : memref<9x128x128xbf16, #tpu.memory_space<vmem>>, vector<1x128x128xbf16>
    %135 = vector.shape_cast %134 : vector<1x128x128xbf16> to vector<128x128xbf16>
    %cst_158 = arith.constant dense<0.000000e+00> : vector<384x128xf32>
    %136 = tpu.matmul %133, %135, %cst_158 {dimension_numbers = #tpu.dot_dimension_numbers<[1], [0], [0], [1], [0, 0, 1, 1], [], []>} : vector<384x128xbf16>, vector<128x128xbf16>, vector<384x128xf32> -> vector<384x128xf32>
    %137 = arith.addf %131, %136 : vector<384x128xf32>
    %c0_159 = arith.constant 0 : index
    %c0_160 = arith.constant 0 : index
    %138 = vector.load %arg11[%c0_159, %c0_160] : memref<384x128xf32, #tpu.memory_space<vmem>>, vector<384x128xf32>
    tpu.vector_store %arg11[%c0_159, %c0_160], %137 {strides = array<i32>} : memref<384x128xf32, #tpu.memory_space<vmem>>, vector<384x128xf32>,
    %c0_161 = arith.constant 0 : index
    %c0_162 = arith.constant 0 : index
    %139 = vector.load %arg11[%c0_161, %c0_162] : memref<384x128xf32, #tpu.memory_space<vmem>>, vector<384x128xf32>
    %c0_163 = arith.constant 0 : index
    %c71_164 = arith.constant 71 : index
    %c0_165 = arith.constant 0 : index
    %140 = vector.load %arg10[%c0_163, %c71_164, %c0_165] : memref<1x480x128xbf16, #tpu.memory_space<vmem>>, vector<1x384x128xbf16>
    %141 = vector.shape_cast %140 : vector<1x384x128xbf16> to vector<384x128xbf16>
    %c6_166 = arith.constant 6 : index
    %c0_167 = arith.constant 0 : index
    %c0_168 = arith.constant 0 : index
    %142 = vector.load %arg5[%c6_166, %c0_167, %c0_168] : memref<9x128x128xbf16, #tpu.memory_space<vmem>>, vector<1x128x128xbf16>
    %143 = vector.shape_cast %142 : vector<1x128x128xbf16> to vector<128x128xbf16>
    %cst_169 = arith.constant dense<0.000000e+00> : vector<384x128xf32>
    %144 = tpu.matmul %141, %143, %cst_169 {dimension_numbers = #tpu.dot_dimension_numbers<[1], [0], [0], [1], [0, 0, 1, 1], [], []>} : vector<384x128xbf16>, vector<128x128xbf16>, vector<384x128xf32> -> vector<384x128xf32>
    %145 = arith.addf %139, %144 : vector<384x128xf32>
    %c0_170 = arith.constant 0 : index
    %c0_171 = arith.constant 0 : index
    %146 = vector.load %arg11[%c0_170, %c0_171] : memref<384x128xf32, #tpu.memory_space<vmem>>, vector<384x128xf32>
    tpu.vector_store %arg11[%c0_170, %c0_171], %145 {strides = array<i32>} : memref<384x128xf32, #tpu.memory_space<vmem>>, vector<384x128xf32>,
    %c0_172 = arith.constant 0 : index
    %c0_173 = arith.constant 0 : index
    %147 = vector.load %arg11[%c0_172, %c0_173] : memref<384x128xf32, #tpu.memory_space<vmem>>, vector<384x128xf32>
    %c0_174 = arith.constant 0 : index
    %c72_175 = arith.constant 72 : index
    %c0_176 = arith.constant 0 : index
    %148 = vector.load %arg10[%c0_174, %c72_175, %c0_176] : memref<1x480x128xbf16, #tpu.memory_space<vmem>>, vector<1x384x128xbf16>
    %149 = vector.shape_cast %148 : vector<1x384x128xbf16> to vector<384x128xbf16>
    %c7_177 = arith.constant 7 : index
    %c0_178 = arith.constant 0 : index
    %c0_179 = arith.constant 0 : index
    %150 = vector.load %arg5[%c7_177, %c0_178, %c0_179] : memref<9x128x128xbf16, #tpu.memory_space<vmem>>, vector<1x128x128xbf16>
    %151 = vector.shape_cast %150 : vector<1x128x128xbf16> to vector<128x128xbf16>
    %cst_180 = arith.constant dense<0.000000e+00> : vector<384x128xf32>
    %152 = tpu.matmul %149, %151, %cst_180 {dimension_numbers = #tpu.dot_dimension_numbers<[1], [0], [0], [1], [0, 0, 1, 1], [], []>} : vector<384x128xbf16>, vector<128x128xbf16>, vector<384x128xf32> -> vector<384x128xf32>
    %153 = arith.addf %147, %152 : vector<384x128xf32>
    %c0_181 = arith.constant 0 : index
    %c0_182 = arith.constant 0 : index
    %154 = vector.load %arg11[%c0_181, %c0_182] : memref<384x128xf32, #tpu.memory_space<vmem>>, vector<384x128xf32>
    tpu.vector_store %arg11[%c0_181, %c0_182], %153 {strides = array<i32>} : memref<384x128xf32, #tpu.memory_space<vmem>>, vector<384x128xf32>,
    %c0_183 = arith.constant 0 : index
    %c0_184 = arith.constant 0 : index
    %155 = vector.load %arg11[%c0_183, %c0_184] : memref<384x128xf32, #tpu.memory_space<vmem>>, vector<384x128xf32>
    %c0_185 = arith.constant 0 : index
    %c73_186 = arith.constant 73 : index
    %c0_187 = arith.constant 0 : index
    %156 = vector.load %arg10[%c0_185, %c73_186, %c0_187] : memref<1x480x128xbf16, #tpu.memory_space<vmem>>, vector<1x384x128xbf16>
    %157 = vector.shape_cast %156 : vector<1x384x128xbf16> to vector<384x128xbf16>
    %c8_188 = arith.constant 8 : index
    %c0_189 = arith.constant 0 : index
    %c0_190 = arith.constant 0 : index
    %158 = vector.load %arg5[%c8_188, %c0_189, %c0_190] : memref<9x128x128xbf16, #tpu.memory_space<vmem>>, vector<1x128x128xbf16>
    %159 = vector.shape_cast %158 : vector<1x128x128xbf16> to vector<128x128xbf16>
    %cst_191 = arith.constant dense<0.000000e+00> : vector<384x128xf32>
    %160 = tpu.matmul %157, %159, %cst_191 {dimension_numbers = #tpu.dot_dimension_numbers<[1], [0], [0], [1], [0, 0, 1, 1], [], []>} : vector<384x128xbf16>, vector<128x128xbf16>, vector<384x128xf32> -> vector<384x128xf32>
    %161 = arith.addf %155, %160 : vector<384x128xf32>
    %c0_192 = arith.constant 0 : index
    %c0_193 = arith.constant 0 : index
    %162 = vector.load %arg11[%c0_192, %c0_193] : memref<384x128xf32, #tpu.memory_space<vmem>>, vector<384x128xf32>
    tpu.vector_store %arg11[%c0_192, %c0_193], %161 {strides = array<i32>} : memref<384x128xf32, #tpu.memory_space<vmem>>, vector<384x128xf32>,
    %c0_194 = arith.constant 0 : index
    %c0_195 = arith.constant 0 : index
    %163 = vector.load %arg11[%c0_194, %c0_195] : memref<384x128xf32, #tpu.memory_space<vmem>>, vector<384x128xf32>
    %164 = vector.broadcast %2 : vector<1x128xf32> to vector<384x128xf32>
    %165 = arith.mulf %163, %164 : vector<384x128xf32>
    %166 = vector.broadcast %3 : vector<1x128xf32> to vector<384x128xf32>
    %167 = arith.addf %165, %166 : vector<384x128xf32>
    %168 = arith.extf %13 : vector<384x128xbf16> to vector<384x128xf32>
    %169 = arith.addf %167, %168 : vector<384x128xf32>
    %cst_196 = arith.constant 0.000000e+00 : f32
    %170 = vector.broadcast %cst_196 : f32 to vector<384x128xf32>
    %171 = arith.maximumf %169, %170 : vector<384x128xf32>
    %172 = arith.truncf %171 : vector<384x128xf32> to vector<384x128xbf16>
    %c0_197 = arith.constant 0 : index
    %c0_198 = arith.constant 0 : index
    %c0_199 = arith.constant 0 : index
    %173 = vector.load %arg9[%c0_197, %c0_198, %c0_199] : memref<1x384x128xbf16, #tpu.memory_space<vmem>>, vector<1x384x128xbf16>
    %174 = vector.shape_cast %173 : vector<1x384x128xbf16> to vector<384x128xbf16>
    %175 = vector.shape_cast %172 : vector<384x128xbf16> to vector<1x384x128xbf16>
    tpu.vector_store %arg9[%c0_197, %c0_198, %c0_199], %175 {strides = array<i32>} : memref<1x384x128xbf16, #tpu.memory_space<vmem>>, vector<1x384x128xbf16>,
    return
  }
  func.func @transform_0(%arg0: i32) -> (i32, i32, i32) {
    %c0_i32 = arith.constant 0 : i32
    %c0_i32_0 = arith.constant 0 : i32
    %c0_i32_1 = arith.constant 0 : i32
    return %arg0, %c0_i32, %c0_i32_0 : i32, i32, i32
  }
  func.func @transform_1(%arg0: i32) -> (i32, i32, i32) {
    %c0_i32 = arith.constant 0 : i32
    %c0_i32_0 = arith.constant 0 : i32
    %c0_i32_1 = arith.constant 0 : i32
    %c0_i32_2 = arith.constant 0 : i32
    return %c0_i32, %c0_i32_0, %c0_i32_1 : i32, i32, i32
  }
  func.func @transform_2(%arg0: i32) -> (i32, i32) {
    %c0_i32 = arith.constant 0 : i32
    %c0_i32_0 = arith.constant 0 : i32
    %c0_i32_1 = arith.constant 0 : i32
    return %c0_i32, %c0_i32_0 : i32, i32
  }
  func.func @transform_3(%arg0: i32) -> (i32, i32) {
    %c0_i32 = arith.constant 0 : i32
    %c0_i32_0 = arith.constant 0 : i32
    %c0_i32_1 = arith.constant 0 : i32
    return %c0_i32, %c0_i32_0 : i32, i32
  }
  func.func @transform_4(%arg0: i32) -> (i32, i32, i32) {
    %c0_i32 = arith.constant 0 : i32
    %c0_i32_0 = arith.constant 0 : i32
    %c0_i32_1 = arith.constant 0 : i32
    %c0_i32_2 = arith.constant 0 : i32
    return %c0_i32, %c0_i32_0, %c0_i32_1 : i32, i32, i32
  }
  func.func @transform_5(%arg0: i32) -> (i32, i32) {
    %c0_i32 = arith.constant 0 : i32
    %c0_i32_0 = arith.constant 0 : i32
    %c0_i32_1 = arith.constant 0 : i32
    return %c0_i32, %c0_i32_0 : i32, i32
  }
  func.func @transform_6(%arg0: i32) -> (i32, i32) {
    %c0_i32 = arith.constant 0 : i32
    %c0_i32_0 = arith.constant 0 : i32
    %c0_i32_1 = arith.constant 0 : i32
    return %c0_i32, %c0_i32_0 : i32, i32
  }
  func.func @transform_7(%arg0: i32) -> (i32, i32) {
    %c0_i32 = arith.constant 0 : i32
    %c0_i32_0 = arith.constant 0 : i32
    %c0_i32_1 = arith.constant 0 : i32
    return %c0_i32, %c0_i32_0 : i32, i32
  }
  func.func @transform_8(%arg0: i32) -> (i32, i32, i32) {
    %c0_i32 = arith.constant 0 : i32
    %c0_i32_0 = arith.constant 0 : i32
    %c0_i32_1 = arith.constant 0 : i32
    return %arg0, %c0_i32, %c0_i32_0 : i32, i32, i32
  }
}

</mosaic_0001>

<bundles_post_ra>
// kernel: tile.8
= control target key start
LH: loop header
LB: loop body
LE: loop exit
PB: predicated region body
PF: predicated region fallthrough
CT: control target
= control target key end

     0   :  { %s28_s0 = inlined_call_operand.vmem [shape: f32[24], index: 0, kind: input, shape index: {}]   ;;  %s29_s1 = inlined_call_operand.vmem [shape: f32[16,24], index: 1, kind: output, shape index: {}]  }
   0x1   :  { %v4_v0 = vld [vmem:[%s28_s0] ss:$0 sm:$0xff] }
   0x2   :  { %5 = vst [vmem:[%s29_s1] sm:$0xff] %v4_v0  ;;  %8 = vst [vmem:[%s29_s1 + $0x8] sm:$0xff] %v4_v0 }

// kernel: tile.0
= control target key start
LH: loop header
LB: loop body
LE: loop exit
PB: predicated region body
PF: predicated region fallthrough
CT: control target
= control target key end

     0   :  { %s821_s8 = smov 126   ;;  %s822_s9 = smov 127   ;;  %vm3_vm0 = vcmask 7168   ;;  %s1630_s0 = inlined_call_operand.vmem [shape: f32[16,24], index: 0, kind: input, shape index: {}]   ;;  %s1631_s1 = inlined_call_operand.vmem [shape: f32[384,1], index: 1, kind: output, shape index: {}]  }
   0x1   :  { %v38_v0 = vld.sshfl [vmem:[%s1630_s0] sm:$0xff pattern:$0x56741230]   ;;  %v604_v1 = vld.sshfl [vmem:[%s1630_s0 + $0x8] sm:$0xff pattern:$0x56741230]  }
   0x2   :  { %39 = vrot.lane.b32.xlu1 %v38_v0, %s821_s8  ;;  %14 = vrot.lane.b32.xlu0 %v38_v0, %s822_s9  ;;  %s823_s12 = smov 125   ;;  %s824_s13 = smov 124   ;;  %v658_v2 = vld.sshfl [vmem:[%s1630_s0 + $0x8] sm:$0xff pattern:$0x67452301]   ;;  %v2_v6 = vld [vmem:[%s1630_s0] sm:$0xff]  }
   0x3   :  { %s825_s14 = smov 123   ;;  %s826_s15 = smov 122   ;;  %v188_v3 = vld.sshfl [vmem:[%s1630_s0] sm:$0xff pattern:$0x67452301]   ;;  %v588_v7 = vld [vmem:[%s1630_s0 + $0x8] sm:$0xff]  }
   0x4   :  { %s827_s16 = smov 121   ;;  %s828_s21 = smov 120   ;;  %v730_v4 = vld.sshfl [vmem:[%s1630_s0 + $0x8] sm:$0xff pattern:$0x74563012]  }
   0x5   :  { %s829_s22 = smov 119   ;;  %s830_s23 = smov 118   ;;  %v388_v5 = vld.sshfl [vmem:[%s1630_s0] sm:$0xff pattern:$0x74563012]  }
   0x6   :  { %52 = vrot.lane.b32.xlu1 %v604_v1, %s821_s8  ;;  %27 = vrot.lane.b32.xlu0 %v604_v1, %s822_s9  ;;  %s831_s24 = smov 117   ;;  %s832_s25 = smov 116   ;;  %4 = vst.msk [vmem:[%s1631_s1] ss:$24 sm:$0xf] %vm3_vm0, %v2_v6  }
   0x7   :  { %s833_s26 = smov 115   ;;  %s834_s27 = smov 114   ;;  %5 = vst.msk [vmem:[%s1631_s1] ss:$24 sm:$0xf0] %vm3_vm0, %v2_v6  }
   0x8   :  { %s835_s28 = smov 113   ;;  %s836_s4 = smov 112   ;;  %589 = vst.msk [vmem:[%s1631_s1 + $0xc0] ss:$24 sm:$0xf] %vm3_vm0, %v588_v7  }
   0x9   :  { %s837_s5 = smov 111   ;;  %s838_s6 = smov 110   ;;  %590 = vst.msk [vmem:[%s1631_s1 + $0xc0] ss:$24 sm:$0xf0] %vm3_vm0, %v588_v7  }
   0xa   :  { %77 = vrot.lane.b32.xlu1 %v604_v1, %s823_s12  ;;  %64 = vrot.lane.b32.xlu0 %v38_v0, %s823_s12  ;;  %s839_s7 = smov 109   ;;  %s840_s19 = smov 108  }
   0xb   :  { %s841_s20 = smov 107  }
   0xe   :  { %102 = vrot.lane.b32.xlu1 %v604_v1, %s824_s13  ;;  %89 = vrot.lane.b32.xlu0 %v38_v0, %s824_s13 }
  0x12   :  { %127 = vrot.lane.b32.xlu1 %v604_v1, %s825_s14  ;;  %114 = vrot.lane.b32.xlu0 %v38_v0, %s825_s14 }
  0x16   :  { %152 = vrot.lane.b32.xlu1 %v604_v1, %s826_s15  ;;  %139 = vrot.lane.b32.xlu0 %v38_v0, %s826_s15 }
  0x1a   :  { %177 = vrot.lane.b32.xlu1 %v604_v1, %s827_s16  ;;  %164 = vrot.lane.b32.xlu0 %v38_v0, %s827_s16 }
  0x1e   :  { %202 = vrot.lane.b32.xlu1 %v658_v2, %s828_s21  ;;  %189 = vrot.lane.b32.xlu0 %v188_v3, %s828_s21  ;;  %s842_s21 = smov 106  }
  0x22   :  { %227 = vrot.lane.b32.xlu1 %v658_v2, %s829_s22  ;;  %214 = vrot.lane.b32.xlu0 %v188_v3, %s829_s22  ;;  %s843_s22 = smov 105  }
  0x26   :  { %252 = vrot.lane.b32.xlu1 %v658_v2, %s830_s23  ;;  %239 = vrot.lane.b32.xlu0 %v188_v3, %s830_s23 }
  0x2a   :  { %277 = vrot.lane.b32.xlu1 %v658_v2, %s831_s24  ;;  %264 = vrot.lane.b32.xlu0 %v188_v3, %s831_s24 }
  0x2e   :  { %302 = vrot.lane.b32.xlu1 %v658_v2, %s832_s25  ;;  %289 = vrot.lane.b32.xlu0 %v188_v3, %s832_s25 }
  0x32   :  { %327 = vrot.lane.b32.xlu1 %v658_v2, %s833_s26  ;;  %314 = vrot.lane.b32.xlu0 %v188_v3, %s833_s26 }
  0x36   :  { %352 = vrot.lane.b32.xlu1 %v658_v2, %s834_s27  ;;  %339 = vrot.lane.b32.xlu0 %v188_v3, %s834_s27 }
  0x3a   :  { %377 = vrot.lane.b32.xlu1 %v658_v2, %s835_s28  ;;  %364 = vrot.lane.b32.xlu0 %v188_v3, %s835_s28 }
  0x3e   :  { %402 = vrot.lane.b32.xlu1 %v730_v4, %s836_s4  ;;  %389 = vrot.lane.b32.xlu0 %v388_v5, %s836_s4 }
  0x42   :  { %427 = vrot.lane.b32.xlu1 %v730_v4, %s837_s5  ;;  %414 = vrot.lane.b32.xlu0 %v388_v5, %s837_s5 }
  0x46   :  { %452 = vrot.lane.b32.xlu1 %v730_v4, %s838_s6  ;;  %439 = vrot.lane.b32.xlu0 %v388_v5, %s838_s6 }
  0x4a   :  { %477 = vrot.lane.b32.xlu1 %v730_v4, %s839_s7  ;;  %464 = vrot.lane.b32.xlu0 %v388_v5, %s839_s7 }
  0x4e   :  { %502 = vrot.lane.b32.xlu1 %v730_v4, %s840_s19  ;;  %489 = vrot.lane.b32.xlu0 %v388_v5, %s840_s19 }
  0x52   :  { %527 = vrot.lane.b32.xlu1 %v730_v4, %s841_s20  ;;  %514 = vrot.lane.b32.xlu0 %v388_v5, %s841_s20 }
  0x56   :  { %552 = vrot.lane.b32.xlu1 %v730_v4, %s842_s21  ;;  %539 = vrot.lane.b32.xlu0 %v388_v5, %s842_s21 }
  0x5a   :  { %577 = vrot.lane.b32.xlu1 %v730_v4, %s843_s22  ;;  %564 = vrot.lane.b32.xlu0 %v388_v5, %s843_s22 }
  0x74   :  { %v40_v8 = vpop.permute.xlu1 %39   ;;  %v15_v9 = vpop.permute.xlu0 %14  }
  0x75   :  { %600 = vst.msk [vmem:[%s1631_s1 + $0x2] ss:$72 sm:$0x3] %vm3_vm0, %v40_v8   ;;  %601 = vst.msk [vmem:[%s1631_s1 + $0x62] ss:$-24 sm:$0xc] %vm3_vm0, %v40_v8  }
  0x76   :  { %602 = vst.msk [vmem:[%s1631_s1 - $0xbe] ss:$72 sm:$0x30] %vm3_vm0, %v40_v8   ;;  %603 = vst.msk [vmem:[%s1631_s1 + $0x122] ss:$-24 sm:$0xc0] %vm3_vm0, %v40_v8  }
  0x77   :  { %591 = vst.msk [vmem:[%s1631_s1 + $0x1] ss:$72 sm:$0x3] %vm3_vm0, %v15_v9   ;;  %592 = vst.msk [vmem:[%s1631_s1 + $0x61] ss:$-24 sm:$0xc] %vm3_vm0, %v15_v9  }
  0x78   :  { %593 = vst.msk [vmem:[%s1631_s1 - $0xbf] ss:$72 sm:$0x30] %vm3_vm0, %v15_v9   ;;  %594 = vst.msk [vmem:[%s1631_s1 + $0x121] ss:$-24 sm:$0xc0] %vm3_vm0, %v15_v9   ;;  %v53_v10 = vpop.permute.xlu1 %52   ;;  %v28_v11 = vpop.permute.xlu0 %27  }
  0x79   :  { %605 = vst.msk [vmem:[%s1631_s1 + $0xc2] ss:$72 sm:$0x3] %vm3_vm0, %v53_v10   ;;  %606 = vst.msk [vmem:[%s1631_s1 + $0x122] ss:$-24 sm:$0xc] %vm3_vm0, %v53_v10  }
  0x7a   :  { %607 = vst.msk [vmem:[%s1631_s1 + $0x2] ss:$72 sm:$0x30] %vm3_vm0, %v53_v10   ;;  %608 = vst.msk [vmem:[%s1631_s1 + $0x1e2] ss:$-24 sm:$0xc0] %vm3_vm0, %v53_v10  }
  0x7b   :  { %596 = vst.msk [vmem:[%s1631_s1 + $0xc1] ss:$72 sm:$0x3] %vm3_vm0, %v28_v11   ;;  %597 = vst.msk [vmem:[%s1631_s1 + $0x121] ss:$-24 sm:$0xc] %vm3_vm0, %v28_v11  }
  0x7c   :  { %598 = vst.msk [vmem:[%s1631_s1 + $0x1] ss:$72 sm:$0x30] %vm3_vm0, %v28_v11   ;;  %599 = vst.msk [vmem:[%s1631_s1 + $0x1e1] ss:$-24 sm:$0xc0] %vm3_vm0, %v28_v11   ;;  %v78_v12 = vpop.permute.xlu1 %77   ;;  %v65_v13 = vpop.permute.xlu0 %64  }
  0x7d   :  { %614 = vst.msk [vmem:[%s1631_s1 + $0xc3] ss:$72 sm:$0x3] %vm3_vm0, %v78_v12   ;;  %615 = vst.msk [vmem:[%s1631_s1 + $0x123] ss:$-24 sm:$0xc] %vm3_vm0, %v78_v12  }
  0x7e   :  { %616 = vst.msk [vmem:[%s1631_s1 + $0x3] ss:$72 sm:$0x30] %vm3_vm0, %v78_v12   ;;  %617 = vst.msk [vmem:[%s1631_s1 + $0x1e3] ss:$-24 sm:$0xc0] %vm3_vm0, %v78_v12  }
  0x7f   :  { %609 = vst.msk [vmem:[%s1631_s1 + $0x3] ss:$72 sm:$0x3] %vm3_vm0, %v65_v13   ;;  %610 = vst.msk [vmem:[%s1631_s1 + $0x63] ss:$-24 sm:$0xc] %vm3_vm0, %v65_v13  }
  0x80   :  { %611 = vst.msk [vmem:[%s1631_s1 - $0xbd] ss:$72 sm:$0x30] %vm3_vm0, %v65_v13   ;;  %612 = vst.msk [vmem:[%s1631_s1 + $0x123] ss:$-24 sm:$0xc0] %vm3_vm0, %v65_v13   ;;  %v103_v14 = vpop.permute.xlu1 %102   ;;  %v90_v15 = vpop.permute.xlu0 %89  }
  0x81   :  { %623 = vst.msk [vmem:[%s1631_s1 + $0xc4] ss:$72 sm:$0x3] %vm3_vm0, %v103_v14   ;;  %624 = vst.msk [vmem:[%s1631_s1 + $0x124] ss:$-24 sm:$0xc] %vm3_vm0, %v103_v14  }
  0x82   :  { %625 = vst.msk [vmem:[%s1631_s1 + $0x4] ss:$72 sm:$0x30] %vm3_vm0, %v103_v14   ;;  %626 = vst.msk [vmem:[%s1631_s1 + $0x1e4] ss:$-24 sm:$0xc0] %vm3_vm0, %v103_v14  }
  0x83   :  { %618 = vst.msk [vmem:[%s1631_s1 + $0x4] ss:$72 sm:$0x3] %vm3_vm0, %v90_v15   ;;  %619 = vst.msk [vmem:[%s1631_s1 + $0x64] ss:$-24 sm:$0xc] %vm3_vm0, %v90_v15  }
  0x84   :  { %620 = vst.msk [vmem:[%s1631_s1 - $0xbc] ss:$72 sm:$0x30] %vm3_vm0, %v90_v15   ;;  %621 = vst.msk [vmem:[%s1631_s1 + $0x124] ss:$-24 sm:$0xc0] %vm3_vm0, %v90_v15   ;;  %v128_v16 = vpop.permute.xlu1 %127   ;;  %v115_v17 = vpop.permute.xlu0 %114  }
  0x85   :  { %632 = vst.msk [vmem:[%s1631_s1 + $0xc5] ss:$72 sm:$0x3] %vm3_vm0, %v128_v16   ;;  %633 = vst.msk [vmem:[%s1631_s1 + $0x125] ss:$-24 sm:$0xc] %vm3_vm0, %v128_v16  }
  0x86   :  { %634 = vst.msk [vmem:[%s1631_s1 + $0x5] ss:$72 sm:$0x30] %vm3_vm0, %v128_v16   ;;  %635 = vst.msk [vmem:[%s1631_s1 + $0x1e5] ss:$-24 sm:$0xc0] %vm3_vm0, %v128_v16  }
  0x87   :  { %627 = vst.msk [vmem:[%s1631_s1 + $0x5] ss:$72 sm:$0x3] %vm3_vm0, %v115_v17   ;;  %628 = vst.msk [vmem:[%s1631_s1 + $0x65] ss:$-24 sm:$0xc] %vm3_vm0, %v115_v17  }
  0x88   :  { %629 = vst.msk [vmem:[%s1631_s1 - $0xbb] ss:$72 sm:$0x30] %vm3_vm0, %v115_v17   ;;  %630 = vst.msk [vmem:[%s1631_s1 + $0x125] ss:$-24 sm:$0xc0] %vm3_vm0, %v115_v17   ;;  %v153_v18 = vpop.permute.xlu1 %152   ;;  %v140_v19 = vpop.permute.xlu0 %139  }
  0x89   :  { %641 = vst.msk [vmem:[%s1631_s1 + $0xc6] ss:$72 sm:$0x3] %vm3_vm0, %v153_v18   ;;  %642 = vst.msk [vmem:[%s1631_s1 + $0x126] ss:$-24 sm:$0xc] %vm3_vm0, %v153_v18  }
  0x8a   :  { %643 = vst.msk [vmem:[%s1631_s1 + $0x6] ss:$72 sm:$0x30] %vm3_vm0, %v153_v18   ;;  %644 = vst.msk [vmem:[%s1631_s1 + $0x1e6] ss:$-24 sm:$0xc0] %vm3_vm0, %v153_v18  }
  0x8b   :  { %636 = vst.msk [vmem:[%s1631_s1 + $0x6] ss:$72 sm:$0x3] %vm3_vm0, %v140_v19   ;;  %637 = vst.msk [vmem:[%s1631_s1 + $0x66] ss:$-24 sm:$0xc] %vm3_vm0, %v140_v19  }
  0x8c   :  { %638 = vst.msk [vmem:[%s1631_s1 - $0xba] ss:$72 sm:$0x30] %vm3_vm0, %v140_v19   ;;  %639 = vst.msk [vmem:[%s1631_s1 + $0x126] ss:$-24 sm:$0xc0] %vm3_vm0, %v140_v19   ;;  %v178_v20 = vpop.permute.xlu1 %177   ;;  %v165_v21 = vpop.permute.xlu0 %164  }
  0x8d   :  { %650 = vst.msk [vmem:[%s1631_s1 + $0xc7] ss:$72 sm:$0x3] %vm3_vm0, %v178_v20   ;;  %651 = vst.msk [vmem:[%s1631_s1 + $0x127] ss:$-24 sm:$0xc] %vm3_vm0, %v178_v20  }
  0x8e   :  { %652 = vst.msk [vmem:[%s1631_s1 + $0x7] ss:$72 sm:$0x30] %vm3_vm0, %v178_v20   ;;  %653 = vst.msk [vmem:[%s1631_s1 + $0x1e7] ss:$-24 sm:$0xc0] %vm3_vm0, %v178_v20  }
  0x8f   :  { %645 = vst.msk [vmem:[%s1631_s1 + $0x7] ss:$72 sm:$0x3] %vm3_vm0, %v165_v21   ;;  %646 = vst.msk [vmem:[%s1631_s1 + $0x67] ss:$-24 sm:$0xc] %vm3_vm0, %v165_v21  }
  0x90   :  { %647 = vst.msk [vmem:[%s1631_s1 - $0xb9] ss:$72 sm:$0x30] %vm3_vm0, %v165_v21   ;;  %648 = vst.msk [vmem:[%s1631_s1 + $0x127] ss:$-24 sm:$0xc0] %vm3_vm0, %v165_v21   ;;  %v203_v22 = vpop.permute.xlu1 %202   ;;  %v190_v23 = vpop.permute.xlu0 %189  }
  0x91   :  { %659 = vst.msk [vmem:[%s1631_s1 + $0xe0] ss:$-24 sm:$0x3] %vm3_vm0, %v203_v22   ;;  %660 = vst.msk [vmem:[%s1631_s1 + $0x140] ss:$-24 sm:$0xc] %vm3_vm0, %v203_v22  }
  0x92   :  { %661 = vst.msk [vmem:[%s1631_s1 + $0x1a0] ss:$-24 sm:$0x30] %vm3_vm0, %v203_v22   ;;  %662 = vst.msk [vmem:[%s1631_s1 + $0x200] ss:$-24 sm:$0xc0] %vm3_vm0, %v203_v22  }
  0x93   :  { %654 = vst.msk [vmem:[%s1631_s1 + $0x20] ss:$-24 sm:$0x3] %vm3_vm0, %v190_v23   ;;  %655 = vst.msk [vmem:[%s1631_s1 + $0x80] ss:$-24 sm:$0xc] %vm3_vm0, %v190_v23  }
  0x94   :  { %656 = vst.msk [vmem:[%s1631_s1 + $0xe0] ss:$-24 sm:$0x30] %vm3_vm0, %v190_v23   ;;  %657 = vst.msk [vmem:[%s1631_s1 + $0x140] ss:$-24 sm:$0xc0] %vm3_vm0, %v190_v23   ;;  %v228_v24 = vpop.permute.xlu1 %227   ;;  %v215_v25 = vpop.permute.xlu0 %214  }
  0x95   :  { %668 = vst.msk [vmem:[%s1631_s1 + $0xe1] ss:$-24 sm:$0x3] %vm3_vm0, %v228_v24   ;;  %669 = vst.msk [vmem:[%s1631_s1 + $0x141] ss:$-24 sm:$0xc] %vm3_vm0, %v228_v24  }
  0x96   :  { %670 = vst.msk [vmem:[%s1631_s1 + $0x1a1] ss:$-24 sm:$0x30] %vm3_vm0, %v228_v24   ;;  %671 = vst.msk [vmem:[%s1631_s1 + $0x201] ss:$-24 sm:$0xc0] %vm3_vm0, %v228_v24  }
  0x97   :  { %663 = vst.msk [vmem:[%s1631_s1 + $0x21] ss:$-24 sm:$0x3] %vm3_vm0, %v215_v25   ;;  %664 = vst.msk [vmem:[%s1631_s1 + $0x81] ss:$-24 sm:$0xc] %vm3_vm0, %v215_v25  }
  0x98   :  { %665 = vst.msk [vmem:[%s1631_s1 + $0xe1] ss:$-24 sm:$0x30] %vm3_vm0, %v215_v25   ;;  %666 = vst.msk [vmem:[%s1631_s1 + $0x141] ss:$-24 sm:$0xc0] %vm3_vm0, %v215_v25   ;;  %v253_v26 = vpop.permute.xlu1 %252   ;;  %v240_v27 = vpop.permute.xlu0 %239  }
  0x99   :  { %677 = vst.msk [vmem:[%s1631_s1 + $0xe2] ss:$-24 sm:$0x3] %vm3_vm0, %v253_v26   ;;  %678 = vst.msk [vmem:[%s1631_s1 + $0x142] ss:$-24 sm:$0xc] %vm3_vm0, %v253_v26  }
  0x9a   :  { %679 = vst.msk [vmem:[%s1631_s1 + $0x1a2] ss:$-24 sm:$0x30] %vm3_vm0, %v253_v26   ;;  %680 = vst.msk [vmem:[%s1631_s1 + $0x202] ss:$-24 sm:$0xc0] %vm3_vm0, %v253_v26  }
  0x9b   :  { %672 = vst.msk [vmem:[%s1631_s1 + $0x22] ss:$-24 sm:$0x3] %vm3_vm0, %v240_v27   ;;  %673 = vst.msk [vmem:[%s1631_s1 + $0x82] ss:$-24 sm:$0xc] %vm3_vm0, %v240_v27  }
  0x9c   :  { %674 = vst.msk [vmem:[%s1631_s1 + $0xe2] ss:$-24 sm:$0x30] %vm3_vm0, %v240_v27   ;;  %675 = vst.msk [vmem:[%s1631_s1 + $0x142] ss:$-24 sm:$0xc0] %vm3_vm0, %v240_v27   ;;  %v278_v28 = vpop.permute.xlu1 %277   ;;  %v265_v29 = vpop.permute.xlu0 %264  }
  0x9d   :  { %686 = vst.msk [vmem:[%s1631_s1 + $0xe3] ss:$-24 sm:$0x3] %vm3_vm0, %v278_v28   ;;  %687 = vst.msk [vmem:[%s1631_s1 + $0x143] ss:$-24 sm:$0xc] %vm3_vm0, %v278_v28  }
  0x9e   :  { %688 = vst.msk [vmem:[%s1631_s1 + $0x1a3] ss:$-24 sm:$0x30] %vm3_vm0, %v278_v28   ;;  %689 = vst.msk [vmem:[%s1631_s1 + $0x203] ss:$-24 sm:$0xc0] %vm3_vm0, %v278_v28  }
  0x9f   :  { %681 = vst.msk [vmem:[%s1631_s1 + $0x23] ss:$-24 sm:$0x3] %vm3_vm0, %v265_v29   ;;  %682 = vst.msk [vmem:[%s1631_s1 + $0x83] ss:$-24 sm:$0xc] %vm3_vm0, %v265_v29  }
  0xa0   :  { %683 = vst.msk [vmem:[%s1631_s1 + $0xe3] ss:$-24 sm:$0x30] %vm3_vm0, %v265_v29   ;;  %684 = vst.msk [vmem:[%s1631_s1 + $0x143] ss:$-24 sm:$0xc0] %vm3_vm0, %v265_v29   ;;  %v303_v30 = vpop.permute.xlu1 %302   ;;  %v290_v31 = vpop.permute.xlu0 %289  }
  0xa1   :  { %695 = vst.msk [vmem:[%s1631_s1 + $0xe4] ss:$-24 sm:$0x3] %vm3_vm0, %v303_v30   ;;  %696 = vst.msk [vmem:[%s1631_s1 + $0x144] ss:$-24 sm:$0xc] %vm3_vm0, %v303_v30  }
  0xa2   :  { %697 = vst.msk [vmem:[%s1631_s1 + $0x1a4] ss:$-24 sm:$0x30] %vm3_vm0, %v303_v30   ;;  %698 = vst.msk [vmem:[%s1631_s1 + $0x204] ss:$-24 sm:$0xc0] %vm3_vm0, %v303_v30  }
  0xa3   :  { %690 = vst.msk [vmem:[%s1631_s1 + $0x24] ss:$-24 sm:$0x3] %vm3_vm0, %v290_v31   ;;  %691 = vst.msk [vmem:[%s1631_s1 + $0x84] ss:$-24 sm:$0xc] %vm3_vm0, %v290_v31  }
  0xa4   :  { %692 = vst.msk [vmem:[%s1631_s1 + $0xe4] ss:$-24 sm:$0x30] %vm3_vm0, %v290_v31   ;;  %693 = vst.msk [vmem:[%s1631_s1 + $0x144] ss:$-24 sm:$0xc0] %vm3_vm0, %v290_v31   ;;  %v328_v32 = vpop.permute.xlu1 %327   ;;  %v315_v33 = vpop.permute.xlu0 %314  }
  0xa5   :  { %704 = vst.msk [vmem:[%s1631_s1 + $0xe5] ss:$-24 sm:$0x3] %vm3_vm0, %v328_v32   ;;  %705 = vst.msk [vmem:[%s1631_s1 + $0x145] ss:$-24 sm:$0xc] %vm3_vm0, %v328_v32  }
  0xa6   :  { %706 = vst.msk [vmem:[%s1631_s1 + $0x1a5] ss:$-24 sm:$0x30] %vm3_vm0, %v328_v32   ;;  %707 = vst.msk [vmem:[%s1631_s1 + $0x205] ss:$-24 sm:$0xc0] %vm3_vm0, %v328_v32  }
  0xa7   :  { %699 = vst.msk [vmem:[%s1631_s1 + $0x25] ss:$-24 sm:$0x3] %vm3_vm0, %v315_v33   ;;  %700 = vst.msk [vmem:[%s1631_s1 + $0x85] ss:$-24 sm:$0xc] %vm3_vm0, %v315_v33  }
  0xa8   :  { %701 = vst.msk [vmem:[%s1631_s1 + $0xe5] ss:$-24 sm:$0x30] %vm3_vm0, %v315_v33   ;;  %702 = vst.msk [vmem:[%s1631_s1 + $0x145] ss:$-24 sm:$0xc0] %vm3_vm0, %v315_v33   ;;  %v353_v34 = vpop.permute.xlu1 %352   ;;  %v340_v35 = vpop.permute.xlu0 %339  }
  0xa9   :  { %713 = vst.msk [vmem:[%s1631_s1 + $0xe6] ss:$-24 sm:$0x3] %vm3_vm0, %v353_v34   ;;  %714 = vst.msk [vmem:[%s1631_s1 + $0x146] ss:$-24 sm:$0xc] %vm3_vm0, %v353_v34  }
  0xaa   :  { %715 = vst.msk [vmem:[%s1631_s1 + $0x1a6] ss:$-24 sm:$0x30] %vm3_vm0, %v353_v34   ;;  %716 = vst.msk [vmem:[%s1631_s1 + $0x206] ss:$-24 sm:$0xc0] %vm3_vm0, %v353_v34  }
  0xab   :  { %708 = vst.msk [vmem:[%s1631_s1 + $0x26] ss:$-24 sm:$0x3] %vm3_vm0, %v340_v35   ;;  %709 = vst.msk [vmem:[%s1631_s1 + $0x86] ss:$-24 sm:$0xc] %vm3_vm0, %v340_v35  }
  0xac   :  { %710 = vst.msk [vmem:[%s1631_s1 + $0xe6] ss:$-24 sm:$0x30] %vm3_vm0, %v340_v35   ;;  %711 = vst.msk [vmem:[%s1631_s1 + $0x146] ss:$-24 sm:$0xc0] %vm3_vm0, %v340_v35   ;;  %v378_v36 = vpop.permute.xlu1 %377   ;;  %v365_v37 = vpop.permute.xlu0 %364  }
  0xad   :  { %722 = vst.msk [vmem:[%s1631_s1 + $0xe7] ss:$-24 sm:$0x3] %vm3_vm0, %v378_v36   ;;  %723 = vst.msk [vmem:[%s1631_s1 + $0x147] ss:$-24 sm:$0xc] %vm3_vm0, %v378_v36  }
  0xae   :  { %724 = vst.msk [vmem:[%s1631_s1 + $0x1a7] ss:$-24 sm:$0x30] %vm3_vm0, %v378_v36   ;;  %725 = vst.msk [vmem:[%s1631_s1 + $0x207] ss:$-24 sm:$0xc0] %vm3_vm0, %v378_v36  }
  0xaf   :  { %717 = vst.msk [vmem:[%s1631_s1 + $0x27] ss:$-24 sm:$0x3] %vm3_vm0, %v365_v37   ;;  %718 = vst.msk [vmem:[%s1631_s1 + $0x87] ss:$-24 sm:$0xc] %vm3_vm0, %v365_v37  }
  0xb0   :  { %719 = vst.msk [vmem:[%s1631_s1 + $0xe7] ss:$-24 sm:$0x30] %vm3_vm0, %v365_v37   ;;  %720 = vst.msk [vmem:[%s1631_s1 + $0x147] ss:$-24 sm:$0xc0] %vm3_vm0, %v365_v37   ;;  %v403_v38 = vpop.permute.xlu1 %402   ;;  %v390_v39 = vpop.permute.xlu0 %389  }
  0xb1   :  { %731 = vst.msk [vmem:[%s1631_s1 + $0x100] ss:$-24 sm:$0x7] %vm3_vm0, %v403_v38   ;;  %732 = vst.msk [vmem:[%s1631_s1 + $0x40] ss:$72 sm:$0x18] %vm3_vm0, %v403_v38  }
  0xb2   :  { %733 = vst.msk [vmem:[%s1631_s1 + $0x1c0] ss:$-24 sm:$0x60] %vm3_vm0, %v403_v38   ;;  %734 = vst.msk [vmem:[%s1631_s1 + $0x171] sm:$0x80] %vm3_vm0, %v403_v38  }
  0xb3   :  { %726 = vst.msk [vmem:[%s1631_s1 + $0x40] ss:$-24 sm:$0x7] %vm3_vm0, %v390_v39   ;;  %727 = vst.msk [vmem:[%s1631_s1 - $0x80] ss:$72 sm:$0x18] %vm3_vm0, %v390_v39  }
  0xb4   :  { %728 = vst.msk [vmem:[%s1631_s1 + $0x100] ss:$-24 sm:$0x60] %vm3_vm0, %v390_v39   ;;  %729 = vst.msk [vmem:[%s1631_s1 + $0xb1] sm:$0x80] %vm3_vm0, %v390_v39   ;;  %v428_v40 = vpop.permute.xlu1 %427   ;;  %v415_v41 = vpop.permute.xlu0 %414  }
  0xb5   :  { %740 = vst.msk [vmem:[%s1631_s1 + $0x101] ss:$-24 sm:$0x7] %vm3_vm0, %v428_v40   ;;  %741 = vst.msk [vmem:[%s1631_s1 + $0x41] ss:$72 sm:$0x18] %vm3_vm0, %v428_v40  }
  0xb6   :  { %742 = vst.msk [vmem:[%s1631_s1 + $0x1c1] ss:$-24 sm:$0x60] %vm3_vm0, %v428_v40   ;;  %743 = vst.msk [vmem:[%s1631_s1 + $0x172] sm:$0x80] %vm3_vm0, %v428_v40  }
  0xb7   :  { %735 = vst.msk [vmem:[%s1631_s1 + $0x41] ss:$-24 sm:$0x7] %vm3_vm0, %v415_v41   ;;  %736 = vst.msk [vmem:[%s1631_s1 - $0x7f] ss:$72 sm:$0x18] %vm3_vm0, %v415_v41  }
  0xb8   :  { %737 = vst.msk [vmem:[%s1631_s1 + $0x101] ss:$-24 sm:$0x60] %vm3_vm0, %v415_v41   ;;  %738 = vst.msk [vmem:[%s1631_s1 + $0xb2] sm:$0x80] %vm3_vm0, %v415_v41   ;;  %v453_v42 = vpop.permute.xlu1 %452   ;;  %v440_v43 = vpop.permute.xlu0 %439  }
  0xb9   :  { %749 = vst.msk [vmem:[%s1631_s1 + $0x102] ss:$-24 sm:$0x7] %vm3_vm0, %v453_v42   ;;  %750 = vst.msk [vmem:[%s1631_s1 + $0x42] ss:$72 sm:$0x18] %vm3_vm0, %v453_v42  }
  0xba   :  { %751 = vst.msk [vmem:[%s1631_s1 + $0x1c2] ss:$-24 sm:$0x60] %vm3_vm0, %v453_v42   ;;  %752 = vst.msk [vmem:[%s1631_s1 + $0x173] sm:$0x80] %vm3_vm0, %v453_v42  }
  0xbb   :  { %744 = vst.msk [vmem:[%s1631_s1 + $0x42] ss:$-24 sm:$0x7] %vm3_vm0, %v440_v43   ;;  %745 = vst.msk [vmem:[%s1631_s1 - $0x7e] ss:$72 sm:$0x18] %vm3_vm0, %v440_v43  }
  0xbc   :  { %746 = vst.msk [vmem:[%s1631_s1 + $0x102] ss:$-24 sm:$0x60] %vm3_vm0, %v440_v43   ;;  %747 = vst.msk [vmem:[%s1631_s1 + $0xb3] sm:$0x80] %vm3_vm0, %v440_v43   ;;  %v478_v44 = vpop.permute.xlu1 %477   ;;  %v465_v45 = vpop.permute.xlu0 %464  }
  0xbd   :  { %758 = vst.msk [vmem:[%s1631_s1 + $0x103] ss:$-24 sm:$0x7] %vm3_vm0, %v478_v44   ;;  %759 = vst.msk [vmem:[%s1631_s1 + $0x43] ss:$72 sm:$0x18] %vm3_vm0, %v478_v44  }
  0xbe   :  { %760 = vst.msk [vmem:[%s1631_s1 + $0x1c3] ss:$-24 sm:$0x60] %vm3_vm0, %v478_v44   ;;  %761 = vst.msk [vmem:[%s1631_s1 + $0x174] sm:$0x80] %vm3_vm0, %v478_v44  }
  0xbf   :  { %753 = vst.msk [vmem:[%s1631_s1 + $0x43] ss:$-24 sm:$0x7] %vm3_vm0, %v465_v45   ;;  %754 = vst.msk [vmem:[%s1631_s1 - $0x7d] ss:$72 sm:$0x18] %vm3_vm0, %v465_v45  }
  0xc0   :  { %755 = vst.msk [vmem:[%s1631_s1 + $0x103] ss:$-24 sm:$0x60] %vm3_vm0, %v465_v45   ;;  %756 = vst.msk [vmem:[%s1631_s1 + $0xb4] sm:$0x80] %vm3_vm0, %v465_v45   ;;  %v503_v46 = vpop.permute.xlu1 %502   ;;  %v490_v47 = vpop.permute.xlu0 %489  }
  0xc1   :  { %767 = vst.msk [vmem:[%s1631_s1 + $0x104] ss:$-24 sm:$0x7] %vm3_vm0, %v503_v46   ;;  %768 = vst.msk [vmem:[%s1631_s1 + $0x44] ss:$72 sm:$0x18] %vm3_vm0, %v503_v46  }
  0xc2   :  { %769 = vst.msk [vmem:[%s1631_s1 + $0x1c4] ss:$-24 sm:$0x60] %vm3_vm0, %v503_v46   ;;  %770 = vst.msk [vmem:[%s1631_s1 + $0x175] sm:$0x80] %vm3_vm0, %v503_v46  }
  0xc3   :  { %762 = vst.msk [vmem:[%s1631_s1 + $0x44] ss:$-24 sm:$0x7] %vm3_vm0, %v490_v47   ;;  %763 = vst.msk [vmem:[%s1631_s1 - $0x7c] ss:$72 sm:$0x18] %vm3_vm0, %v490_v47  }
  0xc4   :  { %764 = vst.msk [vmem:[%s1631_s1 + $0x104] ss:$-24 sm:$0x60] %vm3_vm0, %v490_v47   ;;  %765 = vst.msk [vmem:[%s1631_s1 + $0xb5] sm:$0x80] %vm3_vm0, %v490_v47   ;;  %v528_v48 = vpop.permute.xlu1 %527   ;;  %v515_v49 = vpop.permute.xlu0 %514  }
  0xc5   :  { %776 = vst.msk [vmem:[%s1631_s1 + $0x105] ss:$-24 sm:$0x7] %vm3_vm0, %v528_v48   ;;  %777 = vst.msk [vmem:[%s1631_s1 + $0x45] ss:$72 sm:$0x18] %vm3_vm0, %v528_v48  }
  0xc6   :  { %778 = vst.msk [vmem:[%s1631_s1 + $0x1c5] ss:$-24 sm:$0x60] %vm3_vm0, %v528_v48   ;;  %779 = vst.msk [vmem:[%s1631_s1 + $0x176] sm:$0x80] %vm3_vm0, %v528_v48  }
  0xc7   :  { %771 = vst.msk [vmem:[%s1631_s1 + $0x45] ss:$-24 sm:$0x7] %vm3_vm0, %v515_v49   ;;  %772 = vst.msk [vmem:[%s1631_s1 - $0x7b] ss:$72 sm:$0x18] %vm3_vm0, %v515_v49  }
  0xc8   :  { %773 = vst.msk [vmem:[%s1631_s1 + $0x105] ss:$-24 sm:$0x60] %vm3_vm0, %v515_v49   ;;  %774 = vst.msk [vmem:[%s1631_s1 + $0xb6] sm:$0x80] %vm3_vm0, %v515_v49   ;;  %v553_v50 = vpop.permute.xlu1 %552   ;;  %v540_v51 = vpop.permute.xlu0 %539  }
  0xc9   :  { %785 = vst.msk [vmem:[%s1631_s1 + $0x106] ss:$-24 sm:$0x7] %vm3_vm0, %v553_v50   ;;  %786 = vst.msk [vmem:[%s1631_s1 + $0x46] ss:$72 sm:$0x18] %vm3_vm0, %v553_v50  }
  0xca   :  { %787 = vst.msk [vmem:[%s1631_s1 + $0x1c6] ss:$-24 sm:$0x60] %vm3_vm0, %v553_v50   ;;  %788 = vst.msk [vmem:[%s1631_s1 + $0x177] sm:$0x80] %vm3_vm0, %v553_v50  }
  0xcb   :  { %780 = vst.msk [vmem:[%s1631_s1 + $0x46] ss:$-24 sm:$0x7] %vm3_vm0, %v540_v51   ;;  %781 = vst.msk [vmem:[%s1631_s1 - $0x7a] ss:$72 sm:$0x18] %vm3_vm0, %v540_v51  }
  0xcc   :  { %782 = vst.msk [vmem:[%s1631_s1 + $0x106] ss:$-24 sm:$0x60] %vm3_vm0, %v540_v51   ;;  %783 = vst.msk [vmem:[%s1631_s1 + $0xb7] sm:$0x80] %vm3_vm0, %v540_v51   ;;  %v578_v52 = vpop.permute.xlu1 %577   ;;  %v565_v53 = vpop.permute.xlu0 %564  }
  0xcd   :  { %794 = vst.msk [vmem:[%s1631_s1 + $0x107] ss:$-24 sm:$0x7] %vm3_vm0, %v578_v52   ;;  %795 = vst.msk [vmem:[%s1631_s1 + $0x47] ss:$72 sm:$0x18] %vm3_vm0, %v578_v52  }
  0xce   :  { %796 = vst.msk [vmem:[%s1631_s1 + $0x1c7] ss:$-24 sm:$0x60] %vm3_vm0, %v578_v52   ;;  %797 = vst.msk [vmem:[%s1631_s1 + $0x178] sm:$0x80] %vm3_vm0, %v578_v52  }
  0xcf   :  { %789 = vst.msk [vmem:[%s1631_s1 + $0x47] ss:$-24 sm:$0x7] %vm3_vm0, %v565_v53   ;;  %790 = vst.msk [vmem:[%s1631_s1 - $0x79] ss:$72 sm:$0x18] %vm3_vm0, %v565_v53  }
  0xd0   :  { %791 = vst.msk [vmem:[%s1631_s1 + $0x107] ss:$-24 sm:$0x60] %vm3_vm0, %v565_v53   ;;  %792 = vst.msk [vmem:[%s1631_s1 + $0xb8] sm:$0x80] %vm3_vm0, %v565_v53  }

// kernel: basic_block_forward.1
= control target key start
LH: loop header
LB: loop body
LE: loop exit
PB: predicated region body
PF: predicated region fallthrough
CT: control target
= control target key end

     0   :  { %s18872_s27 = smov 0   ;;  %s22910_s0 = inlined_call_operand.vmem [shape: bf16[2,480,128], index: 0, kind: input, shape index: {}]   ;;  %s22911_s1 = inlined_call_operand.vmem [shape: bf16[9,128,128], index: 1, kind: input, shape index: {}]   ;;  %s22912_s2 = inlined_call_operand.vmem [shape: f32[1,128], index: 2, kind: input, shape index: {}]   ;;  %s22913_s3 = inlined_call_operand.vmem [shape: f32[1,128], index: 3, kind: input, shape index: {}]   ;;  %s22914_s4 = inlined_call_operand.vmem [shape: bf16[9,128,128], index: 4, kind: input, shape index: {}]   ;;  %s22915_s5 = inlined_call_operand.vmem [shape: f32[1,128], index: 5, kind: input, shape index: {}]   ;;  %s22916_s6 = inlined_call_operand.vmem [shape: f32[1,128], index: 6, kind: input, shape index: {}]   ;;  %s22917_s7 = inlined_call_operand.vmem [shape: f32[384,1], index: 7, kind: input, shape index: {}]   ;;  %s22918_s8 = inlined_call_operand.vmem [shape: bf16[2,384,128], index: 8, kind: output, shape index: {}]  }
   0x1 LB: > { %s15150_s28 = sadd.s32 4294967295, %s18824_s27   ;;  %p15154_p0 = scmp.ge.s32.totalorder %s18824_s27, 1  ;;  %s18824_s27 = sphi %s18872_s27, %s18_s27  }
   0x2   : > { %p262_p1 = scmp.lt.s32.totalorder %s18824_s27, 3 }
   0x4   : > { %p263_p2 = pnand %p15154_p0, %p262_p1 }
   0x6   : > { %266 = sbr.rel (%p263_p2) target bundleno = 1328 (0x530), region = 52 }
   0xb   : > { %v18203_v0 = vld [vmem:[%s22911_s1 + $0x138] sm:$0xff]   ;;  %v18205_v2 = vld [vmem:[%s22911_s1 + $0x130] sm:$0xff]   ;;  %p296_p3 = scmp.lt.s32.totalorder %s15150_s28, 1  ;;  %v18207_v4 = vld [vmem:[%s22911_s1 + $0x128] sm:$0xff]   ;;  %vm1137_vm0 = vsmask.f32 4352 }
   0xc   : > { %v18204_v1 = vld [vmem:[%s22911_s1 + $0x38] sm:$0xff]   ;;  %17038 = vmatprep.subr.bf16.mxu0 %v18203_v0  ;;  %v18206_v3 = vld [vmem:[%s22911_s1 + $0x30] sm:$0xff]   ;;  %v18208_v5 = vld [vmem:[%s22911_s1 + $0x28] sm:$0xff]   ;;  %vm2618_vm1 = vsmask.f32 7424 }
   0xd   : > { %17102 = vmatprep.subr.bf16.mxu1 %v18204_v1  ;;  %17039 = vmatpush3.bf16.msra.mxu0 %v18203_v0  ;;  %s23261_s28 = smov (!%p296_p3, %s15150_s28), 1  ;;  %v18209_v6 = vld [vmem:[%s22911_s1 + $0x120] sm:$0xff]   ;;  %v18211_v8 = vld [vmem:[%s22911_s1 + $0x118] sm:$0xff]   ;;  %v18213_v10 = vld [vmem:[%s22911_s1 + $0x110] sm:$0xff]  }
   0xe   : > { %17103 = vmatpush3.bf16.msra.mxu1 %v18204_v1  ;;  %17040 = vmatprep.subr.bf16.mxu0 %v18205_v2  ;;  %v18210_v7 = vld [vmem:[%s22911_s1 + $0x20] sm:$0xff]   ;;  %s18190_s23 = smul.u32 240, %s23261_s28  ;;  %v18212_v9 = vld [vmem:[%s22911_s1 + $0x18] sm:$0xff]   ;;  %v18214_v11 = vld [vmem:[%s22911_s1 + $0x10] sm:$0xff]  }
   0xf   : > { %17104 = vmatprep.subr.bf16.mxu1 %v18206_v3  ;;  %v18215_v15 = vld [vmem:[%s22911_s1 + $0x108] sm:$0xff]   ;;  %v18217_v29 = vld [vmem:[%s22911_s1 + $0x100] sm:$0xff]   ;;  %v18224_v44 = vld [vmem:[%s22911_s1 + $0x78] sm:$0xff]   ;;  %s18191_s30 = smul.u32 192, %s23261_s28 }
  0x10   : > { %s18919_s12 = scalar_lea.vmem %s22910_s0, %s18190_s23  ;;  %v18216_v21 = vld [vmem:[%s22911_s1 + $0x8] sm:$0xff]   ;;  %v18218_v37 = vld [vmem:[%s22911_s1] sm:$0xff]   ;;  %v18229_v55 = vld [vmem:[%s22911_s1 + $0x70] sm:$0xff]  }
  0x11   : > { %17041 = vmatpush3.bf16.msra.mxu0 %v18205_v2  ;;  %v371_v12 = vld [vmem:[%s18919_s12 + $0x18] sm:$0xff]   ;;  %v18220_v13 = vld [vmem:[%s18919_s12 + $0x8] sm:$0xf8]   ;;  %v18221_v14 = vld [vmem:[%s18919_s12 + $0x10] sm:$0xff]   ;;  %s22669_s10 = scalar_lea.vmem %s22918_s8, %s18191_s30 }
  0x12   : > { %17105 = vmatpush3.bf16.msra.mxu1 %v18206_v3  ;;  %17042 = vmatprep.subr.bf16.mxu0 %v18207_v4  ;;  %v1139_v16 = vshrl.u32 %v18220_v13, 16  ;;  %v1142_v17 = vshll.u32 %v18220_v13, 16  ;;  %v18223_v18 = vld [vmem:[%s18919_s12 + $0x18] sm:$0xff]   ;;  %v1147_v19 = vshrl.u32 %v18221_v14, 16  ;;  %v1150_v20 = vshll.u32 %v18221_v14, 16  ;;  %v18226_v26 = vld [vmem:[%s18919_s12 + $0x20] sm:$0xff]  }
  0x13   : > { %17106 = vmatprep.subr.bf16.mxu1 %v18208_v5  ;;  %17054 = vmatprep.mubr.bf16.mxu0 %v371_v12  ;;  %v1156_v24 = vshrl.u32 %v18223_v18, 16  ;;  %v1159_v25 = vshll.u32 %v18223_v18, 16  ;;  %v18228_v33 = vld [vmem:[%s18919_s12 + $0x28] sm:$0xff]   ;;  %v1165_v35 = vshrl.u32 %v18226_v26, 16  ;;  %v1168_v36 = vshll.u32 %v18226_v26, 16  ;;  %v18231_v41 = vld [vmem:[%s18919_s12 + $0x30] sm:$0xff]  }
  0x14   : > { %v1141_v22 = vrot.slane %v1139_v16, 3  ;;  %v1144_v23 = vrot.slane %v1142_v17, 4  ;;  %v1149_v27 = vrot.slane %v1147_v19, 3  ;;  %v1152_v28 = vrot.slane %v1150_v20, 4  ;;  %v373_v42 = vld [vmem:[%s18919_s12 + $0x20] sm:$0xff]   ;;  %v375_v45 = vld [vmem:[%s18919_s12 + $0x28] sm:$0xff]  }
  0x15   : > { %17043 = vmatpush3.bf16.msra.mxu0 %v18207_v4  ;;  %v1158_v31 = vrot.slane %v1156_v24, 3  ;;  %v1161_v32 = vrot.slane %v1159_v25, 4  ;;  %v1167_v39 = vrot.slane %v1165_v35, 3  ;;  %v1170_v40 = vrot.slane %v1168_v36, 4  ;;  %v18233_v51 = vld [vmem:[%s18919_s12 + $0x38] sm:$0xff]   ;;  %v18235_v56 = vld [vmem:[%s18919_s12 + $0x40] sm:$0xff]  }
  0x16   : > { %17107 = vmatpush3.bf16.msra.mxu1 %v18208_v5  ;;  %17044 = vmatprep.subr.bf16.mxu0 %v18209_v6  ;;  %v1145_v30 = vor.u32 %v1144_v23, %v1141_v22  ;;  %v1153_v34 = vor.u32 %v1152_v28, %v1149_v27  ;;  %v1174_v46 = vshrl.u32 %v18228_v33, 16  ;;  %v1177_v47 = vshll.u32 %v18228_v33, 16  ;;  %v377_v60 = vld [vmem:[%s18919_s12 + $0x30] sm:$0xff]   ;;  %v379_v61 = vld [vmem:[%s18919_s12 + $0x38] sm:$0xff]   ;;  %v18238_v1 = vld [vmem:[%s22911_s1 + $0x68] sm:$0xff]  }
  0x17   : > { %17108 = vmatprep.subr.bf16.mxu1 %v18210_v7  ;;  %v1162_v43 = vor.u32 %v1161_v32, %v1158_v31  ;;  %v1171_v48 = vor.u32 %v1170_v40, %v1167_v39  ;;  %v1183_v49 = vshrl.u32 %v18231_v41, 16  ;;  %v1186_v50 = vshll.u32 %v18231_v41, 16  ;;  %v18243_v13 = vld [vmem:[%s22911_s1 + $0x60] sm:$0xff]   ;;  %v383_v16 = vld [vmem:[%s18919_s12 + $0x48] sm:$0xff]   ;;  %v18252_v22 = vld [vmem:[%s22911_s1 + $0x58] sm:$0xff]  }
  0x18   : > { %v1154_v38 = vsel %vm1137_vm0, %v1145_v30, %v1153_v34  ;;  %v1176_v53 = vrot.slane %v1174_v46, 3  ;;  %v1179_v54 = vrot.slane %v1177_v47, 4  ;;  %v1192_v62 = vshrl.u32 %v18233_v51, 16  ;;  %v381_v14 = vld [vmem:[%s18919_s12 + $0x40] sm:$0xff]   ;;  %v18242_v23 = vld [vmem:[%s18919_s12 + $0x58] sm:$0xff]   ;;  %v18257_v31 = vld [vmem:[%s22911_s1 + $0x50] sm:$0xff]  }
  0x19   : > { %17045 = vmatpush3.bf16.msra.mxu0 %v18209_v6  ;;  %17118 = vmatprep.mubr.bf16.mxu1 %v1154_v38  ;;  %v1163_v52 = vsel %vm1137_vm0, %v1153_v34, %v1162_v43  ;;  %v1172_v57 = vsel %vm1137_vm0, %v1162_v43, %v1171_v48  ;;  %v1185_v58 = vrot.slane %v1183_v49, 3  ;;  %v1188_v59 = vrot.slane %v1186_v50, 4  ;;  %v18237_v6 = vld [vmem:[%s18919_s12 + $0x48] sm:$0xff]   ;;  %v18245_v30 = vld [vmem:[%s18919_s12 + $0x60] sm:$0xff]   ;;  %v18262_v32 = vld [vmem:[%s22911_s1 + $0xb8] sm:$0xff]  }
  0x1a   : > { %17109 = vmatpush3.bf16.msra.mxu1 %v18210_v7  ;;  %17046 = vmatprep.subr.bf16.mxu0 %v18211_v8  ;;  %v1180_v63 = vor.u32 %v1179_v54, %v1176_v53  ;;  %v1195_v0 = vshll.u32 %v18233_v51, 16  ;;  %v1201_v3 = vshrl.u32 %v18235_v56, 16  ;;  %v1204_v4 = vshll.u32 %v18235_v56, 16  ;;  %v385_v33 = vld [vmem:[%s18919_s12 + $0x50] sm:$0xff]   ;;  %v387_v36 = vld [vmem:[%s18919_s12 + $0x58] sm:$0xff]   ;;  %v18247_v43 = vld [vmem:[%s18919_s12 + $0x68] sm:$0xff]  }
  0x1b   : > { %17110 = vmatprep.subr.bf16.mxu1 %v18212_v9  ;;  %v1189_v2 = vor.u32 %v1188_v59, %v1185_v58  ;;  %v1194_v5 = vrot.slane %v1192_v62, 3  ;;  %v1210_v17 = vshrl.u32 %v18237_v6, 16  ;;  %v1213_v18 = vshll.u32 %v18237_v6, 16  ;;  %v18263_v41 = vld [vmem:[%s22911_s1 + $0xb0] sm:$0xff]   ;;  %v18268_v50 = vld [vmem:[%s22911_s1 + $0x48] sm:$0xff]   ;;  %v18270_v54 = vld [vmem:[%s22911_s1 + $0xa0] sm:$0xff]  }
  0x1c   : > { %v1181_v7 = vsel %vm1137_vm0, %v1171_v48, %v1180_v63  ;;  %v1206_v12 = vrot.slane %v1204_v4, 4  ;;  %v1228_v34 = vshrl.u32 %v18242_v23, 16  ;;  %v1237_v39 = vshrl.u32 %v18245_v30, 16  ;;  %v18249_v46 = vld [vmem:[%s18919_s12 + $0x70] sm:$0xff]   ;;  %v18269_v51 = vld [vmem:[%s22911_s1 + $0xa8] sm:$0xff]   ;;  %v18254_v62 = vld [vmem:[%s18919_s12 + $0x80] sm:$0xff]  }
  0x1d   : > { %17047 = vmatpush3.bf16.msra.mxu0 %v18211_v8  ;;  %v1197_v8 = vrot.slane %v1195_v0, 4  ;;  %v1212_v25 = vrot.slane %v1210_v17, 3  ;;  %v1215_v26 = vrot.slane %v1213_v18, 4  ;;  %v1240_v40 = vshll.u32 %v18245_v30, 16  ;;  %v391_v56 = vld [vmem:[%s18919_s12 + $0x68] sm:$0xff]   ;;  %v18276_v0 = vld [vmem:[%s22911_s1 + $0x40] sm:$0xff]  }
  0x1e   : > { %17111 = vmatpush3.bf16.msra.mxu1 %v18212_v9  ;;  %17048 = vmatprep.subr.bf16.mxu0 %v18213_v10  ;;  %v18240_v9 = vld [vmem:[%s18919_s12 + $0x50] sm:$0xff]   ;;  %v1239_v48 = vrot.slane %v1237_v39, 3  ;;  %v1246_v53 = vshrl.u32 %v18247_v43, 16  ;;  %v1255_v59 = vshrl.u32 %v18249_v46, 16  ;;  %v18256_v18 = vld [vmem:[%s18919_s12 + $0x88] sm:$0xff]   ;;  %v18265_v39 = vld [vmem:[%s18919_s12 + $0xa0] sm:$0xff]  }
  0x1f   : > { %17112 = vmatprep.subr.bf16.mxu1 %v18214_v11  ;;  %v1219_v19 = vshrl.u32 %v18240_v9, 16  ;;  %v1216_v35 = vor.u32 %v1215_v26, %v1212_v25  ;;  %v1242_v49 = vrot.slane %v1240_v40, 4  ;;  %v19029_v26 = vld [vmem:[%s22911_s1 + $0xf8] sm:$0xff]   ;;  %v399_v30 = vld [vmem:[%s18919_s12 + $0x88] sm:$0xff]  }
  0x21   : > { %17049 = vmatpush3.bf16.msra.mxu0 %v18213_v10  ;;  %v1190_v10 = vsel %vm1137_vm0, %v1180_v63, %v1189_v2  ;;  %v1221_v28 = vrot.slane %v1219_v19, 3  ;;  %v1243_v58 = vor.u32 %v1242_v49, %v1239_v48  ;;  %v1248_v63 = vrot.slane %v1246_v53, 3  ;;  %v18259_v19 = vld [vmem:[%s18919_s12 + $0x90] sm:$0xff]   ;;  %v18267_v53 = vld [vmem:[%s18919_s12 + $0xa8] sm:$0xff]  }
  0x22   : > { %17113 = vmatpush3.bf16.msra.mxu1 %v18214_v11  ;;  %17050 = vmatprep.subr.bf16.mxu0 %v18215_v15  ;;  %v1203_v11 = vrot.slane %v1201_v3, 3  ;;  %v18275_v3 = vld [vmem:[%s22911_s1 + $0x98] sm:$0xff]   ;;  %v1309_v49 = vshrl.u32 %v18265_v39, 16 }
  0x23   : > { %17114 = vmatprep.subr.bf16.mxu1 %v18216_v21 }
  0x24   : > { %v1207_v20 = vor.u32 %v1206_v12, %v1203_v11  ;;  %v395_v12 = vld [vmem:[%s18919_s12 + $0x78] sm:$0xff]  }
  0x25   : > { %17051 = vmatpush3.bf16.msra.mxu0 %v18215_v15  ;;  %v1198_v15 = vor.u32 %v1197_v8, %v1194_v5  ;;  %v1257_v5 = vrot.slane %v1255_v59, 3  ;;  %v405_v59 = vld [vmem:[%s18919_s12 + $0xa0] sm:$0xff]  }
  0x26   : > { %17115 = vmatpush3.bf16.msra.mxu1 %v18216_v21  ;;  %17052 = vmatprep.subr.bf16.mxu0 %v18217_v29  ;;  %v1222_v21 = vshll.u32 %v18240_v9, 16 }
  0x27   : > { %17116 = vmatprep.subr.bf16.mxu1 %v18218_v37  ;;  %v1199_v24 = vsel %vm1137_vm0, %v1189_v2, %v1198_v15  ;;  %v1208_v27 = vsel %vm1137_vm0, %v1198_v15, %v1207_v20  ;;  %v1276_v15 = vshll.u32 %v18254_v62, 16 }
  0x29   : > { %17053 = vmatpush3.bf16.msra.mxu0 %v18217_v29  ;;  %v1224_v29 = vrot.slane %v1222_v21, 4  ;;  %v1278_v25 = vrot.slane %v1276_v15, 4 }
  0x2a   : > { %17117 = vmatpush3.bf16.msra.mxu1 %v18218_v37  ;;  %17166 = vmatprep.subr.bf16.mxu0 %v18224_v44  ;;  %v1231_v37 = vshll.u32 %v18242_v23, 16 }
  0x2b   : > { %v1225_v38 = vor.u32 %v1224_v29, %v1221_v28  ;;  %17230 = vmatprep.subr.bf16.mxu1 %v18262_v32  ;;  %v18283_v28 = vld [vmem:[%s22911_s1 + $0x80] sm:$0xff]  }
  0x2c   : > { %17055 = vmatmul.mubr.bf16.vlgmr.msra.gmra.mxu0 %v373_v42  ;;  %v1230_v42 = vrot.slane %v1228_v34, 3  ;;  %v1294_v34 = vshll.u32 %v18259_v19, 16 }
  0x2d   : > { %17119 = vmatmul.mubr.bf16.vlgmr.msra.gmra.mxu1 %v1163_v52  ;;  %17167 = vmatpush3.bf16.msra.mxu0 %v18224_v44  ;;  %v1217_v44 = vsel %vm1137_vm0, %v1207_v20, %v1216_v35  ;;  %v1226_v47 = vsel %vm1137_vm0, %v1216_v35, %v1225_v38  ;;  %v389_v52 = vld [vmem:[%s18919_s12 + $0x60] sm:$0xff]  }
  0x2e   : > { %17058 = vmatprep.mubr.bf16.mxu0 %v375_v45  ;;  %17122 = vmatprep.mubr.bf16.mxu1 %v1172_v57  ;;  %v1233_v45 = vrot.slane %v1231_v37, 4  ;;  %v1249_v57 = vshll.u32 %v18247_v43, 16  ;;  %v401_v43 = vld [vmem:[%s18919_s12 + $0x90] sm:$0xff]  }
  0x2f   : > { %17168 = vmatprep.subr.bf16.mxu0 %v18229_v55  ;;  %17231 = vmatpush3.bf16.msra.mxu1 %v18262_v32 }
  0x30   : > { %17232 = vmatprep.subr.bf16.mxu1 %v18263_v41  ;;  %v1251_v2 = vrot.slane %v1249_v57, 4 }
  0x31   : > { %17169 = vmatpush3.bf16.msra.mxu0 %v18229_v55  ;;  %v1234_v55 = vor.u32 %v1233_v45, %v1230_v42  ;;  %v1296_v42 = vrot.slane %v1294_v34, 4  ;;  %v18288_v34 = vld [vmem:[%s18919_s12 + $0x14] sm:$0xff]  }
  0x32   : > { %17170 = vmatprep.subr.bf16.mxu0 %v18238_v1  ;;  %v1252_v11 = vor.u32 %v1251_v2, %v1248_v63 }
  0x33   : > { %17233 = vmatpush3.bf16.msra.mxu1 %v18263_v41  ;;  %v1244_v4 = vsel %vm1137_vm0, %v1234_v55, %v1243_v58 }
  0x34   : > { %17059 = vmatmul.mubr.bf16.gmra.mxu0 %v377_v60  ;;  %v1258_v60 = vshll.u32 %v18249_v46, 16  ;;  %17234 = vmatprep.subr.bf16.mxu1 %v18269_v51  ;;  %v1253_v20 = vsel %vm1137_vm0, %v1243_v58, %v1252_v11  ;;  %v18272_v58 = vld [vmem:[%s18919_s12 + $0xb0] sm:$0xff]  }
  0x35   : > { %17123 = vmatmul.mubr.bf16.gmra.mxu1 %v1181_v7  ;;  %17062 = vmatprep.mubr.bf16.mxu0 %v379_v61  ;;  %v18251_v61 = vld [vmem:[%s18919_s12 + $0x78] sm:$0xff]   ;;  %v393_v7 = vld [vmem:[%s18919_s12 + $0x70] sm:$0xff]   ;;  %v1330_v2 = vshll.u32 %v18272_v58, 16 }
  0x36   : > { %17126 = vmatprep.mubr.bf16.mxu1 %v1190_v10  ;;  %17171 = vmatpush3.bf16.msra.mxu0 %v18238_v1  ;;  %v1235_v1 = vsel %vm1137_vm0, %v1225_v38, %v1234_v55  ;;  %v1260_v6 = vrot.slane %v1258_v60, 4  ;;  %v1264_v8 = vshrl.u32 %v18251_v61, 16  ;;  %v1267_v9 = vshll.u32 %v18251_v61, 16  ;;  %v18277_v10 = vld [vmem:[%s22911_s1 + $0x90] sm:$0xff]   ;;  %v407_v60 = vld [vmem:[%s18919_s12 + $0xa8] sm:$0xff]  }
  0x37   : > { %17172 = vmatprep.subr.bf16.mxu0 %v18243_v13  ;;  %17235 = vmatpush3.bf16.msra.mxu1 %v18269_v51  ;;  %v1318_v61 = vshrl.u32 %v18267_v53, 16 }
  0x38   : > { %17236 = vmatprep.subr.bf16.mxu1 %v18270_v54  ;;  %v1269_v17 = vrot.slane %v1267_v9, 4 }
  0x3a   : > { %17173 = vmatpush3.bf16.msra.mxu0 %v18243_v13  ;;  %v1273_v13 = vshrl.u32 %v18254_v62, 16  ;;  %v1321_v62 = vshll.u32 %v18267_v53, 16  ;;  %v2631_v53 = vshrl.u32 %v18288_v34, 16 }
  0x3b   : > { %17174 = vmatprep.subr.bf16.mxu0 %v18252_v22  ;;  %17237 = vmatpush3.bf16.msra.mxu1 %v18270_v54 }
  0x3c   : > { %17063 = vmatmul.mubr.bf16.gmra.mxu0 %v381_v14  ;;  %17238 = vmatprep.subr.bf16.mxu1 %v18275_v3  ;;  %v1261_v14 = vor.u32 %v1260_v6, %v1257_v5  ;;  %v1275_v21 = vrot.slane %v1273_v13, 3  ;;  %v1323_v6 = vrot.slane %v1321_v62, 4  ;;  %v18297_v62 = vld [vmem:[%s18919_s12 + $0x34] sm:$0xff]  }
  0x3d   : > { %17127 = vmatmul.mubr.bf16.gmra.mxu1 %v1199_v24  ;;  %17066 = vmatprep.mubr.bf16.mxu0 %v383_v16  ;;  %v1266_v16 = vrot.slane %v1264_v8, 3  ;;  %v397_v24 = vld [vmem:[%s18919_s12 + $0x80] sm:$0xff]  }
  0x3e   : > { %17130 = vmatprep.mubr.bf16.mxu1 %v1208_v27  ;;  %17175 = vmatpush3.bf16.msra.mxu0 %v18252_v22  ;;  %v18282_v22 = vld [vmem:[%s22911_s1 + $0x88] sm:$0xff]   ;;  %v1262_v23 = vsel %vm1137_vm0, %v1252_v11, %v1261_v14  ;;  %v1282_v27 = vshrl.u32 %v18256_v18, 16  ;;  %v1279_v32 = vor.u32 %v1278_v25, %v1275_v21  ;;  %v409_v11 = vld [vmem:[%s18919_s12 + $0xb0] sm:$0xff]  }
  0x3f   : > { %17176 = vmatprep.subr.bf16.mxu0 %v18257_v31  ;;  %17239 = vmatpush3.bf16.msra.mxu1 %v18275_v3  ;;  %v1270_v29 = vor.u32 %v1269_v17, %v1266_v16  ;;  %v1320_v3 = vrot.slane %v1318_v61, 3 }
  0x40   : > { %17240 = vmatprep.subr.bf16.mxu1 %v18277_v10  ;;  %v1284_v35 = vrot.slane %v1282_v27, 3  ;;  %v18287_v27 = vld [vmem:[%s18919_s12 + $0xc] sm:$0xff]  }
  0x41   : > { %v1271_v37 = vsel %vm1137_vm0, %v1261_v14, %v1270_v29  ;;  %v1280_v40 = vsel %vm1137_vm0, %v1270_v29, %v1279_v32  ;;  %v1324_v14 = vor.u32 %v1323_v6, %v1320_v3  ;;  %v415_v29 = vld [vmem:[%s18919_s12 + $0xc8] sm:$0xff]  }
  0x42   : > { %17177 = vmatpush3.bf16.msra.mxu0 %v18257_v31  ;;  %v1285_v31 = vshll.u32 %v18256_v18, 16 }
  0x43   : > { %17178 = vmatprep.subr.bf16.mxu0 %v18268_v50  ;;  %17241 = vmatpush3.bf16.msra.mxu1 %v18277_v10  ;;  %v1332_v10 = vrot.slane %v1330_v2, 4 }
  0x44   : > { %17067 = vmatmul.mubr.bf16.gmra.mxu0 %v385_v33  ;;  %17242 = vmatprep.subr.bf16.mxu1 %v18282_v22  ;;  %v1291_v33 = vshrl.u32 %v18259_v19, 16  ;;  %v1287_v38 = vrot.slane %v1285_v31, 4 }
  0x45   : > { %17131 = vmatmul.mubr.bf16.gmra.mxu1 %v1217_v44  ;;  %17070 = vmatprep.mubr.bf16.mxu0 %v387_v36  ;;  %v18261_v36 = vld [vmem:[%s18919_s12 + $0x98] sm:$0xff]  }
  0x46   : > { %17134 = vmatprep.mubr.bf16.mxu1 %v1226_v47  ;;  %17179 = vmatpush3.bf16.msra.mxu0 %v18268_v50  ;;  %v1293_v41 = vrot.slane %v1291_v33, 3  ;;  %v1300_v44 = vshrl.u32 %v18261_v36, 16  ;;  %v1303_v45 = vshll.u32 %v18261_v36, 16  ;;  %v1288_v46 = vor.u32 %v1287_v38, %v1284_v35  ;;  %v403_v47 = vld [vmem:[%s18919_s12 + $0x98] sm:$0xff]  }
  0x47   : > { %17180 = vmatprep.subr.bf16.mxu0 %v18276_v0  ;;  %17243 = vmatpush3.bf16.msra.mxu1 %v18282_v22  ;;  %v1312_v50 = vshll.u32 %v18265_v39, 16  ;;  %v2622_v35 = vshll.u32 %v18287_v27, 16  ;;  %v2620_v39 = vshrl.u32 %v18287_v27, 16 }
  0x48   : > { %17244 = vmatprep.subr.bf16.mxu1 %v18283_v28  ;;  %v1297_v48 = vor.u32 %v1296_v42, %v1293_v41  ;;  %v1302_v51 = vrot.slane %v1300_v44, 3  ;;  %v1289_v54 = vsel %vm1137_vm0, %v1279_v32, %v1288_v46  ;;  %v2627_v42 = vshll.u32 %v18288_v34, 16  ;;  %v18289_v44 = vld [vmem:[%s18919_s12 + $0x1c] sm:$0xff]  }
  0x49   : > { %v1314_v57 = vrot.slane %v1312_v50, 4  ;;  %v2624_v41 = vrot.slane %v2622_v35, 1  ;;  %v18284_v50 = vld [vmem:[%s18919_s12 + $0xc] sm:$0xff]   ;;  %v18315_v34 = vld [vmem:[%s22911_s1 + $0xd8] sm:$0xff]  }
  0x4a   : > { %17181 = vmatpush3.bf16.msra.mxu0 %v18276_v0  ;;  %v1298_v55 = vsel %vm1137_vm0, %v1288_v46, %v1297_v48  ;;  %v18340_v35 = vld [vmem:[%s22911_s1 + $0x158] sm:$0xff]  }
  0x4b   : > { %17294 = vmatprep.subr.bf16.mxu0 %v19029_v26  ;;  %17245 = vmatpush3.bf16.msra.mxu1 %v18283_v28  ;;  %v413_v28 = vld [vmem:[%s18919_s12 + $0xc0] sm:$0xff]   ;;  %v2625_v46 = vor.u32 %v2624_v41, %v2620_v39 }
  0x4c   : > { %17071 = vmatmul.mubr.bf16.gmra.mxu0 %v389_v52  ;;  %v1305_v52 = vrot.slane %v1303_v45, 4 }
  0x4d   : > { %17135 = vmatmul.mubr.bf16.gmra.mxu1 %v1235_v1  ;;  %17074 = vmatprep.mubr.bf16.mxu0 %v391_v56  ;;  %v1311_v56 = vrot.slane %v1309_v49, 3  ;;  %v1327_v1 = vshrl.u32 %v18272_v58, 16  ;;  %v18327_v49 = vld [vmem:[%s22911_s1 + $0x178] sm:$0xff]   ;;  %v18293_v58 = vld [vmem:[%s18919_s12 + $0x2c] sm:$0xff]  }
  0x4e   : > { %17138 = vmatprep.mubr.bf16.mxu1 %v1244_v4  ;;  %v1306_v63 = vor.u32 %v1305_v52, %v1302_v51  ;;  %v18274_v4 = vld [vmem:[%s18919_s12 + $0xb8] sm:$0xff]   ;;  %v2635_v51 = vshll.u32 %v18289_v44, 16  ;;  %17358 = vmatprep.subr.bf16.mxu1 %v18327_v49  ;;  %v2655_v6 = vshrl.u32 %v18293_v58, 16 }
  0x4f   : > { %v1315_v0 = vor.u32 %v1314_v57, %v1311_v56  ;;  %v1329_v9 = vrot.slane %v1327_v1, 3  ;;  %v1336_v13 = vshrl.u32 %v18274_v4, 16  ;;  %v1339_v15 = vshll.u32 %v18274_v4, 16  ;;  %v18294_v4 = vld [vmem:[%s22911_s1 + $0xf0] sm:$0xff]  }
  0x50   : > { %v1307_v5 = vsel %vm1137_vm0, %v1297_v48, %v1306_v63  ;;  %v18292_v48 = vld [vmem:[%s18919_s12 + $0x24] sm:$0xff]   ;;  %v2637_v57 = vrot.slane %v2635_v51, 1  ;;  %v2651_v1 = vshll.u32 %v18293_v58, 16 }
  0x51   : > { %v1316_v8 = vsel %vm1137_vm0, %v1306_v63, %v1315_v0  ;;  %v1333_v17 = vor.u32 %v1332_v10, %v1329_v9  ;;  %v1338_v19 = vrot.slane %v1336_v13, 3  ;;  %v1325_v21 = vsel %vm1137_vm0, %v1315_v0, %v1324_v14  ;;  %v18285_v63 = vld [vmem:[%s18919_s12 + $0x14] sm:$0xff]   ;;  %v18290_v0 = vld [vmem:[%s18919_s12 + $0x1c] sm:$0xff]   ;;  %v18301_v13 = vld [vmem:[%s22911_s1 + $0xe8] sm:$0xff]  }
  0x52   : > { %v1341_v22 = vrot.slane %v1339_v15, 4  ;;  %v2643_v56 = vshll.u32 %v18292_v48, 16  ;;  %v2647_v3 = vshrl.u32 %v18292_v48, 16  ;;  %v2653_v9 = vrot.slane %v2651_v1, 1  ;;  %v18298_v10 = vld [vmem:[%s18919_s12 + $0x3c] sm:$0xff]   ;;  %v18311_v51 = vld [vmem:[%s18919_s12 + $0x64] sm:$0xff]  }
  0x54   : > { %17075 = vmatmul.mubr.bf16.gmra.mxu0 %v393_v7  ;;  %v18279_v7 = vld [vmem:[%s18919_s12 + $0xc0] sm:$0xff]   ;;  %v1342_v32 = vor.u32 %v1341_v22, %v1338_v19  ;;  %v2645_v61 = vrot.slane %v2643_v56, 1  ;;  %v2671_v22 = vshrl.u32 %v18298_v10, 16 }
  0x55   : > { %17139 = vmatmul.mubr.bf16.gmra.mxu1 %v1253_v20  ;;  %17078 = vmatprep.mubr.bf16.mxu0 %v395_v12  ;;  %v411_v12 = vld [vmem:[%s18919_s12 + $0xb8] sm:$0xff]   ;;  %v1345_v16 = vshrl.u32 %v18279_v7, 16  ;;  %v1348_v18 = vshll.u32 %v18279_v7, 16  ;;  %v18281_v20 = vld [vmem:[%s18919_s12 + $0xc8] ss:$0 sps:$4 sm:$0xff]   ;;  %v2659_v7 = vshll.u32 %v18297_v62, 16 }
  0x56   : > { %17142 = vmatprep.mubr.bf16.mxu1 %v1262_v23  ;;  %v1357_v31 = vshll.u32 %v18281_v20, 16 }
  0x57   : > { %v1347_v23 = vrot.slane %v1345_v16, 3  ;;  %v1350_v25 = vrot.slane %v1348_v18, 4  ;;  %v2661_v15 = vrot.slane %v2659_v7, 1  ;;  %v18302_v16 = vld [vmem:[%s18919_s12 + $0x44] sm:$0xff]   ;;  %v2667_v18 = vshll.u32 %v18298_v10, 16  ;;  %v18309_v7 = vld [vmem:[%s18919_s12 + $0x5c] sm:$0xff]  }
  0x58   : > { %v1359_v38 = vrot.slane %v1357_v31, 4  ;;  %v2679_v39 = vshrl.u32 %v18302_v16, 16  ;;  %v2711_v10 = vshrl.u32 %v18311_v51, 16 }
  0x59   : > { %v1351_v33 = vor.u32 %v1350_v25, %v1347_v23  ;;  %v2675_v23 = vshll.u32 %v18302_v16, 16  ;;  %v18335_v25 = vld [vmem:[%s22911_s1 + $0x160] sm:$0xff]   ;;  %v2669_v27 = vrot.slane %v2667_v18, 1 }
  0x5a   : > { %v18320_v18 = vld [vmem:[%s18919_s12 + $0x84] sm:$0xff]  }
  0x5b   : > { %v2673_v31 = vor.u32 %v2671_v22, %v2669_v27 }
  0x5c   : > { %17079 = vmatmul.mubr.bf16.gmra.mxu0 %v397_v24  ;;  %v1334_v24 = vsel %vm1137_vm0, %v1324_v14, %v1333_v17  ;;  %v2657_v14 = vor.u32 %v2655_v6, %v2653_v9  ;;  %v18305_v6 = vld [vmem:[%s18919_s12 + $0x54] sm:$0xff]  }
  0x5d   : > { %17143 = vmatmul.mubr.bf16.gmra.mxu1 %v1271_v37  ;;  %17082 = vmatprep.mubr.bf16.mxu0 %v399_v30  ;;  %v1354_v30 = vshrl.u32 %v18281_v20, 16  ;;  %v1343_v37 = vsel %vm1137_vm0, %v1333_v17, %v1342_v32  ;;  %v18295_v17 = vld [vmem:[%s18919_s12 + $0x2c] sm:$0xff]   ;;  %v2663_v20 = vshrl.u32 %v18297_v62, 16  ;;  %v18348_v62 = vld [vmem:[%s22911_s1 + $0x140] sm:$0xff]  }
  0x5e   : > { %17146 = vmatprep.mubr.bf16.mxu1 %v1280_v40  ;;  %v1352_v40 = vsel %vm1137_vm0, %v1342_v32, %v1351_v33  ;;  %v2677_v32 = vrot.slane %v2675_v23, 1 }
  0x5f   : > { %v1356_v36 = vrot.slane %v1354_v30, 3  ;;  %v2665_v30 = vor.u32 %v2663_v20, %v2661_v15  ;;  %v18313_v20 = vld [vmem:[%s18919_s12 + $0x6c] sm:$0xff]  }
  0x60   : > { %v2681_v48 = vor.u32 %v2679_v39, %v2677_v32 }
  0x61   : > { %v1360_v45 = vor.u32 %v1359_v38, %v1356_v36  ;;  %v18299_v36 = vld [vmem:[%s18919_s12 + $0x3c] sm:$0xff]   ;;  %v2670_v38 = vsel %vm2618_vm1, %v2665_v30, %v2669_v27  ;;  %v2739_v27 = vshll.u32 %v18320_v18, 16 }
  0x63   : > { %v1361_v52 = vsel %vm1137_vm0, %v1351_v33, %v1360_v45  ;;  %v18306_v33 = vld [vmem:[%s18919_s12 + $0x54] sm:$0xff]  }
  0x64   : > { %17083 = vmatmul.mubr.bf16.gmra.mxu0 %v401_v43  ;;  %v417_v43 = vld [vmem:[%s18919_s12 + $0xd0] sm:$0xff]  }
  0x65   : > { %17147 = vmatmul.mubr.bf16.gmra.mxu1 %v1289_v54  ;;  %17086 = vmatprep.mubr.bf16.mxu0 %v403_v47  ;;  %v2629_v47 = vrot.slane %v2627_v42, 1  ;;  %v2691_v42 = vshll.u32 %v18306_v33, 16 }
  0x66   : > { %17150 = vmatprep.mubr.bf16.mxu1 %v1298_v55  ;;  %v2639_v55 = vshrl.u32 %v18289_v44, 16  ;;  %v18342_v44 = vld [vmem:[%s22911_s1 + $0x150] sm:$0xff]  }
  0x67   : > { %v2630_v54 = vsel %vm2618_vm1, %v2625_v46, %v2629_v47  ;;  %v18307_v46 = vld [vmem:[%s18919_s12 + $0x5c] sm:$0xff]  }
  0x6c   : > { %17087 = vmatmul.mubr.bf16.gmra.mxu0 %v405_v59  ;;  %v2633_v59 = vor.u32 %v2631_v53, %v2629_v47  ;;  %v18300_v47 = vld [vmem:[%s18919_s12 + $0x44] sm:$0xff]  }
  0x6d   : > { %17151 = vmatmul.mubr.bf16.gmra.mxu1 %v1307_v5  ;;  %17090 = vmatprep.mubr.bf16.mxu0 %v407_v60  ;;  %v2641_v60 = vor.u32 %v2639_v55, %v2637_v57  ;;  %v18347_v53 = vld [vmem:[%s22911_s1 + $0x148] sm:$0xff]   ;;  %v2699_v55 = vshll.u32 %v18307_v46, 16 }
  0x6e   : > { %17154 = vmatprep.mubr.bf16.mxu1 %v1316_v8  ;;  %v2638_v2 = vsel %vm2618_vm1, %v2633_v59, %v2637_v57  ;;  %v18328_v8 = vld [vmem:[%s22911_s1 + $0x170] sm:$0xff]   ;;  %v2695_v57 = vshrl.u32 %v18306_v33, 16  ;;  %v2703_v59 = vshrl.u32 %v18307_v46, 16 }
  0x6f   : > { %v2646_v5 = vsel %vm2618_vm1, %v2641_v60, %v2645_v61  ;;  %v2707_v60 = vshll.u32 %v18311_v51, 16  ;;  %v18325_v33 = vld [vmem:[%s18919_s12 + $0x94] sm:$0xff]  }
  0x74   : > { %17091 = vmatmul.mubr.bf16.gmra.mxu0 %v409_v11  ;;  %v18291_v11 = vld [vmem:[%s18919_s12 + $0x24] sm:$0xff]  }
  0x75   : > { %17155 = vmatmul.mubr.bf16.gmra.mxu1 %v1325_v21  ;;  %17094 = vmatprep.mubr.bf16.mxu0 %v411_v12  ;;  %v2649_v12 = vor.u32 %v2647_v3, %v2645_v61  ;;  %v2662_v21 = vsel %vm2618_vm1, %v2657_v14, %v2661_v15  ;;  %v18341_v61 = vld [vmem:[%s22911_s1 + $0xc0] sm:$0xff]  }
  0x76   : > { %17158 = vmatprep.mubr.bf16.mxu1 %v1334_v24  ;;  %v18308_v24 = vld [vmem:[%s22911_s1 + $0xe0] sm:$0xff]  }
  0x77   : > { %v2654_v19 = vsel %vm2618_vm1, %v2649_v12, %v2653_v9  ;;  %v18317_v15 = vld [vmem:[%s18919_s12 + $0x7c] sm:$0xff]  }
  0x7c   : > { %17095 = vmatmul.mubr.bf16.gmra.mxu0 %v413_v28  ;;  %v18303_v28 = vld [vmem:[%s18919_s12 + $0x4c] sm:$0xff]  }
  0x7d   : > { %17159 = vmatmul.mubr.bf16.gmra.mxu1 %v1343_v37  ;;  %17098 = vmatprep.mubr.bf16.mxu0 %v415_v29  ;;  %v18296_v29 = vld [vmem:[%s18919_s12 + $0x34] sm:$0xff]   ;;  %v2683_v37 = vshll.u32 %v18303_v28, 16  ;;  %v2687_v41 = vshrl.u32 %v18303_v28, 16 }
  0x7e   : > { %17162 = vmatprep.mubr.bf16.mxu1 %v1352_v40  ;;  %v2678_v40 = vsel %vm2618_vm1, %v2673_v31, %v2677_v32  ;;  %v2741_v32 = vrot.slane %v2739_v27, 1  ;;  %v18353_v27 = vld [vmem:[%s18919_s12 + $0x18] sm:$0xff]  }
  0x7f   : > { %v2685_v45 = vrot.slane %v2683_v37, 1 }
  0x81   : > { %v2686_v56 = vsel %vm2618_vm1, %v2681_v48, %v2685_v45  ;;  %v18319_v48 = vld [vmem:[%s18919_s12 + $0x84] sm:$0xff]  }
  0x84   : > { %17099 = vmatmul.mubr.bf16.gmra.mxu0 %v417_v43  ;;  %v18322_v43 = vld [vmem:[%s22911_s1 + $0xd0] sm:$0xff]  }
  0x85   : > { %17163 = vmatmul.mubr.bf16.gmra.mxu1 %v1361_v52  ;;  %17182 = vmatprep.mubr.bf16.mxu0 %v18284_v50  ;;  %v2693_v50 = vrot.slane %v2691_v42, 1  ;;  %v18331_v52 = vld [vmem:[%s22911_s1 + $0xc8] sm:$0xff]  }
  0x86   : > { %17246 = vmatprep.mubr.bf16.mxu1 %v2630_v54  ;;  %v18304_v54 = vld [vmem:[%s18919_s12 + $0x4c] sm:$0xff]  }
  0x87   : > { %v2697_v1 = vor.u32 %v2695_v57, %v2693_v50  ;;  %v18333_v57 = vld [vmem:[%s18919_s12 + $0xac] sm:$0xff]  }
  0x8c   : > { %17183 = vmatmul.mubr.bf16.vlgmr.msra.gmra.mxu0 %v18285_v63  ;;  %v2701_v63 = vrot.slane %v2699_v55, 1 }
  0x8d   : > { %17295 = vmatpush3.bf16.msra.mxu0 %v19029_v26  ;;  %17247 = vmatmul.mubr.bf16.vlgmr.msra.gmra.mxu1 %v2638_v2  ;;  %v18334_v26 = vld [vmem:[%s22911_s1 + $0x168] sm:$0xff]   ;;  %v18316_v2 = vld [vmem:[%s18919_s12 + $0x74] sm:$0xff]  }
  0x8e   : > { %17186 = vmatprep.mubr.bf16.mxu0 %v18290_v0  ;;  %17250 = vmatprep.mubr.bf16.mxu1 %v2646_v5  ;;  %v18312_v0 = vld [vmem:[%s18919_s12 + $0x6c] sm:$0xff]   ;;  %v2705_v3 = vor.u32 %v2703_v59, %v2701_v63  ;;  %v19144_v5 = vld [vmem:[%s22911_s1 + $0x1b8] sm:$0xff]   ;;  %v2702_v9 = vsel %vm2618_vm1, %v2697_v1, %v2701_v63  ;;  %v2727_v23 = vshrl.u32 %v18316_v2, 16  ;;  %v2779_v1 = vshll.u32 %v18333_v57, 16 }
  0x8f   : > { %17296 = vmatprep.subr.bf16.mxu0 %v18294_v4  ;;  %17359 = vmatpush3.bf16.msra.mxu1 %v18327_v49  ;;  %v2689_v49 = vor.u32 %v2687_v41, %v2685_v45  ;;  %v2719_v12 = vshrl.u32 %v18312_v0, 16  ;;  %v2755_v41 = vshll.u32 %v18325_v33, 16  ;;  %v18338_v59 = vld [vmem:[%s18919_s12 + $0xb4] sm:$0xff]  }
  0x90   : > { %17360 = vmatprep.subr.bf16.mxu1 %v18328_v8  ;;  %v18324_v63 = vld [vmem:[%s18919_s12 + $0x94] sm:$0xff]  }
  0x91   : > { %17297 = vmatpush3.bf16.msra.mxu0 %v18294_v4  ;;  %v2694_v58 = vsel %vm2618_vm1, %v2689_v49, %v2693_v50  ;;  %v2709_v4 = vrot.slane %v2707_v60, 1  ;;  %v2757_v46 = vrot.slane %v2755_v41, 1  ;;  %v18323_v49 = vld [vmem:[%s18919_s12 + $0x8c] sm:$0xff]  }
  0x92   : > { %17298 = vmatprep.subr.bf16.mxu0 %v18301_v13 }
  0x93   : > { %17361 = vmatpush3.bf16.msra.mxu1 %v18328_v8  ;;  %v2715_v8 = vshll.u32 %v18312_v0, 16  ;;  %v2713_v16 = vor.u32 %v2711_v10, %v2709_v4  ;;  %v18329_v0 = vld [vmem:[%s18919_s12 + $0x9c] sm:$0xff]   ;;  %v18345_v10 = vld [vmem:[%s18919_s12 + $0xc4] sm:$0xff]  }
  0x94   : > { %17187 = vmatmul.mubr.bf16.gmra.mxu0 %v18291_v11  ;;  %17362 = vmatprep.subr.bf16.mxu1 %v18334_v26  ;;  %v2710_v11 = vsel %vm2618_vm1, %v2705_v3, %v2709_v4  ;;  %v2787_v4 = vshll.u32 %v18338_v59, 16 }
  0x95   : > { %17251 = vmatmul.mubr.bf16.gmra.mxu1 %v2654_v19  ;;  %17190 = vmatprep.mubr.bf16.mxu0 %v18295_v17  ;;  %v2717_v14 = vrot.slane %v2715_v8, 1  ;;  %v18310_v19 = vld [vmem:[%s18919_s12 + $0x64] sm:$0xff]  }
  0x96   : > { %17254 = vmatprep.mubr.bf16.mxu1 %v2662_v21  ;;  %17299 = vmatpush3.bf16.msra.mxu0 %v18301_v13  ;;  %v2723_v13 = vshll.u32 %v18316_v2, 16  ;;  %v2731_v21 = vshll.u32 %v18317_v15, 16 }
  0x97   : > { %17300 = vmatprep.subr.bf16.mxu0 %v18308_v24  ;;  %17363 = vmatpush3.bf16.msra.mxu1 %v18334_v26  ;;  %v2721_v26 = vor.u32 %v2719_v12, %v2717_v14  ;;  %v2718_v22 = vsel %vm2618_vm1, %v2713_v16, %v2717_v14  ;;  %v2791_v14 = vshrl.u32 %v18338_v59, 16 }
  0x98   : > { %17364 = vmatprep.subr.bf16.mxu1 %v18335_v25  ;;  %v2725_v17 = vrot.slane %v2723_v13, 1  ;;  %v2733_v28 = vrot.slane %v2731_v21, 1  ;;  %v2789_v13 = vrot.slane %v2787_v4, 1  ;;  %v18349_v21 = vld [vmem:[%s18919_s12 + $0x14] sm:$0xf8]  }
  0x9a   : > { %17301 = vmatpush3.bf16.msra.mxu0 %v18308_v24  ;;  %v2726_v24 = vsel %vm2618_vm1, %v2721_v26, %v2725_v17  ;;  %v2729_v30 = vor.u32 %v2727_v23, %v2725_v17  ;;  %v18351_v23 = vld [vmem:[%s18919_s12 + $0x24] sm:$0xff]  }
  0x9b   : > { %17302 = vmatprep.subr.bf16.mxu0 %v18315_v34  ;;  %17365 = vmatpush3.bf16.msra.mxu1 %v18335_v25  ;;  %v2735_v25 = vshrl.u32 %v18317_v15, 16  ;;  %v18336_v15 = vld [vmem:[%s18919_s12 + $0xac] sm:$0xff]   ;;  %v3466_v41 = vshll.u32 %v18351_v23, 16 }
  0x9c   : > { %17191 = vmatmul.mubr.bf16.gmra.mxu0 %v18296_v29  ;;  %17366 = vmatprep.subr.bf16.mxu1 %v18340_v35  ;;  %v18321_v29 = vld [vmem:[%s18919_s12 + $0x8c] sm:$0xff]   ;;  %v2734_v37 = vsel %vm2618_vm1, %v2729_v30, %v2733_v28  ;;  %v3449_v30 = vshll.u32 %v18349_v21, 16 }
  0x9d   : > { %17255 = vmatmul.mubr.bf16.gmra.mxu1 %v2670_v38  ;;  %17194 = vmatprep.mubr.bf16.mxu0 %v18299_v36  ;;  %v2737_v31 = vor.u32 %v2735_v25, %v2733_v28  ;;  %v2747_v36 = vshll.u32 %v18321_v29, 16  ;;  %v2743_v38 = vshrl.u32 %v18320_v18, 16  ;;  %v18350_v18 = vld [vmem:[%s18919_s12 + $0x1c] sm:$0xff]   ;;  %v2807_v25 = vshrl.u32 %v18345_v10, 16 }
  0x9e   : > { %17258 = vmatprep.mubr.bf16.mxu1 %v2678_v40  ;;  %17303 = vmatpush3.bf16.msra.mxu0 %v18315_v34  ;;  %v18314_v34 = vld [vmem:[%s18919_s12 + $0x74] sm:$0xff]   ;;  %v2751_v40 = vshrl.u32 %v18321_v29, 16  ;;  %v3446_v29 = vshrl.u32 %v18349_v21, 16  ;;  %v18362_v21 = vld [vmem:[%s18919_s12 + $0x44] sm:$0xff]  }
  0x9f   : > { %17304 = vmatprep.subr.bf16.mxu0 %v18322_v43  ;;  %17367 = vmatpush3.bf16.msra.mxu1 %v18340_v35  ;;  %v18318_v35 = vld [vmem:[%s18919_s12 + $0x7c] sm:$0xff]   ;;  %v2742_v39 = vsel %vm2618_vm1, %v2737_v31, %v2741_v32  ;;  %v2749_v42 = vrot.slane %v2747_v36, 1  ;;  %v3454_v31 = vshrl.u32 %v18350_v18, 16 }
  0xa0   : > { %17368 = vmatprep.subr.bf16.mxu1 %v18342_v44 }
  0xa1   : > { %v2753_v45 = vor.u32 %v2751_v40, %v2749_v42 }
  0xa2   : > { %17305 = vmatpush3.bf16.msra.mxu0 %v18322_v43  ;;  %v18326_v43 = vld [vmem:[%s18919_s12 + $0x9c] sm:$0xff]  }
  0xa3   : > { %17306 = vmatprep.subr.bf16.mxu0 %v18331_v52  ;;  %17369 = vmatpush3.bf16.msra.mxu1 %v18342_v44  ;;  %v2745_v44 = vor.u32 %v2743_v38, %v2741_v32  ;;  %v2763_v50 = vshll.u32 %v18326_v43, 16  ;;  %v3457_v32 = vshll.u32 %v18350_v18, 16  ;;  %v4302_v38 = vshll.u32 %v18353_v27, 16 }
  0xa4   : > { %17195 = vmatmul.mubr.bf16.gmra.mxu0 %v18300_v47  ;;  %17370 = vmatprep.subr.bf16.mxu1 %v18347_v53  ;;  %v18332_v47 = vld [vmem:[%s18919_s12 + $0xa4] sm:$0xff]  }
  0xa5   : > { %17259 = vmatmul.mubr.bf16.gmra.mxu1 %v2686_v56  ;;  %17198 = vmatprep.mubr.bf16.mxu0 %v18304_v54  ;;  %v2750_v51 = vsel %vm2618_vm1, %v2745_v44, %v2749_v42  ;;  %v2767_v54 = vshrl.u32 %v18326_v43, 16  ;;  %v2771_v55 = vshll.u32 %v18332_v47, 16  ;;  %v2765_v56 = vrot.slane %v2763_v50, 1  ;;  %v18354_v42 = vld [vmem:[%s18919_s12 + $0x20] sm:$0xff]  }
  0xa6   : > { %17262 = vmatprep.mubr.bf16.mxu1 %v2694_v58  ;;  %17307 = vmatpush3.bf16.msra.mxu0 %v18331_v52  ;;  %v2759_v52 = vshrl.u32 %v18325_v33, 16  ;;  %v2775_v3 = vshrl.u32 %v18332_v47, 16  ;;  %v2793_v33 = vor.u32 %v2791_v14, %v2789_v13  ;;  %v3448_v43 = vrot.slane %v3446_v29, 3 }
  0xa7   : > { %17308 = vmatprep.subr.bf16.mxu0 %v18341_v61  ;;  %17371 = vmatpush3.bf16.msra.mxu1 %v18347_v53  ;;  %v2758_v53 = vsel %vm2618_vm1, %v2753_v45, %v2757_v46  ;;  %v2769_v60 = vor.u32 %v2767_v54, %v2765_v56  ;;  %v3456_v44 = vrot.slane %v3454_v31, 3  ;;  %v3459_v45 = vrot.slane %v3457_v32, 4  ;;  %v18357_v54 = vld [vmem:[%s18919_s12 + $0x34] sm:$0xff]   ;;  %v18365_v32 = vld [vmem:[%s18919_s12 + $0x4c] sm:$0xff]  }
  0xa8   : > { %17372 = vmatprep.subr.bf16.mxu1 %v18348_v62  ;;  %v2761_v58 = vor.u32 %v2759_v52, %v2757_v46  ;;  %v18356_v46 = vld [vmem:[%s18919_s12 + $0x2c] sm:$0xff]   ;;  %v3451_v47 = vrot.slane %v3449_v30, 4  ;;  %v4304_v50 = vrot.slane %v4302_v38, 1  ;;  %v3502_v38 = vshll.u32 %v18362_v21, 16 }
  0xaa   : > { %17309 = vmatpush3.bf16.msra.mxu0 %v18341_v61  ;;  %v2773_v61 = vrot.slane %v2771_v55, 1  ;;  %v2766_v2 = vsel %vm2618_vm1, %v2761_v58, %v2765_v56  ;;  %v3472_v55 = vshrl.u32 %v18356_v46, 16  ;;  %v3475_v56 = vshll.u32 %v18356_v46, 16 }
  0xab   : > { %17373 = vmatpush3.bf16.msra.mxu1 %v18348_v62  ;;  %17422 = vmatprep.subr.bf16.mxu0 %v19144_v5  ;;  %v18339_v62 = vld [vmem:[%s18919_s12 + $0xbc] sm:$0xff]  }
  0xac   : > { %17199 = vmatmul.mubr.bf16.gmra.mxu0 %v18305_v6  ;;  %v2774_v6 = vsel %vm2618_vm1, %v2769_v60, %v2773_v61  ;;  %v2795_v8 = vshll.u32 %v18339_v62, 16  ;;  %v2777_v12 = vor.u32 %v2775_v3, %v2773_v61  ;;  %v2799_v17 = vshrl.u32 %v18339_v62, 16  ;;  %v19201_v60 = vld [vmem:[%s18919_s12 + $0x30] sm:$0xff]   ;;  %v19204_v61 = vld [vmem:[%s18919_s12 + $0x38] sm:$0xff]   ;;  %v18344_v62 = vld [vmem:[%s18919_s12 + $0xc4] sm:$0xff]  }
  0xad   : > { %17263 = vmatmul.mubr.bf16.gmra.mxu1 %v2702_v9  ;;  %17202 = vmatprep.mubr.bf16.mxu0 %v18309_v7  ;;  %v2783_v7 = vshrl.u32 %v18333_v57, 16  ;;  %v2781_v9 = vrot.slane %v2779_v1, 1  ;;  %v3468_v1 = vrot.slane %v3466_v41, 4  ;;  %v4331_v14 = vshll.u32 %v19204_v61, 16 }
  0xae   : > { %17266 = vmatprep.mubr.bf16.mxu1 %v2710_v11  ;;  %v18330_v11 = vld [vmem:[%s18919_s12 + $0xa4] sm:$0xff]   ;;  %v2797_v26 = vrot.slane %v2795_v8, 1  ;;  %v18361_v8 = vld [vmem:[%s18919_s12 + $0x3c] sm:$0xff]   ;;  %v4327_v31 = vshrl.u32 %v19201_v60, 16 }
  0xaf   : > { %v2785_v16 = vor.u32 %v2783_v7, %v2781_v9  ;;  %v3481_v7 = vshrl.u32 %v18357_v54, 16  ;;  %v3493_v18 = vshll.u32 %v18361_v8, 16 }
  0xb0   : > { %v2801_v40 = vor.u32 %v2799_v17, %v2797_v26  ;;  %v3490_v17 = vshrl.u32 %v18361_v8, 16 }
  0xb1   : > { %v2790_v28 = vsel %vm2618_vm1, %v2785_v16, %v2789_v13  ;;  %v4323_v13 = vshll.u32 %v19201_v60, 16  ;;  %v3504_v60 = vrot.slane %v3502_v38, 4 }
  0xb4   : > { %17203 = vmatmul.mubr.bf16.gmra.mxu0 %v18310_v19  ;;  %v19183_v19 = vld [vmem:[%s22911_s1 + $0x1f8] sm:$0xff]  }
  0xb5   : > { %17267 = vmatmul.mubr.bf16.gmra.mxu1 %v2718_v22  ;;  %17206 = vmatprep.mubr.bf16.mxu0 %v18313_v20  ;;  %v18346_v20 = vld [vmem:[%s18919_s12 + $0xcc] ss:$0 sps:$4 sm:$0x11]   ;;  %v2803_v22 = vshll.u32 %v18345_v10, 16  ;;  %v3477_v10 = vrot.slane %v3475_v56, 4 }
  0xb6   : > { %17270 = vmatprep.mubr.bf16.mxu1 %v2726_v24  ;;  %17486 = vmatprep.subr.bf16.mxu1 %v19183_v19  ;;  %v2782_v24 = vsel %vm2618_vm1, %v2777_v12, %v2781_v9  ;;  %v2811_v36 = vshll.u32 %v18346_v20, 16  ;;  %v3474_v9 = vrot.slane %v3472_v55, 3 }
  0xb8   : > { %v2813_v58 = vrot.slane %v2811_v36, 1  ;;  %v3495_v36 = vrot.slane %v3493_v18, 4 }
  0xbc   : > { %17207 = vmatmul.mubr.bf16.gmra.mxu0 %v18314_v34  ;;  %v18337_v34 = vld [vmem:[%s18919_s12 + $0xb4] sm:$0xff]  }
  0xbd   : > { %17271 = vmatmul.mubr.bf16.gmra.mxu1 %v2734_v37  ;;  %17210 = vmatprep.mubr.bf16.mxu0 %v18318_v35  ;;  %v2805_v35 = vrot.slane %v2803_v22, 1  ;;  %v3463_v37 = vshrl.u32 %v18351_v23, 16 }
  0xbe   : > { %17274 = vmatprep.mubr.bf16.mxu1 %v2742_v39  ;;  %v18343_v39 = vld [vmem:[%s18919_s12 + $0xbc] sm:$0xff]  }
  0xbf   : > { %v2806_v52 = vsel %vm2618_vm1, %v2801_v40, %v2805_v35  ;;  %v2809_v57 = vor.u32 %v2807_v25, %v2805_v35  ;;  %v3465_v59 = vrot.slane %v3463_v37, 3  ;;  %v19215_v25 = vld [vmem:[%s18919_s12 + $0x40] sm:$0xff]   ;;  %v3492_v35 = vrot.slane %v3490_v17, 3  ;;  %v18366_v40 = vld [vmem:[%s18919_s12 + $0x54] sm:$0xff]  }
  0xc0   : > { %v3499_v37 = vshrl.u32 %v18362_v21, 16  ;;  %v4343_v46 = vshrl.u32 %v19215_v25, 16  ;;  %v3517_v56 = vshrl.u32 %v18366_v40, 16  ;;  %v19273_v21 = vld [vmem:[%s18919_s12 + $0x64] sm:$0xff]  }
  0xc1   : > { %v3469_v22 = vor.u32 %v3468_v1, %v3465_v59  ;;  %v19237_v55 = vor.u32 %v3495_v36, %v3492_v35 }
  0xc2   : > { %v3501_v59 = vrot.slane %v3499_v37, 3  ;;  %v19290_v37 = vld [vmem:[%s18919_s12 + $0x68] sm:$0xff]  }
  0xc4   : > { %17211 = vmatmul.mubr.bf16.gmra.mxu0 %v18319_v48  ;;  %v4300_v48 = vshrl.u32 %v18353_v27, 16  ;;  %v19218_v27 = vld [vmem:[%s18919_s12 + $0x48] sm:$0xff]  }
  0xc5   : > { %17275 = vmatmul.mubr.bf16.gmra.mxu1 %v2750_v51  ;;  %17214 = vmatprep.mubr.bf16.mxu0 %v18323_v49  ;;  %v2798_v49 = vsel %vm2618_vm1, %v2793_v33, %v2797_v26  ;;  %v18355_v51 = vld [vmem:[%s18919_s12 + $0x28] sm:$0xff]   ;;  %v4325_v33 = vrot.slane %v4323_v13, 1  ;;  %v19259_v13 = vrot.slane %v3517_v56, 3  ;;  %v3538_v56 = vshll.u32 %v19273_v21, 16 }
  0xc6   : > { %17278 = vmatprep.mubr.bf16.mxu1 %v2758_v53  ;;  %v4307_v53 = vshll.u32 %v18354_v42, 16  ;;  %v4305_v3 = vor.u32 %v4304_v50, %v4300_v48  ;;  %v4319_v12 = vshrl.u32 %v18355_v51, 16  ;;  %v3511_v50 = vshll.u32 %v18365_v32, 16 }
  0xc8   : > { %v4309_v4 = vrot.slane %v4307_v53, 1 }
  0xca   : > { %v4310_v26 = vsel %vm2618_vm1, %v4305_v3, %v4309_v4  ;;  %v18367_v3 = vld [vmem:[%s22911_s1 + $0x1a8] sm:$0xff]  }
  0xcc   : > { %17215 = vmatmul.mubr.bf16.gmra.mxu0 %v18324_v63  ;;  %v3452_v63 = vor.u32 %v3451_v47, %v3448_v43  ;;  %v4339_v43 = vshll.u32 %v19215_v25, 16  ;;  %v3508_v47 = vshrl.u32 %v18365_v32, 16  ;;  %v18406_v25 = vld [vmem:[%s22911_s1 + $0x1d8] sm:$0xff]  }
  0xcd   : > { %17279 = vmatmul.mubr.bf16.gmra.mxu1 %v2766_v2  ;;  %17218 = vmatprep.mubr.bf16.mxu0 %v18329_v0  ;;  %v3460_v0 = vor.u32 %v3459_v45, %v3456_v44  ;;  %v4311_v2 = vshrl.u32 %v18354_v42, 16  ;;  %v18360_v42 = vld [vmem:[%s22911_s1 + $0x1b0] sm:$0xff]   ;;  %v4347_v44 = vshll.u32 %v19218_v27, 16 }
  0xce   : > { %17282 = vmatprep.mubr.bf16.mxu1 %v2774_v6  ;;  %v4315_v6 = vshll.u32 %v18355_v51, 16  ;;  %v19235_v51 = vld [vmem:[%s18919_s12 + $0x50] sm:$0xff]   ;;  %v3510_v1 = vrot.slane %v3508_v47, 3 }
  0xcf   : > { %v3461_v16 = vsel %vm1137_vm0, %v3452_v63, %v3460_v0  ;;  %v4313_v23 = vor.u32 %v4311_v2, %v4309_v4  ;;  %v3470_v41 = vsel %vm1137_vm0, %v3460_v0, %v3469_v22  ;;  %v3520_v2 = vshll.u32 %v18366_v40, 16 }
  0xd0   : > { %v4317_v20 = vrot.slane %v4315_v6, 1  ;;  %v4355_v8 = vshll.u32 %v19235_v51, 16 }
  0xd2   : > { %v4321_v30 = vor.u32 %v4319_v12, %v4317_v20  ;;  %v4318_v45 = vsel %vm2618_vm1, %v4313_v23, %v4317_v20  ;;  %v19270_v20 = vrot.slane %v3520_v2, 4 }
  0xd4   : > { %17219 = vmatmul.mubr.bf16.gmra.mxu0 %v18330_v11  ;;  %v3484_v11 = vshll.u32 %v18357_v54, 16  ;;  %v4329_v54 = vor.u32 %v4327_v31, %v4325_v33  ;;  %v4359_v31 = vshrl.u32 %v19235_v51, 16 }
  0xd5   : > { %17283 = vmatmul.mubr.bf16.gmra.mxu1 %v2782_v24  ;;  %17222 = vmatprep.mubr.bf16.mxu0 %v18336_v15  ;;  %v2814_v15 = vsel %vm2618_vm1, %v2809_v57, %v2813_v58  ;;  %v3483_v24 = vrot.slane %v3481_v7, 3  ;;  %v18394_v57 = vld [vmem:[%s22911_s1 + $0x1f0] sm:$0xff]   ;;  %v3513_v7 = vrot.slane %v3511_v50, 4 }
  0xd6   : > { %17286 = vmatprep.mubr.bf16.mxu1 %v2790_v28  ;;  %v3478_v28 = vor.u32 %v3477_v10, %v3474_v9  ;;  %v3486_v29 = vrot.slane %v3484_v11, 4  ;;  %v19253_v9 = vld [vmem:[%s18919_s12 + $0x58] sm:$0xff]  }
  0xd7   : > { %v18370_v10 = vld [vmem:[%s18919_s12 + $0x5c] sm:$0xff]  }
  0xd8   : > { %v3479_v48 = vsel %vm1137_vm0, %v3469_v22, %v3478_v28  ;;  %v3487_v53 = vor.u32 %v3486_v29, %v3483_v24  ;;  %v4363_v24 = vshll.u32 %v19253_v9, 16  ;;  %v3526_v32 = vshrl.u32 %v18370_v10, 16 }
  0xd9   : > { %v3529_v36 = vshll.u32 %v18370_v10, 16 }
  0xda   : > { %v19302_v47 = vrot.slane %v4363_v24, 1  ;;  %v19351_v24 = vld [vmem:[%s18919_s12 + $0x78] sm:$0xff]  }
  0xdc   : > { %17223 = vmatmul.mubr.bf16.gmra.mxu0 %v18337_v34  ;;  %v4333_v34 = vrot.slane %v4331_v14, 1  ;;  %v18400_v14 = vld [vmem:[%s22911_s1 + $0x1e8] sm:$0xff]  }
  0xdd   : > { %17287 = vmatmul.mubr.bf16.gmra.mxu1 %v2798_v49  ;;  %17226 = vmatprep.mubr.bf16.mxu0 %v18343_v39  ;;  %v4335_v39 = vshrl.u32 %v19204_v61, 16  ;;  %v4326_v49 = vsel %vm2618_vm1, %v4321_v30, %v4325_v33  ;;  %v4341_v61 = vrot.slane %v4339_v43, 1  ;;  %v3505_v30 = vor.u32 %v3504_v60, %v3501_v59  ;;  %v19284_v33 = vld [vmem:[%s18919_s12 + $0x60] sm:$0xff]   ;;  %v19299_v43 = vld [vmem:[%s18919_s12 + $0x6c] sm:$0xff]  }
  0xde   : > { %17290 = vmatprep.mubr.bf16.mxu1 %v2806_v52  ;;  %v4334_v18 = vsel %vm2618_vm1, %v4329_v54, %v4333_v34  ;;  %v3531_v54 = vrot.slane %v3529_v36, 4 }
  0xdf   : > { %v4337_v6 = vor.u32 %v4335_v39, %v4333_v34  ;;  %v18401_v34 = vld [vmem:[%s22911_s1 + $0x1e0] sm:$0xff]   ;;  %v4345_v40 = vor.u32 %v4343_v46, %v4341_v61  ;;  %v3506_v51 = vsel %vm1137_vm0, %v19237_v55, %v3505_v30 }
  0xe1   : > { %v4342_v23 = vsel %vm2618_vm1, %v4337_v6, %v4341_v61 }
  0xe4   : > { %17227 = vmatmul.mubr.bf16.gmra.mxu0 %v18344_v62  ;;  %v19243_v62 = vrot.slane %v4347_v44, 1 }
  0xe5   : > { %17291 = vmatmul.mubr.bf16.gmra.mxu1 %v2814_v15  ;;  %17310 = vmatprep.mubr.bf16.mxu0 %v3461_v16  ;;  %v3488_v16 = vsel %vm1137_vm0, %v3478_v28, %v3487_v53 }
  0xe6   : > { %17374 = vmatprep.mubr.bf16.mxu1 %v4310_v26  ;;  %v4350_v60 = vsel %vm2618_vm1, %v4345_v40, %v19243_v62 }
  0xec   : > { %v17056_v52 = vpop.f32.mrf.mxu0  ;;  %17311 = vmatmul.mubr.bf16.vlgmr.msra.gmra.mxu0 %v3470_v41  ;;  %v19296_v41 = vor.u32 %v3513_v7, %v3510_v1 }
  0xed   : > { %v17120_v58 = vpop.f32.mrf.mxu1  ;;  %17423 = vmatpush3.bf16.msra.mxu0 %v19144_v5  ;;  %17375 = vmatmul.mubr.bf16.vlgmr.msra.gmra.mxu1 %v4318_v45  ;;  %v4351_v5 = vshrl.u32 %v19218_v27, 16  ;;  %v18374_v27 = vld [vmem:[%s22911_s1 + $0x1a0] sm:$0xff]  }
  0xee   : > { %v19245_v63 = vadd.f32 %v17120_v58, %v17056_v52  ;;  %v662_v0 = vpop.f32.mrf.mxu0  ;;  %17314 = vmatprep.mubr.bf16.mxu0 %v3479_v48  ;;  %17378 = vmatprep.mubr.bf16.mxu1 %v4326_v49  ;;  %v3535_v48 = vshrl.u32 %v19273_v21, 16  ;;  %v18381_v49 = vld [vmem:[%s22911_s1 + $0x198] sm:$0xff]   ;;  %v3515_v61 = vsel %vm1137_vm0, %v3505_v30, %v19296_v41 }
  0xef   : > { %v1468_v4 = vpop.f32.mrf.mxu1  ;;  %17424 = vmatprep.subr.bf16.mxu0 %v18360_v42  ;;  %17487 = vmatpush3.bf16.msra.mxu1 %v19183_v19  ;;  %v3497_v19 = vsel %vm1137_vm0, %v3487_v53, %v19237_v55  ;;  %v4353_v45 = vor.u32 %v4351_v5, %v19243_v62  ;;  %v3528_v53 = vrot.slane %v3526_v32, 3  ;;  %v19325_v55 = vld [vmem:[%s18919_s12 + $0x74] sm:$0xff]   ;;  %v4375_v5 = vshrl.u32 %v19284_v33, 16 }
  0xf0   : > { %v19257_v11 = vadd.f32 %v1468_v4, %v662_v0  ;;  %v17057_v12 = vpop.f32.mrf.mxu0  ;;  %17488 = vmatprep.subr.bf16.mxu1 %v18394_v57  ;;  %v4371_v0 = vshll.u32 %v19284_v33, 16  ;;  %v4379_v4 = vshll.u32 %v19290_v37, 16  ;;  %v18388_v62 = vld [vmem:[%s22911_s1 + $0x190] sm:$0xff]  }
  0xf1   : > { %v17121_v15 = vpop.f32.mrf.mxu1  ;;  %17425 = vmatpush3.bf16.msra.mxu0 %v18360_v42  ;;  %v4357_v42 = vrot.slane %v4355_v8, 1  ;;  %v3544_v8 = vshrl.u32 %v19299_v43, 16 }
  0xf2   : > { %v19265_v26 = vadd.f32 %v17121_v15, %v17057_v12  ;;  %v665_v17 = vpop.f32.mrf.mxu0  ;;  %17426 = vmatprep.subr.bf16.mxu0 %v18367_v3  ;;  %v3523_v12 = vor.u32 %v19270_v20, %v19259_v13  ;;  %v3540_v15 = vrot.slane %v3538_v56, 4  ;;  %v4373_v21 = vrot.slane %v4371_v0, 1 }
  0xf3   : > { %v1471_v22 = vpop.f32.mrf.mxu1  ;;  %17489 = vmatpush3.bf16.msra.mxu1 %v18394_v57  ;;  %v4367_v57 = vshrl.u32 %v19253_v9, 16  ;;  %v4358_v2 = vsel %vm2618_vm1, %v4353_v45, %v4357_v42  ;;  %v18408_v9 = vld [vmem:[%s22911_s1 + $0x1d0] sm:$0xff]   ;;  %v3546_v32 = vrot.slane %v3544_v8, 3  ;;  %v4395_v56 = vshll.u32 %v19351_v24, 16 }
  0xf4   : > { %v19280_v28 = vadd.f32 %v1471_v22, %v665_v17  ;;  %v17060_v29 = vpop.f32.mrf.mxu0  ;;  %17315 = vmatmul.mubr.bf16.gmra.mxu0 %v3488_v16  ;;  %17490 = vmatprep.subr.bf16.mxu1 %v18400_v14  ;;  %v3547_v16 = vshll.u32 %v19299_v43, 16  ;;  %v3553_v22 = vshrl.u32 %v19325_v55, 16  ;;  %v3524_v36 = vsel %vm1137_vm0, %v19296_v41, %v3523_v12 }
  0xf5   : > { %v17124_v35 = vpop.f32.mrf.mxu1  ;;  %17379 = vmatmul.mubr.bf16.gmra.mxu1 %v4334_v18  ;;  %17318 = vmatprep.mubr.bf16.mxu0 %v3497_v19  ;;  %v19344_v19 = vor.u32 %v3531_v54, %v3528_v53  ;;  %v4369_v20 = vor.u32 %v4367_v57, %v19302_v47  ;;  %v18414_v57 = vld [vmem:[%s22911_s1 + $0x1c0] sm:$0xff]  }
  0xf6   : > { %v19292_v38 = vadd.f32 %v17124_v35, %v17060_v29  ;;  %v678_v39 = vpop.f32.mrf.mxu0  ;;  %17382 = vmatprep.mubr.bf16.mxu1 %v4342_v23  ;;  %17427 = vmatpush3.bf16.msra.mxu0 %v18367_v3  ;;  %v3537_v3 = vrot.slane %v3535_v48, 3  ;;  %v19348_v23 = vld [vmem:[%s18919_s12 + $0x70] sm:$0xff]   ;;  %v18397_v29 = vld [vmem:[%s22911_s1 + $0x188] sm:$0xff]   ;;  %v3549_v40 = vrot.slane %v3547_v16, 4  ;;  %v4381_v48 = vrot.slane %v4379_v4, 1 }
  0xf7   : > { %v1484_v44 = vpop.f32.mrf.mxu1  ;;  %17428 = vmatprep.subr.bf16.mxu0 %v18374_v27  ;;  %17491 = vmatpush3.bf16.msra.mxu1 %v18400_v14  ;;  %v4361_v14 = vor.u32 %v4359_v31, %v4357_v42  ;;  %v18379_v42 = vld [vmem:[%s18919_s12 + $0x7c] sm:$0xff]   ;;  %v3533_v45 = vsel %vm1137_vm0, %v3523_v12, %v19344_v19  ;;  %v4387_v41 = vshll.u32 %v19348_v23, 16  ;;  %v3555_v54 = vrot.slane %v3553_v22, 3  ;;  %v18384_v16 = vld [vmem:[%s18919_s12 + $0x8c] sm:$0xff]  }
  0xf8   : > { %v19311_v46 = vadd.f32 %v1484_v44, %v678_v39  ;;  %v17061_v50 = vpop.f32.mrf.mxu0  ;;  %17492 = vmatprep.subr.bf16.mxu1 %v18401_v34  ;;  %v3562_v0 = vshrl.u32 %v18379_v42, 16  ;;  %v3565_v4 = vshll.u32 %v18379_v42, 16 }
  0xf9   : > { %v17125_v52 = vpop.f32.mrf.mxu1  ;;  %v4366_v39 = vsel %vm2618_vm1, %v4361_v14, %v19302_v47  ;;  %v18407_v47 = vld [vmem:[%s22911_s1 + $0x180] sm:$0xff]  }
  0xfa   : > { %v19317_v58 = vadd.f32 %v17125_v52, %v17061_v50  ;;  %v681_v59 = vpop.f32.mrf.mxu0  ;;  %17429 = vmatpush3.bf16.msra.mxu0 %v18374_v27  ;;  %v3556_v27 = vshll.u32 %v19325_v55, 16  ;;  %v3541_v50 = vor.u32 %v3540_v15, %v3537_v3  ;;  %v18380_v55 = vld [vmem:[%s18919_s12 + $0x84] sm:$0xff]   ;;  %v4391_v3 = vshrl.u32 %v19348_v23, 16 }
  0xfb   : > { %v1487_v1 = vpop.f32.mrf.mxu1  ;;  %17430 = vmatprep.subr.bf16.mxu0 %v18381_v49  ;;  %17493 = vmatpush3.bf16.msra.mxu1 %v18401_v34  ;;  %v18413_v34 = vld [vmem:[%s22911_s1 + $0x1c8] sm:$0xff]   ;;  %v4397_v15 = vrot.slane %v4395_v56, 1  ;;  %v3564_v23 = vrot.slane %v3562_v0, 3 }
  0xfc   : > { %v19333_v6 = vadd.f32 %v1487_v1, %v681_v59  ;;  %v17064_v7 = vpop.f32.mrf.mxu0  ;;  %17319 = vmatmul.mubr.bf16.gmra.mxu0 %v3506_v51  ;;  %17494 = vmatprep.subr.bf16.mxu1 %v18406_v25  ;;  %v4374_v51 = vsel %vm2618_vm1, %v4369_v20, %v4373_v21  ;;  %v3542_v14 = vsel %vm1137_vm0, %v19344_v19, %v3541_v50 }
  0xfd   : > { %v17128_v10 = vpop.f32.mrf.mxu1  ;;  %17383 = vmatmul.mubr.bf16.gmra.mxu1 %v4350_v60  ;;  %17322 = vmatprep.mubr.bf16.mxu0 %v3515_v61  ;;  %v4377_v60 = vor.u32 %v4375_v5, %v4373_v21  ;;  %v19386_v61 = vor.u32 %v3549_v40, %v3546_v32  ;;  %v4389_v5 = vrot.slane %v4387_v41, 1  ;;  %v4399_v32 = vshrl.u32 %v19351_v24, 16 }
  0xfe   : > { %v19342_v17 = vadd.f32 %v17128_v10, %v17064_v7  ;;  %v694_v18 = vpop.f32.mrf.mxu0  ;;  %17386 = vmatprep.mubr.bf16.mxu1 %v4358_v2  ;;  %17431 = vmatpush3.bf16.msra.mxu0 %v18381_v49  ;;  %v4383_v49 = vshrl.u32 %v19290_v37, 16  ;;  %v3558_v37 = vrot.slane %v3556_v27, 4  ;;  %v19396_v7 = vld [vmem:[%s18919_s12 + $0x88] sm:$0xff]  }
  0xff   : > { %v1500_v13 = vpop.f32.mrf.mxu1  ;;  %17432 = vmatprep.subr.bf16.mxu0 %v18388_v62  ;;  %17495 = vmatpush3.bf16.msra.mxu1 %v18406_v25  ;;  %v4382_v21 = vsel %vm2618_vm1, %v4377_v60, %v4381_v48  ;;  %v3551_v22 = vsel %vm1137_vm0, %v3541_v50, %v19386_v61  ;;  %v3583_v50 = vshll.u32 %v18384_v16, 16  ;;  %v4401_v56 = vor.u32 %v4399_v32, %v4397_v15 }
 0x100   : > { %v19358_v30 = vadd.f32 %v1500_v13, %v694_v18  ;;  %v17065_v31 = vpop.f32.mrf.mxu0  ;;  %17496 = vmatprep.subr.bf16.mxu1 %v18408_v9  ;;  %v4385_v33 = vor.u32 %v4383_v49, %v4381_v48  ;;  %v3571_v13 = vshrl.u32 %v18380_v55, 16  ;;  %v3559_v42 = vor.u32 %v3558_v37, %v3555_v54  ;;  %v19424_v54 = vld [vmem:[%s18919_s12 + $0x90] sm:$0xff]  }
 0x101   : > { %v17129_v35 = vpop.f32.mrf.mxu1  ;;  %v4393_v48 = vor.u32 %v4391_v3, %v4389_v5  ;;  %v19430_v3 = vld [vmem:[%s18919_s12 + $0x98] sm:$0xff]  }
 0x102   : > { %v19368_v43 = vadd.f32 %v17129_v35, %v17065_v31  ;;  %v697_v44 = vpop.f32.mrf.mxu0  ;;  %17433 = vmatpush3.bf16.msra.mxu0 %v18388_v62  ;;  %v19393_v62 = vld [vmem:[%s18919_s12 + $0x80] sm:$0xff]   ;;  %v3574_v31 = vshll.u32 %v18380_v55, 16  ;;  %v3573_v49 = vrot.slane %v3571_v13, 3  ;;  %v4427_v32 = vshll.u32 %v19430_v3, 16 }
 0x103   : > { %v1503_v25 = vpop.f32.mrf.mxu1  ;;  %17434 = vmatprep.subr.bf16.mxu0 %v18397_v29  ;;  %17497 = vmatpush3.bf16.msra.mxu1 %v18408_v9  ;;  %v18418_v9 = vld [vmem:[%s22911_s1 + $0x238] sm:$0xff]   ;;  %v4403_v35 = vshll.u32 %v19393_v62, 16 }
 0x104   : > { %v19378_v52 = vadd.f32 %v1503_v25, %v697_v44  ;;  %v17068_v53 = vpop.f32.mrf.mxu0  ;;  %17323 = vmatmul.mubr.bf16.gmra.mxu0 %v3524_v36  ;;  %17498 = vmatprep.subr.bf16.mxu1 %v18413_v34  ;;  %v19415_v36 = vld [vmem:[%s18919_s12 + $0x94] sm:$0xff]   ;;  %v4411_v44 = vshll.u32 %v19396_v7, 16  ;;  %v4407_v25 = vshrl.u32 %v19393_v62, 16 }
 0x105   : > { %v17132_v59 = vpop.f32.mrf.mxu1  ;;  %17387 = vmatmul.mubr.bf16.gmra.mxu1 %v4366_v39  ;;  %17326 = vmatprep.mubr.bf16.mxu0 %v3533_v45  ;;  %v3580_v45 = vshrl.u32 %v18384_v16, 16 }
 0x106   : > { %v19389_v1 = vadd.f32 %v17132_v59, %v17068_v53  ;;  %v710_v2 = vpop.f32.mrf.mxu0  ;;  %17390 = vmatprep.mubr.bf16.mxu1 %v4374_v51  ;;  %17435 = vmatpush3.bf16.msra.mxu0 %v18397_v29  ;;  %v3567_v29 = vrot.slane %v3565_v4, 4  ;;  %v3576_v53 = vrot.slane %v3574_v31, 4  ;;  %v3589_v59 = vshrl.u32 %v19415_v36, 16  ;;  %v18389_v4 = vld [vmem:[%s18919_s12 + $0x9c] sm:$0xff]  }
 0x107   : > { %v1516_v8 = vpop.f32.mrf.mxu1  ;;  %17436 = vmatprep.subr.bf16.mxu0 %v18407_v47  ;;  %17499 = vmatpush3.bf16.msra.mxu1 %v18413_v34  ;;  %v4390_v34 = vsel %vm2618_vm1, %v4385_v33, %v4389_v5  ;;  %v4413_v55 = vrot.slane %v4411_v44, 1  ;;  %v4398_v33 = vsel %vm2618_vm1, %v4393_v48, %v4397_v15  ;;  %v3585_v5 = vrot.slane %v3583_v50, 4 }
 0x108   : > { %v19401_v10 = vadd.f32 %v1516_v8, %v710_v2  ;;  %v17069_v12 = vpop.f32.mrf.mxu0  ;;  %17500 = vmatprep.subr.bf16.mxu1 %v18414_v57  ;;  %v3582_v2 = vrot.slane %v3580_v45, 3  ;;  %v3560_v8 = vsel %vm1137_vm0, %v19386_v61, %v3559_v42  ;;  %v3591_v61 = vrot.slane %v3589_v59, 3 }
 0x109   : > { %v17133_v18 = vpop.f32.mrf.mxu1  ;;  %v4423_v31 = vshrl.u32 %v19424_v54, 16  ;;  %v4429_v59 = vrot.slane %v4427_v32, 1 }
 0x10a   : > { %v19409_v20 = vadd.f32 %v17133_v18, %v17069_v12  ;;  %v713_v27 = vpop.f32.mrf.mxu0  ;;  %17437 = vmatpush3.bf16.msra.mxu0 %v18407_v47  ;;  %v3568_v47 = vor.u32 %v3567_v29, %v3564_v23  ;;  %v4415_v18 = vshrl.u32 %v19396_v7, 16  ;;  %v3577_v23 = vor.u32 %v3576_v53, %v3573_v49  ;;  %v19454_v53 = vld [vmem:[%s18919_s12 + $0xa8] sm:$0xff]  }
 0x10b   : > { %v1519_v19 = vpop.f32.mrf.mxu1  ;;  %17501 = vmatpush3.bf16.msra.mxu1 %v18414_v57  ;;  %17550 = vmatprep.subr.bf16.mxu0 %v18418_v9  ;;  %v4405_v57 = vrot.slane %v4403_v35, 1  ;;  %v3592_v9 = vshll.u32 %v19415_v36, 16  ;;  %v3586_v35 = vor.u32 %v3585_v5, %v3582_v2  ;;  %v3601_v36 = vshll.u32 %v18389_v4, 16 }
 0x10c   : > { %v19417_v39 = vadd.f32 %v1519_v19, %v713_v27  ;;  %v17072_v40 = vpop.f32.mrf.mxu0  ;;  %17327 = vmatmul.mubr.bf16.gmra.mxu0 %v3542_v14  ;;  %v3569_v16 = vsel %vm1137_vm0, %v3559_v42, %v3568_v47  ;;  %v18390_v27 = vld [vmem:[%s18919_s12 + $0xa4] sm:$0xff]   ;;  %v3598_v19 = vshrl.u32 %v18389_v4, 16 }
 0x10d   : > { %v17136_v24 = vpop.f32.mrf.mxu1  ;;  %17391 = vmatmul.mubr.bf16.gmra.mxu1 %v4382_v21  ;;  %17330 = vmatprep.mubr.bf16.mxu0 %v3551_v22  ;;  %v4419_v21 = vshll.u32 %v19424_v54, 16  ;;  %v4406_v13 = vsel %vm2618_vm1, %v4401_v56, %v4405_v57  ;;  %v4409_v7 = vor.u32 %v4407_v25, %v4405_v57  ;;  %v3594_v45 = vrot.slane %v3592_v9, 4  ;;  %v18395_v54 = vld [vmem:[%s18919_s12 + $0xac] sm:$0xff]  }
 0x10e   : > { %v19421_v51 = vadd.f32 %v17136_v24, %v17072_v40  ;;  %v726_v41 = vpop.f32.mrf.mxu0  ;;  %17394 = vmatprep.mubr.bf16.mxu1 %v4390_v34  ;;  %v19449_v40 = vld [vmem:[%s18919_s12 + $0xa0] sm:$0xff]   ;;  %v4417_v24 = vor.u32 %v4415_v18, %v4413_v55  ;;  %v3607_v50 = vshrl.u32 %v18390_v27, 16  ;;  %v3578_v56 = vsel %vm1137_vm0, %v3568_v47, %v3577_v23 }
 0x10f   : > { %v1532_v37 = vpop.f32.mrf.mxu1  ;;  %v4421_v48 = vrot.slane %v4419_v21, 1  ;;  %v3603_v2 = vrot.slane %v3601_v36, 4  ;;  %v4435_v4 = vshll.u32 %v19449_v40, 16  ;;  %v3587_v5 = vsel %vm1137_vm0, %v3577_v23, %v3586_v35 }
 0x110   : > { %v19427_v60 = vadd.f32 %v1532_v37, %v726_v41  ;;  %v17073_v0 = vpop.f32.mrf.mxu0  ;;  %v3610_v41 = vshll.u32 %v18390_v27, 16  ;;  %v4431_v18 = vshrl.u32 %v19430_v3, 16  ;;  %v4443_v21 = vshll.u32 %v19454_v53, 16 }
 0x111   : > { %v17137_v62 = vpop.f32.mrf.mxu1  ;;  %v4422_v9 = vsel %vm2618_vm1, %v4417_v24, %v4421_v48  ;;  %v3616_v27 = vshrl.u32 %v18395_v54, 16  ;;  %v3595_v23 = vor.u32 %v3594_v45, %v3591_v61  ;;  %v4425_v32 = vor.u32 %v4423_v31, %v4421_v48  ;;  %v19486_v61 = vld [vmem:[%s18919_s12 + $0xb8] sm:$0xff]  }
 0x112   : > { %v19437_v12 = vadd.f32 %v17137_v62, %v17073_v0  ;;  %v729_v14 = vpop.f32.mrf.mxu0  ;;  %v3600_v0 = vrot.slane %v3598_v19, 3  ;;  %v19468_v47 = vrot.slane %v3610_v41, 4  ;;  %v3619_v19 = vshll.u32 %v18395_v54, 16 }
 0x113   : > { %v1535_v22 = vpop.f32.mrf.mxu1  ;;  %v4439_v24 = vshrl.u32 %v19449_v40, 16  ;;  %v19483_v41 = vrot.slane %v4443_v21, 1  ;;  %v3618_v48 = vrot.slane %v3616_v27, 3  ;;  %v4447_v21 = vshrl.u32 %v19454_v53, 16 }
 0x114   : > { %v19444_v15 = vadd.f32 %v1535_v22, %v729_v14  ;;  %v17076_v29 = vpop.f32.mrf.mxu0  ;;  %17331 = vmatmul.mubr.bf16.gmra.mxu0 %v3560_v8  ;;  %v19480_v36 = vor.u32 %v3603_v2, %v3600_v0  ;;  %v3596_v0 = vsel %vm1137_vm0, %v3586_v35, %v3595_v23  ;;  %v3621_v2 = vrot.slane %v3619_v19, 4 }
 0x115   : > { %v17140_v34 = vpop.f32.mrf.mxu1  ;;  %17395 = vmatmul.mubr.bf16.gmra.mxu1 %v4398_v33  ;;  %17334 = vmatprep.mubr.bf16.mxu0 %v3569_v16  ;;  %v4414_v33 = vsel %vm2618_vm1, %v4409_v7, %v4413_v55  ;;  %v19466_v16 = vrot.slane %v3607_v50, 3  ;;  %v18396_v55 = vld [vmem:[%s18919_s12 + $0xb4] sm:$0xff]   ;;  %v4433_v50 = vor.u32 %v4431_v18, %v4429_v59  ;;  %v4459_v35 = vshll.u32 %v19486_v61, 16 }
 0x116   : > { %v19451_v42 = vadd.f32 %v17140_v34, %v17076_v29  ;;  %v742_v44 = vpop.f32.mrf.mxu0  ;;  %17398 = vmatprep.mubr.bf16.mxu1 %v4406_v13  ;;  %v19476_v34 = vld [vmem:[%s18919_s12 + $0xb0] sm:$0xff]   ;;  %v3625_v54 = vshrl.u32 %v18396_v55, 16 }
 0x117   : > { %v1548_v49 = vpop.f32.mrf.mxu1  ;;  %v4451_v40 = vshll.u32 %v19476_v34, 16 }
 0x118   : > { %v19457_v37 = vadd.f32 %v1548_v49, %v742_v44  ;;  %v17077_v25 = vpop.f32.mrf.mxu0  ;;  %v4437_v44 = vrot.slane %v4435_v4, 1 }
 0x119   : > { %v17141_v57 = vpop.f32.mrf.mxu1 }
 0x11a   : > { %v19461_v62 = vadd.f32 %v17141_v57, %v17077_v25  ;;  %v745_v8 = vpop.f32.mrf.mxu0  ;;  %v3628_v25 = vshll.u32 %v18396_v55, 16  ;;  %v4438_v18 = vsel %vm2618_vm1, %v4433_v50, %v4437_v44  ;;  %v3627_v55 = vrot.slane %v3625_v54, 3  ;;  %v19511_v50 = vld [vmem:[%s18919_s12 + $0xc0] sm:$0xff]  }
 0x11b   : > { %v1551_v14 = vpop.f32.mrf.mxu1  ;;  %v4441_v19 = vor.u32 %v4439_v24, %v4437_v44  ;;  %v4453_v54 = vrot.slane %v4451_v40, 1  ;;  %v4449_v44 = vor.u32 %v4447_v21, %v19483_v41  ;;  %v4461_v24 = vrot.slane %v4459_v35, 1  ;;  %v18409_v35 = vld [vmem:[%s18919_s12 + $0xcc] sm:$0xff]  }
 0x11c   : > { %v19472_v22 = vadd.f32 %v1551_v14, %v745_v8  ;;  %v17080_v13 = vpop.f32.mrf.mxu0  ;;  %17335 = vmatmul.mubr.bf16.gmra.mxu0 %v3578_v56  ;;  %v18402_v56 = vld [vmem:[%s18919_s12 + $0xbc] sm:$0xff]   ;;  %v3630_v53 = vrot.slane %v3628_v25, 4  ;;  %v4455_v25 = vshrl.u32 %v19476_v34, 16  ;;  %v313_v34 = vld [vmem:[%s22917_s7 + $0x10] sm:$0xff]  ;;  %v4467_v21 = vshll.u32 %v19511_v50, 16 }
 0x11d   : > { %v17144_v29 = vpop.f32.mrf.mxu1  ;;  %17399 = vmatmul.mubr.bf16.gmra.mxu1 %v4414_v33  ;;  %17338 = vmatprep.mubr.bf16.mxu0 %v3587_v5  ;;  %v4430_v33 = vsel %vm2618_vm1, %v4425_v32, %v4429_v59  ;;  %v3605_v5 = vsel %vm1137_vm0, %v3595_v23, %v19480_v36  ;;  %v3613_v32 = vor.u32 %v19468_v47, %v19466_v16  ;;  %v311_v16 = vld [vmem:[%s22917_s7] sm:$0xff] }
 0x11e   : > { %v19478_v7 = vadd.f32 %v17144_v29, %v17080_v13  ;;  %v758_v3 = vpop.f32.mrf.mxu0  ;;  %17402 = vmatprep.mubr.bf16.mxu1 %v4422_v9  ;;  %v19499_v9 = vld [vmem:[%s18919_s12 + $0xc4] sm:$0xff]   ;;  %v18826_v13 = vmov 0   ;;  %v3634_v29 = vshrl.u32 %v18402_v56, 16 }
 0x11f   : > { %v1564_v49 = vpop.f32.mrf.mxu1  ;;  %18201 = vset.pattern.permute.xlu0 %v18826_v13  ;;  %361 = vst [vmem:[#allocation2 + $0x8] sm:$0xf] %v18826_v13  ;;  %362 = vst [vmem:[#allocation2 + $0xc] sm:$0xf] %v18826_v13  ;;  %18202 = vset.pattern.permute.xlu1 %v18826_v13 }
 0x120   : > { %v19488_v31 = vadd.f32 %v1564_v49, %v758_v3  ;;  %v17081_v45 = vpop.f32.mrf.mxu0  ;;  %363 = vst [vmem:[#allocation2 + $0x10] sm:$0xf] %v18826_v13  ;;  %364 = vst [vmem:[#allocation2 + $0x14] sm:$0xf] %v18826_v13  ;;  %v19508_v3 = vor.u32 %v3621_v2, %v3618_v48  ;;  %v3637_v49 = vshll.u32 %v18402_v56, 16  ;;  %v3646_v48 = vshll.u32 %v19499_v9, 16  ;;  %7400 = vperm.xlu0 %18201, %v311_v16  }
 0x121   : > { %v17145_v57 = vpop.f32.mrf.mxu1  ;;  %365 = vst [vmem:[#allocation2 + $0xd8] sm:$0xf] %v18826_v13  ;;  %366 = vst [vmem:[#allocation2 + $0xdc] sm:$0xf] %v18826_v13  ;;  %v19523_v56 = vld [vmem:[%s18919_s12 + $0xc8] sm:$0xff]   ;;  %7410 = vperm.xlu1 %18202, %v313_v34  }
 0x122   : > { %v19493_v4 = vadd.f32 %v17145_v57, %v17081_v45  ;;  %v761_v8 = vpop.f32.mrf.mxu0  ;;  %367 = vst [vmem:[#allocation2 + $0xe0] sm:$0xf] %v18826_v13  ;;  %368 = vst [vmem:[#allocation2 + $0xe4] sm:$0xf] %v18826_v13  ;;  %v19550_v16 = vrot.slane %v3646_v48, 4 }
 0x123   : > { %v1567_v14 = vpop.f32.mrf.mxu1  ;;  %v18410_v34 = vld [vmem:[%s18919_s12 + $0xd4] ss:$0 sps:$4 sm:$0xff]  }
 0x124   : > { %v19504_v59 = vadd.f32 %v1567_v14, %v761_v8  ;;  %v17084_v27 = vpop.f32.mrf.mxu0  ;;  %17339 = vmatmul.mubr.bf16.gmra.mxu0 %v3596_v0  ;;  %v3643_v0 = vshrl.u32 %v19499_v9, 16  ;;  %v4463_v8 = vshrl.u32 %v19486_v61, 16  ;;  %v3614_v9 = vsel %vm1137_vm0, %v19480_v36, %v3613_v32  ;;  %v314_v36 = vld [vmem:[%s22917_s7 + $0x18] sm:$0xff] }
 0x125   : > { %v17148_v23 = vpop.f32.mrf.mxu1  ;;  %17403 = vmatmul.mubr.bf16.gmra.mxu1 %v4430_v33  ;;  %17342 = vmatprep.mubr.bf16.mxu0 %v3605_v5  ;;  %v312_v33 = vld [vmem:[%s22917_s7 + $0x8] sm:$0xff]  ;;  %v3636_v14 = vrot.slane %v3634_v29, 3  ;;  %v4446_v61 = vsel %vm2618_vm1, %v4441_v19, %v19483_v41  ;;  %v4457_v19 = vor.u32 %v4455_v25, %v4453_v54  ;;  %v19570_v25 = vld [vmem:[%s18919_s12 + $0xd0] sm:$0xff]  }
 0x126   : > { %v19513_v45 = vadd.f32 %v17148_v23, %v17084_v27  ;;  %v774_v57 = vpop.f32.mrf.mxu0  ;;  %17406 = vmatprep.mubr.bf16.mxu1 %v4438_v18  ;;  %v3639_v18 = vrot.slane %v3637_v49, 4  ;;  %v3623_v23 = vsel %vm1137_vm0, %v3613_v32, %v19508_v3  ;;  %v4454_v49 = vsel %vm2618_vm1, %v4449_v44, %v4453_v54  ;;  %7405 = vperm.xlu0 %18201, %v312_v33   ;;  %v315_v44 = vld [vmem:[%s22917_s7 + $0x20] sm:$0xff] }
 0x127   : > { %v1580_v47 = vpop.f32.mrf.mxu1  ;;  %v3631_v32 = vor.u32 %v3630_v53, %v3627_v55  ;;  %7415 = vperm.xlu1 %18202, %v314_v36   ;;  %v3652_v33 = vshrl.u32 %v18409_v35, 16  ;;  %v3655_v54 = vshll.u32 %v18409_v35, 16  ;;  %v4465_v36 = vor.u32 %v4463_v8, %v4461_v24  ;;  %v18415_v35 = vld [vmem:[%s18919_s12 + $0x20] sm:$0xf8]   ;;  %v317_v8 = vld [vmem:[%s22917_s7 + $0x30] sm:$0xff] }
 0x128   : > { %22922 = vst [vmem:[#allocation4_spill] sm:$0xff] %v19513_v45  ;;  %v19528_v2 = vadd.f32 %v1580_v47, %v774_v57  ;;  %v17085_v40 = vpop.f32.mrf.mxu0  ;;  %v19544_v57 = vrot.slane %v3643_v0, 3  ;;  %v4475_v47 = vshll.u32 %v19523_v56, 16  ;;  %v19557_v0 = vld [vmem:[%s18919_s12 + $0xd8] ss:$0 sps:$4 sm:$0x11]  }
 0x129   : > { %v17149_v5 = vpop.f32.mrf.mxu1 }
 0x12a   : > { %22923 = vst [vmem:[#allocation5_spill] sm:$0xff] %v19528_v2  ;;  %v19538_v13 = vadd.f32 %v17149_v5, %v17085_v40  ;;  %v777_v27 = vpop.f32.mrf.mxu0  ;;  %v19562_v5 = vor.u32 %v3639_v18, %v3636_v14  ;;  %v3661_v14 = vshrl.u32 %v18410_v34, 16  ;;  %v18416_v18 = vld [vmem:[%s18919_s12 + $0x28] sm:$0xff]   ;;  %7420 = vperm.xlu0 %18201, %v315_v44   ;;  %v4477_v44 = vrot.slane %v4475_v47, 1 }
 0x12b   : > { %v1583_v29 = vpop.f32.mrf.mxu1  ;;  %v5134_v47 = vshrl.u32 %v18416_v18, 16 }
 0x12c   : > { %22924 = vst [vmem:[#allocation6_spill] sm:$0xff] %v19538_v13  ;;  %v19554_v40 = vadd.f32 %v1583_v29, %v777_v27  ;;  %v17088_v41 = vpop.f32.mrf.mxu0  ;;  %17343 = vmatmul.mubr.bf16.gmra.mxu0 %v3614_v9  ;;  %v316_v9 = vld [vmem:[%s22917_s7 + $0x28] sm:$0xff]  ;;  %v4469_v29 = vrot.slane %v4467_v21, 1 }
 0x12d   : > { %v17152_v48 = vpop.f32.mrf.mxu1  ;;  %17407 = vmatmul.mubr.bf16.gmra.mxu1 %v4446_v61  ;;  %17346 = vmatprep.mubr.bf16.mxu0 %v3623_v23  ;;  %v4471_v61 = vshrl.u32 %v19511_v50, 16  ;;  %v3641_v50 = vsel %vm1137_vm0, %v3631_v32, %v19562_v5 }
 0x12e   : > { %22925 = vst [vmem:[#allocation7_spill] sm:$0xff] %v19554_v40  ;;  %v19567_v55 = vadd.f32 %v17152_v48, %v17088_v41  ;;  %v790_v53 = vpop.f32.mrf.mxu0  ;;  %17410 = vmatprep.mubr.bf16.mxu1 %v4454_v49  ;;  %v3632_v41 = vsel %vm1137_vm0, %v19508_v3, %v3631_v32  ;;  %v4462_v48 = vsel %vm2618_vm1, %v4457_v19, %v4461_v24  ;;  %v3664_v49 = vshll.u32 %v18410_v34, 16  ;;  %v318_v3 = vld [vmem:[%s22917_s7 + $0x38] sm:$0xff] }
 0x12f   : > { %v1596_v27 = vpop.f32.mrf.mxu1  ;;  %7425 = vperm.xlu1 %18202, %v316_v9   ;;  %v3657_v19 = vrot.slane %v3655_v54, 4  ;;  %v4483_v9 = vshll.u32 %v19570_v25, 16  ;;  %v4470_v13 = vsel %vm2618_vm1, %v4465_v36, %v4469_v29  ;;  %v19594_v32 = vrot.slane %v3661_v14, 3  ;;  %7430 = vperm.xlu0 %18201, %v317_v8  }
 0x130   : > { %22926 = vst [vmem:[#allocation8_spill] sm:$0xff] %v19567_v55  ;;  %v19574_v23 = vadd.f32 %v1596_v27, %v790_v53  ;;  %v17089_v40 = vpop.f32.mrf.mxu0  ;;  %v3654_v53 = vrot.slane %v3652_v33, 3  ;;  %v4479_v27 = vshrl.u32 %v19523_v56, 16  ;;  %v5137_v33 = vshll.u32 %v18416_v18, 16  ;;  %v19597_v56 = vld [vmem:[%s18919_s12 + $0x30] sm:$0xff]  }
 0x131   : > { %v17153_v21 = vpop.f32.mrf.mxu1  ;;  %v4487_v54 = vshrl.u32 %v19570_v25, 16  ;;  %v4473_v14 = vor.u32 %v4471_v61, %v4469_v29  ;;  %v5129_v18 = vshll.u32 %v18415_v35, 16 }
 0x132   : > { %22927 = vst [vmem:[#allocation9_spill] sm:$0xff] %v19574_v23  ;;  %v19589_v24 = vadd.f32 %v17153_v21, %v17089_v40  ;;  %v793_v34 = vpop.f32.mrf.mxu0  ;;  %v4491_v23 = vshll.u32 %v19557_v0, 16  ;;  %v19601_v21 = vrot.slane %v3664_v49, 4  ;;  %v319_v0 = vld [vmem:[%s22917_s7 + $0x40] sm:$0xff]  ;;  %v19614_v8 = vor.u32 %v3657_v19, %v3654_v53  ;;  %v322_v19 = vld [vmem:[%s22917_s7 + $0x58] sm:$0xff] }
 0x133   : > { %v1599_v55 = vpop.f32.mrf.mxu1  ;;  %7435 = vperm.xlu1 %18202, %v318_v3   ;;  %v4485_v3 = vrot.slane %v4483_v9, 1  ;;  %v5139_v45 = vrot.slane %v5137_v33, 4  ;;  %7440 = vperm.xlu0 %18201, %v319_v0  }
 0x134   : > { %22928 = vst [vmem:[#allocation10_spill] sm:$0xff] %v19589_v24  ;;  %v19599_v2 = vadd.f32 %v1599_v55, %v793_v34  ;;  %v17092_v40 = vpop.f32.mrf.mxu0  ;;  %17347 = vmatmul.mubr.bf16.gmra.mxu0 %v3632_v41  ;;  %v5126_v24 = vshrl.u32 %v18415_v35, 16  ;;  %v3649_v55 = vor.u32 %v19550_v16, %v19544_v57  ;;  %v320_v41 = vld [vmem:[%s22917_s7 + $0x48] sm:$0xff]  ;;  %v4481_v34 = vor.u32 %v4479_v27, %v4477_v44  ;;  %v18421_v16 = vld [vmem:[%s18919_s12 + $0x38] sm:$0xff]  }
 0x135   : > { %v17156_v36 = vpop.f32.mrf.mxu1  ;;  %17411 = vmatmul.mubr.bf16.gmra.mxu1 %v4462_v48  ;;  %17350 = vmatprep.mubr.bf16.mxu0 %v3641_v50  ;;  %v4493_v48 = vrot.slane %v4491_v23, 1  ;;  %v5143_v57 = vshrl.u32 %v19597_v56, 16  ;;  %v5131_v27 = vrot.slane %v5129_v18, 4 }
 0x136   : > { %22929 = vst [vmem:[#allocation11_spill] sm:$0xff] %v19599_v2  ;;  %v19612_v25 = vadd.f32 %v17156_v36, %v17092_v40  ;;  %v806_v49 = vpop.f32.mrf.mxu0  ;;  %17414 = vmatprep.mubr.bf16.mxu1 %v4470_v13  ;;  %v5136_v2 = vrot.slane %v5134_v47, 3  ;;  %v5128_v35 = vrot.slane %v5126_v24, 3  ;;  %v18422_v40 = vld [vmem:[%s18919_s12 + $0x40] sm:$0xff]   ;;  %v321_v13 = vld [vmem:[%s22917_s7 + $0x50] sm:$0xff]  ;;  %v3650_v23 = vsel %vm1137_vm0, %v19562_v5, %v3649_v55 }
 0x137   : > { %v1612_v50 = vpop.f32.mrf.mxu1  ;;  %7445 = vperm.xlu1 %18202, %v320_v41   ;;  %v4478_v24 = vsel %vm2618_vm1, %v4473_v14, %v4477_v44  ;;  %v3659_v33 = vsel %vm1137_vm0, %v3649_v55, %v19614_v8  ;;  %v4486_v36 = vsel %vm2618_vm1, %v4481_v34, %v4485_v3  ;;  %v5145_v41 = vrot.slane %v5143_v57, 3  ;;  %7450 = vperm.xlu0 %18201, %v321_v13   ;;  %v323_v44 = vld [vmem:[%s22917_s7 + $0x60] sm:$0xff]  ;;  %v324_v55 = vld [vmem:[%s22917_s7 + $0x68] sm:$0xff] }
 0x138   : > { %v19618_v29 = vadd.f32 %v1612_v50, %v806_v49  ;;  %v17093_v61 = vpop.f32.mrf.mxu0  ;;  %v5146_v49 = vshll.u32 %v19597_v56, 16  ;;  %v5152_v50 = vshrl.u32 %v18421_v16, 16  ;;  %v3667_v56 = vor.u32 %v19601_v21, %v19594_v32  ;;  %v18419_v32 = vld [vmem:[%s18919_s12 + $0x24] sm:$0xff]  }
 0x139   : > { %v17157_v53 = vpop.f32.mrf.mxu1  ;;  %v4489_v34 = vor.u32 %v4487_v54, %v4485_v3  ;;  %v5132_v13 = vor.u32 %v5131_v27, %v5128_v35  ;;  %v325_v54 = vld [vmem:[%s22917_s7 + $0x70] sm:$0xff] }
 0x13a   : > { %v19629_v9 = vadd.f32 %v17157_v53, %v17093_v61  ;;  %v809_v47 = vpop.f32.mrf.mxu0  ;;  %v5155_v61 = vshll.u32 %v18421_v16, 16  ;;  %v5140_v53 = vor.u32 %v5139_v45, %v5136_v2  ;;  %v5154_v21 = vrot.slane %v5152_v50, 3  ;;  %v326_v45 = vld [vmem:[%s22917_s7 + $0x78] sm:$0xff] }
 0x13b   : > { %v1615_v0 = vpop.f32.mrf.mxu1  ;;  %7455 = vperm.xlu1 %18202, %v322_v19   ;;  %v18426_v19 = vld [vmem:[%s18919_s12 + $0x48] sm:$0xff]   ;;  %7460 = vperm.xlu0 %18201, %v323_v44   ;;  %v3668_v3 = vsel %vm1137_vm0, %v19614_v8, %v3667_v56  ;;  %v4494_v35 = vsel %vm2618_vm1, %v4489_v34, %v4493_v48 }
 0x13c   : > { %22930 = vst [vmem:[#allocation12_spill] sm:$0xff] %v19629_v9  ;;  %v19636_v5 = vadd.f32 %v1615_v0, %v809_v47  ;;  %v17096_v18 = vpop.f32.mrf.mxu0  ;;  %17351 = vmatmul.mubr.bf16.gmra.mxu0 %v3650_v23  ;;  %v5161_v23 = vshrl.u32 %v18422_v40, 16  ;;  %v5164_v0 = vshll.u32 %v18422_v40, 16  ;;  %v5148_v9 = vrot.slane %v5146_v49, 4  ;;  %v328_v56 = vld [vmem:[%s22917_s7 + $0x88] sm:$0xff] }
 0x13d   : > { %v17160_v14 = vpop.f32.mrf.mxu1  ;;  %17415 = vmatmul.mubr.bf16.gmra.mxu1 %v4478_v24  ;;  %17354 = vmatprep.mubr.bf16.mxu0 %v3659_v33  ;;  %v5157_v49 = vrot.slane %v5155_v61, 4  ;;  %v5173_v8 = vshll.u32 %v18426_v19, 16  ;;  %v327_v61 = vld [vmem:[%s22917_s7 + $0x80] sm:$0xff] }
 0x13e   : > { %22931 = vst [vmem:[#allocation13_spill] sm:$0xff] %v19636_v5  ;;  %v19646_v57 = vadd.f32 %v17160_v14, %v17096_v18  ;;  %v822_v16 = vpop.f32.mrf.mxu0  ;;  %17418 = vmatprep.mubr.bf16.mxu1 %v4486_v36  ;;  %v19650_v5 = vld [vmem:[%s18919_s12 + $0x50] sm:$0xff]   ;;  %v5141_v36 = vsel %vm1137_vm0, %v5132_v13, %v5140_v53  ;;  %v5163_v18 = vrot.slane %v5161_v23, 3  ;;  %v5166_v44 = vrot.slane %v5164_v0, 4  ;;  %v18430_v0 = vld [vmem:[%s18919_s12 + $0x58] sm:$0xff]  }
 0x13f   : > { %v1628_v47 = vpop.f32.mrf.mxu1  ;;  %7465 = vperm.xlu1 %18202, %v324_v55   ;;  %v5170_v55 = vshrl.u32 %v18426_v19, 16  ;;  %7470 = vperm.xlu0 %18201, %v325_v54   ;;  %v5179_v48 = vshrl.u32 %v19650_v5, 16  ;;  %v5149_v13 = vor.u32 %v5148_v9, %v5145_v41  ;;  %v18420_v54 = vld [vmem:[%s18919_s12 + $0x2c] sm:$0xff]   ;;  %v5175_v9 = vrot.slane %v5173_v8, 4 }
 0x140   : > { %v19652_v24 = vadd.f32 %v1628_v47, %v822_v16  ;;  %v17097_v33 = vpop.f32.mrf.mxu0  ;;  %v5182_v47 = vshll.u32 %v19650_v5, 16  ;;  %v329_v5 = vld [vmem:[%s22917_s7 + $0x90] sm:$0xff]  ;;  %v5188_v8 = vshrl.u32 %v18430_v0, 16 }
 0x141   : > { %v17161_v2 = vpop.f32.mrf.mxu1  ;;  %v19687_v41 = vrot.slane %v5179_v48, 3  ;;  %v5191_v48 = vshll.u32 %v18430_v0, 16  ;;  %v332_v0 = vld [vmem:[%s22917_s7 + $0xa8] sm:$0xff] }
 0x142   : > { %v19664_v40 = vadd.f32 %v17161_v2, %v17097_v33  ;;  %v825_v27 = vpop.f32.mrf.mxu0  ;;  %v5172_v2 = vrot.slane %v5170_v55, 3 }
 0x143   : > { %v1631_v50 = vpop.f32.mrf.mxu1  ;;  %7475 = vperm.xlu1 %18202, %v326_v45   ;;  %v19681_v45 = vor.u32 %v5157_v49, %v5154_v21  ;;  %7480 = vperm.xlu0 %18201, %v327_v61   ;;  %v18425_v49 = vld [vmem:[%s22911_s1 + $0x230] sm:$0xff]  }
 0x144   : > { %v19667_v14 = vadd.f32 %v1631_v50, %v825_v27  ;;  %v17100_v16 = vpop.f32.mrf.mxu0  ;;  %17355 = vmatmul.mubr.bf16.gmra.mxu0 %v3668_v3  ;;  %v18431_v3 = vld [vmem:[%s18919_s12 + $0x60] sm:$0xff]   ;;  %v18423_v50 = vld [vmem:[%s18919_s12 + $0x34] sm:$0xff]  }
 0x145   : > { %v17164_v34 = vpop.f32.mrf.mxu1  ;;  %17419 = vmatmul.mubr.bf16.gmra.mxu1 %v4494_v35  ;;  %17438 = vmatprep.mubr.bf16.mxu0 %v5141_v36  ;;  %v5150_v36 = vsel %vm1137_vm0, %v5140_v53, %v5149_v13 }
 0x146   : > { %22932 = vst [vmem:[#allocation14_spill] sm:$0xff] %v19667_v14  ;;  %v19676_v23 = vadd.f32 %v17164_v34, %v17100_v16  ;;  %v838_v19 = vpop.f32.mrf.mxu0  ;;  %17502 = vmatprep.mubr.bf16.mxu1 %v18419_v32  ;;  %v330_v32 = vld [vmem:[%s22917_s7 + $0x98] sm:$0xff]  ;;  %v5197_v34 = vshrl.u32 %v18431_v3, 16  ;;  %v19732_v14 = vld [vmem:[%s18919_s12 + $0x70] sm:$0xff]  }
 0x147   : > { %v1644_v33 = vpop.f32.mrf.mxu1  ;;  %7485 = vperm.xlu1 %18202, %v328_v56   ;;  %v5159_v56 = vsel %vm1137_vm0, %v5149_v13, %v19681_v45  ;;  %7490 = vperm.xlu0 %18201, %v329_v5   ;;  %v331_v13 = vld [vmem:[%s22917_s7 + $0xa0] sm:$0xff] }
 0x148   : > { %22933 = vst [vmem:[#allocation15_spill] sm:$0xff] %v19676_v23  ;;  %v19684_v27 = vadd.f32 %v1644_v33, %v838_v19  ;;  %v17101_v35 = vpop.f32.mrf.mxu0  ;;  %v19704_v19 = vld [vmem:[%s18919_s12 + $0x68] sm:$0xff]   ;;  %v5200_v23 = vshll.u32 %v18431_v3, 16 }
 0x149   : > { %v17165_v21 = vpop.f32.mrf.mxu1 }
 0x14a   : > { %22934 = vst [vmem:[#allocation16_spill] sm:$0xff] %v19684_v27  ;;  %v19699_v55 = vadd.f32 %v17165_v21, %v17101_v35  ;;  %v841_v16 = vpop.f32.mrf.mxu0  ;;  %v5184_v27 = vrot.slane %v5182_v47, 4  ;;  %v19711_v35 = vld [vmem:[%s22911_s1 + $0x228] sm:$0xff]   ;;  %v18791_v47 = vld [vmem:[%s22911_s1 + $0x238] sm:$0xff]  }
 0x14b   : > { %v1647_v61 = vpop.f32.mrf.mxu1  ;;  %7495 = vperm.xlu1 %18202, %v330_v32   ;;  %v5167_v32 = vor.u32 %v5166_v44, %v5163_v18  ;;  %7500 = vperm.xlu0 %18201, %v331_v13   ;;  %v18428_v44 = vld [vmem:[%s18919_s12 + $0x44] sm:$0xff]   ;;  %v5209_v13 = vshll.u32 %v19704_v19, 16 }
 0x14c   : > { %22935 = vst [vmem:[#allocation17_spill] sm:$0xff] %v19699_v55  ;;  %v19706_v33 = vadd.f32 %v1647_v61, %v841_v16  ;;  %v17184_v53 = vpop.f32.mrf.mxu0  ;;  %17439 = vmatmul.mubr.bf16.vlgmr.msra.gmra.mxu0 %v5150_v36  ;;  %v19723_v36 = vor.u32 %v5175_v9, %v5172_v2  ;;  %v5190_v16 = vrot.slane %v5188_v8, 3  ;;  %v5193_v61 = vrot.slane %v5191_v48, 4  ;;  %v18424_v55 = vld [vmem:[%s18919_s12 + $0x3c] sm:$0xff]  }
 0x14d   : > { %v2287_v5 = vadd.f32 %v17184_v53, %v19245_v63  ;;  %17551 = vmatpush3.bf16.msra.mxu0 %v18791_v47  ;;  %v17248_v3 = vpop.f32.mrf.mxu1  ;;  %17503 = vmatmul.mubr.bf16.vlgmr.msra.gmra.mxu1 %v18420_v54  ;;  %v19729_v47 = vrot.slane %v5197_v34, 3  ;;  %v19735_v54 = vrot.slane %v5200_v23, 4  ;;  %v5206_v2 = vshrl.u32 %v19704_v19, 16 }
 0x14e   : > { %22936 = vst [vmem:[#allocation18_spill] sm:$0xff] %v19706_v33  ;;  %v2094_v21 = vpop.f32.mrf.mxu0  ;;  %17442 = vmatprep.mubr.bf16.mxu0 %v5159_v56  ;;  %17506 = vmatprep.mubr.bf16.mxu1 %v18423_v50  ;;  %v334_v50 = vld [vmem:[%s22917_s7 + $0xb8] sm:$0xff]  ;;  %v5168_v23 = vsel %vm1137_vm0, %v19681_v45, %v5167_v32  ;;  %v5177_v34 = vsel %vm1137_vm0, %v5167_v32, %v19723_v36  ;;  %v5215_v45 = vshrl.u32 %v19732_v14, 16  ;;  %v5218_v19 = vshll.u32 %v19732_v14, 16 }
 0x14f   : > { %v2285_v33 = vadd.f32 %v2094_v21, %v19257_v11  ;;  %v19726_v63 = vadd.f32 %v17248_v3, %v2287_v5  ;;  %v2921_v53 = vpop.f32.mrf.mxu1  ;;  %17552 = vmatprep.subr.bf16.mxu0 %v18425_v49  ;;  %7505 = vperm.xlu1 %18202, %v332_v0   ;;  %v333_v11 = vld [vmem:[%s22917_s7 + $0xb0] sm:$0xff]  ;;  %v18439_v0 = vld [vmem:[%s22911_s1 + $0x220] sm:$0xff]   ;;  %v19761_v32 = vrot.slane %v5206_v2, 3  ;;  %v5185_v2 = vor.u32 %v5184_v27, %v19687_v41  ;;  %v18446_v27 = vld [vmem:[%s22911_s1 + $0x218] sm:$0xff]  }
 0x150   : > { %v17185_v18 = vpop.f32.mrf.mxu0  ;;  %7510 = vperm.xlu0 %18201, %v333_v11   ;;  %v335_v21 = vld [vmem:[%s22917_s7 + $0xc0] sm:$0xff] }
 0x151   : > { %v2288_v9 = vadd.f32 %v17185_v18, %v19265_v26  ;;  %v19745_v8 = vadd.f32 %v2921_v53, %v2285_v33  ;;  %v17249_v48 = vpop.f32.mrf.mxu1  ;;  %17553 = vmatpush3.bf16.msra.mxu0 %v18425_v49  ;;  %v18440_v49 = vld [vmem:[%s18919_s12 + $0x78] sm:$0xff]  }
 0x152   : > { %v2097_v56 = vpop.f32.mrf.mxu0  ;;  %17554 = vmatprep.subr.bf16.mxu0 %v19711_v35 }
 0x153   : > { %v2286_v26 = vadd.f32 %v2097_v56, %v19280_v28  ;;  %v19757_v33 = vadd.f32 %v17249_v48, %v2288_v9  ;;  %v2924_v5 = vpop.f32.mrf.mxu1  ;;  %7515 = vperm.xlu1 %18202, %v334_v50   ;;  %v336_v28 = vld [vmem:[%s22917_s7 + $0xc8] sm:$0xff]  ;;  %v19774_v50 = vor.u32 %v5193_v61, %v5190_v16  ;;  %v5211_v9 = vrot.slane %v5209_v13, 4  ;;  %v19778_v48 = vld [vmem:[%s18919_s12 + $0x80] sm:$0xff]  }
 0x154   : > { %v17188_v3 = vpop.f32.mrf.mxu0  ;;  %17443 = vmatmul.mubr.bf16.gmra.mxu0 %v5168_v23  ;;  %7520 = vperm.xlu0 %18201, %v335_v21   ;;  %v5224_v16 = vshrl.u32 %v18440_v49, 16  ;;  %v5227_v61 = vshll.u32 %v18440_v49, 16  ;;  %v19803_v21 = vrot.slane %v5218_v19, 4 }
 0x155   : > { %v2291_v53 = vadd.f32 %v17188_v3, %v19292_v38  ;;  %v19771_v18 = vadd.f32 %v2924_v5, %v2286_v26  ;;  %v17252_v11 = vpop.f32.mrf.mxu1  ;;  %17507 = vmatmul.mubr.bf16.gmra.mxu1 %v18424_v55  ;;  %17446 = vmatprep.mubr.bf16.mxu0 %v5177_v34  ;;  %v18429_v26 = vld [vmem:[%s18919_s12 + $0x4c] sm:$0xff]   ;;  %v19784_v55 = vrot.slane %v5215_v45, 3  ;;  %v5186_v45 = vsel %vm1137_vm0, %v19723_v36, %v5185_v2 }
 0x156   : > { %v2110_v14 = vpop.f32.mrf.mxu0  ;;  %17510 = vmatprep.mubr.bf16.mxu1 %v18428_v44  ;;  %17555 = vmatpush3.bf16.msra.mxu0 %v19711_v35  ;;  %v18433_v35 = vld [vmem:[%s18919_s12 + $0x54] sm:$0xff]   ;;  %v5195_v49 = vsel %vm1137_vm0, %v5185_v2, %v19774_v50  ;;  %v19815_v19 = vrot.slane %v5224_v16, 3  ;;  %v340_v2 = vld [vmem:[%s22917_s7 + $0xe8] sm:$0xff]  ;;  %v5203_v16 = vor.u32 %v19735_v54, %v19729_v47 }
 0x157   : > { %v2289_v23 = vadd.f32 %v2110_v14, %v19311_v46  ;;  %v19781_v38 = vadd.f32 %v17252_v11, %v2291_v53  ;;  %v2937_v56 = vpop.f32.mrf.mxu1  ;;  %17556 = vmatprep.subr.bf16.mxu0 %v18439_v0  ;;  %7525 = vperm.xlu1 %18202, %v336_v28   ;;  %v337_v46 = vld [vmem:[%s22917_s7 + $0xd0] sm:$0xff]  ;;  %v338_v44 = vld [vmem:[%s22917_s7 + $0xd8] sm:$0xff]  ;;  %v19806_v28 = vld [vmem:[%s18919_s12 + $0x88] sm:$0xff]   ;;  %v5233_v14 = vshrl.u32 %v19778_v48, 16 }
 0x158   : > { %v17189_v41 = vpop.f32.mrf.mxu0  ;;  %v18453_v36 = vld [vmem:[%s22911_s1 + $0x210] sm:$0xff]   ;;  %7530 = vperm.xlu0 %18201, %v337_v46   ;;  %v18460_v47 = vld [vmem:[%s22911_s1 + $0x208] sm:$0xff]  }
 0x159   : > { %v2292_v34 = vadd.f32 %v17189_v41, %v19317_v58  ;;  %v19797_v13 = vadd.f32 %v2937_v56, %v2289_v23  ;;  %v17253_v5 = vpop.f32.mrf.mxu1 }
 0x15a   : > { %v2113_v3 = vpop.f32.mrf.mxu0  ;;  %17557 = vmatpush3.bf16.msra.mxu0 %v18439_v0  ;;  %v19817_v0 = vrot.slane %v5227_v61, 4 }
 0x15b   : > { %v2290_v53 = vadd.f32 %v2113_v3, %v19333_v6  ;;  %v19809_v11 = vadd.f32 %v17253_v5, %v2292_v34  ;;  %v2940_v58 = vpop.f32.mrf.mxu1  ;;  %17558 = vmatprep.subr.bf16.mxu0 %v18446_v27  ;;  %7535 = vperm.xlu1 %18202, %v338_v44   ;;  %v339_v6 = vld [vmem:[%s22917_s7 + $0xe0] sm:$0xff]  ;;  %v19831_v44 = vor.u32 %v5211_v9, %v19761_v32  ;;  %v5236_v34 = vshll.u32 %v19778_v48, 16  ;;  %v18445_v5 = vld [vmem:[%s18919_s12 + $0x90] sm:$0xff]  }
 0x15c   : > { %v17192_v23 = vpop.f32.mrf.mxu0  ;;  %17447 = vmatmul.mubr.bf16.gmra.mxu0 %v5186_v45  ;;  %7540 = vperm.xlu0 %18201, %v339_v6   ;;  %v18437_v32 = vld [vmem:[%s18919_s12 + $0x64] sm:$0xff]   ;;  %v5242_v9 = vshrl.u32 %v19806_v28, 16  ;;  %v341_v48 = vld [vmem:[%s22917_s7 + $0xf0] sm:$0xff] }
 0x15d   : > { %v2295_v56 = vadd.f32 %v17192_v23, %v19342_v17  ;;  %v19826_v41 = vadd.f32 %v2940_v58, %v2290_v53  ;;  %v17256_v46 = vpop.f32.mrf.mxu1  ;;  %17511 = vmatmul.mubr.bf16.gmra.mxu1 %v18429_v26  ;;  %17450 = vmatprep.mubr.bf16.mxu0 %v5195_v49  ;;  %v18434_v26 = vld [vmem:[%s18919_s12 + $0x5c] sm:$0xff]   ;;  %v19839_v49 = vrot.slane %v5233_v14, 3  ;;  %v5204_v14 = vsel %vm1137_vm0, %v19774_v50, %v5203_v16 }
 0x15e   : > { %v2126_v61 = vpop.f32.mrf.mxu0  ;;  %17514 = vmatprep.mubr.bf16.mxu1 %v18433_v35  ;;  %17559 = vmatpush3.bf16.msra.mxu0 %v18446_v27  ;;  %v342_v27 = vld [vmem:[%s22917_s7 + $0xf8] sm:$0xff]  ;;  %v5213_v6 = vsel %vm1137_vm0, %v5203_v16, %v19831_v44  ;;  %v18467_v50 = vld [vmem:[%s22911_s1 + $0x200] sm:$0xff]   ;;  %v5244_v16 = vrot.slane %v5242_v9, 3 }
 0x15f   : > { %v2293_v17 = vadd.f32 %v2126_v61, %v19358_v30  ;;  %v19836_v45 = vadd.f32 %v17256_v46, %v2295_v56  ;;  %v2953_v3 = vpop.f32.mrf.mxu1  ;;  %17560 = vmatprep.subr.bf16.mxu0 %v18453_v36  ;;  %v5245_v30 = vshll.u32 %v19806_v28, 16  ;;  %7545 = vperm.xlu1 %18202, %v340_v2   ;;  %v19859_v23 = vld [vmem:[%s18919_s12 + $0x98] sm:$0xff]   ;;  %v5251_v2 = vshrl.u32 %v18445_v5, 16  ;;  %v19864_v56 = vld [vmem:[%s18919_s12 + $0xa0] sm:$0xff]  }
 0x160   : > { %v17193_v54 = vpop.f32.mrf.mxu0  ;;  %7550 = vperm.xlu0 %18201, %v341_v48   ;;  %v19885_v48 = vor.u32 %v19817_v0, %v19815_v19  ;;  %v18442_v19 = vld [vmem:[%s18919_s12 + $0x74] sm:$0xff]   ;;  %v5263_v0 = vshll.u32 %v19859_v23, 16 }
 0x161   : > { %v2296_v35 = vadd.f32 %v17193_v54, %v19368_v43  ;;  %v19854_v53 = vadd.f32 %v2953_v3, %v2293_v17  ;;  %v17257_v58 = vpop.f32.mrf.mxu1  ;;  %v5254_v17 = vshll.u32 %v18445_v5, 16  ;;  %v5238_v54 = vrot.slane %v5236_v34, 4 }
 0x162   : > { %v2129_v28 = vpop.f32.mrf.mxu0  ;;  %17561 = vmatpush3.bf16.msra.mxu0 %v18453_v36  ;;  %v343_v36 = vld [vmem:[%s22917_s7 + $0x100] sm:$0xff]  ;;  %v5221_v34 = vor.u32 %v19803_v21, %v19784_v55  ;;  %v5260_v55 = vshrl.u32 %v19859_v23, 16 }
 0x163   : > { %v2294_v46 = vadd.f32 %v2129_v28, %v19378_v52  ;;  %v19867_v61 = vadd.f32 %v17257_v58, %v2296_v35  ;;  %v2956_v43 = vpop.f32.mrf.mxu1  ;;  %17562 = vmatprep.subr.bf16.mxu0 %v18460_v47  ;;  %7555 = vperm.xlu1 %18202, %v342_v27   ;;  %v344_v52 = vld [vmem:[%s22917_s7 + $0x108] sm:$0xff]  ;;  %v5247_v27 = vrot.slane %v5245_v30, 4 }
 0x164   : > { %v17196_v3 = vpop.f32.mrf.mxu0  ;;  %17451 = vmatmul.mubr.bf16.gmra.mxu0 %v5204_v14  ;;  %v19887_v14 = vrot.slane %v5251_v2, 3  ;;  %7560 = vperm.xlu0 %18201, %v343_v36   ;;  %v5222_v23 = vsel %vm1137_vm0, %v19831_v44, %v5221_v34  ;;  %v5272_v36 = vshll.u32 %v19864_v56, 16  ;;  %v5265_v44 = vrot.slane %v5263_v0, 4 }
 0x165   : > { %v2299_v5 = vadd.f32 %v17196_v3, %v19389_v1  ;;  %v19879_v35 = vadd.f32 %v2956_v43, %v2294_v46  ;;  %v17260_v58 = vpop.f32.mrf.mxu1  ;;  %17515 = vmatmul.mubr.bf16.gmra.mxu1 %v18434_v26  ;;  %17454 = vmatprep.mubr.bf16.mxu0 %v5213_v6  ;;  %v18438_v6 = vld [vmem:[%s18919_s12 + $0x6c] sm:$0xff]   ;;  %v19893_v46 = vrot.slane %v5254_v17, 4  ;;  %v5231_v3 = vsel %vm1137_vm0, %v5221_v34, %v19885_v48 }
 0x166   : > { %v2142_v9 = vpop.f32.mrf.mxu0  ;;  %17518 = vmatprep.mubr.bf16.mxu1 %v18437_v32  ;;  %17563 = vmatpush3.bf16.msra.mxu0 %v18460_v47  ;;  %v5269_v32 = vshrl.u32 %v19864_v56, 16  ;;  %v346_v47 = vld [vmem:[%s22917_s7 + $0x118] sm:$0xff]  ;;  %v347_v56 = vld [vmem:[%s22917_s7 + $0x120] sm:$0xff]  ;;  %v5239_v0 = vor.u32 %v5238_v54, %v19839_v49  ;;  %v349_v54 = vld [vmem:[%s22917_s7 + $0x130] sm:$0xff] }
 0x167   : > { %v2297_v1 = vadd.f32 %v2142_v9, %v19401_v10  ;;  %v19890_v28 = vadd.f32 %v17260_v58, %v2299_v5  ;;  %v2969_v26 = vpop.f32.mrf.mxu1  ;;  %17564 = vmatprep.subr.bf16.mxu0 %v18467_v50  ;;  %7565 = vperm.xlu1 %18202, %v344_v52   ;;  %v345_v10 = vld [vmem:[%s22917_s7 + $0x110] sm:$0xff]  ;;  %v18454_v52 = vld [vmem:[%s18919_s12 + $0xa8] sm:$0xff]  }
 0x168   : > { %v17197_v21 = vpop.f32.mrf.mxu0  ;;  %7570 = vperm.xlu0 %18201, %v345_v10   ;;  %v19932_v10 = vor.u32 %v5247_v27, %v5244_v16 }
 0x169   : > { %v2300_v30 = vadd.f32 %v17197_v21, %v19409_v20  ;;  %v19906_v2 = vadd.f32 %v2969_v26, %v2297_v1  ;;  %v17261_v43 = vpop.f32.mrf.mxu1  ;;  %v19917_v20 = vrot.slane %v5260_v55, 3  ;;  %v18455_v1 = vld [vmem:[%s18919_s12 + $0xb0] sm:$0xff]   ;;  %v19920_v21 = vrot.slane %v5269_v32, 3 }
 0x16a   : > { %v2145_v17 = vpop.f32.mrf.mxu0  ;;  %17565 = vmatpush3.bf16.msra.mxu0 %v18467_v50  ;;  %v5290_v49 = vshll.u32 %v18455_v1, 16 }
 0x16b   : > { %v2298_v5 = vadd.f32 %v2145_v17, %v19417_v39  ;;  %v19915_v58 = vadd.f32 %v17261_v43, %v2300_v30  ;;  %v2972_v9 = vpop.f32.mrf.mxu1  ;;  %7575 = vperm.xlu1 %18202, %v346_v47   ;;  %v348_v39 = vld [vmem:[%s22917_s7 + $0x128] sm:$0xff]  ;;  %v5278_v47 = vshrl.u32 %v18454_v52, 16  ;;  %v5281_v30 = vshll.u32 %v18454_v52, 16  ;;  %v18443_v17 = vld [vmem:[%s18919_s12 + $0x7c] sm:$0xff]  }
 0x16c   : > { %v17200_v26 = vpop.f32.mrf.mxu0  ;;  %17455 = vmatmul.mubr.bf16.gmra.mxu0 %v5222_v23  ;;  %7580 = vperm.xlu0 %18201, %v347_v56  }
 0x16d   : > { %v2303_v50 = vadd.f32 %v17200_v26, %v19421_v51  ;;  %v19929_v34 = vadd.f32 %v2972_v9, %v2298_v5  ;;  %v17264_v55 = vpop.f32.mrf.mxu1  ;;  %17519 = vmatmul.mubr.bf16.gmra.mxu1 %v18438_v6  ;;  %17458 = vmatprep.mubr.bf16.mxu0 %v5231_v3  ;;  %v5287_v5 = vshrl.u32 %v18455_v1, 16  ;;  %v18458_v9 = vld [vmem:[%s18919_s12 + $0xb8] sm:$0xff]   ;;  %v18447_v26 = vld [vmem:[%s18919_s12 + $0x84] sm:$0xff]   ;;  %v19940_v3 = vrot.slane %v5272_v36, 4 }
 0x16e   : > { %v2158_v32 = vpop.f32.mrf.mxu0  ;;  %17522 = vmatprep.mubr.bf16.mxu1 %v18442_v19  ;;  %v5240_v36 = vsel %vm1137_vm0, %v19885_v48, %v5239_v0  ;;  %v5249_v1 = vsel %vm1137_vm0, %v5239_v0, %v19932_v10  ;;  %v19955_v56 = vrot.slane %v5278_v47, 3  ;;  %v19967_v48 = vrot.slane %v5290_v49, 4  ;;  %v351_v47 = vld [vmem:[%s22917_s7 + $0x140] sm:$0xff] }
 0x16f   : > { %v2301_v43 = vadd.f32 %v2158_v32, %v19427_v60  ;;  %v19935_v23 = vadd.f32 %v17264_v55, %v2303_v50  ;;  %v2985_v51 = vpop.f32.mrf.mxu1  ;;  %7585 = vperm.xlu1 %18202, %v348_v39   ;;  %v350_v60 = vld [vmem:[%s22917_s7 + $0x138] sm:$0xff]  ;;  %v19957_v39 = vrot.slane %v5281_v30, 4  ;;  %v5296_v0 = vshrl.u32 %v18458_v9, 16 }
 0x170   : > { %v17201_v6 = vpop.f32.mrf.mxu0  ;;  %7590 = vperm.xlu0 %18201, %v349_v54   ;;  %v5257_v49 = vor.u32 %v19893_v46, %v19887_v14  ;;  %v18451_v14 = vld [vmem:[%s18919_s12 + $0x94] sm:$0xff]  }
 0x171   : > { %v2304_v16 = vadd.f32 %v17201_v6, %v19437_v12  ;;  %v19949_v27 = vadd.f32 %v2985_v51, %v2301_v43  ;;  %v17265_v19 = vpop.f32.mrf.mxu1  ;;  %v19962_v12 = vrot.slane %v5287_v5, 3  ;;  %v19965_v43 = vld [vmem:[%s18919_s12 + $0xc0] sm:$0xff]   ;;  %v19991_v46 = vrot.slane %v5296_v0, 3 }
 0x172   : > { %v2161_v52 = vpop.f32.mrf.mxu0  ;;  %v5258_v0 = vsel %vm1137_vm0, %v19932_v10, %v5257_v49  ;;  %v5275_v10 = vor.u32 %v19940_v3, %v19920_v21  ;;  %v5284_v21 = vor.u32 %v19957_v39, %v19955_v56 }
 0x173   : > { %v2302_v50 = vadd.f32 %v2161_v52, %v19444_v15  ;;  %v19960_v55 = vadd.f32 %v17265_v19, %v2304_v16  ;;  %v2988_v32 = vpop.f32.mrf.mxu1  ;;  %7595 = vperm.xlu1 %18202, %v350_v60   ;;  %v352_v15 = vld [vmem:[%s22917_s7 + $0x148] sm:$0xff]  ;;  %v19981_v60 = vor.u32 %v5265_v44, %v19917_v20  ;;  %v5299_v16 = vshll.u32 %v18458_v9, 16  ;;  %v354_v44 = vld [vmem:[%s22917_s7 + $0x158] sm:$0xff] }
 0x174   : > { %v17204_v51 = vpop.f32.mrf.mxu0  ;;  %17459 = vmatmul.mubr.bf16.gmra.mxu0 %v5240_v36  ;;  %v18463_v19 = vld [vmem:[%s18919_s12 + $0xc8] sm:$0xff]   ;;  %7600 = vperm.xlu0 %18201, %v351_v47   ;;  %v5308_v20 = vshll.u32 %v19965_v43, 16 }
 0x175   : > { %v2307_v30 = vadd.f32 %v17204_v51, %v19451_v42  ;;  %v19976_v5 = vadd.f32 %v2988_v32, %v2302_v50  ;;  %v17268_v6 = vpop.f32.mrf.mxu1  ;;  %17523 = vmatmul.mubr.bf16.gmra.mxu1 %v18443_v17  ;;  %17462 = vmatprep.mubr.bf16.mxu0 %v5249_v1  ;;  %v18448_v50 = vld [vmem:[%s18919_s12 + $0x8c] sm:$0xff]   ;;  %v5305_v17 = vshrl.u32 %v19965_v43, 16  ;;  %v5267_v43 = vsel %vm1137_vm0, %v5257_v49, %v19981_v60  ;;  %v355_v49 = vld [vmem:[%s22917_s7 + $0x160] sm:$0xff] }
 0x176   : > { %v2174_v54 = vpop.f32.mrf.mxu0  ;;  %17526 = vmatprep.mubr.bf16.mxu1 %v18447_v26  ;;  %v18464_v32 = vld [vmem:[%s18919_s12 + $0xd0] sm:$0xff]  }
 0x177   : > { %22937 = vst [vmem:[#allocation19_spill] sm:$0xff] %v19976_v5  ;;  %v2305_v36 = vadd.f32 %v2174_v54, %v19457_v37  ;;  %v19985_v42 = vadd.f32 %v17268_v6, %v2307_v30  ;;  %v3001_v52 = vpop.f32.mrf.mxu1  ;;  %7605 = vperm.xlu1 %18202, %v352_v15   ;;  %v353_v37 = vld [vmem:[%s22917_s7 + $0x150] sm:$0xff]  ;;  %v20007_v15 = vrot.slane %v5299_v16, 4  ;;  %v18468_v30 = vld [vmem:[%s18919_s12 + $0xd8] sm:$0xff]   ;;  %v5314_v5 = vshrl.u32 %v18463_v19, 16 }
 0x178   : > { %v17205_v1 = vpop.f32.mrf.mxu0  ;;  %7610 = vperm.xlu0 %18201, %v353_v37  }
 0x179   : > { %22938 = vst [vmem:[#allocation20_spill] sm:$0xff] %v19985_v42  ;;  %v2308_v9 = vadd.f32 %v17205_v1, %v19461_v62  ;;  %v20001_v26 = vadd.f32 %v3001_v52, %v2305_v36  ;;  %v17269_v51 = vpop.f32.mrf.mxu1  ;;  %v5317_v62 = vshll.u32 %v18463_v19, 16  ;;  %v5323_v52 = vshrl.u32 %v18464_v32, 16 }
 0x17a   : > { %v2177_v47 = vpop.f32.mrf.mxu0  ;;  %v5326_v1 = vshll.u32 %v18464_v32, 16  ;;  %v20026_v32 = vrot.slane %v5305_v17, 3  ;;  %v357_v17 = vld [vmem:[%s22917_s7 + $0x170] sm:$0xff] }
 0x17b   : > { %v2306_v6 = vadd.f32 %v2177_v47, %v19472_v22  ;;  %v20011_v54 = vadd.f32 %v17269_v51, %v2308_v9  ;;  %v3004_v42 = vpop.f32.mrf.mxu1  ;;  %7615 = vperm.xlu1 %18202, %v354_v44   ;;  %v356_v22 = vld [vmem:[%s22917_s7 + $0x168] sm:$0xff]  ;;  %v20028_v44 = vrot.slane %v5308_v20, 4  ;;  %v5332_v9 = vshrl.u32 %v18468_v30, 16  ;;  %v18452_v47 = vld [vmem:[%s18919_s12 + $0x9c] sm:$0xff]  }
 0x17c   : > { %v17208_v36 = vpop.f32.mrf.mxu0  ;;  %17463 = vmatmul.mubr.bf16.gmra.mxu0 %v5258_v0  ;;  %v5335_v51 = vshll.u32 %v18468_v30, 16  ;;  %7620 = vperm.xlu0 %18201, %v355_v49   ;;  %v20035_v56 = vrot.slane %v5323_v52, 3  ;;  %v20037_v39 = vrot.slane %v5326_v1, 4  ;;  %v5276_v30 = vsel %vm1137_vm0, %v19981_v60, %v5275_v10 }
 0x17d   : > { %v2311_v16 = vadd.f32 %v17208_v36, %v19478_v7  ;;  %v20022_v19 = vadd.f32 %v3004_v42, %v2306_v6  ;;  %v17272_v37 = vpop.f32.mrf.mxu1  ;;  %17527 = vmatmul.mubr.bf16.gmra.mxu1 %v18448_v50  ;;  %17466 = vmatprep.mubr.bf16.mxu0 %v5267_v43  ;;  %v5316_v50 = vrot.slane %v5314_v5, 3  ;;  %v5319_v43 = vrot.slane %v5317_v62, 4  ;;  %v18456_v36 = vld [vmem:[%s18919_s12 + $0xa4] sm:$0xff]  }
 0x17e   : > { %v2190_v3 = vpop.f32.mrf.mxu0  ;;  %17530 = vmatprep.mubr.bf16.mxu1 %v18451_v14  ;;  %v5285_v52 = vsel %vm1137_vm0, %v5275_v10, %v5284_v21  ;;  %v20051_v1 = vrot.slane %v5332_v9, 3  ;;  %v20053_v49 = vrot.slane %v5335_v51, 4  ;;  %v5293_v9 = vor.u32 %v19967_v48, %v19962_v12 }
 0x17f   : > { %v2309_v0 = vadd.f32 %v2190_v3, %v19488_v31  ;;  %v20031_v7 = vadd.f32 %v17272_v37, %v2311_v16  ;;  %v3017_v42 = vpop.f32.mrf.mxu1  ;;  %7625 = vperm.xlu1 %18202, %v356_v22   ;;  %v358_v31 = vld [vmem:[%s22917_s7 + $0x178] sm:$0xff]  ;;  %v22939_v3 = vld [vmem:[#allocation4_spill] sm:$0xff]  ;;  %v5302_v51 = vor.u32 %v20007_v15, %v19991_v46 }
 0x180   : > { %v17209_v6 = vpop.f32.mrf.mxu0  ;;  %7630 = vperm.xlu0 %18201, %v357_v17   ;;  %v5294_v12 = vsel %vm1137_vm0, %v5284_v21, %v5293_v9  ;;  %v5311_v21 = vor.u32 %v20028_v44, %v20026_v32 }
 0x181   : > { %v2312_v14 = vadd.f32 %v17209_v6, %v19493_v4  ;;  %v20046_v5 = vadd.f32 %v3017_v42, %v2309_v0  ;;  %v17273_v20 = vpop.f32.mrf.mxu1  ;;  %v22940_v42 = vld [vmem:[#allocation5_spill] sm:$0xff] }
 0x182   : > { %v2193_v62 = vpop.f32.mrf.mxu0  ;;  %v5312_v32 = vsel %vm1137_vm0, %v5302_v51, %v5311_v21 }
 0x183   : > { %v2310_v22 = vadd.f32 %v2193_v62, %v19504_v59  ;;  %v20056_v16 = vadd.f32 %v17273_v20, %v2312_v14  ;;  %v3020_v37 = vpop.f32.mrf.mxu1  ;;  %7635 = vperm.xlu1 %18202, %v358_v31   ;;  %v18457_v14 = vld [vmem:[%s18919_s12 + $0xac] sm:$0xff]   ;;  %v22941_v62 = vld [vmem:[#allocation6_spill] sm:$0xff] }
 0x184   : > { %v17212_v4 = vpop.f32.mrf.mxu0  ;;  %17467 = vmatmul.mubr.bf16.gmra.mxu0 %v5276_v30  ;;  %v18461_v30 = vld [vmem:[%s18919_s12 + $0xb4] sm:$0xff]  }
 0x185   : > { %v2315_v60 = vadd.f32 %v17212_v4, %v22939_v3  ;;  %v20059_v0 = vadd.f32 %v3020_v37, %v2310_v22  ;;  %v17276_v10 = vpop.f32.mrf.mxu1  ;;  %17531 = vmatmul.mubr.bf16.gmra.mxu1 %v18452_v47  ;;  %17470 = vmatprep.mubr.bf16.mxu0 %v5285_v52  ;;  %v22942_v37 = vld [vmem:[#allocation7_spill] sm:$0xff] }
 0x186   : > { %v2206_v59 = vpop.f32.mrf.mxu0  ;;  %17534 = vmatprep.mubr.bf16.mxu1 %v18456_v36  ;;  %v5303_v36 = vsel %vm1137_vm0, %v5293_v9, %v5302_v51 }
 0x187   : > { %v2313_v6 = vadd.f32 %v2206_v59, %v22940_v42  ;;  %v20066_v17 = vadd.f32 %v17276_v10, %v2315_v60  ;;  %v3033_v31 = vpop.f32.mrf.mxu1  ;;  %v22943_v60 = vld [vmem:[#allocation8_spill] sm:$0xff] }
 0x188   : > { %v17213_v20 = vpop.f32.mrf.mxu0 }
 0x189   : > { %v2316_v22 = vadd.f32 %v17213_v20, %v22941_v62  ;;  %v20071_v47 = vadd.f32 %v3033_v31, %v2313_v6  ;;  %v17277_v52 = vpop.f32.mrf.mxu1  ;;  %v5320_v6 = vor.u32 %v5319_v43, %v5316_v50  ;;  %v22944_v31 = vld [vmem:[#allocation9_spill] sm:$0xff]  ;;  %v22946_v43 = vld [vmem:[#allocation11_spill] sm:$0xff] }
 0x18a   : > { %v2209_v48 = vpop.f32.mrf.mxu0 }
 0x18b   : > { %v2314_v46 = vadd.f32 %v2209_v48, %v22942_v37  ;;  %v20076_v15 = vadd.f32 %v17277_v52, %v2316_v22  ;;  %v3036_v4 = vpop.f32.mrf.mxu1  ;;  %v18462_v52 = vld [vmem:[%s18919_s12 + $0xbc] sm:$0xff]   ;;  %v18465_v37 = vld [vmem:[%s18919_s12 + $0xc4] sm:$0xff]   ;;  %v5321_v50 = vsel %vm1137_vm0, %v5311_v21, %v5320_v6 }
 0x18c   : > { %v17216_v3 = vpop.f32.mrf.mxu0  ;;  %17471 = vmatmul.mubr.bf16.gmra.mxu0 %v5294_v12  ;;  %v18469_v12 = vld [vmem:[%s18919_s12 + $0xe0] ss:$0 sps:$4 sm:$0xff]  }
 0x18d   : > { %v2319_v10 = vadd.f32 %v17216_v3, %v22943_v60  ;;  %v20079_v59 = vadd.f32 %v3036_v4, %v2314_v46  ;;  %v17280_v42 = vpop.f32.mrf.mxu1  ;;  %17535 = vmatmul.mubr.bf16.gmra.mxu1 %v18457_v14  ;;  %17474 = vmatprep.mubr.bf16.mxu0 %v5303_v36  ;;  %v18472_v46 = vld [vmem:[%s18919_s12 + $0x24] sm:$0xff]   ;;  %v5341_v51 = vshrl.u32 %v18469_v12, 16  ;;  %v5344_v21 = vshll.u32 %v18469_v12, 16 }
 0x18e   : > { %v2222_v9 = vpop.f32.mrf.mxu0  ;;  %17538 = vmatprep.mubr.bf16.mxu1 %v18461_v30  ;;  %v22945_v4 = vld [vmem:[#allocation10_spill] sm:$0xff] }
 0x18f   : > { %v2317_v20 = vadd.f32 %v2222_v9, %v22944_v31  ;;  %v20084_v62 = vadd.f32 %v17280_v42, %v2319_v10  ;;  %v3049_v22 = vpop.f32.mrf.mxu1  ;;  %v5329_v9 = vor.u32 %v20037_v39, %v20035_v56 }
 0x190   : > { %v17217_v48 = vpop.f32.mrf.mxu0 }
 0x191   : > { %v2320_v3 = vadd.f32 %v17217_v48, %v22945_v4  ;;  %v20091_v14 = vadd.f32 %v3049_v22, %v2317_v20  ;;  %v17281_v36 = vpop.f32.mrf.mxu1  ;;  %v5338_v48 = vor.u32 %v20053_v49, %v20051_v1  ;;  %v20108_v4 = vld [vmem:[%s18919_s12 + $0x2c] sm:$0xff]   ;;  %v5343_v1 = vrot.slane %v5341_v51, 3  ;;  %v18474_v51 = vld [vmem:[%s18919_s12 + $0x34] sm:$0xff]  }
 0x192   : > { %v2225_v44 = vpop.f32.mrf.mxu0  ;;  %v5346_v49 = vrot.slane %v5344_v21, 4 }
 0x193   : > { %v20096_v30 = vadd.f32 %v2225_v44, %v22946_v43  ;;  %v20098_v60 = vadd.f32 %v17281_v36, %v2320_v3  ;;  %v20100_v10 = vpop.f32.mrf.mxu1  ;;  %v6608_v3 = vshll.u32 %v18472_v46, 16 }
 0x194   : > { %22948 = vst [vmem:[#allocation5_spill] sm:$0xff] %v20100_v10  ;;  %v17220_v42 = vpop.f32.mrf.mxu0  ;;  %17475 = vmatmul.mubr.bf16.gmra.mxu0 %v5312_v32  ;;  %v22949_v32 = vld [vmem:[#allocation12_spill] sm:$0xff] }
 0x195   : > { %22947 = vst [vmem:[#allocation4_spill] sm:$0xff] %v20096_v30  ;;  %v2323_v31 = vadd.f32 %v17220_v42, %v19612_v25  ;;  %v17284_v20 = vpop.f32.mrf.mxu1  ;;  %17539 = vmatmul.mubr.bf16.gmra.mxu1 %v18462_v52  ;;  %17478 = vmatprep.mubr.bf16.mxu0 %v5321_v50  ;;  %v5330_v52 = vsel %vm1137_vm0, %v5320_v6, %v5329_v9  ;;  %v18466_v50 = vld [vmem:[%s18919_s12 + $0xcc] sm:$0xff]   ;;  %v18470_v10 = vld [vmem:[%s18919_s12 + $0xd4] sm:$0xff]  }
 0x196   : > { %v2238_v22 = vpop.f32.mrf.mxu0  ;;  %17542 = vmatprep.mubr.bf16.mxu1 %v18465_v37  ;;  %v5339_v42 = vsel %vm1137_vm0, %v5329_v9, %v5338_v48 }
 0x197   : > { %v2321_v36 = vadd.f32 %v2238_v22, %v19618_v29  ;;  %v20111_v56 = vadd.f32 %v17284_v20, %v2323_v31  ;;  %v3065_v25 = vpop.f32.mrf.mxu1  ;;  %v6606_v29 = vshrl.u32 %v18472_v46, 16  ;;  %v6610_v31 = vrot.slane %v6608_v3, 1  ;;  %v22950_v22 = vld [vmem:[#allocation13_spill] sm:$0xff] }
 0x198   : > { %v17221_v39 = vpop.f32.mrf.mxu0  ;;  %v6613_v20 = vshll.u32 %v20108_v4, 16  ;;  %v5347_v46 = vor.u32 %v5346_v49, %v5343_v1  ;;  %v18471_v49 = vld [vmem:[%s18919_s12 + $0xdc] sm:$0xff]  }
 0x199   : > { %v2324_v44 = vadd.f32 %v17221_v39, %v22949_v32  ;;  %v20115_v12 = vadd.f32 %v3065_v25, %v2321_v36  ;;  %v17285_v37 = vpop.f32.mrf.mxu1  ;;  %v6611_v3 = vor.u32 %v6610_v31, %v6606_v29  ;;  %v6625_v31 = vshrl.u32 %v18474_v51, 16 }
 0x19a   : > { %v2241_v43 = vpop.f32.mrf.mxu0  ;;  %v6615_v30 = vrot.slane %v6613_v20, 1  ;;  %v5348_v1 = vsel %vm1137_vm0, %v5338_v48, %v5347_v46  ;;  %v22958_v46 = vld [vmem:[#allocation15_spill] sm:$0xff] }
 0x19b   : > { %v20122_v6 = vadd.f32 %v2241_v43, %v22950_v22  ;;  %v20124_v39 = vadd.f32 %v17285_v37, %v2324_v44  ;;  %v20126_v36 = vpop.f32.mrf.mxu1  ;;  %v18475_v43 = vld [vmem:[%s18919_s12 + $0x3c] sm:$0xff]  }
 0x19c   : > { %22952 = vst [vmem:[#allocation7_spill] sm:$0xff] %v20126_v36  ;;  %v17224_v25 = vpop.f32.mrf.mxu0  ;;  %17479 = vmatmul.mubr.bf16.gmra.mxu0 %v5330_v52  ;;  %v6621_v52 = vshll.u32 %v18474_v51, 16  ;;  %v6616_v29 = vsel %vm2618_vm1, %v6611_v3, %v6615_v30  ;;  %v6629_v20 = vshll.u32 %v18475_v43, 16 }
 0x19d   : > { %22951 = vst [vmem:[#allocation6_spill] sm:$0xff] %v20122_v6  ;;  %v2327_v21 = vadd.f32 %v17224_v25, %v19646_v57  ;;  %v17288_v32 = vpop.f32.mrf.mxu1  ;;  %17543 = vmatmul.mubr.bf16.gmra.mxu1 %v18466_v50  ;;  %17482 = vmatprep.mubr.bf16.mxu0 %v5339_v42  ;;  %v22954_v25 = vld [vmem:[#allocation14_spill] sm:$0xff] }
 0x19e   : > { %v2254_v9 = vpop.f32.mrf.mxu0  ;;  %17546 = vmatprep.mubr.bf16.mxu1 %v18470_v10  ;;  %v6617_v10 = vshrl.u32 %v20108_v4, 16  ;;  %v6623_v4 = vrot.slane %v6621_v52, 1  ;;  %v22960_v52 = vld [vmem:[#allocation17_spill] sm:$0xff] }
 0x19f   : > { %v2325_v44 = vadd.f32 %v2254_v9, %v19652_v24  ;;  %v20132_v37 = vadd.f32 %v17288_v32, %v2327_v21  ;;  %v3081_v22 = vpop.f32.mrf.mxu1  ;;  %v18497_v24 = vld [vmem:[%s22914_s4 + $0x138] sm:$0xff]   ;;  %v18476_v32 = vld [vmem:[%s18919_s12 + $0x44] sm:$0xff]  }
 0x1a0   : > { %v17225_v36 = vpop.f32.mrf.mxu0  ;;  %17614 = vmatprep.subr.bf16.mxu1 %v18497_v24  ;;  %v6619_v51 = vor.u32 %v6617_v10, %v6615_v30 }
 0x1a1   : > { %v2328_v6 = vadd.f32 %v17225_v36, %v19664_v40  ;;  %v20135_v57 = vadd.f32 %v3081_v22, %v2325_v44  ;;  %v17289_v50 = vpop.f32.mrf.mxu1  ;;  %17615 = vmatpush3.bf16.msra.mxu1 %v18497_v24  ;;  %v6627_v22 = vor.u32 %v6625_v31, %v6623_v4  ;;  %v6641_v31 = vshrl.u32 %v18476_v32, 16 }
 0x1a2   : > { %v2257_v42 = vpop.f32.mrf.mxu0  ;;  %v6624_v30 = vsel %vm2618_vm1, %v6619_v51, %v6623_v4 }
 0x1a3   : > { %22953 = vst [vmem:[#allocation8_spill] sm:$0xff] %v20135_v57  ;;  %v20145_v40 = vadd.f32 %v2257_v42, %v22954_v25  ;;  %v20147_v36 = vadd.f32 %v17289_v50, %v2328_v6  ;;  %v20149_v21 = vpop.f32.mrf.mxu1  ;;  %v6631_v42 = vrot.slane %v6629_v20, 1  ;;  %v18477_v6 = vld [vmem:[%s18919_s12 + $0x4c] sm:$0xff]  }
 0x1a4   : > { %22957 = vst [vmem:[#allocation11_spill] sm:$0xff] %v20149_v21  ;;  %v17228_v48 = vpop.f32.mrf.mxu0  ;;  %17483 = vmatmul.mubr.bf16.gmra.mxu0 %v5348_v1  ;;  %v22959_v50 = vld [vmem:[#allocation16_spill] sm:$0xff]  ;;  %v6637_v1 = vshll.u32 %v18476_v32, 16  ;;  %v6645_v20 = vshll.u32 %v18477_v6, 16 }
 0x1a5   : > { %22955 = vst [vmem:[#allocation9_spill] sm:$0xff] %v20145_v40  ;;  %22956 = vst [vmem:[#allocation10_spill] sm:$0xff] %v20147_v36  ;;  %v2331_v9 = vadd.f32 %v17228_v48, %v22958_v46  ;;  %v17292_v44 = vpop.f32.mrf.mxu1  ;;  %17547 = vmatmul.mubr.bf16.gmra.mxu1 %v18471_v49  ;;  %17566 = vmatprep.mubr.bf16.mxu0 %v6616_v29  ;;  %v6633_v49 = vshrl.u32 %v18475_v43, 16  ;;  %v6632_v29 = vsel %vm2618_vm1, %v6627_v22, %v6631_v42  ;;  %v22961_v46 = vld [vmem:[#allocation18_spill] sm:$0xff]  ;;  %v18498_v32 = vld [vmem:[%s22914_s4 + $0x130] sm:$0xff]  }
 0x1a6   : > { %v2270_v3 = vpop.f32.mrf.mxu0  ;;  %17616 = vmatprep.subr.bf16.mxu1 %v18498_v32 }
 0x1a7   : > { %v2329_v25 = vadd.f32 %v2270_v3, %v22959_v50  ;;  %v20155_v40 = vadd.f32 %v17292_v44, %v2331_v9  ;;  %v3097_v21 = vpop.f32.mrf.mxu1  ;;  %v18478_v50 = vld [vmem:[%s18919_s12 + $0x54] sm:$0xff]   ;;  %v6635_v51 = vor.u32 %v6633_v49, %v6631_v42  ;;  %17617 = vmatpush3.bf16.msra.mxu1 %v18498_v32 }
 0x1a8   : > { %v17229_v36 = vpop.f32.mrf.mxu0 }
 0x1a9   : > { %v2332_v24 = vadd.f32 %v17229_v36, %v22960_v52  ;;  %v20158_v57 = vadd.f32 %v3097_v21, %v2329_v25  ;;  %v17293_v48 = vpop.f32.mrf.mxu1  ;;  %v6639_v21 = vrot.slane %v6637_v1, 1  ;;  %v6647_v52 = vrot.slane %v6645_v20, 1 }
 0x1aa   : > { %v2273_v10 = vpop.f32.mrf.mxu0 }
 0x1ab   : > { %v20163_v9 = vadd.f32 %v2273_v10, %v22961_v46  ;;  %v20165_v44 = vadd.f32 %v17293_v48, %v2332_v24  ;;  %v20167_v3 = vpop.f32.mrf.mxu1  ;;  %v6643_v25 = vor.u32 %v6641_v31, %v6639_v21  ;;  %v18479_v24 = vld [vmem:[%s18919_s12 + $0x5c] sm:$0xff]   ;;  %v6653_v46 = vshll.u32 %v18478_v50, 16 }
 0x1ac   : > { %22962 = vst [vmem:[#allocation12_spill] sm:$0xff] %v20167_v3  ;;  %v17312_v36 = vpop.f32.mrf.mxu0  ;;  %17567 = vmatmul.mubr.bf16.vlgmr.msra.gmra.mxu0 %v6624_v30  ;;  %v6649_v31 = vshrl.u32 %v18477_v6, 16  ;;  %v18481_v3 = vld [vmem:[%s18919_s12 + $0x6c] sm:$0xff]  }
 0x1ad   : > { %v3968_v4 = vadd.f32 %v17312_v36, %v19726_v63  ;;  %v17376_v43 = vpop.f32.mrf.mxu1  ;;  %17570 = vmatprep.mubr.bf16.mxu0 %v6632_v29  ;;  %v6640_v29 = vsel %vm2618_vm1, %v6635_v51, %v6639_v21  ;;  %v6648_v36 = vsel %vm2618_vm1, %v6643_v25, %v6647_v52 }
 0x1ae   : > { %v3775_v22 = vpop.f32.mrf.mxu0  ;;  %v6651_v51 = vor.u32 %v6649_v31, %v6647_v52  ;;  %v6665_v52 = vshrl.u32 %v18479_v24, 16  ;;  %v18499_v31 = vld [vmem:[%s22914_s4 + $0x128] sm:$0xff]  }
 0x1af   : > { %v3966_v48 = vadd.f32 %v3775_v22, %v19745_v8  ;;  %v20176_v10 = vadd.f32 %v17376_v43, %v3968_v4  ;;  %v4601_v30 = vpop.f32.mrf.mxu1  ;;  %v6657_v8 = vshrl.u32 %v18478_v50, 16  ;;  %v6661_v4 = vshll.u32 %v18479_v24, 16  ;;  %17618 = vmatprep.subr.bf16.mxu1 %v18499_v31 }
 0x1b0   : > { %v17313_v1 = vpop.f32.mrf.mxu0  ;;  %17619 = vmatpush3.bf16.msra.mxu1 %v18499_v31 }
 0x1b1   : > { %v3969_v63 = vadd.f32 %v17313_v1, %v19757_v33  ;;  %v20179_v42 = vadd.f32 %v4601_v30, %v3966_v48  ;;  %v17377_v49 = vpop.f32.mrf.mxu1  ;;  %v6655_v48 = vrot.slane %v6653_v46, 1  ;;  %v18480_v30 = vld [vmem:[%s18919_s12 + $0x64] sm:$0xff]   ;;  %v6663_v1 = vrot.slane %v6661_v4, 1 }
 0x1b2   : > { %v3778_v20 = vpop.f32.mrf.mxu0  ;;  %v6673_v4 = vshrl.u32 %v18480_v30, 16 }
 0x1b3   : > { %v20184_v43 = vadd.f32 %v3778_v20, %v19771_v18  ;;  %v20186_v22 = vadd.f32 %v17377_v49, %v3969_v63  ;;  %v20188_v32 = vpop.f32.mrf.mxu1  ;;  %v6659_v50 = vor.u32 %v6657_v8, %v6655_v48 }
 0x1b4   : > { %22963 = vst [vmem:[#allocation13_spill] sm:$0xff] %v20188_v32  ;;  %v17316_v33 = vpop.f32.mrf.mxu0  ;;  %17571 = vmatmul.mubr.bf16.gmra.mxu0 %v6640_v29  ;;  %v6669_v32 = vshll.u32 %v18480_v30, 16  ;;  %v6667_v30 = vor.u32 %v6665_v52, %v6663_v1 }
 0x1b5   : > { %v3972_v21 = vadd.f32 %v17316_v33, %v19781_v38  ;;  %v17380_v6 = vpop.f32.mrf.mxu1  ;;  %17574 = vmatprep.mubr.bf16.mxu0 %v6648_v36  ;;  %v6656_v36 = vsel %vm2618_vm1, %v6651_v51, %v6655_v48  ;;  %v6677_v33 = vshll.u32 %v18481_v3, 16  ;;  %v18482_v51 = vld [vmem:[%s18919_s12 + $0x74] sm:$0xff]  }
 0x1b6   : > { %v3791_v25 = vpop.f32.mrf.mxu0  ;;  %v6671_v24 = vrot.slane %v6669_v32, 1 }
 0x1b7   : > { %v3970_v18 = vadd.f32 %v3791_v25, %v19797_v13  ;;  %v20194_v20 = vadd.f32 %v17380_v6, %v3972_v21  ;;  %v4617_v63 = vpop.f32.mrf.mxu1  ;;  %v6664_v13 = vsel %vm2618_vm1, %v6659_v50, %v6663_v1  ;;  %v6681_v1 = vshrl.u32 %v18481_v3, 16 }
 0x1b8   : > { %v17317_v49 = vpop.f32.mrf.mxu0  ;;  %v6672_v31 = vsel %vm2618_vm1, %v6667_v30, %v6671_v24 }
 0x1b9   : > { %v3973_v29 = vadd.f32 %v17317_v49, %v19809_v11  ;;  %v20197_v46 = vadd.f32 %v4617_v63, %v3970_v18  ;;  %v17381_v38 = vpop.f32.mrf.mxu1  ;;  %v6675_v63 = vor.u32 %v6673_v4, %v6671_v24  ;;  %v18483_v49 = vld [vmem:[%s18919_s12 + $0x7c] sm:$0xff]   ;;  %v6689_v4 = vshrl.u32 %v18482_v51, 16 }
 0x1ba   : > { %v3794_v8 = vpop.f32.mrf.mxu0 }
 0x1bb   : > { %v20205_v21 = vadd.f32 %v3794_v8, %v19826_v41  ;;  %v20207_v11 = vadd.f32 %v17381_v38, %v3973_v29  ;;  %v20209_v6 = vpop.f32.mrf.mxu1  ;;  %v6679_v41 = vrot.slane %v6677_v33, 1  ;;  %v6693_v33 = vshll.u32 %v18483_v49, 16 }
 0x1bc   : > { %22965 = vst [vmem:[#allocation15_spill] sm:$0xff] %v20209_v6  ;;  %v17320_v48 = vpop.f32.mrf.mxu0  ;;  %17575 = vmatmul.mubr.bf16.gmra.mxu0 %v6656_v36 }
 0x1bd   : > { %22964 = vst [vmem:[#allocation14_spill] sm:$0xff] %v20205_v21  ;;  %v3976_v25 = vadd.f32 %v17320_v48, %v19836_v45  ;;  %v17384_v18 = vpop.f32.mrf.mxu1  ;;  %17578 = vmatprep.mubr.bf16.mxu0 %v6664_v13  ;;  %v6685_v21 = vshll.u32 %v18482_v51, 16  ;;  %v6680_v13 = vsel %vm2618_vm1, %v6675_v63, %v6679_v41  ;;  %v6683_v30 = vor.u32 %v6681_v1, %v6679_v41  ;;  %v18500_v51 = vld [vmem:[%s22914_s4 + $0x120] sm:$0xff]  }
 0x1be   : > { %v3807_v50 = vpop.f32.mrf.mxu0  ;;  %v6695_v63 = vrot.slane %v6693_v33, 1  ;;  %17620 = vmatprep.subr.bf16.mxu1 %v18500_v51 }
 0x1bf   : > { %v3974_v29 = vadd.f32 %v3807_v50, %v19854_v53  ;;  %v20215_v38 = vadd.f32 %v17384_v18, %v3976_v25  ;;  %v4633_v8 = vpop.f32.mrf.mxu1  ;;  %v18484_v18 = vld [vmem:[%s18919_s12 + $0x84] sm:$0xff]   ;;  %17621 = vmatpush3.bf16.msra.mxu1 %v18500_v51 }
 0x1c0   : > { %v17321_v6 = vpop.f32.mrf.mxu0 }
 0x1c1   : > { %v3977_v32 = vadd.f32 %v17321_v6, %v19867_v61  ;;  %v20218_v36 = vadd.f32 %v4633_v8, %v3974_v29  ;;  %v17385_v45 = vpop.f32.mrf.mxu1  ;;  %v6687_v6 = vrot.slane %v6685_v21, 1  ;;  %v18485_v29 = vld [vmem:[%s18919_s12 + $0x8c] sm:$0xff]  }
 0x1c2   : > { %v3810_v52 = vpop.f32.mrf.mxu0 }
 0x1c3   : > { %v20223_v53 = vadd.f32 %v3810_v52, %v19879_v35  ;;  %v20225_v48 = vadd.f32 %v17385_v45, %v3977_v32  ;;  %v20227_v25 = vpop.f32.mrf.mxu1  ;;  %v6691_v35 = vor.u32 %v6689_v4, %v6687_v6  ;;  %v6688_v52 = vsel %vm2618_vm1, %v6683_v30, %v6687_v6 }
 0x1c4   : > { %22966 = vst [vmem:[#allocation16_spill] sm:$0xff] %v20227_v25  ;;  %v17324_v61 = vpop.f32.mrf.mxu0  ;;  %17579 = vmatmul.mubr.bf16.gmra.mxu0 %v6672_v31  ;;  %v6701_v31 = vshll.u32 %v18484_v18, 16 }
 0x1c5   : > { %v3980_v24 = vadd.f32 %v17324_v61, %v19890_v28  ;;  %v17388_v3 = vpop.f32.mrf.mxu1  ;;  %17582 = vmatprep.mubr.bf16.mxu0 %v6680_v13  ;;  %v6697_v13 = vshrl.u32 %v18483_v49, 16  ;;  %v6696_v33 = vsel %vm2618_vm1, %v6691_v35, %v6695_v63  ;;  %v6709_v61 = vshll.u32 %v18485_v29, 16 }
 0x1c6   : > { %v3823_v50 = vpop.f32.mrf.mxu0 }
 0x1c7   : > { %v3978_v8 = vadd.f32 %v3823_v50, %v19906_v2  ;;  %v20236_v32 = vadd.f32 %v17388_v3, %v3980_v24  ;;  %v4649_v45 = vpop.f32.mrf.mxu1  ;;  %v6705_v2 = vshrl.u32 %v18484_v18, 16  ;;  %v6703_v50 = vrot.slane %v6701_v31, 1 }
 0x1c8   : > { %v17325_v21 = vpop.f32.mrf.mxu0  ;;  %v6699_v30 = vor.u32 %v6697_v13, %v6695_v63  ;;  %v6713_v63 = vshrl.u32 %v18485_v29, 16  ;;  %v18501_v13 = vld [vmem:[%s22914_s4 + $0x118] sm:$0xff]  }
 0x1c9   : > { %v3981_v28 = vadd.f32 %v17325_v21, %v19915_v58  ;;  %v20239_v41 = vadd.f32 %v4649_v45, %v3978_v8  ;;  %v17389_v1 = vpop.f32.mrf.mxu1  ;;  %v18486_v8 = vld [vmem:[%s18919_s12 + $0x94] sm:$0xff]   ;;  %v6707_v18 = vor.u32 %v6705_v2, %v6703_v50  ;;  %v6711_v45 = vrot.slane %v6709_v61, 1  ;;  %v18487_v21 = vld [vmem:[%s18919_s12 + $0x9c] sm:$0xff]   ;;  %17622 = vmatprep.subr.bf16.mxu1 %v18501_v13 }
 0x1ca   : > { %v3826_v4 = vpop.f32.mrf.mxu0  ;;  %v6721_v61 = vshrl.u32 %v18486_v8, 16  ;;  %17623 = vmatpush3.bf16.msra.mxu1 %v18501_v13 }
 0x1cb   : > { %v20244_v24 = vadd.f32 %v3826_v4, %v19929_v34  ;;  %v20246_v3 = vadd.f32 %v17389_v1, %v3981_v28  ;;  %v20248_v51 = vpop.f32.mrf.mxu1 }
 0x1cc   : > { %22968 = vst [vmem:[#allocation18_spill] sm:$0xff] %v20248_v51  ;;  %v17328_v58 = vpop.f32.mrf.mxu0  ;;  %17583 = vmatmul.mubr.bf16.gmra.mxu0 %v6688_v52  ;;  %v6717_v51 = vshll.u32 %v18486_v8, 16  ;;  %v6715_v8 = vor.u32 %v6713_v63, %v6711_v45 }
 0x1cd   : > { %22967 = vst [vmem:[#allocation17_spill] sm:$0xff] %v20244_v24  ;;  %v3984_v6 = vadd.f32 %v17328_v58, %v19935_v23  ;;  %v17392_v49 = vpop.f32.mrf.mxu1  ;;  %17586 = vmatprep.mubr.bf16.mxu0 %v6696_v33  ;;  %v6704_v33 = vsel %vm2618_vm1, %v6699_v30, %v6703_v50  ;;  %v6725_v58 = vshll.u32 %v18487_v21, 16  ;;  %v18488_v30 = vld [vmem:[%s18919_s12 + $0xa4] sm:$0xff]  }
 0x1ce   : > { %v3839_v35 = vpop.f32.mrf.mxu0  ;;  %v6719_v29 = vrot.slane %v6717_v51, 1  ;;  %v6733_v25 = vshll.u32 %v18488_v30, 16 }
 0x1cf   : > { %v3982_v34 = vadd.f32 %v3839_v35, %v19949_v27  ;;  %v20254_v4 = vadd.f32 %v17392_v49, %v3984_v6  ;;  %v4665_v28 = vpop.f32.mrf.mxu1  ;;  %v6712_v27 = vsel %vm2618_vm1, %v6707_v18, %v6711_v45  ;;  %v22969_v6 = vld [vmem:[#allocation19_spill] sm:$0xff]  ;;  %v6729_v45 = vshrl.u32 %v18487_v21, 16 }
 0x1d0   : > { %v17329_v1 = vpop.f32.mrf.mxu0  ;;  %v6723_v24 = vor.u32 %v6721_v61, %v6719_v29 }
 0x1d1   : > { %v3985_v52 = vadd.f32 %v17329_v1, %v19960_v55  ;;  %v20257_v31 = vadd.f32 %v4665_v28, %v3982_v34  ;;  %v17393_v23 = vpop.f32.mrf.mxu1  ;;  %v22972_v34 = vld [vmem:[#allocation20_spill] sm:$0xff] }
 0x1d2   : > { %v3842_v2 = vpop.f32.mrf.mxu0 }
 0x1d3   : > { %v20265_v49 = vadd.f32 %v3842_v2, %v22969_v6  ;;  %v20267_v55 = vadd.f32 %v17393_v23, %v3985_v52  ;;  %v20269_v35 = vpop.f32.mrf.mxu1  ;;  %v6727_v2 = vrot.slane %v6725_v58, 1  ;;  %v18489_v6 = vld [vmem:[%s18919_s12 + $0xac] sm:$0xff]   ;;  %v6737_v58 = vshrl.u32 %v18488_v30, 16 }
 0x1d4   : > { %22971 = vst [vmem:[#allocation21_spill] sm:$0xff] %v20269_v35  ;;  %v17332_v50 = vpop.f32.mrf.mxu0  ;;  %17587 = vmatmul.mubr.bf16.gmra.mxu0 %v6704_v33 }
 0x1d5   : > { %22970 = vst [vmem:[#allocation19_spill] sm:$0xff] %v20265_v49  ;;  %v3988_v28 = vadd.f32 %v17332_v50, %v22972_v34  ;;  %v17396_v1 = vpop.f32.mrf.mxu1  ;;  %17590 = vmatprep.mubr.bf16.mxu0 %v6712_v27  ;;  %v6720_v27 = vsel %vm2618_vm1, %v6715_v8, %v6719_v29  ;;  %v6728_v61 = vsel %vm2618_vm1, %v6723_v24, %v6727_v2  ;;  %v6741_v50 = vshll.u32 %v18489_v6, 16  ;;  %v18502_v24 = vld [vmem:[%s22914_s4 + $0x110] sm:$0xff]  }
 0x1d6   : > { %v3855_v18 = vpop.f32.mrf.mxu0  ;;  %17624 = vmatprep.subr.bf16.mxu1 %v18502_v24 }
 0x1d7   : > { %v3986_v52 = vadd.f32 %v3855_v18, %v20001_v26  ;;  %v20275_v23 = vadd.f32 %v17396_v1, %v3988_v28  ;;  %v4681_v35 = vpop.f32.mrf.mxu1  ;;  %v6731_v1 = vor.u32 %v6729_v45, %v6727_v2  ;;  %v6743_v8 = vrot.slane %v6741_v50, 1  ;;  %v18491_v18 = vld [vmem:[%s18919_s12 + $0xbc] sm:$0xff]   ;;  %17625 = vmatpush3.bf16.msra.mxu1 %v18502_v24 }
 0x1d8   : > { %v17333_v49 = vpop.f32.mrf.mxu0 }
 0x1d9   : > { %v3989_v51 = vadd.f32 %v17333_v49, %v20011_v54  ;;  %v20278_v33 = vadd.f32 %v4681_v35, %v3986_v52  ;;  %v17397_v13 = vpop.f32.mrf.mxu1  ;;  %v6735_v49 = vrot.slane %v6733_v25, 1  ;;  %v18490_v35 = vld [vmem:[%s18919_s12 + $0xb4] sm:$0xff]  }
 0x1da   : > { %v3858_v63 = vpop.f32.mrf.mxu0 }
 0x1db   : > { %v20283_v26 = vadd.f32 %v3858_v63, %v20022_v19  ;;  %v20285_v34 = vadd.f32 %v17397_v13, %v3989_v51  ;;  %v20287_v28 = vpop.f32.mrf.mxu1  ;;  %v6739_v19 = vor.u32 %v6737_v58, %v6735_v49  ;;  %v6736_v63 = vsel %vm2618_vm1, %v6731_v1, %v6735_v49 }
 0x1dc   : > { %v17336_v54 = vpop.f32.mrf.mxu0  ;;  %17591 = vmatmul.mubr.bf16.gmra.mxu0 %v6720_v27  ;;  %v6749_v27 = vshll.u32 %v18490_v35, 16 }
 0x1dd   : > { %v3992_v29 = vadd.f32 %v17336_v54, %v20031_v7  ;;  %v17400_v21 = vpop.f32.mrf.mxu1  ;;  %17594 = vmatprep.mubr.bf16.mxu0 %v6728_v61  ;;  %v6745_v61 = vshrl.u32 %v18489_v6, 16  ;;  %v6744_v50 = vsel %vm2618_vm1, %v6739_v19, %v6743_v8  ;;  %v6757_v54 = vshll.u32 %v18491_v18, 16 }
 0x1de   : > { %v3871_v30 = vpop.f32.mrf.mxu0 }
 0x1df   : > { %v3990_v52 = vadd.f32 %v3871_v30, %v20046_v5  ;;  %v20296_v51 = vadd.f32 %v17400_v21, %v3992_v29  ;;  %v4697_v13 = vpop.f32.mrf.mxu1  ;;  %v6753_v5 = vshrl.u32 %v18490_v35, 16  ;;  %v6751_v30 = vrot.slane %v6749_v27, 1 }
 0x1e0   : > { %v17337_v25 = vpop.f32.mrf.mxu0  ;;  %v6747_v1 = vor.u32 %v6745_v61, %v6743_v8  ;;  %v6761_v8 = vshrl.u32 %v18491_v18, 16  ;;  %v18503_v61 = vld [vmem:[%s22914_s4 + $0x108] sm:$0xff]  }
 0x1e1   : > { %v3993_v7 = vadd.f32 %v17337_v25, %v20056_v16  ;;  %v20299_v2 = vadd.f32 %v4697_v13, %v3990_v52  ;;  %v17401_v45 = vpop.f32.mrf.mxu1  ;;  %v18492_v52 = vld [vmem:[%s18919_s12 + $0xc4] sm:$0xff]   ;;  %v6755_v35 = vor.u32 %v6753_v5, %v6751_v30  ;;  %v6759_v13 = vrot.slane %v6757_v54, 1  ;;  %v18493_v25 = vld [vmem:[%s18919_s12 + $0xcc] sm:$0xff]   ;;  %17626 = vmatprep.subr.bf16.mxu1 %v18503_v61 }
 0x1e2   : > { %v3874_v58 = vpop.f32.mrf.mxu0  ;;  %v6769_v54 = vshrl.u32 %v18492_v52, 16  ;;  %17627 = vmatpush3.bf16.msra.mxu1 %v18503_v61  ;;  %v6777_v61 = vshrl.u32 %v18493_v25, 16 }
 0x1e3   : > { %v20304_v29 = vadd.f32 %v3874_v58, %v20059_v0  ;;  %v20306_v21 = vadd.f32 %v17401_v45, %v3993_v7  ;;  %v20308_v24 = vpop.f32.mrf.mxu1 }
 0x1e4   : > { %22973 = vst [vmem:[#allocation20_spill] sm:$0xff] %v20308_v24  ;;  %v17340_v16 = vpop.f32.mrf.mxu0  ;;  %17595 = vmatmul.mubr.bf16.gmra.mxu0 %v6736_v63  ;;  %v6765_v24 = vshll.u32 %v18492_v52, 16  ;;  %v6763_v52 = vor.u32 %v6761_v8, %v6759_v13 }
 0x1e5   : > { %v3996_v49 = vadd.f32 %v17340_v16, %v20066_v17  ;;  %v17404_v6 = vpop.f32.mrf.mxu1  ;;  %17598 = vmatprep.mubr.bf16.mxu0 %v6744_v50  ;;  %v6752_v50 = vsel %vm2618_vm1, %v6747_v1, %v6751_v30  ;;  %v6773_v16 = vshll.u32 %v18493_v25, 16  ;;  %v18494_v1 = vld [vmem:[%s18919_s12 + $0xd4] sm:$0xff]  }
 0x1e6   : > { %v3887_v19 = vpop.f32.mrf.mxu0  ;;  %v6767_v18 = vrot.slane %v6765_v24, 1  ;;  %v18506_v25 = vld [vmem:[%s22914_s4 + $0x30] sm:$0xff]  }
 0x1e7   : > { %v3994_v0 = vadd.f32 %v3887_v19, %v20071_v47  ;;  %v20314_v58 = vadd.f32 %v17404_v6, %v3996_v49  ;;  %v4713_v7 = vpop.f32.mrf.mxu1  ;;  %v6760_v47 = vsel %vm2618_vm1, %v6755_v35, %v6759_v13 }
 0x1e8   : > { %v17341_v45 = vpop.f32.mrf.mxu0 }
 0x1e9   : > { %v3997_v63 = vadd.f32 %v17341_v45, %v20076_v15  ;;  %v20317_v27 = vadd.f32 %v4713_v7, %v3994_v0  ;;  %v17405_v17 = vpop.f32.mrf.mxu1  ;;  %v6771_v7 = vor.u32 %v6769_v54, %v6767_v18  ;;  %v18495_v45 = vld [vmem:[%s18919_s12 + $0xdc] sm:$0xff]  }
 0x1ea   : > { %v3890_v5 = vpop.f32.mrf.mxu0 }
 0x1eb   : > { %v20325_v49 = vadd.f32 %v3890_v5, %v20079_v59  ;;  %v20327_v15 = vadd.f32 %v17405_v17, %v3997_v63  ;;  %v20329_v6 = vpop.f32.mrf.mxu1  ;;  %v6775_v59 = vrot.slane %v6773_v16, 1  ;;  %v18504_v63 = vld [vmem:[%s22914_s4 + $0x38] sm:$0xff]   ;;  %v6785_v16 = vshrl.u32 %v18494_v1, 16 }
 0x1ec   : > { %22975 = vst [vmem:[#allocation23_spill] sm:$0xff] %v20329_v6  ;;  %v17344_v30 = vpop.f32.mrf.mxu0  ;;  %17599 = vmatmul.mubr.bf16.gmra.mxu0 %v6752_v50  ;;  %v6781_v6 = vshll.u32 %v18494_v1, 16  ;;  %17678 = vmatprep.subr.bf16.mxu0 %v18504_v63 }
 0x1ed   : > { %22974 = vst [vmem:[#allocation22_spill] sm:$0xff] %v20325_v49  ;;  %v4000_v19 = vadd.f32 %v17344_v30, %v20084_v62  ;;  %v17408_v0 = vpop.f32.mrf.mxu1  ;;  %17602 = vmatprep.mubr.bf16.mxu0 %v6760_v47  ;;  %v6768_v47 = vsel %vm2618_vm1, %v6763_v52, %v6767_v18  ;;  %17679 = vmatpush3.bf16.msra.mxu0 %v18504_v63  ;;  %v6789_v30 = vshll.u32 %v18495_v45, 16 }
 0x1ee   : > { %v3903_v35 = vpop.f32.mrf.mxu0  ;;  %v6783_v18 = vrot.slane %v6781_v6, 1  ;;  %17680 = vmatprep.subr.bf16.mxu0 %v18506_v25 }
 0x1ef   : > { %v3998_v17 = vadd.f32 %v3903_v35, %v20091_v14  ;;  %v20338_v5 = vadd.f32 %v17408_v0, %v4000_v19  ;;  %v4729_v24 = vpop.f32.mrf.mxu1  ;;  %v6776_v14 = vsel %vm2618_vm1, %v6771_v7, %v6775_v59  ;;  %v6779_v35 = vor.u32 %v6777_v61, %v6775_v59  ;;  %v18496_v7 = vld [vmem:[%s18919_s12 + $0xe4] ss:$0 sps:$4 sm:$0x11]  }
 0x1f0   : > { %v17345_v50 = vpop.f32.mrf.mxu0 }
 0x1f1   : > { %v4001_v62 = vadd.f32 %v17345_v50, %v20098_v60  ;;  %v20341_v13 = vadd.f32 %v4729_v24, %v3998_v17  ;;  %v17409_v8 = vpop.f32.mrf.mxu1  ;;  %17681 = vmatpush3.bf16.msra.mxu0 %v18506_v25  ;;  %v6787_v17 = vor.u32 %v6785_v16, %v6783_v18  ;;  %v6791_v24 = vrot.slane %v6789_v30, 1  ;;  %v18507_v50 = vld [vmem:[%s22914_s4 + $0x28] sm:$0xff]  }
 0x1f2   : > { %v20344_v54 = vpop.f32.mrf.mxu0  ;;  %v6784_v61 = vsel %vm2618_vm1, %v6779_v35, %v6783_v18  ;;  %17682 = vmatprep.subr.bf16.mxu0 %v18507_v50  ;;  %v6793_v16 = vshrl.u32 %v18495_v45, 16  ;;  %v6797_v30 = vshll.u32 %v18496_v7, 16 }
 0x1f3   : > { %v20350_v19 = vadd.f32 %v17409_v8, %v4001_v62  ;;  %v20352_v60 = vpop.f32.mrf.mxu1 }
 0x1f4   : > { %22976 = vst [vmem:[#allocation24_spill] sm:$0xff] %v20352_v60  ;;  %v17348_v0 = vpop.f32.mrf.mxu0  ;;  %17603 = vmatmul.mubr.bf16.gmra.mxu0 %v6768_v47  ;;  %v6795_v7 = vor.u32 %v6793_v16, %v6791_v24 }
 0x1f5   : > { %v4004_v52 = vadd.f32 %v17348_v0, %v20111_v56  ;;  %v17412_v63 = vpop.f32.mrf.mxu1  ;;  %17606 = vmatprep.mubr.bf16.mxu0 %v6776_v14  ;;  %17683 = vmatpush3.bf16.msra.mxu0 %v18507_v50  ;;  %v6792_v0 = vsel %vm2618_vm1, %v6787_v17, %v6791_v24  ;;  %v18509_v50 = vld [vmem:[%s22914_s4 + $0x18] sm:$0xff]  }
 0x1f6   : > { %v3919_v1 = vpop.f32.mrf.mxu0 }
 0x1f7   : > { %v4002_v62 = vadd.f32 %v3919_v1, %v20115_v12  ;;  %v20360_v8 = vadd.f32 %v17412_v63, %v4004_v52  ;;  %v4745_v59 = vpop.f32.mrf.mxu1  ;;  %v18508_v12 = vld [vmem:[%s22914_s4 + $0x20] sm:$0xff]   ;;  %v6799_v1 = vrot.slane %v6797_v30, 1 }
 0x1f8   : > { %v17349_v6 = vpop.f32.mrf.mxu0  ;;  %17684 = vmatprep.subr.bf16.mxu0 %v18508_v12 }
 0x1f9   : > { %v4005_v56 = vadd.f32 %v17349_v6, %v20124_v39  ;;  %v20364_v47 = vadd.f32 %v4745_v59, %v4002_v62  ;;  %v17413_v14 = vpop.f32.mrf.mxu1  ;;  %v18505_v39 = vld [vmem:[%s22914_s4 + $0x100] sm:$0xff]   ;;  %17685 = vmatpush3.bf16.msra.mxu0 %v18508_v12  ;;  %v22978_v62 = vld [vmem:[#allocation8_spill] sm:$0xff]  ;;  %v6800_v16 = vsel %vm2618_vm1, %v6795_v7, %v6799_v1  ;;  %v18512_v7 = vld [vmem:[%s22914_s4 + $0x8] sm:$0xff]  }
 0x1fa   : > { %v20366_v25 = vpop.f32.mrf.mxu0  ;;  %17628 = vmatprep.subr.bf16.mxu1 %v18505_v39  ;;  %17686 = vmatprep.subr.bf16.mxu0 %v18509_v50  ;;  %v18511_v12 = vld [vmem:[%s22914_s4 + $0x10] sm:$0xff]   ;;  %v18515_v1 = vld [vmem:[#allocation2 + $0x8] sm:$0xf8]  }
 0x1fb   : > { %v20372_v52 = vadd.f32 %v17413_v14, %v4005_v56  ;;  %v20374_v35 = vpop.f32.mrf.mxu1  ;;  %17629 = vmatpush3.bf16.msra.mxu1 %v18505_v39 }
 0x1fc   : > { %22977 = vst [vmem:[#allocation25_spill] sm:$0xff] %v20374_v35  ;;  %v17352_v18 = vpop.f32.mrf.mxu0  ;;  %17607 = vmatmul.mubr.bf16.gmra.mxu0 %v6784_v61 }
 0x1fd   : > { %v4008_v45 = vadd.f32 %v17352_v18, %v20132_v37  ;;  %v17416_v63 = vpop.f32.mrf.mxu1  ;;  %17610 = vmatprep.mubr.bf16.mxu0 %v6792_v0  ;;  %v22979_v37 = vld [vmem:[#allocation10_spill] sm:$0xff]  ;;  %17687 = vmatpush3.bf16.msra.mxu0 %v18509_v50  ;;  %v18516_v50 = vld [vmem:[#allocation2 + $0x10] sm:$0xff]  }
 0x1fe   : > { %v3935_v17 = vpop.f32.mrf.mxu0  ;;  %17688 = vmatprep.subr.bf16.mxu0 %v18511_v12 }
 0x1ff   : > { %v4006_v59 = vadd.f32 %v3935_v17, %v22978_v62  ;;  %v20384_v6 = vadd.f32 %v17416_v63, %v4008_v45  ;;  %v4761_v61 = vpop.f32.mrf.mxu1 }
 0x200   : > { %v17353_v56 = vpop.f32.mrf.mxu0 }
 0x201   : > { %v4009_v14 = vadd.f32 %v17353_v56, %v22979_v37  ;;  %v20387_v0 = vadd.f32 %v4761_v61, %v4006_v59  ;;  %v17417_v24 = vpop.f32.mrf.mxu1  ;;  %17689 = vmatpush3.bf16.msra.mxu0 %v18511_v12 }
 0x202   : > { %v20390_v30 = vpop.f32.mrf.mxu0  ;;  %17690 = vmatprep.subr.bf16.mxu0 %v18512_v7 }
 0x203   : > { %v20395_v39 = vadd.f32 %v17417_v24, %v4009_v14  ;;  %v20397_v18 = vpop.f32.mrf.mxu1  ;;  %v8501_v14 = vshrl.u32 %v18515_v1, 16  ;;  %v8504_v24 = vshll.u32 %v18515_v1, 16 }
 0x204   : > { %22980 = vst [vmem:[#allocation8_spill] sm:$0xff] %v20397_v18  ;;  %v17356_v45 = vpop.f32.mrf.mxu0  ;;  %17611 = vmatmul.mubr.bf16.gmra.mxu0 %v6800_v16  ;;  %v8509_v16 = vshrl.u32 %v18516_v50, 16 }
 0x205   : > { %v4012_v63 = vadd.f32 %v17356_v45, %v20155_v40  ;;  %v17420_v17 = vpop.f32.mrf.mxu1  ;;  %v8512_v40 = vshll.u32 %v18516_v50, 16  ;;  %17691 = vmatpush3.bf16.msra.mxu0 %v18512_v7 }
 0x206   : > { %v3951_v62 = vpop.f32.mrf.mxu0  ;;  %v8511_v1 = vrot.slane %v8509_v16, 3 }
 0x207   : > { %v4010_v59 = vadd.f32 %v3951_v62, %v20158_v57  ;;  %v20404_v61 = vadd.f32 %v17420_v17, %v4012_v63  ;;  %v4777_v56 = vpop.f32.mrf.mxu1  ;;  %v20414_v57 = vld [vmem:[%s22914_s4 + $0x78] sm:$0xff]   ;;  %v18513_v63 = vld [vmem:[%s22914_s4] sm:$0xff]   ;;  %v8503_v17 = vrot.slane %v8501_v14, 3  ;;  %v8506_v62 = vrot.slane %v8504_v24, 4 }
 0x208   : > { %v17357_v37 = vpop.f32.mrf.mxu0  ;;  %22981 = vst [vmem:[#allocation10_spill] sm:$0xff] %v20414_v57  ;;  %v8514_v50 = vrot.slane %v8512_v40, 4  ;;  %17742 = vmatprep.subr.bf16.mxu1 %v20414_v57  ;;  %17692 = vmatprep.subr.bf16.mxu0 %v18513_v63 }
 0x209   : > { %v4013_v45 = vadd.f32 %v17357_v37, %v20165_v44  ;;  %v20407_v12 = vadd.f32 %v4777_v56, %v4010_v59  ;;  %v17421_v18 = vpop.f32.mrf.mxu1  ;;  %v8507_v37 = vor.u32 %v8506_v62, %v8503_v17  ;;  %17693 = vmatpush3.bf16.msra.mxu0 %v18513_v63 }
 0x20a   : > { %v20409_v35 = vpop.f32.mrf.mxu0  ;;  %v20424_v60 = vor.u32 %v8514_v50, %v8511_v1 }
 0x20b   : > { %v20419_v44 = vadd.f32 %v17421_v18, %v4013_v45  ;;  %v20421_v59 = vpop.f32.mrf.mxu1 }
 0x20c   : > { %v17440_v56 = vpop.f32.mrf.mxu0  ;;  %22982 = vst [vmem:[#allocation26_spill] sm:$0xff] %v20424_v60  ;;  %v8516_v18 = vsel %vm1137_vm0, %v8507_v37, %v20424_v60 }
 0x20d   : > { %v20427_v7 = vadd.f32 %v17440_v56, %v20176_v10  ;;  %v20429_v49 = vpop.f32.mrf.mxu1  ;;  %17694 = vmatprep.mubr.bf16.mxu0 %v8516_v18 }
 0x20e   : > { %v5455_v14 = vpop.f32.mrf.mxu0 }
 0x20f   : > { %v20434_v24 = vadd.f32 %v5455_v14, %v20179_v42  ;;  %v20436_v16 = vpop.f32.mrf.mxu1 }
 0x210   : > { %v17441_v40 = vpop.f32.mrf.mxu0 }
 0x211   : > { %v20439_v45 = vadd.f32 %v17441_v40, %v20186_v22  ;;  %v20441_v17 = vpop.f32.mrf.mxu1 }
 0x212   : > { %v20443_v10 = vpop.f32.mrf.mxu0 }
 0x213   : > { %v20445_v62 = vpop.f32.mrf.mxu1 }
 0x214   : > { %v17444_v63 = vpop.f32.mrf.mxu0 }
 0x215   : > { %v20448_v1 = vadd.f32 %v17444_v63, %v20194_v20  ;;  %v20450_v50 = vpop.f32.mrf.mxu1 }
 0x216   : > { %v5471_v42 = vpop.f32.mrf.mxu0 }
 0x217   : > { %v20453_v56 = vadd.f32 %v5471_v42, %v20197_v46  ;;  %v20455_v37 = vpop.f32.mrf.mxu1 }
 0x218   : > { %22983 = vst [vmem:[#allocation27_spill] sm:$0xff] %v20455_v37  ;;  %v17445_v22 = vpop.f32.mrf.mxu0 }
 0x219   : > { %v20458_v14 = vadd.f32 %v17445_v22, %v20207_v11  ;;  %v20460_v18 = vpop.f32.mrf.mxu1 }
 0x21a   : > { %22985 = vst [vmem:[#allocation29_spill] sm:$0xff] %v20460_v18  ;;  %v20462_v40 = vpop.f32.mrf.mxu0 }
 0x21b   : > { %22984 = vst [vmem:[#allocation28_spill] sm:$0xff] %v20458_v14  ;;  %v20464_v60 = vpop.f32.mrf.mxu1 }
 0x21c   : > { %22986 = vst [vmem:[#allocation30_spill] sm:$0xff] %v20464_v60  ;;  %v17448_v20 = vpop.f32.mrf.mxu0 }
 0x21d   : > { %v20467_v63 = vadd.f32 %v17448_v20, %v20215_v38  ;;  %v20469_v57 = vpop.f32.mrf.mxu1 }
 0x21e   : > { %22987 = vst [vmem:[#allocation31_spill] sm:$0xff] %v20469_v57  ;;  %v5487_v46 = vpop.f32.mrf.mxu0 }
 0x21f   : > { %v20472_v42 = vadd.f32 %v5487_v46, %v20218_v36  ;;  %v20474_v37 = vpop.f32.mrf.mxu1 }
 0x220   : > { %22988 = vst [vmem:[#allocation32_spill] sm:$0xff] %v20474_v37  ;;  %v17449_v11 = vpop.f32.mrf.mxu0 }
 0x221   : > { %v20477_v22 = vadd.f32 %v17449_v11, %v20225_v48  ;;  %v20479_v18 = vpop.f32.mrf.mxu1 }
 0x222   : > { %22990 = vst [vmem:[#allocation34_spill] sm:$0xff] %v20479_v18  ;;  %v20481_v14 = vpop.f32.mrf.mxu0 }
 0x223   : > { %22989 = vst [vmem:[#allocation33_spill] sm:$0xff] %v20477_v22  ;;  %v20483_v60 = vpop.f32.mrf.mxu1 }
 0x224   : > { %22991 = vst [vmem:[#allocation35_spill] sm:$0xff] %v20483_v60  ;;  %v17452_v38 = vpop.f32.mrf.mxu0 }
 0x225   : > { %v20486_v20 = vadd.f32 %v17452_v38, %v20236_v32  ;;  %v20488_v57 = vpop.f32.mrf.mxu1 }
 0x226   : > { %22992 = vst [vmem:[#allocation36_spill] sm:$0xff] %v20488_v57  ;;  %v5503_v36 = vpop.f32.mrf.mxu0 }
 0x227   : > { %v20491_v46 = vadd.f32 %v5503_v36, %v20239_v41  ;;  %v20493_v37 = vpop.f32.mrf.mxu1 }
 0x228   : > { %22993 = vst [vmem:[#allocation37_spill] sm:$0xff] %v20493_v37  ;;  %v17453_v48 = vpop.f32.mrf.mxu0 }
 0x229   : > { %v20496_v11 = vadd.f32 %v17453_v48, %v20246_v3  ;;  %v20498_v18 = vpop.f32.mrf.mxu1 }
 0x22a   : > { %22995 = vst [vmem:[#allocation39_spill] sm:$0xff] %v20498_v18  ;;  %v20500_v22 = vpop.f32.mrf.mxu0 }
 0x22b   : > { %22994 = vst [vmem:[#allocation38_spill] sm:$0xff] %v20496_v11  ;;  %v20502_v60 = vpop.f32.mrf.mxu1 }
 0x22c   : > { %22996 = vst [vmem:[#allocation40_spill] sm:$0xff] %v20502_v60  ;;  %v17456_v32 = vpop.f32.mrf.mxu0 }
 0x22d   : > { %v20505_v38 = vadd.f32 %v17456_v32, %v20254_v4  ;;  %v20507_v57 = vpop.f32.mrf.mxu1 }
 0x22e   : > { %22997 = vst [vmem:[#allocation41_spill] sm:$0xff] %v20507_v57  ;;  %v5519_v41 = vpop.f32.mrf.mxu0 }
 0x22f   : > { %v20510_v36 = vadd.f32 %v5519_v41, %v20257_v31  ;;  %v20512_v37 = vpop.f32.mrf.mxu1 }
 0x230   : > { %22998 = vst [vmem:[#allocation42_spill] sm:$0xff] %v20512_v37  ;;  %v17457_v3 = vpop.f32.mrf.mxu0 }
 0x231   : > { %v20515_v48 = vadd.f32 %v17457_v3, %v20267_v55  ;;  %v20517_v18 = vpop.f32.mrf.mxu1 }
 0x232   : > { %23000 = vst [vmem:[#allocation44_spill] sm:$0xff] %v20517_v18  ;;  %v20519_v11 = vpop.f32.mrf.mxu0 }
 0x233   : > { %22999 = vst [vmem:[#allocation43_spill] sm:$0xff] %v20515_v48  ;;  %v20521_v60 = vpop.f32.mrf.mxu1 }
 0x234   : > { %23001 = vst [vmem:[#allocation45_spill] sm:$0xff] %v20521_v60  ;;  %v17460_v4 = vpop.f32.mrf.mxu0 }
 0x235   : > { %v20524_v32 = vadd.f32 %v17460_v4, %v20275_v23  ;;  %v20526_v57 = vpop.f32.mrf.mxu1 }
 0x236   : > { %23002 = vst [vmem:[#allocation46_spill] sm:$0xff] %v20526_v57  ;;  %v5535_v31 = vpop.f32.mrf.mxu0 }
 0x237   : > { %v20529_v41 = vadd.f32 %v5535_v31, %v20278_v33  ;;  %v20531_v37 = vpop.f32.mrf.mxu1 }
 0x238   : > { %23003 = vst [vmem:[#allocation47_spill] sm:$0xff] %v20531_v37  ;;  %v17461_v55 = vpop.f32.mrf.mxu0 }
 0x239   : > { %v20534_v3 = vadd.f32 %v17461_v55, %v20285_v34  ;;  %v20536_v18 = vpop.f32.mrf.mxu1 }
 0x23a   : > { %23005 = vst [vmem:[#allocation49_spill] sm:$0xff] %v20536_v18  ;;  %v20538_v48 = vpop.f32.mrf.mxu0 }
 0x23b   : > { %23004 = vst [vmem:[#allocation48_spill] sm:$0xff] %v20534_v3  ;;  %v20540_v60 = vpop.f32.mrf.mxu1 }
 0x23c   : > { %23006 = vst [vmem:[#allocation50_spill] sm:$0xff] %v20540_v60  ;;  %v17464_v23 = vpop.f32.mrf.mxu0 }
 0x23d   : > { %v20543_v4 = vadd.f32 %v17464_v23, %v20296_v51  ;;  %v20545_v57 = vpop.f32.mrf.mxu1 }
 0x23e   : > { %23007 = vst [vmem:[#allocation51_spill] sm:$0xff] %v20545_v57  ;;  %v5551_v33 = vpop.f32.mrf.mxu0 }
 0x23f   : > { %v20548_v31 = vadd.f32 %v5551_v33, %v20299_v2  ;;  %v20550_v37 = vpop.f32.mrf.mxu1  ;;  %v20566_v2 = vpop.permute.xlu0 %7400 }
 0x240   : > { %23008 = vst [vmem:[#allocation52_spill] sm:$0xff] %v20550_v37  ;;  %v17465_v34 = vpop.f32.mrf.mxu0  ;;  %23014 = vst [vmem:[#allocation58_spill] sm:$0xff] %v20566_v2  ;;  %v20568_v37 = vpop.permute.xlu1 %7410 }
 0x241   : > { %v20553_v55 = vadd.f32 %v17465_v34, %v20306_v21  ;;  %v20555_v18 = vpop.f32.mrf.mxu1  ;;  %23015 = vst [vmem:[#allocation59_spill] sm:$0xff] %v20568_v37 }
 0x242   : > { %23010 = vst [vmem:[#allocation54_spill] sm:$0xff] %v20555_v18  ;;  %v20557_v3 = vpop.f32.mrf.mxu0 }
 0x243   : > { %23009 = vst [vmem:[#allocation53_spill] sm:$0xff] %v20553_v55  ;;  %v20559_v60 = vpop.f32.mrf.mxu1 }
 0x244   : > { %23011 = vst [vmem:[#allocation55_spill] sm:$0xff] %v20559_v60  ;;  %v17468_v51 = vpop.f32.mrf.mxu0 }
 0x245   : > { %v20562_v23 = vadd.f32 %v17468_v51, %v20314_v58  ;;  %v20564_v57 = vpop.f32.mrf.mxu1 }
 0x246   : > { %23013 = vst [vmem:[#allocation57_spill] sm:$0xff] %v20564_v57  ;;  %v5567_v33 = vpop.f32.mrf.mxu0  ;;  %v20584_v57 = vpop.permute.xlu0 %7405 }
 0x247   : > { %23012 = vst [vmem:[#allocation56_spill] sm:$0xff] %v20562_v23  ;;  %v20571_v21 = vadd.f32 %v5567_v33, %v20317_v27  ;;  %v20573_v34 = vpop.f32.mrf.mxu1  ;;  %23019 = vst [vmem:[#allocation63_spill] sm:$0xff] %v20584_v57  ;;  %v20586_v23 = vpop.permute.xlu1 %7415 }
 0x248   : > { %v17469_v18 = vpop.f32.mrf.mxu0  ;;  %23020 = vst [vmem:[#allocation64_spill] sm:$0xff] %v20586_v23 }
 0x249   : > { %v20576_v55 = vadd.f32 %v17469_v18, %v20327_v15  ;;  %v20578_v60 = vpop.f32.mrf.mxu1 }
 0x24a   : > { %23017 = vst [vmem:[#allocation61_spill] sm:$0xff] %v20578_v60  ;;  %v20580_v58 = vpop.f32.mrf.mxu0  ;;  %v20605_v23 = vpop.permute.xlu0 %7420 }
 0x24b   : > { %23016 = vst [vmem:[#allocation60_spill] sm:$0xff] %v20576_v55  ;;  %v20582_v51 = vpop.f32.mrf.mxu1  ;;  %23025 = vst [vmem:[#allocation69_spill] sm:$0xff] %v20605_v23 }
 0x24c   : > { %23018 = vst [vmem:[#allocation62_spill] sm:$0xff] %v20582_v51  ;;  %v17472_v2 = vpop.f32.mrf.mxu0 }
 0x24d   : > { %v20589_v27 = vadd.f32 %v17472_v2, %v20338_v5  ;;  %v20591_v33 = vpop.f32.mrf.mxu1  ;;  %v20607_v5 = vpop.permute.xlu1 %7425 }
 0x24e   : > { %23021 = vst [vmem:[#allocation65_spill] sm:$0xff] %v20591_v33  ;;  %v5583_v37 = vpop.f32.mrf.mxu0  ;;  %23026 = vst [vmem:[#allocation70_spill] sm:$0xff] %v20607_v5  ;;  %v20629_v5 = vld [vmem:[%s22914_s4 + $0xb8] sm:$0xff]  }
 0x24f   : > { %v20594_v15 = vadd.f32 %v5583_v37, %v20341_v13  ;;  %v20596_v18 = vpop.f32.mrf.mxu1  ;;  %23034 = vst [vmem:[#allocation78_spill] sm:$0xff] %v20629_v5  ;;  %17806 = vmatprep.subr.bf16.mxu0 %v20629_v5  ;;  %v23043_v5 = vld [vmem:[#allocation4_spill] sm:$0xff] }
 0x250   : > { %23022 = vst [vmem:[#allocation66_spill] sm:$0xff] %v20596_v18  ;;  %v17473_v60 = vpop.f32.mrf.mxu0 }
 0x251   : > { %v20599_v55 = vadd.f32 %v17473_v60, %v20350_v19  ;;  %v20601_v51 = vpop.f32.mrf.mxu1 }
 0x252   : > { %23024 = vst [vmem:[#allocation68_spill] sm:$0xff] %v20601_v51  ;;  %v20603_v57 = vpop.f32.mrf.mxu0  ;;  %v20619_v51 = vpop.permute.xlu0 %7430 }
 0x253   : > { %23023 = vst [vmem:[#allocation67_spill] sm:$0xff] %v20599_v55  ;;  %v20609_v33 = vpop.f32.mrf.mxu1  ;;  %23031 = vst [vmem:[#allocation75_spill] sm:$0xff] %v20619_v51  ;;  %v20621_v55 = vpop.permute.xlu1 %7435 }
 0x254   : > { %v17476_v2 = vpop.f32.mrf.mxu0  ;;  %23027 = vst [vmem:[#allocation71_spill] sm:$0xff] %v20609_v33  ;;  %23032 = vst [vmem:[#allocation76_spill] sm:$0xff] %v20621_v55  ;;  %v23048_v33 = vld [vmem:[#allocation11_spill] sm:$0xff] }
 0x255   : > { %v20612_v13 = vadd.f32 %v17476_v2, %v20360_v8  ;;  %v20617_v19 = vpop.f32.mrf.mxu1 }
 0x256   : > { %v5599_v37 = vpop.f32.mrf.mxu0  ;;  %23030 = vst [vmem:[#allocation74_spill] sm:$0xff] %v20617_v19  ;;  %v20639_v55 = vpop.permute.xlu0 %7440 }
 0x257   : > { %23028 = vst [vmem:[#allocation72_spill] sm:$0xff] %v20612_v13  ;;  %v20615_v18 = vadd.f32 %v5599_v37, %v20364_v47  ;;  %v20634_v47 = vpop.f32.mrf.mxu1  ;;  %23038 = vst [vmem:[#allocation82_spill] sm:$0xff] %v20639_v55  ;;  %v23045_v13 = vld [vmem:[#allocation6_spill] sm:$0xff]  ;;  %v23047_v55 = vld [vmem:[#allocation9_spill] sm:$0xff] }
 0x258   : > { %v17477_v60 = vpop.f32.mrf.mxu0  ;;  %23036 = vst [vmem:[#allocation80_spill] sm:$0xff] %v20634_v47  ;;  %v23044_v47 = vld [vmem:[#allocation5_spill] sm:$0xff] }
 0x259   : > { %23029 = vst [vmem:[#allocation73_spill] sm:$0xff] %v20615_v18  ;;  %v20624_v23 = vadd.f32 %v17477_v60, %v20372_v52  ;;  %v20641_v52 = vpop.permute.xlu1 %7445  ;;  %v3145_v19 = vadd.f32 %v23044_v47, %v23043_v5  ;;  %v23051_v5 = vld [vmem:[#allocation13_spill] sm:$0xff] }
 0x25a   : > { %v20631_v8 = vpop.f32.mrf.mxu0  ;;  %23039 = vst [vmem:[#allocation83_spill] sm:$0xff] %v20641_v52  ;;  %v3153_v52 = vadd.f32 %v23048_v33, %v23047_v55  ;;  %v4793_v47 = vadd.f32 %v23051_v5, %v20184_v43  ;;  %v23055_v33 = vld [vmem:[#allocation15_spill] sm:$0xff] }
 0x25b   : > { %23033 = vst [vmem:[#allocation77_spill] sm:$0xff] %v20624_v23  ;;  %23035 = vst [vmem:[#allocation79_spill] sm:$0xff] %v20631_v8  ;;  %v20646_v23 = vpop.f32.mrf.mxu1  ;;  %v23059_v5 = vld [vmem:[#allocation19_spill] sm:$0xff] }
 0x25c   : > { %v17480_v2 = vpop.f32.mrf.mxu0  ;;  %23041 = vst [vmem:[#allocation85_spill] sm:$0xff] %v20646_v23 }
 0x25d   : > { %v20637_v37 = vadd.f32 %v17480_v2, %v20384_v6  ;;  %v23046_v6 = vld [vmem:[#allocation7_spill] sm:$0xff]  ;;  %v20671_v55 = vpop.permute.xlu1 %7455 }
 0x25e   : > { %v5615_v51 = vpop.f32.mrf.mxu0  ;;  %v3149_v2 = vadd.f32 %v23046_v6, %v23045_v13  ;;  %v4007_v13 = vadd.f32 %v20390_v30, %v3153_v52  ;;  %23053 = vst [vmem:[#allocation6_spill] sm:$0xff] %v20671_v55  ;;  %v23060_v30 = vld [vmem:[#allocation21_spill] sm:$0xff]  ;;  %v23061_v55 = vld [vmem:[#allocation20_spill] sm:$0xff] }
 0x25f   : > { %23037 = vst [vmem:[#allocation81_spill] sm:$0xff] %v20637_v37  ;;  %v20644_v60 = vadd.f32 %v5615_v51, %v20387_v0  ;;  %v23049_v0 = vld [vmem:[#allocation12_spill] sm:$0xff]  ;;  %v4809_v52 = vadd.f32 %v23060_v30, %v23059_v5 }
 0x260   : > { %v17481_v18 = vpop.f32.mrf.mxu0  ;;  %v3157_v51 = vadd.f32 %v23049_v0, %v20163_v9  ;;  %v4003_v23 = vadd.f32 %v20366_v25, %v3149_v2  ;;  %v23057_v0 = vld [vmem:[#allocation17_spill] sm:$0xff] }
 0x261   : > { %23040 = vst [vmem:[#allocation84_spill] sm:$0xff] %v20644_v60  ;;  %v20649_v8 = vadd.f32 %v17481_v18, %v20395_v39  ;;  %v3999_v60 = vadd.f32 %v20344_v54, %v3145_v19  ;;  %v20663_v39 = vpop.f32.mrf.mxu1  ;;  %v23054_v54 = vld [vmem:[#allocation14_spill] sm:$0xff]  ;;  %v23056_v19 = vld [vmem:[#allocation16_spill] sm:$0xff] }
 0x262   : > { %v20655_v37 = vpop.f32.mrf.mxu0  ;;  %23050 = vst [vmem:[#allocation4_spill] sm:$0xff] %v20663_v39  ;;  %v4011_v6 = vadd.f32 %v20409_v35, %v3157_v51  ;;  %v4797_v25 = vadd.f32 %v23055_v33, %v23054_v54  ;;  %v4801_v2 = vadd.f32 %v23056_v19, %v20223_v53  ;;  %v23058_v39 = vld [vmem:[#allocation18_spill] sm:$0xff]  ;;  %v4813_v51 = vadd.f32 %v20287_v28, %v20283_v26  ;;  %v23063_v53 = vld [vmem:[#allocation23_spill] sm:$0xff] }
 0x263   : > { %23042 = vst [vmem:[#allocation86_spill] sm:$0xff] %v20649_v8  ;;  %v20669_v8 = vpop.permute.xlu0 %7450  ;;  %v4805_v43 = vadd.f32 %v23058_v39, %v23057_v0  ;;  %v23062_v33 = vld [vmem:[#allocation22_spill] sm:$0xff]  ;;  %v23065_v0 = vld [vmem:[#allocation25_spill] sm:$0xff]  ;;  %v20701_v26 = vpop.f32.mrf.mxu1 }
 0x264   : > { %v17484_v18 = vpop.f32.mrf.mxu0  ;;  %23052 = vst [vmem:[#allocation5_spill] sm:$0xff] %v20669_v8  ;;  %v4821_v19 = vadd.f32 %v23063_v53, %v23062_v33  ;;  %v23064_v8 = vld [vmem:[#allocation24_spill] sm:$0xff]  ;;  %v20698_v5 = vadd.f32 %v23065_v0, %v4003_v23  ;;  %v5651_v30 = vadd.f32 %v20462_v40, %v4797_v25  ;;  %v6274_v23 = vadd.f32 %v20429_v49, %v20427_v7  ;;  %v23069_v7 = vld [vmem:[#allocation29_spill] sm:$0xff]  ;;  %v23074_v33 = vld [vmem:[#allocation34_spill] sm:$0xff] }
 0x265   : > { %v20674_v9 = vadd.f32 %v17484_v18, %v20404_v61  ;;  %v4817_v61 = vadd.f32 %v23061_v55, %v20304_v29  ;;  %v5647_v18 = vadd.f32 %v20443_v10, %v4793_v47  ;;  %v20695_v39 = vadd.f32 %v23064_v8, %v3999_v60  ;;  %v23066_v29 = vld [vmem:[#allocation8_spill] sm:$0xff] }
 0x266   : > { %v5631_v35 = vpop.f32.mrf.mxu0  ;;  %v20704_v55 = vadd.f32 %v23066_v29, %v4007_v13  ;;  %v5655_v10 = vadd.f32 %v20481_v14, %v4801_v2  ;;  %v6272_v40 = vadd.f32 %v20436_v16, %v20434_v24  ;;  %v6275_v8 = vadd.f32 %v20441_v17, %v20439_v45  ;;  %v23068_v49 = vld [vmem:[#allocation28_spill] sm:$0xff]  ;;  %v20735_v16 = vpop.permute.xlu1 %7465  ;;  %v23070_v45 = vld [vmem:[#allocation30_spill] sm:$0xff] }
 0x267   : > { %v20690_v54 = vadd.f32 %v5631_v35, %v20407_v12  ;;  %v20707_v12 = vadd.f32 %v20421_v59, %v4011_v6  ;;  %v5659_v60 = vadd.f32 %v20500_v22, %v4805_v43  ;;  %v6273_v59 = vadd.f32 %v20445_v62, %v5647_v18  ;;  %v20733_v24 = vpop.permute.xlu0 %7460  ;;  %v23071_v62 = vld [vmem:[#allocation31_spill] sm:$0xff]  ;;  %v20749_v2 = vpop.f32.mrf.mxu1  ;;  %v20754_v43 = vld [vmem:[%s22912_s2] ss:$0 sm:$0xff]  ;;  %v23073_v18 = vld [vmem:[#allocation33_spill] sm:$0xff] }
 0x268   : > { %v17485_v28 = vpop.f32.mrf.mxu0  ;;  %v6278_v14 = vadd.f32 %v20450_v50, %v20448_v1  ;;  %v20731_v25 = vadd.f32 %v23069_v7, %v23068_v49  ;;  %v20738_v17 = vadd.f32 %v23070_v45, %v5651_v30  ;;  %v20742_v22 = vadd.f32 %v23071_v62, %v20467_v63  ;;  %v23072_v1 = vld [vmem:[#allocation32_spill] sm:$0xff]  ;;  %v23075_v63 = vld [vmem:[#allocation35_spill] sm:$0xff]  ;;  %v23078_v29 = vld [vmem:[#allocation38_spill] sm:$0xff] }
 0x269   : > { %v20711_v47 = vadd.f32 %v17485_v28, %v20419_v44  ;;  %v23067_v44 = vld [vmem:[#allocation27_spill] sm:$0xff]  ;;  %v20746_v50 = vadd.f32 %v23072_v1, %v20472_v42  ;;  %v20758_v53 = vadd.f32 %v23074_v33, %v23073_v18  ;;  %v20761_v0 = vadd.f32 %v23075_v63, %v5655_v10  ;;  %v23076_v42 = vld [vmem:[#allocation36_spill] sm:$0xff]  ;;  %v20782_v10 = vld [vmem:[%s22913_s3] ss:$0 sm:$0xff] }
 0x26a   : > { %v20720_v13 = vpop.f32.mrf.mxu0  ;;  %v20727_v6 = vadd.f32 %v23067_v44, %v20453_v56  ;;  %v5663_v56 = vadd.f32 %v20519_v11, %v4809_v52  ;;  %v20765_v30 = vadd.f32 %v23076_v42, %v20486_v20  ;;  %v23077_v52 = vld [vmem:[#allocation37_spill] sm:$0xff]  ;;  %v23079_v44 = vld [vmem:[#allocation39_spill] sm:$0xff]  ;;  %v23080_v7 = vld [vmem:[#allocation40_spill] sm:$0xff]  ;;  %v5667_v62 = vadd.f32 %v20538_v48, %v4813_v51 }
 0x26b   : > { %v20769_v28 = vadd.f32 %v23077_v52, %v20491_v46  ;;  %v20773_v49 = vadd.f32 %v23079_v44, %v23078_v29  ;;  %v20776_v45 = vadd.f32 %v23080_v7, %v5659_v60  ;;  %v23082_v46 = vld [vmem:[#allocation42_spill] sm:$0xff]  ;;  %v23083_v33 = vld [vmem:[#allocation43_spill] sm:$0xff]  ;;  %v23084_v63 = vld [vmem:[#allocation44_spill] sm:$0xff]  ;;  %v20805_v44 = vpop.f32.mrf.mxu1  ;;  %v20807_v7 = vpop.permute.xlu0 %7470 }
 0x26c   : > { %v17568_v35 = vpop.f32.mrf.mxu0  ;;  %v20795_v48 = vadd.f32 %v23084_v63, %v23083_v33  ;;  %v23085_v51 = vld [vmem:[#allocation45_spill] sm:$0xff]  ;;  %v23086_v52 = vld [vmem:[#allocation46_spill] sm:$0xff] }
 0x26d   : > { %v7100_v11 = vadd.f32 %v17568_v35, %v6274_v23  ;;  %v23081_v23 = vld [vmem:[#allocation41_spill] sm:$0xff]  ;;  %v20790_v35 = vadd.f32 %v23082_v46, %v20510_v36  ;;  %v20798_v42 = vadd.f32 %v23085_v51, %v5663_v56  ;;  %v20802_v29 = vadd.f32 %v23086_v52, %v20524_v32  ;;  %v23089_v32 = vld [vmem:[#allocation48_spill] sm:$0xff]  ;;  %v23093_v51 = vld [vmem:[#allocation51_spill] sm:$0xff] }
 0x26e   : > { %v6907_v20 = vpop.f32.mrf.mxu0  ;;  %v20786_v1 = vadd.f32 %v23081_v23, %v20505_v38  ;;  %v5671_v38 = vadd.f32 %v20557_v3, %v4817_v61  ;;  %v23090_v33 = vld [vmem:[#allocation49_spill] sm:$0xff]  ;;  %v23091_v3 = vld [vmem:[#allocation50_spill] sm:$0xff]  ;;  %v20826_v52 = vadd.f32 %v23093_v51, %v20543_v4 }
 0x26f   : > { %v7250_v18 = vmul.f32 %v20754_v43, %v7100_v11  ;;  %v7098_v60 = vadd.f32 %v6907_v20, %v6272_v40  ;;  %23087 = vst [vmem:[#allocation7_spill] sm:$0xff] %v20802_v29  ;;  %v20809_v11 = vpop.permute.xlu1 %7475  ;;  %v23088_v40 = vld [vmem:[#allocation47_spill] sm:$0xff]  ;;  %v20819_v63 = vadd.f32 %v23090_v33, %v23089_v32  ;;  %v20822_v61 = vadd.f32 %v23091_v3, %v5667_v62  ;;  %v23100_v4 = vld [vmem:[#allocation57_spill] sm:$0xff] }
 0x270   : > { %v17569_v36 = vpop.f32.mrf.mxu0  ;;  %v20813_v20 = vadd.f32 %v23088_v40, %v20529_v41  ;;  %v5675_v29 = vadd.f32 %v20580_v58, %v4821_v19  ;;  %v23094_v40 = vld [vmem:[#allocation52_spill] sm:$0xff]  ;;  %v23097_v62 = vld [vmem:[#allocation55_spill] sm:$0xff]  ;;  %v20845_v58 = vpop.f32.mrf.mxu1 }
 0x271   : > { %v7304_v56 = vadd.f32 %v20782_v10, %v7250_v18  ;;  %v7248_v23 = vmul.f32 %v20754_v43, %v7098_v60  ;;  %v7101_v46 = vadd.f32 %v17569_v36, %v6275_v8  ;;  %23092 = vst [vmem:[#allocation9_spill] sm:$0xff] %v20822_v61  ;;  %v20831_v18 = vadd.f32 %v23094_v40, %v20548_v31  ;;  %v23095_v60 = vld [vmem:[#allocation53_spill] sm:$0xff]  ;;  %v23096_v8 = vld [vmem:[#allocation54_spill] sm:$0xff]  ;;  %v23099_v61 = vld [vmem:[#allocation56_spill] sm:$0xff] }
 0x272   : > { %v6910_v41 = vpop.f32.mrf.mxu0  ;;  %v20835_v36 = vadd.f32 %v23096_v8, %v23095_v60  ;;  %v20839_v3 = vadd.f32 %v23097_v62, %v5671_v38  ;;  %v20843_v51 = vadd.f32 %v23100_v4, %v23099_v61  ;;  %v20850_v60 = vadd.f32 %v20573_v34, %v20571_v21  ;;  %v23103_v8 = vld [vmem:[#allocation60_spill] sm:$0xff]  ;;  %v23106_v61 = vld [vmem:[#allocation62_spill] sm:$0xff] }
 0x273   : > { %v7251_v32 = vmul.f32 %v20754_v43, %v7101_v46  ;;  %v7099_v33 = vadd.f32 %v6910_v41, %v6273_v59  ;;  %v7352_v19 = vmax.f32 %v7304_v56, 0.0  ;;  %v7302_v31 = vadd.f32 %v20782_v10, %v7248_v23  ;;  %v23104_v46 = vld [vmem:[#allocation61_spill] sm:$0xff] }
 0x274   : > { %23098 = vst [vmem:[#allocation11_spill] sm:$0xff] %v20839_v3  ;;  %23101 = vst [vmem:[#allocation12_spill] sm:$0xff] %v20843_v51  ;;  %v17572_v40 = vpop.f32.mrf.mxu0  ;;  %v20854_v59 = vadd.f32 %v23104_v46, %v23103_v8  ;;  %v20859_v62 = vadd.f32 %v23106_v61, %v5675_v29  ;;  %v23108_v56 = vld [vmem:[#allocation65_spill] sm:$0xff]  ;;  %v5679_v23 = vadd.f32 %v20603_v57, %v20695_v39  ;;  %v20869_v8 = vpop.permute.xlu1 %7485  ;;  %v23114_v39 = vld [vmem:[#allocation59_spill] sm:$0xff] }
 0x275   : > { %23102 = vst [vmem:[#allocation13_spill] sm:$0xff] %v20850_v60  ;;  %v7305_v38 = vadd.f32 %v20782_v10, %v7251_v32  ;;  %v7249_v41 = vmul.f32 %v20754_v43, %v7099_v33  ;;  %v20863_v4 = vadd.f32 %v23108_v56, %v20589_v27  ;;  %v7104_v21 = vadd.f32 %v17572_v40, %v6278_v14  ;;  %v20867_v60 = vpop.permute.xlu0 %7480  ;;  %v23110_v32 = vld [vmem:[#allocation66_spill] sm:$0xff]  ;;  %v23111_v27 = vld [vmem:[#allocation67_spill] sm:$0xff]  ;;  %v23112_v56 = vld [vmem:[#allocation68_spill] sm:$0xff]  ;;  %v17548_v57 = vpop.f32.mrf.mxu1 }
 0x276   : > { %23105 = vst [vmem:[#allocation14_spill] sm:$0xff] %v20854_v59  ;;  %23107 = vst [vmem:[#allocation15_spill] sm:$0xff] %v20859_v62  ;;  %v6923_v34 = vpop.f32.mrf.mxu0  ;;  %v20873_v46 = vadd.f32 %v23110_v32, %v20594_v15  ;;  %v7640_v14 = vmul.f32 %v23114_v39, %v7352_v19  ;;  %v7350_v40 = vmax.f32 %v7302_v31, 0.0  ;;  %v23115_v51 = vld [vmem:[#allocation64_spill] sm:$0xff]  ;;  %v23116_v32 = vld [vmem:[#allocation71_spill] sm:$0xff] }
 0x277   : > { %23109 = vst [vmem:[#allocation16_spill] sm:$0xff] %v20863_v4  ;;  %v7353_v33 = vmax.f32 %v7305_v38, 0.0  ;;  %v7303_v29 = vadd.f32 %v20782_v10, %v7249_v41  ;;  %v7102_v61 = vadd.f32 %v6923_v34, %v20727_v6  ;;  %v20879_v4 = vadd.f32 %v23112_v56, %v23111_v27  ;;  %v23117_v34 = vld [vmem:[#allocation72_spill] sm:$0xff]  ;;  %v23118_v27 = vld [vmem:[#allocation74_spill] sm:$0xff]  ;;  %v23120_v19 = vld [vmem:[#allocation79_spill] sm:$0xff] }
 0x278   : > { %v7254_v62 = vmul.f32 %v20754_v43, %v7104_v21  ;;  %v17573_v59 = vpop.f32.mrf.mxu0  ;;  %v20887_v6 = vadd.f32 %v23116_v32, %v5679_v23  ;;  %v20891_v56 = vadd.f32 %v23118_v27, %v23117_v34  ;;  %v5683_v31 = vadd.f32 %v23120_v19, %v20698_v5  ;;  %v23124_v5 = vld [vmem:[#allocation58_spill] sm:$0xff] }
 0x279   : > { %23113 = vst [vmem:[#allocation17_spill] sm:$0xff] %v20879_v4  ;;  %v7641_v3 = vmul.f32 %v23115_v51, %v7353_v33  ;;  %v7351_v15 = vmax.f32 %v7303_v29, 0.0  ;;  %v7252_v38 = vmul.f32 %v20754_v43, %v7102_v61  ;;  %v7105_v41 = vadd.f32 %v17573_v59, %v20731_v25  ;;  %v23121_v4 = vld [vmem:[#allocation73_spill] sm:$0xff]  ;;  %v23122_v51 = vld [vmem:[#allocation80_spill] sm:$0xff]  ;;  %v6257_v61 = vpop.f32.mrf.mxu1 }
 0x27a   : > { %23119 = vst [vmem:[#allocation18_spill] sm:$0xff] %v20891_v56  ;;  %v7308_v21 = vadd.f32 %v20782_v10, %v7254_v62  ;;  %v6926_v39 = vpop.f32.mrf.mxu0  ;;  %v20898_v33 = vadd.f32 %v23122_v51, %v23121_v4  ;;  %v5687_v23 = vadd.f32 %v20655_v37, %v20704_v55  ;;  %v7638_v27 = vmul.f32 %v23124_v5, %v7350_v40  ;;  %v23125_v62 = vld [vmem:[#allocation63_spill] sm:$0xff]  ;;  %v20907_v56 = vpop.permute.xlu0 %7490  ;;  %v23129_v40 = vld [vmem:[#allocation81_spill] sm:$0xff] }
 0x27b   : > { %v7687_v29 = vpack.c.bf16 %v7641_v3, %v7640_v14  ;;  %v7255_v25 = vmul.f32 %v20754_v43, %v7105_v41  ;;  %v7103_v59 = vadd.f32 %v6926_v39, %v20738_v17  ;;  %v7306_v32 = vadd.f32 %v20782_v10, %v7252_v38  ;;  %v20909_v4 = vpop.permute.xlu1 %7495  ;;  %v23126_v3 = vld [vmem:[#allocation77_spill] sm:$0xff]  ;;  %v23128_v38 = vld [vmem:[#allocation4_spill] sm:$0xff] }
 0x27c   : > { %23123 = vst [vmem:[#allocation19_spill] sm:$0xff] %v20898_v33  ;;  %v17576_v34 = vpop.f32.mrf.mxu0  ;;  %v7639_v19 = vmul.f32 %v23125_v62, %v7351_v15  ;;  %v23127_v14 = vld [vmem:[#allocation85_spill] sm:$0xff]  ;;  %v20919_v39 = vadd.f32 %v23128_v38, %v5683_v31  ;;  %v20923_v15 = vadd.f32 %v20701_v26, %v23129_v40  ;;  %v7356_v51 = vmax.f32 %v7308_v21, 0.0  ;;  %v23130_v31 = vld [vmem:[#allocation84_spill] sm:$0xff]  ;;  %v23131_v26 = vld [vmem:[#allocation86_spill] sm:$0xff] }
 0x27d   : > { %v20913_v41 = vadd.f32 %v23127_v14, %v23126_v3  ;;  %16416 = vst [vmem:[#allocation2 + $0x20] sm:$0xff] %v7687_v29   ;;  %v7309_v17 = vadd.f32 %v20782_v10, %v7255_v25  ;;  %v7253_v37 = vmul.f32 %v20754_v43, %v7103_v59  ;;  %v7108_v55 = vadd.f32 %v17576_v34, %v20742_v22  ;;  %v18514_v22 = vld [vmem:[%s22914_s4 + $0x70] sm:$0xff]  }
 0x27e   : > { %v6939_v5 = vpop.f32.mrf.mxu0  ;;  %v7686_v62 = vpack.c.bf16 %v7639_v19, %v7638_v27  ;;  %v20933_v59 = vadd.f32 %v20749_v2, %v23130_v31  ;;  %v20937_v21 = vadd.f32 %v20805_v44, %v23131_v26  ;;  %v20940_v34 = vadd.f32 %v20845_v58, %v5687_v23  ;;  %v17549_v27 = vpop.f32.mrf.mxu1  ;;  %v23133_v58 = vld [vmem:[#allocation75_spill] sm:$0xff]  ;;  %v23136_v26 = vld [vmem:[#allocation69_spill] sm:$0xff] }
 0x27f   : > { %v7357_v33 = vmax.f32 %v7309_v17, 0.0  ;;  %v7307_v3 = vadd.f32 %v20782_v10, %v7253_v37  ;;  %v7258_v14 = vmul.f32 %v20754_v43, %v7108_v55  ;;  %v7106_v25 = vadd.f32 %v6939_v5, %v20746_v50  ;;  %v23132_v17 = vld [vmem:[#allocation76_spill] sm:$0xff]  ;;  %v23134_v5 = vld [vmem:[#allocation10_spill] sm:$0xff] }
 0x280   : > { %v7354_v19 = vmax.f32 %v7306_v32, 0.0  ;;  %16415 = vst [vmem:[#allocation2 + $0x18] sm:$0xff] %v7686_v62   ;;  %17630 = vmatprep.mubr.bf16.mxu1 %v7686_v62  ;;  %v17577_v50 = vpop.f32.mrf.mxu0  ;;  %v20946_v40 = vadd.f32 %v17548_v57, %v20674_v9  ;;  %v20949_v44 = vadd.f32 %v6257_v61, %v20690_v54  ;;  %v7644_v23 = vmul.f32 %v23133_v58, %v7356_v51  ;;  %v23135_v54 = vld [vmem:[#allocation70_spill] sm:$0xff]  ;;  %v6260_v51 = vpop.f32.mrf.mxu1 }
 0x281   : > { %v7645_v37 = vmul.f32 %v23132_v17, %v7357_v33  ;;  %v7355_v55 = vmax.f32 %v7307_v3, 0.0  ;;  %v7312_v38 = vadd.f32 %v20782_v10, %v7258_v14  ;;  %v7256_v2 = vmul.f32 %v20754_v43, %v7106_v25  ;;  %17631 = vmatmul.mubr.bf16.vlgmr.msra.gmra.mxu1 %v7687_v29  ;;  %v20954_v33 = vpop.permute.xlu0 %7500  ;;  %v20956_v3 = vpop.permute.xlu1 %7505  ;;  %v18524_v58 = vld [vmem:[%s22914_s4 + $0x60] sm:$0xff]  }
 0x282   : > { %v7109_v32 = vadd.f32 %v17577_v50, %v20758_v53  ;;  %17743 = vmatpush3.bf16.msra.mxu1 %v23134_v5  ;;  %v6942_v62 = vpop.f32.mrf.mxu0  ;;  %v5691_v29 = vadd.f32 %v20720_v13, %v20707_v12  ;;  %v18520_v53 = vld [vmem:[%s22914_s4 + $0x68] sm:$0xff]   ;;  %v7642_v50 = vmul.f32 %v23136_v26, %v7354_v19  ;;  %v20969_v13 = vadd.f32 %v17549_v27, %v20711_v47 }
 0x283   : > { %v7310_v9 = vadd.f32 %v20782_v10, %v7256_v2  ;;  %v7107_v57 = vadd.f32 %v6942_v62, %v20761_v0  ;;  %v7643_v61 = vmul.f32 %v23135_v54, %v7355_v55  ;;  %17744 = vmatprep.subr.bf16.mxu1 %v18514_v22  ;;  %v7360_v14 = vmax.f32 %v7312_v38, 0.0 }
 0x284   : > { %v7259_v25 = vmul.f32 %v20754_v43, %v7109_v32  ;;  %v17580_v31 = vpop.f32.mrf.mxu0  ;;  %v7689_v17 = vpack.c.bf16 %v7645_v37, %v7644_v23  ;;  %v18518_v12 = vld [vmem:[#allocation2 + $0x20] sm:$0xff]   ;;  %v20977_v23 = vadd.f32 %v6260_v51, %v5691_v29 }
 0x285   : > { %v7358_v0 = vmax.f32 %v7310_v9, 0.0  ;;  %v7257_v55 = vmul.f32 %v20754_v43, %v7107_v57  ;;  %v7112_v2 = vadd.f32 %v17580_v31, %v20765_v30  ;;  %v7688_v5 = vpack.c.bf16 %v7643_v61, %v7642_v50  ;;  %v23137_v9 = vld [vmem:[#allocation5_spill] sm:$0xff]  ;;  %v20983_v31 = vpop.permute.xlu0 %7510  ;;  %v20985_v29 = vpop.permute.xlu1 %7515 }
 0x286   : > { %v7313_v38 = vadd.f32 %v20782_v10, %v7259_v25  ;;  %v6955_v32 = vpop.f32.mrf.mxu0  ;;  %16418 = vst [vmem:[#allocation2 + $0x30] sm:$0xff] %v7689_v17   ;;  %17745 = vmatpush3.bf16.msra.mxu1 %v18514_v22  ;;  %v8527_v19 = vshrl.u32 %v18518_v12, 16  ;;  %v8530_v37 = vshll.u32 %v18518_v12, 16  ;;  %v7648_v57 = vmul.f32 %v23137_v9, %v7360_v14  ;;  %v23138_v12 = vld [vmem:[#allocation6_spill] sm:$0xff] }
 0x287   : > { %v7311_v47 = vadd.f32 %v20782_v10, %v7257_v55  ;;  %v7262_v27 = vmul.f32 %v20754_v43, %v7112_v2  ;;  %v7110_v30 = vadd.f32 %v6955_v32, %v20769_v28  ;;  %v18517_v62 = vld [vmem:[#allocation2 + $0x18] sm:$0xff]   ;;  %17746 = vmatprep.subr.bf16.mxu1 %v18520_v53  ;;  %16417 = vst [vmem:[#allocation2 + $0x28] sm:$0xff] %v7688_v5   ;;  %v23139_v2 = vld [vmem:[#allocation82_spill] sm:$0xff] }
 0x288   : > { %v7361_v54 = vmax.f32 %v7313_v38, 0.0  ;;  %17634 = vmatprep.mubr.bf16.mxu1 %v7688_v5  ;;  %v17581_v61 = vpop.f32.mrf.mxu0  ;;  %v8529_v25 = vrot.slane %v8527_v19, 3  ;;  %v8532_v22 = vrot.slane %v8530_v37, 4  ;;  %v7646_v38 = vmul.f32 %v23139_v2, %v7358_v0 }
 0x289   : > { %v7359_v51 = vmax.f32 %v7311_v47, 0.0  ;;  %v7316_v26 = vadd.f32 %v20782_v10, %v7262_v27  ;;  %v7260_v50 = vmul.f32 %v20754_v43, %v7110_v30  ;;  %v7113_v28 = vadd.f32 %v17581_v61, %v20773_v49  ;;  %17635 = vmatmul.mubr.bf16.gmra.mxu1 %v7689_v17  ;;  %v18528_v49 = vld [vmem:[%s22914_s4 + $0x58] sm:$0xff]   ;;  %v23140_v30 = vld [vmem:[#allocation83_spill] sm:$0xff] }
 0x28a   : > { %v7649_v14 = vmul.f32 %v23138_v12, %v7361_v54  ;;  %v6958_v55 = vpop.f32.mrf.mxu0  ;;  %v8518_v32 = vshrl.u32 %v18517_v62, 16  ;;  %v8521_v5 = vshll.u32 %v18517_v62, 16  ;;  %17747 = vmatpush3.bf16.msra.mxu1 %v18520_v53 }
 0x28b   : > { %v7364_v19 = vmax.f32 %v7316_v26, 0.0  ;;  %v7314_v37 = vadd.f32 %v20782_v10, %v7260_v50  ;;  %v7263_v47 = vmul.f32 %v20754_v43, %v7113_v28  ;;  %v7111_v27 = vadd.f32 %v6958_v55, %v20776_v45  ;;  %17748 = vmatprep.subr.bf16.mxu1 %v18524_v58 }
 0x28c   : > { %v17584_v17 = vpop.f32.mrf.mxu0  ;;  %v7647_v9 = vmul.f32 %v23140_v30, %v7359_v51  ;;  %v7691_v54 = vpack.c.bf16 %v7649_v14, %v7648_v57  ;;  %v8520_v0 = vrot.slane %v8518_v32, 3  ;;  %v8523_v61 = vrot.slane %v8521_v5, 4  ;;  %v18532_v57 = vld [vmem:[%s22914_s4 + $0x50] sm:$0xff]   ;;  %v21010_v14 = vpop.permute.xlu0 %7520 }
 0x28d   : > { %v7362_v62 = vmax.f32 %v7314_v37, 0.0  ;;  %v7317_v53 = vadd.f32 %v20782_v10, %v7263_v47  ;;  %v7261_v26 = vmul.f32 %v20754_v43, %v7111_v27  ;;  %v21001_v50 = vor.u32 %v8532_v22, %v8529_v25  ;;  %v21003_v28 = vld [vmem:[#allocation2 + $0x30] sm:$0xff]   ;;  %v21012_v32 = vpop.permute.xlu1 %7525 }
 0x28e   : > { %v7652_v45 = vmul.f32 %v20807_v7, %v7364_v19  ;;  %v7116_v12 = vadd.f32 %v17584_v17, %v20786_v1  ;;  %v6971_v55 = vpop.f32.mrf.mxu0  ;;  %v7690_v2 = vpack.c.bf16 %v7647_v9, %v7646_v38  ;;  %16420 = vst [vmem:[#allocation2 + $0x40] sm:$0xff] %v7691_v54   ;;  %v8524_v51 = vor.u32 %v8523_v61, %v8520_v0  ;;  %v18519_v5 = vld [vmem:[#allocation2 + $0x28] sm:$0xff]   ;;  %v23141_v19 = vld [vmem:[#allocation26_spill] sm:$0xff]  ;;  %v18542_v9 = vld [vmem:[%s22914_s4 + $0xb0] sm:$0xff]  }
 0x28f   : > { %17749 = vmatpush3.bf16.msra.mxu1 %v18524_v58  ;;  %v7365_v25 = vmax.f32 %v7317_v53, 0.0  ;;  %v7315_v22 = vadd.f32 %v20782_v10, %v7261_v26  ;;  %v7114_v7 = vadd.f32 %v6971_v55, %v20790_v35  ;;  %v7650_v1 = vmul.f32 %v20733_v24, %v7362_v62 }
 0x290   : > { %17750 = vmatprep.subr.bf16.mxu1 %v18528_v49  ;;  %v7266_v38 = vmul.f32 %v20754_v43, %v7116_v12  ;;  %16419 = vst [vmem:[#allocation2 + $0x38] sm:$0xff] %v7690_v2   ;;  %17638 = vmatprep.mubr.bf16.mxu1 %v7690_v2  ;;  %v17585_v58 = vpop.f32.mrf.mxu0  ;;  %v8525_v37 = vsel %vm1137_vm0, %v23141_v19, %v8524_v51  ;;  %v8545_v27 = vshrl.u32 %v21003_v28, 16  ;;  %v8536_v62 = vshrl.u32 %v18519_v5, 16 }
 0x291   : > { %v8534_v47 = vsel %vm1137_vm0, %v8524_v51, %v21001_v50  ;;  %v7653_v17 = vmul.f32 %v20809_v11, %v7365_v25  ;;  %v7363_v35 = vmax.f32 %v7315_v22, 0.0  ;;  %v7264_v24 = vmul.f32 %v20754_v43, %v7114_v7  ;;  %17639 = vmatmul.mubr.bf16.gmra.mxu1 %v7691_v54  ;;  %17695 = vmatmul.mubr.bf16.vlgmr.msra.gmra.mxu0 %v8525_v37  ;;  %v18536_v11 = vld [vmem:[%s22914_s4 + $0x48] sm:$0xff]  }
 0x292   : > { %v7117_v30 = vadd.f32 %v17585_v58, %v20795_v48  ;;  %v7320_v0 = vadd.f32 %v20782_v10, %v7266_v38  ;;  %17698 = vmatprep.mubr.bf16.mxu0 %v8534_v47  ;;  %v6974_v61 = vpop.f32.mrf.mxu0  ;;  %v8539_v53 = vshll.u32 %v18519_v5, 16  ;;  %v8547_v26 = vrot.slane %v8545_v27, 3  ;;  %v23142_v5 = vld [vmem:[#allocation78_spill] sm:$0xff]  ;;  %v21040_v38 = vpop.permute.xlu1 %7535 }
 0x293   : > { %17751 = vmatpush3.bf16.msra.mxu1 %v18528_v49  ;;  %v7318_v48 = vadd.f32 %v20782_v10, %v7264_v24  ;;  %v7115_v12 = vadd.f32 %v6974_v61, %v20798_v42  ;;  %v7651_v55 = vmul.f32 %v20735_v16, %v7363_v35  ;;  %v7693_v25 = vpack.c.bf16 %v7653_v17, %v7652_v45  ;;  %v21038_v49 = vpop.permute.xlu0 %7530  ;;  %v23143_v42 = vld [vmem:[#allocation7_spill] sm:$0xff]  ;;  %v21050_v45 = vld [vmem:[%s22914_s4 + $0x40] sm:$0xff]  }
 0x294   : > { %v7267_v54 = vmul.f32 %v20754_v43, %v7117_v30  ;;  %17752 = vmatprep.subr.bf16.mxu1 %v18532_v57  ;;  %v7368_v2 = vmax.f32 %v7320_v0, 0.0  ;;  %v17588_v51 = vpop.f32.mrf.mxu0  ;;  %v8538_v22 = vrot.slane %v8536_v62, 3  ;;  %v8541_v7 = vrot.slane %v8539_v53, 4  ;;  %17807 = vmatpush3.bf16.msra.mxu0 %v23142_v5  ;;  %v18544_v0 = vld [vmem:[%s22914_s4 + $0xa8] sm:$0xff]  }
 0x295   : > { %v7366_v58 = vmax.f32 %v7318_v48, 0.0  ;;  %v7265_v37 = vmul.f32 %v20754_v43, %v7115_v12  ;;  %v7120_v47 = vadd.f32 %v17588_v51, %v23143_v42  ;;  %v21045_v16 = vld [vmem:[#allocation2 + $0x40] sm:$0xff]   ;;  %17808 = vmatprep.subr.bf16.mxu0 %v18542_v9  ;;  %v7692_v35 = vpack.c.bf16 %v7651_v55, %v7650_v1  ;;  %16422 = vst [vmem:[#allocation2 + $0x50] sm:$0xff] %v7693_v25  }
 0x296   : > { %v7321_v19 = vadd.f32 %v20782_v10, %v7267_v54  ;;  %v7656_v27 = vmul.f32 %v20907_v56, %v7368_v2  ;;  %v6987_v17 = vpop.f32.mrf.mxu0  ;;  %v8542_v24 = vor.u32 %v8541_v7, %v8538_v22  ;;  %v8548_v30 = vshll.u32 %v21003_v28, 16  ;;  %v18546_v22 = vld [vmem:[%s22914_s4 + $0xa0] sm:$0xff]  }
 0x297   : > { %17753 = vmatpush3.bf16.msra.mxu1 %v18532_v57  ;;  %v7319_v62 = vadd.f32 %v20782_v10, %v7265_v37  ;;  %v7270_v53 = vmul.f32 %v20754_v43, %v7120_v47  ;;  %v7118_v48 = vadd.f32 %v6987_v17, %v20813_v20  ;;  %v18522_v54 = vld [vmem:[#allocation2 + $0x38] sm:$0xff]   ;;  %16421 = vst [vmem:[#allocation2 + $0x48] sm:$0xff] %v7692_v35   ;;  %v8563_v12 = vshrl.u32 %v21045_v16, 16 }
 0x298   : > { %v7369_v61 = vmax.f32 %v7321_v19, 0.0  ;;  %17754 = vmatprep.subr.bf16.mxu1 %v18536_v11  ;;  %17642 = vmatprep.mubr.bf16.mxu1 %v7692_v35  ;;  %v17589_v56 = vpop.f32.mrf.mxu0  ;;  %v8543_v28 = vsel %vm1137_vm0, %v21001_v50, %v8542_v24  ;;  %v8550_v57 = vrot.slane %v8548_v30, 4  ;;  %v7654_v1 = vmul.f32 %v20867_v60, %v7366_v58  ;;  %v23144_v37 = vld [vmem:[#allocation9_spill] sm:$0xff] }
 0x299   : > { %17809 = vmatpush3.bf16.msra.mxu0 %v18542_v9  ;;  %v7367_v2 = vmax.f32 %v7319_v62, 0.0  ;;  %v7324_v51 = vadd.f32 %v20782_v10, %v7270_v53  ;;  %v7268_v20 = vmul.f32 %v20754_v43, %v7118_v48  ;;  %17643 = vmatmul.mubr.bf16.gmra.mxu1 %v7693_v25  ;;  %v7121_v50 = vadd.f32 %v17589_v56, %v20819_v63  ;;  %v21073_v9 = vpop.permute.xlu1 %7545  ;;  %v21082_v63 = vld [vmem:[%s22914_s4 + $0xf8] sm:$0xff]  }
 0x29a   : > { %v7657_v55 = vmul.f32 %v20909_v4, %v7369_v61  ;;  %17699 = vmatmul.mubr.bf16.gmra.mxu0 %v8543_v28  ;;  %v8551_v7 = vor.u32 %v8550_v57, %v8547_v26  ;;  %v6990_v60 = vpop.f32.mrf.mxu0  ;;  %v8554_v5 = vshrl.u32 %v18522_v54, 16  ;;  %v8557_v58 = vshll.u32 %v18522_v54, 16  ;;  %17810 = vmatprep.subr.bf16.mxu0 %v18544_v0  ;;  %v21071_v4 = vpop.permute.xlu0 %7540  ;;  %v18550_v61 = vld [vmem:[%s22914_s4 + $0x98] sm:$0xff]  }
 0x29b   : > { %17755 = vmatpush3.bf16.msra.mxu1 %v18536_v11  ;;  %v7372_v19 = vmax.f32 %v7324_v51, 0.0  ;;  %v7322_v25 = vadd.f32 %v20782_v10, %v7268_v20  ;;  %v7119_v42 = vadd.f32 %v6990_v60, %v23144_v37  ;;  %v7655_v47 = vmul.f32 %v20869_v8, %v7367_v2 }
 0x29c   : > { %17756 = vmatprep.subr.bf16.mxu1 %v21050_v45  ;;  %v7271_v26 = vmul.f32 %v20754_v43, %v7121_v50  ;;  %v8552_v11 = vsel %vm1137_vm0, %v8542_v24, %v8551_v7  ;;  %v17592_v17 = vpop.f32.mrf.mxu0  ;;  %v7695_v35 = vpack.c.bf16 %v7657_v55, %v7656_v27  ;;  %v8556_v30 = vrot.slane %v8554_v5, 3  ;;  %v21092_v54 = vld [vmem:[#allocation2 + $0x50] sm:$0xff]  }
 0x29d   : > { %17811 = vmatpush3.bf16.msra.mxu0 %v18544_v0  ;;  %v7660_v8 = vmul.f32 %v20983_v31, %v7372_v19  ;;  %v7370_v62 = vmax.f32 %v7322_v25, 0.0  ;;  %17702 = vmatprep.mubr.bf16.mxu0 %v8552_v11  ;;  %v7269_v53 = vmul.f32 %v20754_v43, %v7119_v42  ;;  %v7124_v48 = vadd.f32 %v17592_v17, %v20826_v52  ;;  %v21105_v60 = vpop.permute.xlu1 %7555 }
 0x29e   : > { %17812 = vmatprep.subr.bf16.mxu0 %v18546_v22  ;;  %v7325_v24 = vadd.f32 %v20782_v10, %v7271_v26  ;;  %v7003_v27 = vpop.f32.mrf.mxu0  ;;  %v7694_v56 = vpack.c.bf16 %v7655_v47, %v7654_v1  ;;  %16424 = vst [vmem:[#allocation2 + $0x60] sm:$0xff] %v7695_v35   ;;  %v8559_v0 = vrot.slane %v8557_v58, 4  ;;  %v8565_v28 = vrot.slane %v8563_v12, 3  ;;  %v18525_v2 = vld [vmem:[#allocation2 + $0x48] sm:$0xff]   ;;  %v21103_v50 = vpop.permute.xlu0 %7550 }
 0x29f   : > { %17757 = vmatpush3.bf16.msra.mxu1 %v21050_v45  ;;  %v7323_v31 = vadd.f32 %v20782_v10, %v7269_v53  ;;  %v7274_v57 = vmul.f32 %v20754_v43, %v7124_v48  ;;  %v7122_v55 = vadd.f32 %v7003_v27, %v20831_v18  ;;  %v8566_v52 = vshll.u32 %v21045_v16, 16 }
 0x2a0   : > { %17870 = vmatprep.subr.bf16.mxu1 %v21082_v63  ;;  %v7373_v51 = vmax.f32 %v7325_v24, 0.0  ;;  %16423 = vst [vmem:[#allocation2 + $0x58] sm:$0xff] %v7694_v56   ;;  %17646 = vmatprep.mubr.bf16.mxu1 %v7694_v56  ;;  %v17593_v1 = vpop.f32.mrf.mxu0  ;;  %v8560_v20 = vor.u32 %v8559_v0, %v8556_v30  ;;  %v7658_v12 = vmul.f32 %v20954_v33, %v7370_v62  ;;  %v8581_v45 = vshrl.u32 %v21092_v54, 16  ;;  %v18554_v33 = vld [vmem:[%s22914_s4 + $0x90] sm:$0xff]   ;;  %v18557_v56 = vld [vmem:[%s22914_s4 + $0x88] sm:$0xff]  }
 0x2a1   : > { %17813 = vmatpush3.bf16.msra.mxu0 %v18546_v22  ;;  %v7371_v18 = vmax.f32 %v7323_v31, 0.0  ;;  %v7328_v16 = vadd.f32 %v20782_v10, %v7274_v57  ;;  %v7272_v5 = vmul.f32 %v20754_v43, %v7122_v55  ;;  %v7125_v58 = vadd.f32 %v17593_v1, %v20835_v36  ;;  %17647 = vmatmul.mubr.bf16.gmra.mxu1 %v7695_v35  ;;  %v23145_v36 = vld [vmem:[#allocation11_spill] sm:$0xff] }
 0x2a2   : > { %17814 = vmatprep.subr.bf16.mxu0 %v18550_v61  ;;  %v7661_v19 = vmul.f32 %v20985_v29, %v7373_v51  ;;  %v8561_v22 = vsel %vm1137_vm0, %v8551_v7, %v8560_v20  ;;  %v8568_v25 = vrot.slane %v8566_v52, 4  ;;  %v7006_v37 = vpop.f32.mrf.mxu0  ;;  %v8572_v42 = vshrl.u32 %v18525_v2, 16  ;;  %v21127_v57 = vpop.permute.xlu0 %7560  ;;  %v23147_v51 = vld [vmem:[#allocation13_spill] sm:$0xff] }
 0x2a3   : > { %v7376_v47 = vmax.f32 %v7328_v16, 0.0  ;;  %v7326_v26 = vadd.f32 %v20782_v10, %v7272_v5  ;;  %v7275_v11 = vmul.f32 %v20754_v43, %v7125_v58  ;;  %17703 = vmatmul.mubr.bf16.gmra.mxu0 %v8561_v22  ;;  %v7123_v17 = vadd.f32 %v7006_v37, %v23145_v36  ;;  %v23148_v37 = vld [vmem:[#allocation14_spill] sm:$0xff]  ;;  %v23149_v36 = vld [vmem:[#allocation15_spill] sm:$0xff] }
 0x2a4   : > { %v8569_v35 = vor.u32 %v8568_v25, %v8565_v28  ;;  %v17596_v30 = vpop.f32.mrf.mxu0  ;;  %v7659_v62 = vmul.f32 %v20956_v3, %v7371_v18  ;;  %v7697_v53 = vpack.c.bf16 %v7661_v19, %v7660_v8  ;;  %v8574_v48 = vrot.slane %v8572_v42, 3  ;;  %v23146_v28 = vld [vmem:[#allocation12_spill] sm:$0xff] }
 0x2a5   : > { %17815 = vmatpush3.bf16.msra.mxu0 %v18550_v61  ;;  %v7664_v29 = vmul.f32 %v21038_v49, %v7376_v47  ;;  %v7374_v7 = vmax.f32 %v7326_v26, 0.0  ;;  %v7329_v24 = vadd.f32 %v20782_v10, %v7275_v11  ;;  %v7273_v27 = vmul.f32 %v20754_v43, %v7123_v17  ;;  %v21129_v49 = vpop.permute.xlu1 %7565 }
 0x2a6   : > { %17816 = vmatprep.subr.bf16.mxu0 %v18554_v33  ;;  %v8570_v0 = vsel %vm1137_vm0, %v8560_v20, %v8569_v35  ;;  %v7128_v31 = vadd.f32 %v17596_v30, %v23146_v28  ;;  %v7019_v3 = vpop.f32.mrf.mxu0  ;;  %v7696_v8 = vpack.c.bf16 %v7659_v62, %v7658_v12  ;;  %16426 = vst [vmem:[#allocation2 + $0x70] sm:$0xff] %v7697_v53   ;;  %v8575_v61 = vshll.u32 %v18525_v2, 16 }
 0x2a7   : > { %v7377_v55 = vmax.f32 %v7329_v24, 0.0  ;;  %17706 = vmatprep.mubr.bf16.mxu0 %v8570_v0  ;;  %v7327_v52 = vadd.f32 %v20782_v10, %v7273_v27  ;;  %v7126_v1 = vadd.f32 %v7019_v3, %v23147_v51  ;;  %v8583_v18 = vrot.slane %v8581_v45, 3  ;;  %v18527_v58 = vld [vmem:[#allocation2 + $0x58] sm:$0xff]   ;;  %v18561_v45 = vld [vmem:[%s22914_s4 + $0x80] sm:$0xff]  }
 0x2a8   : > { %v7278_v16 = vmul.f32 %v20754_v43, %v7128_v31  ;;  %16425 = vst [vmem:[#allocation2 + $0x68] sm:$0xff] %v7696_v8   ;;  %17650 = vmatprep.mubr.bf16.mxu1 %v7696_v8  ;;  %v17597_v20 = vpop.f32.mrf.mxu0  ;;  %v8577_v5 = vrot.slane %v8575_v61, 4  ;;  %v8584_v12 = vshll.u32 %v21092_v54, 16  ;;  %v7662_v2 = vmul.f32 %v21010_v14, %v7374_v7  ;;  %v18529_v0 = vld [vmem:[#allocation2 + $0x60] sm:$0xff]   ;;  %v23150_v8 = vld [vmem:[#allocation16_spill] sm:$0xff] }
 0x2a9   : > { %17817 = vmatpush3.bf16.msra.mxu0 %v18554_v33  ;;  %v7665_v19 = vmul.f32 %v21040_v38, %v7377_v55  ;;  %v7375_v22 = vmax.f32 %v7327_v52, 0.0  ;;  %v7276_v25 = vmul.f32 %v20754_v43, %v7126_v1  ;;  %v7129_v42 = vadd.f32 %v17597_v20, %v23148_v37  ;;  %17651 = vmatmul.mubr.bf16.gmra.mxu1 %v7697_v53  ;;  %v21150_v28 = vpop.permute.xlu1 %7575  ;;  %v23151_v37 = vld [vmem:[#allocation17_spill] sm:$0xff] }
 0x2aa   : > { %17818 = vmatprep.subr.bf16.mxu0 %v18557_v56  ;;  %v7332_v47 = vadd.f32 %v20782_v10, %v7278_v16  ;;  %v8578_v54 = vor.u32 %v8577_v5, %v8574_v48  ;;  %v8586_v26 = vrot.slane %v8584_v12, 4  ;;  %v7022_v14 = vpop.f32.mrf.mxu0  ;;  %v8590_v11 = vshrl.u32 %v18527_v58, 16  ;;  %v21148_v48 = vpop.permute.xlu0 %7570 }
 0x2ab   : > { %v7330_v33 = vadd.f32 %v20782_v10, %v7276_v25  ;;  %v7279_v38 = vmul.f32 %v20754_v43, %v7129_v42  ;;  %v7127_v17 = vadd.f32 %v7022_v14, %v23149_v36  ;;  %v7663_v30 = vmul.f32 %v21012_v32, %v7375_v22 }
 0x2ac   : > { %v7380_v62 = vmax.f32 %v7332_v47, 0.0  ;;  %v8579_v53 = vsel %vm1137_vm0, %v8569_v35, %v8578_v54  ;;  %v8587_v7 = vor.u32 %v8586_v26, %v8583_v18  ;;  %v17600_v24 = vpop.f32.mrf.mxu0  ;;  %v7699_v27 = vpack.c.bf16 %v7665_v19, %v7664_v29 }
 0x2ad   : > { %17819 = vmatpush3.bf16.msra.mxu0 %v18557_v56  ;;  %v7333_v31 = vadd.f32 %v20782_v10, %v7279_v38  ;;  %v7277_v3 = vmul.f32 %v20754_v43, %v7127_v17  ;;  %v7132_v61 = vadd.f32 %v17600_v24, %v23150_v8  ;;  %v7378_v35 = vmax.f32 %v7330_v33, 0.0  ;;  %v21175_v38 = vld [vmem:[%s22912_s2] ss:$0 sm:$0xff]  ;;  %v18531_v24 = vld [vmem:[#allocation2 + $0x70] sm:$0xff]  }
 0x2ae   : > { %17707 = vmatmul.mubr.bf16.gmra.mxu0 %v8579_v53  ;;  %17820 = vmatprep.subr.bf16.mxu0 %v18561_v45  ;;  %v7668_v32 = vmul.f32 %v21103_v50, %v7380_v62  ;;  %v8588_v55 = vsel %vm1137_vm0, %v8578_v54, %v8587_v7  ;;  %v7035_v29 = vpop.f32.mrf.mxu0  ;;  %v7698_v52 = vpack.c.bf16 %v7663_v30, %v7662_v2  ;;  %v8592_v20 = vrot.slane %v8590_v11, 3  ;;  %v21164_v14 = vpop.permute.xlu0 %7580 }
 0x2af   : > { %16428 = vst [vmem:[#allocation2 + $0x80] sm:$0xff] %v7699_v27   ;;  %v7381_v56 = vmax.f32 %v7333_v31, 0.0  ;;  %17710 = vmatprep.mubr.bf16.mxu0 %v8588_v55  ;;  %v7331_v51 = vadd.f32 %v20782_v10, %v7277_v3  ;;  %v7282_v1 = vmul.f32 %v20754_v43, %v7132_v61  ;;  %v7130_v18 = vadd.f32 %v7035_v29, %v20873_v46  ;;  %v23153_v29 = vld [vmem:[#allocation19_spill] sm:$0xff] }
 0x2b0   : > { %16427 = vst [vmem:[#allocation2 + $0x78] sm:$0xff] %v7698_v52   ;;  %17654 = vmatprep.mubr.bf16.mxu1 %v7698_v52  ;;  %v17601_v16 = vpop.f32.mrf.mxu0  ;;  %v8593_v5 = vshll.u32 %v18527_v58, 16  ;;  %v8599_v50 = vshrl.u32 %v18529_v0, 16  ;;  %v8602_v12 = vshll.u32 %v18529_v0, 16  ;;  %v21166_v58 = vpop.permute.xlu1 %7585  ;;  %v7666_v11 = vmul.f32 %v21071_v4, %v7378_v35  ;;  %v23152_v4 = vld [vmem:[#allocation18_spill] sm:$0xff] }
 0x2b1   : > { %17821 = vmatpush3.bf16.msra.mxu0 %v18561_v45  ;;  %v7669_v19 = vmul.f32 %v21105_v60, %v7381_v56  ;;  %v7379_v2 = vmax.f32 %v7331_v51, 0.0  ;;  %v7336_v22 = vadd.f32 %v20782_v10, %v7282_v1  ;;  %v7280_v25 = vmul.f32 %v20754_v43, %v7130_v18  ;;  %17655 = vmatmul.mubr.bf16.gmra.mxu1 %v7699_v27  ;;  %v18530_v43 = vld [vmem:[#allocation2 + $0x68] sm:$0xff]  }
 0x2b2   : > { %v7133_v42 = vadd.f32 %v17601_v16, %v23151_v37  ;;  %v8595_v47 = vrot.slane %v8593_v5, 4  ;;  %v8601_v46 = vrot.slane %v8599_v50, 3  ;;  %v8604_v54 = vrot.slane %v8602_v12, 4  ;;  %v7038_v26 = vpop.f32.mrf.mxu0 }
 0x2b3   : > { %v7334_v45 = vadd.f32 %v20782_v10, %v7280_v25  ;;  %v7131_v60 = vadd.f32 %v7038_v26, %v20887_v6  ;;  %v7667_v33 = vmul.f32 %v21073_v9, %v7379_v2  ;;  %v7701_v53 = vpack.c.bf16 %v7669_v19, %v7668_v32  ;;  %v21183_v9 = vld [vmem:[%s22913_s3] ss:$0 sm:$0xff] }
 0x2b4   : > { %v7283_v36 = vmul.f32 %v21175_v38, %v7133_v42  ;;  %v8596_v17 = vor.u32 %v8595_v47, %v8592_v20  ;;  %v8605_v30 = vor.u32 %v8604_v54, %v8601_v46  ;;  %v17604_v62 = vpop.f32.mrf.mxu0  ;;  %v7384_v10 = vmax.f32 %v7336_v22, 0.0  ;;  %v7591_v20 = vpop.permute.xlu0 %7590 }
 0x2b5   : > { %v7382_v27 = vmax.f32 %v7334_v45, 0.0  ;;  %v7281_v6 = vmul.f32 %v21175_v38, %v7131_v60  ;;  %v7136_v0 = vadd.f32 %v17604_v62, %v23152_v4  ;;  %v7700_v32 = vpack.c.bf16 %v7667_v33, %v7666_v11  ;;  %16430 = vst [vmem:[#allocation2 + $0x90] sm:$0xff] %v7701_v53   ;;  %v21191_v5 = vpop.permute.xlu1 %7595  ;;  %v21202_v60 = vld [vmem:[%s22914_s4 + $0x178] sm:$0xff]  }
 0x2b6   : > { %v7337_v31 = vadd.f32 %v21183_v9, %v7283_v36  ;;  %v8597_v3 = vsel %vm1137_vm0, %v8587_v7, %v8596_v17  ;;  %v8606_v8 = vsel %vm1137_vm0, %v8596_v17, %v8605_v30  ;;  %v7051_v61 = vpop.f32.mrf.mxu0  ;;  %v8608_v56 = vshrl.u32 %v18530_v43, 16  ;;  %17934 = vmatprep.subr.bf16.mxu0 %v21202_v60 }
 0x2b7   : > { %17711 = vmatmul.mubr.bf16.gmra.mxu0 %v8597_v3  ;;  %v7335_v35 = vadd.f32 %v21183_v9, %v7281_v6  ;;  %v7286_v55 = vmul.f32 %v21175_v38, %v7136_v0  ;;  %v7134_v52 = vadd.f32 %v7051_v61, %v23153_v29  ;;  %16429 = vst [vmem:[#allocation2 + $0x88] sm:$0xff] %v7700_v32   ;;  %v8611_v18 = vshll.u32 %v18530_v43, 16  ;;  %v18533_v36 = vld [vmem:[#allocation2 + $0x78] sm:$0xff]  }
 0x2b8   : > { %v7385_v51 = vmax.f32 %v7337_v31, 0.0  ;;  %17714 = vmatprep.mubr.bf16.mxu0 %v8606_v8  ;;  %17658 = vmatprep.mubr.bf16.mxu1 %v7700_v32  ;;  %v17605_v1 = vpop.f32.mrf.mxu0  ;;  %v8617_v7 = vshrl.u32 %v18531_v24, 16  ;;  %v8620_v16 = vshll.u32 %v18531_v24, 16  ;;  %v7672_v22 = vmul.f32 %v21148_v48, %v7384_v10  ;;  %v18534_v24 = vld [vmem:[#allocation2 + $0x80] sm:$0xff]  }
 0x2b9   : > { %v7383_v50 = vmax.f32 %v7335_v35, 0.0  ;;  %v7340_v12 = vadd.f32 %v21183_v9, %v7286_v55  ;;  %v7284_v19 = vmul.f32 %v21175_v38, %v7134_v52  ;;  %v7137_v2 = vadd.f32 %v17605_v1, %v20913_v41  ;;  %17659 = vmatmul.mubr.bf16.gmra.mxu1 %v7701_v53  ;;  %v21217_v4 = vpop.permute.xlu1 %7605 }
 0x2ba   : > { %v8610_v25 = vrot.slane %v8608_v56, 3  ;;  %v8613_v37 = vrot.slane %v8611_v18, 4  ;;  %v8619_v42 = vrot.slane %v8617_v7, 3  ;;  %v7054_v47 = vpop.f32.mrf.mxu0  ;;  %v7673_v46 = vmul.f32 %v21150_v28, %v7385_v51 }
 0x2bb   : > { %v7388_v54 = vmax.f32 %v7340_v12, 0.0  ;;  %v7287_v26 = vmul.f32 %v21175_v38, %v7137_v2  ;;  %v8622_v45 = vrot.slane %v8620_v16, 4  ;;  %v7135_v41 = vadd.f32 %v7054_v47, %v20919_v39 }
 0x2bc   : > { %v8614_v11 = vor.u32 %v8613_v37, %v8610_v25  ;;  %v17608_v33 = vpop.f32.mrf.mxu0  ;;  %v7670_v48 = vmul.f32 %v21127_v57, %v7382_v27  ;;  %v7671_v43 = vmul.f32 %v21129_v49, %v7383_v50  ;;  %v7338_v28 = vadd.f32 %v21183_v9, %v7284_v19  ;;  %v21215_v49 = vpop.permute.xlu0 %7600 }
 0x2bd   : > { %v21207_v17 = vmul.f32 %v7591_v20, %v7388_v54  ;;  %v7341_v62 = vadd.f32 %v21183_v9, %v7287_v26  ;;  %v8623_v53 = vor.u32 %v8622_v45, %v8619_v42  ;;  %v7285_v39 = vmul.f32 %v21175_v38, %v7135_v41  ;;  %v7616_v47 = vpop.permute.xlu1 %7615 }
 0x2be   : > { %v8615_v10 = vsel %vm1137_vm0, %v8605_v30, %v8614_v11  ;;  %v7140_v6 = vadd.f32 %v17608_v33, %v20923_v15  ;;  %v7067_v57 = vpop.f32.mrf.mxu0  ;;  %v7702_v27 = vpack.c.bf16 %v7671_v43, %v7670_v48  ;;  %v7703_v8 = vpack.c.bf16 %v7673_v46, %v7672_v22  ;;  %v18535_v37 = vld [vmem:[#allocation2 + $0x88] sm:$0xff]  }
 0x2bf   : > { %v7389_v0 = vmax.f32 %v7341_v62, 0.0  ;;  %17715 = vmatmul.mubr.bf16.gmra.mxu0 %v8615_v10  ;;  %v8624_v31 = vsel %vm1137_vm0, %v8614_v11, %v8623_v53  ;;  %v7138_v3 = vadd.f32 %v7067_v57, %v20933_v59  ;;  %v7339_v30 = vadd.f32 %v21183_v9, %v7285_v39  ;;  %v18537_v62 = vld [vmem:[#allocation2 + $0x90] sm:$0xff]  }
 0x2c0   : > { %17718 = vmatprep.mubr.bf16.mxu0 %v8624_v31  ;;  %v7290_v61 = vmul.f32 %v21175_v38, %v7140_v6  ;;  %16431 = vst [vmem:[#allocation2 + $0x98] sm:$0xff] %v7702_v27   ;;  %17662 = vmatprep.mubr.bf16.mxu1 %v7702_v27  ;;  %v17609_v15 = vpop.f32.mrf.mxu0  ;;  %v8626_v32 = vshrl.u32 %v18533_v36, 16  ;;  %v8629_v35 = vshll.u32 %v18533_v36, 16  ;;  %v7386_v55 = vmax.f32 %v7338_v28, 0.0  ;;  %16432 = vst [vmem:[#allocation2 + $0xa0] sm:$0xff] %v7703_v8   ;;  %v7611_v42 = vpop.permute.xlu0 %7610 }
 0x2c1   : > { %v7288_v29 = vmul.f32 %v21175_v38, %v7138_v3  ;;  %v7141_v52 = vadd.f32 %v17609_v15, %v20937_v21  ;;  %17663 = vmatmul.mubr.bf16.gmra.mxu1 %v7703_v8  ;;  %v8635_v56 = vshrl.u32 %v18534_v24, 16  ;;  %v7387_v59 = vmax.f32 %v7339_v30, 0.0 }
 0x2c2   : > { %v7344_v51 = vadd.f32 %v21183_v9, %v7290_v61  ;;  %v8628_v1 = vrot.slane %v8626_v32, 3  ;;  %v8631_v18 = vrot.slane %v8629_v35, 4  ;;  %v7070_v7 = vpop.f32.mrf.mxu0  ;;  %v8638_v12 = vshll.u32 %v18534_v24, 16 }
 0x2c3   : > { %v7342_v16 = vadd.f32 %v21183_v9, %v7288_v29  ;;  %v7291_v20 = vmul.f32 %v21175_v38, %v7141_v52  ;;  %v8637_v50 = vrot.slane %v8635_v56, 3  ;;  %v7677_v19 = vmul.f32 %v21191_v5, %v7389_v0 }
 0x2c4   : > { %v7392_v2 = vmax.f32 %v7344_v51, 0.0  ;;  %v8632_v22 = vor.u32 %v8631_v18, %v8628_v1  ;;  %v7139_v21 = vadd.f32 %v7070_v7, %v20940_v34  ;;  %v17612_v25 = vpop.f32.mrf.mxu0  ;;  %v8640_v26 = vrot.slane %v8638_v12, 4  ;;  %v7621_v8 = vpop.permute.xlu0 %7620 }
 0x2c5   : > { %v7390_v46 = vmax.f32 %v7342_v16, 0.0  ;;  %v7345_v54 = vadd.f32 %v21183_v9, %v7291_v20  ;;  %v7144_v45 = vadd.f32 %v17612_v25, %v20946_v40  ;;  %v7674_v5 = vmul.f32 %v21164_v14, %v7386_v55 }
 0x2c6   : > { %v8633_v11 = vsel %vm1137_vm0, %v8623_v53, %v8632_v22  ;;  %v7289_v41 = vmul.f32 %v21175_v38, %v7139_v21  ;;  %v7083_v33 = vpop.f32.mrf.mxu0  ;;  %v7675_v48 = vmul.f32 %v21166_v58, %v7387_v59  ;;  %v8641_v43 = vor.u32 %v8640_v26, %v8637_v50 }
 0x2c7   : > { %v7393_v34 = vmax.f32 %v7345_v54, 0.0  ;;  %17719 = vmatmul.mubr.bf16.gmra.mxu0 %v8633_v11  ;;  %v7294_v36 = vmul.f32 %v21175_v38, %v7144_v45  ;;  %v7142_v28 = vadd.f32 %v7083_v33, %v20949_v44  ;;  %v7705_v53 = vpack.c.bf16 %v7677_v19, %v21207_v17  ;;  %v7626_v17 = vpop.permute.xlu1 %7625  ;;  %v18538_v35 = vld [vmem:[#allocation2 + $0x98] sm:$0xff]   ;;  %v18540_v18 = vld [vmem:[#allocation2 + $0xa0] sm:$0xff]  }
 0x2c8   : > { %v7343_v24 = vadd.f32 %v21183_v9, %v7289_v41  ;;  %v7704_v40 = vpack.c.bf16 %v7675_v48, %v7674_v5  ;;  %v17613_v10 = vpop.f32.mrf.mxu0  ;;  %v8644_v39 = vshrl.u32 %v18535_v37, 16  ;;  %v7680_v6 = vmul.f32 %v7611_v42, %v7392_v2  ;;  %v7631_v42 = vpop.permute.xlu0 %7630 }
 0x2c9   : > { %v8642_v14 = vsel %vm1137_vm0, %v8632_v22, %v8641_v43  ;;  %v7348_v58 = vadd.f32 %v21183_v9, %v7294_v36  ;;  %v7292_v57 = vmul.f32 %v21175_v38, %v7142_v28  ;;  %v7145_v44 = vadd.f32 %v17613_v10, %v20969_v13  ;;  %16434 = vst [vmem:[#allocation2 + $0xb0] sm:$0xff] %v7705_v53  }
 0x2ca   : > { %17722 = vmatprep.mubr.bf16.mxu0 %v8642_v14  ;;  %v7391_v27 = vmax.f32 %v7343_v24, 0.0  ;;  %16433 = vst [vmem:[#allocation2 + $0xa8] sm:$0xff] %v7704_v40   ;;  %17666 = vmatprep.mubr.bf16.mxu1 %v7704_v40  ;;  %v8646_v0 = vrot.slane %v8644_v39, 3  ;;  %v8647_v31 = vshll.u32 %v18535_v37, 16  ;;  %v7086_v3 = vpop.f32.mrf.mxu0  ;;  %v7681_v30 = vmul.f32 %v7616_v47, %v7393_v34 }
 0x2cb   : > { %v7346_v61 = vadd.f32 %v21183_v9, %v7292_v57  ;;  %17667 = vmatmul.mubr.bf16.gmra.mxu1 %v7705_v53  ;;  %v8653_v15 = vshrl.u32 %v18537_v62, 16  ;;  %v8656_v32 = vshll.u32 %v18537_v62, 16  ;;  %v7396_v55 = vmax.f32 %v7348_v58, 0.0  ;;  %v18547_v58 = vld [vmem:[#allocation2 + $0xc] sm:$0xff]  }
 0x2cc   : > { %v7295_v29 = vmul.f32 %v21175_v38, %v7145_v44  ;;  %v8649_v52 = vrot.slane %v8647_v31, 4  ;;  %v7143_v56 = vadd.f32 %v7086_v3, %v20977_v23  ;;  %v7678_v1 = vmul.f32 %v21215_v49, %v7390_v46  ;;  %v7636_v49 = vpop.permute.xlu1 %7635 }
 0x2cd   : > { %v7394_v13 = vmax.f32 %v7346_v61, 0.0  ;;  %v8655_v59 = vrot.slane %v8653_v15, 3  ;;  %v8658_v51 = vrot.slane %v8656_v32, 4  ;;  %v7679_v50 = vmul.f32 %v21217_v4, %v7391_v27 }
 0x2ce   : > { %v7349_v7 = vadd.f32 %v21183_v9, %v7295_v29  ;;  %v8650_v16 = vor.u32 %v8649_v52, %v8646_v0  ;;  %v7293_v20 = vmul.f32 %v21175_v38, %v7143_v56  ;;  %v7707_v19 = vpack.c.bf16 %v7681_v30, %v7680_v6  ;;  %v18559_v29 = vld [vmem:[#allocation2 + $0xc] sm:$0xff]  }
 0x2cf   : > { %v8659_v12 = vor.u32 %v8658_v51, %v8655_v59  ;;  %v8662_v2 = vshrl.u32 %v18538_v35, 16  ;;  %v8665_v22 = vshll.u32 %v18538_v35, 16  ;;  %v7706_v37 = vpack.c.bf16 %v7679_v50, %v7678_v1  ;;  %v18549_v59 = vld [vmem:[#allocation2 + $0x14] sm:$0xff]   ;;  %v18553_v51 = vld [vmem:[#allocation2 + $0x1c] sm:$0xff]  }
 0x2d0   : > { %v7397_v21 = vmax.f32 %v7349_v7, 0.0  ;;  %v8651_v23 = vsel %vm1137_vm0, %v8641_v43, %v8650_v16  ;;  %v7347_v25 = vadd.f32 %v21183_v9, %v7293_v20  ;;  %16436 = vst [vmem:[#allocation2 + $0xc0] sm:$0xff] %v7707_v19   ;;  %v8671_v54 = vshrl.u32 %v18540_v18, 16  ;;  %v18545_v34 = vld [vmem:[#allocation2 + $0xb0] sm:$0xff]  }
 0x2d1   : > { %17723 = vmatmul.mubr.bf16.gmra.mxu0 %v8651_v23  ;;  %v8660_v47 = vsel %vm1137_vm0, %v8650_v16, %v8659_v12  ;;  %v8664_v46 = vrot.slane %v8662_v2, 3  ;;  %v8667_v38 = vrot.slane %v8665_v22, 4  ;;  %v18543_v4 = vld [vmem:[#allocation2 + $0xa8] sm:$0xff]   ;;  %v7684_v26 = vmul.f32 %v7631_v42, %v7396_v55  ;;  %16435 = vst [vmem:[#allocation2 + $0xb8] sm:$0xff] %v7706_v37   ;;  %17670 = vmatprep.mubr.bf16.mxu1 %v7706_v37 }
 0x2d2   : > { %v7685_v45 = vmul.f32 %v7636_v49, %v7397_v21  ;;  %17726 = vmatprep.mubr.bf16.mxu0 %v8660_v47  ;;  %v7395_v11 = vmax.f32 %v7347_v25, 0.0  ;;  %v8674_v41 = vshll.u32 %v18540_v18, 16  ;;  %v8673_v33 = vrot.slane %v8671_v54, 3  ;;  %v18569_v2 = vld [vmem:[%s22914_s4 + $0xe8] sm:$0xff]   ;;  %v18564_v54 = vld [vmem:[#allocation2 + $0x1c] sm:$0xff]  }
 0x2d3   : > { %17671 = vmatmul.mubr.bf16.gmra.mxu1 %v7707_v19  ;;  %v8668_v9 = vor.u32 %v8667_v38, %v8664_v46  ;;  %v8680_v5 = vshrl.u32 %v18543_v4, 16  ;;  %v8683_v48 = vshll.u32 %v18543_v4, 16  ;;  %v7682_v36 = vmul.f32 %v7621_v8, %v7394_v13  ;;  %v18562_v13 = vld [vmem:[%s22914_s4 + $0xf0] sm:$0xff]   ;;  %v18556_v49 = vld [vmem:[#allocation2 + $0x24] sm:$0xff]  }
 0x2d4   : > { %v8676_v43 = vrot.slane %v8674_v41, 4  ;;  %v7683_v28 = vmul.f32 %v7626_v17, %v7395_v11  ;;  %v7709_v62 = vpack.c.bf16 %v7685_v45, %v7684_v26  ;;  %v8689_v10 = vshrl.u32 %v18545_v34, 16  ;;  %v18560_v19 = vld [vmem:[#allocation2 + $0x14] sm:$0xff]   ;;  %v18558_v38 = vld [vmem:[#allocation2 + $0x2c] sm:$0xff]   ;;  %v18566_v45 = vld [vmem:[#allocation2 + $0x24] sm:$0xff]  }
 0x2d5   : > { %v8669_v24 = vsel %vm1137_vm0, %v8659_v12, %v8668_v9  ;;  %v8682_v40 = vrot.slane %v8680_v5, 3  ;;  %v8685_v6 = vrot.slane %v8683_v48, 4  ;;  %v8692_v14 = vshll.u32 %v18545_v34, 16  ;;  %v18583_v11 = vld [vmem:[%s22914_s4 + $0xd8] sm:$0xff]   ;;  %v18590_v34 = vld [vmem:[%s22914_s4 + $0xd0] sm:$0xff]  }
 0x2d6   : > { %v8677_v53 = vor.u32 %v8676_v43, %v8673_v33  ;;  %v7708_v39 = vpack.c.bf16 %v7683_v28, %v7682_v36  ;;  %16438 = vst [vmem:[#allocation2 + $0xd0] sm:$0xff] %v7709_v62   ;;  %v8691_v27 = vrot.slane %v8689_v10, 3  ;;  %v9983_v50 = vshll.u32 %v18559_v29, 16  ;;  %v18563_v5 = vld [vmem:[#allocation2 + $0x34] sm:$0xff]   ;;  %v18565_v36 = vld [vmem:[#allocation2 + $0x3c] sm:$0xff]  }
 0x2d7   : > { %v18552_v44 = vld [vmem:[#allocation2 + $0xc0] sm:$0xff]   ;;  %v8694_v0 = vrot.slane %v8692_v14, 4  ;;  %v8686_v3 = vor.u32 %v8685_v6, %v8682_v40  ;;  %v9981_v37 = vshrl.u32 %v18559_v29, 16  ;;  %v9988_v47 = vshll.u32 %v18560_v19, 16  ;;  %v21296_v29 = vld [vmem:[%s22914_s4 + $0x1b8] sm:$0xff]  }
 0x2d8   : > { %v8678_v57 = vsel %vm1137_vm0, %v8668_v9, %v8677_v53  ;;  %16437 = vst [vmem:[#allocation2 + $0xc8] sm:$0xff] %v7708_v39   ;;  %17674 = vmatprep.mubr.bf16.mxu1 %v7708_v39  ;;  %v18548_v31 = vld [vmem:[#allocation2 + $0xb8] sm:$0xff]   ;;  %v8707_v61 = vshrl.u32 %v18552_v44, 16  ;;  %v8710_v15 = vshll.u32 %v18552_v44, 16  ;;  %v9985_v42 = vrot.slane %v9983_v50, 1  ;;  %v18597_v39 = vld [vmem:[%s22914_s4 + $0xc8] sm:$0xff]  }
 0x2d9   : > { %17727 = vmatmul.mubr.bf16.gmra.mxu0 %v8669_v24  ;;  %v8698_v8 = vshrl.u32 %v18548_v31, 16  ;;  %v8701_v17 = vshll.u32 %v18548_v31, 16  ;;  %v8695_v30 = vor.u32 %v8694_v0, %v8691_v27  ;;  %v8687_v32 = vsel %vm1137_vm0, %v8677_v53, %v8686_v3  ;;  %v18571_v53 = vld [vmem:[#allocation2 + $0x34] sm:$0xff]   ;;  %v18567_v27 = vld [vmem:[#allocation2 + $0x44] sm:$0xff]  }
 0x2da   : > { %17730 = vmatprep.mubr.bf16.mxu0 %v8678_v57  ;;  %v8709_v1 = vrot.slane %v8707_v61, 3  ;;  %v8712_v18 = vrot.slane %v8710_v15, 4  ;;  %v9986_v4 = vor.u32 %v9985_v42, %v9981_v37  ;;  %v9990_v26 = vrot.slane %v9988_v47, 1  ;;  %v18605_v31 = vld [vmem:[%s22914_s4 + $0xc0] sm:$0xff]   ;;  %v18609_v61 = vld [vmem:[%s22914_s4 + $0x168] sm:$0xff]   ;;  %v18616_v50 = vld [vmem:[%s22914_s4 + $0x158] sm:$0xff]  }
 0x2db   : > { %17675 = vmatmul.mubr.bf16.gmra.mxu1 %v7709_v62  ;;  %v8700_v35 = vrot.slane %v8698_v8, 3  ;;  %v8703_v55 = vrot.slane %v8701_v17, 4  ;;  %v8696_v52 = vsel %vm1137_vm0, %v8686_v3, %v8695_v30  ;;  %v9996_v9 = vshll.u32 %v18564_v54, 16  ;;  %v18568_v62 = vld [vmem:[#allocation2 + $0x2c] sm:$0xff]  }
 0x2dc   : > { %17758 = vmatprep.mubr.bf16.mxu1 %v18547_v58  ;;  %v8713_v12 = vor.u32 %v8712_v18, %v8709_v1  ;;  %v9991_v33 = vsel %vm2618_vm1, %v9986_v4, %v9990_v26  ;;  %v10004_v48 = vshll.u32 %v18566_v45, 16  ;;  %v9992_v43 = vshrl.u32 %v18560_v19, 16  ;;  %v18606_v58 = vld [vmem:[%s22914_s4 + $0x170] sm:$0xff]   ;;  %v18623_v4 = vld [vmem:[%s22914_s4 + $0x148] sm:$0xff]  }
 0x2dd   : > { %v8704_v7 = vor.u32 %v8703_v55, %v8700_v35  ;;  %v9998_v28 = vrot.slane %v9996_v9, 1  ;;  %v10000_v40 = vshrl.u32 %v18564_v54, 16  ;;  %v10012_v14 = vshll.u32 %v18568_v62, 16  ;;  %v18570_v8 = vld [vmem:[#allocation2 + $0x4c] sm:$0xff]   ;;  %v18575_v55 = vld [vmem:[#allocation2 + $0x44] sm:$0xff]   ;;  %v18580_v19 = vld [vmem:[#allocation2 + $0x54] sm:$0xff]  }
 0x2de   : > { %v9994_v24 = vor.u32 %v9992_v43, %v9990_v26  ;;  %v10006_v10 = vrot.slane %v10004_v48, 1  ;;  %v10020_v0 = vshll.u32 %v18571_v53, 16  ;;  %v10008_v3 = vshrl.u32 %v18566_v45, 16  ;;  %v18582_v54 = vld [vmem:[#allocation2 + $0x5c] sm:$0xff]   ;;  %v18585_v45 = vld [vmem:[#allocation2 + $0x64] sm:$0xff]   ;;  %v18581_v43 = vld [vmem:[#allocation2 + $0x74] sm:$0xff]  }
 0x2df   : > { %v18555_v56 = vld [vmem:[#allocation2 + $0xc8] ss:$0 sps:$4 sm:$0xff]   ;;  %v8705_v22 = vsel %vm1137_vm0, %v8695_v30, %v8704_v7  ;;  %v8714_v25 = vsel %vm1137_vm0, %v8704_v7, %v8713_v12  ;;  %v10002_v6 = vor.u32 %v10000_v40, %v9998_v28  ;;  %v10014_v17 = vrot.slane %v10012_v14, 1  ;;  %v18573_v30 = vld [vmem:[#allocation2 + $0x3c] sm:$0xff]   ;;  %v18587_v40 = vld [vmem:[#allocation2 + $0x6c] sm:$0xff]  }
 0x2e0   : > { %v8716_v16 = vshrl.u32 %v18555_v56, 16  ;;  %v8719_v20 = vshll.u32 %v18555_v56, 16  ;;  %v9999_v57 = vsel %vm2618_vm1, %v9994_v24, %v9998_v28  ;;  %v10010_v15 = vor.u32 %v10008_v3, %v10006_v10  ;;  %v18613_v56 = vld [vmem:[%s22914_s4 + $0x160] sm:$0xff]  }
 0x2e1   : > { %17731 = vmatmul.mubr.bf16.gmra.mxu0 %v8687_v32  ;;  %v10007_v44 = vsel %vm2618_vm1, %v10002_v6, %v10006_v10  ;;  %v10016_v32 = vshrl.u32 %v18568_v62, 16  ;;  %v10022_v35 = vrot.slane %v10020_v0, 1  ;;  %v10036_v1 = vshll.u32 %v18575_v55, 16  ;;  %v18574_v7 = vld [vmem:[#allocation2 + $0x5c] sm:$0xff]   ;;  %v18589_v6 = vld [vmem:[#allocation2 + $0x74] sm:$0xff]   ;;  %v18588_v0 = vld [vmem:[#allocation2 + $0x8c] sm:$0xff]  }
 0x2e2   : > { %17734 = vmatprep.mubr.bf16.mxu0 %v8696_v52  ;;  %v8718_v21 = vrot.slane %v8716_v16, 3  ;;  %v8721_v23 = vrot.slane %v8719_v20, 4  ;;  %v10028_v52 = vshll.u32 %v18573_v30, 16  ;;  %v10024_v18 = vshrl.u32 %v18571_v53, 16  ;;  %v18578_v20 = vld [vmem:[#allocation2 + $0x4c] sm:$0xff]   ;;  %v18584_v62 = vld [vmem:[#allocation2 + $0x7c] sm:$0xff]  }
 0x2e3   : > { %17759 = vmatmul.mubr.bf16.vlgmr.msra.gmra.mxu1 %v18549_v59  ;;  %v10040_v47 = vshrl.u32 %v18575_v55, 16  ;;  %v10056_v28 = vshrl.u32 %v18580_v19, 16  ;;  %v10064_v53 = vshrl.u32 %v18582_v54, 16  ;;  %v10072_v3 = vshrl.u32 %v18585_v45, 16 }
 0x2e4   : > { %17762 = vmatprep.mubr.bf16.mxu1 %v18553_v51  ;;  %17871 = vmatpush3.bf16.msra.mxu1 %v21082_v63  ;;  %v18576_v63 = vld [vmem:[%s22914_s4 + $0xe0] sm:$0xff]   ;;  %v8722_v46 = vor.u32 %v8721_v23, %v8718_v21  ;;  %v18572_v51 = vld [vmem:[#allocation2 + $0x54] sm:$0xff]   ;;  %v10030_v16 = vrot.slane %v10028_v52, 1  ;;  %v10044_v23 = vshll.u32 %v18578_v20, 16 }
 0x2e5   : > { %17872 = vmatprep.subr.bf16.mxu1 %v18562_v13 }
 0x2e6   : > { %v8723_v41 = vsel %vm1137_vm0, %v8713_v12, %v8722_v46  ;;  %v10026_v12 = vor.u32 %v10024_v18, %v10022_v35  ;;  %v18579_v46 = vld [vmem:[#allocation2 + $0x6c] sm:$0xff]  }
 0x2e8   : > { %17873 = vmatpush3.bf16.msra.mxu1 %v18562_v13  ;;  %v10015_v13 = vsel %vm2618_vm1, %v10010_v15, %v10014_v17  ;;  %v10031_v37 = vsel %vm2618_vm1, %v10026_v12, %v10030_v16  ;;  %v18594_v15 = vld [vmem:[#allocation2 + $0x84] sm:$0xff]   ;;  %v18599_v12 = vld [vmem:[#allocation2 + $0x94] sm:$0xff]  }
 0x2e9   : > { %17735 = vmatmul.mubr.bf16.gmra.mxu0 %v8705_v22  ;;  %17874 = vmatprep.subr.bf16.mxu1 %v18569_v2  ;;  %v10038_v22 = vrot.slane %v10036_v1, 1  ;;  %v18593_v1 = vld [vmem:[#allocation2 + $0x9c] sm:$0xff]  }
 0x2ea   : > { %17738 = vmatprep.mubr.bf16.mxu0 %v8714_v25  ;;  %v18620_v25 = vld [vmem:[%s22914_s4 + $0x150] sm:$0xff]  }
 0x2eb   : > { %17763 = vmatmul.mubr.bf16.gmra.mxu1 %v18556_v49  ;;  %v10052_v49 = vshll.u32 %v18580_v19, 16  ;;  %v10042_v26 = vor.u32 %v10040_v47, %v10038_v22  ;;  %v18612_v47 = vld [vmem:[#allocation2 + $0x1c] sm:$0xff]  }
 0x2ec   : > { %17766 = vmatprep.mubr.bf16.mxu1 %v18558_v38  ;;  %17875 = vmatpush3.bf16.msra.mxu1 %v18569_v2  ;;  %v10032_v2 = vshrl.u32 %v18573_v30, 16  ;;  %v10046_v38 = vrot.slane %v10044_v23, 1  ;;  %v18592_v30 = vld [vmem:[#allocation2 + $0x7c] sm:$0xff]   ;;  %v18595_v23 = vld [vmem:[#allocation2 + $0xa4] sm:$0xff]  }
 0x2ed   : > { %17876 = vmatprep.subr.bf16.mxu1 %v18576_v63 }
 0x2ee   : > { %v10034_v21 = vor.u32 %v10032_v2, %v10030_v16  ;;  %v10047_v48 = vsel %vm2618_vm1, %v10042_v26, %v10046_v38 }
 0x2f0   : > { %17877 = vmatpush3.bf16.msra.mxu1 %v18576_v63  ;;  %v10039_v42 = vsel %vm2618_vm1, %v10034_v21, %v10038_v22  ;;  %v18577_v63 = vld [vmem:[#allocation2 + $0x64] sm:$0xff]  }
 0x2f1   : > { %17739 = vmatmul.mubr.bf16.gmra.mxu0 %v8723_v41  ;;  %17878 = vmatprep.subr.bf16.mxu1 %v18583_v11  ;;  %v10054_v41 = vrot.slane %v10052_v49, 1  ;;  %v18611_v49 = vld [vmem:[#allocation2 + $0x14] sm:$0xf8]  }
 0x2f2   : > { %17822 = vmatprep.mubr.bf16.mxu0 %v9991_v33  ;;  %v10060_v33 = vshll.u32 %v18582_v54, 16 }
 0x2f3   : > { %17767 = vmatmul.mubr.bf16.gmra.mxu1 %v18563_v5  ;;  %v18627_v5 = vld [vmem:[%s22914_s4 + $0x140] sm:$0xff]   ;;  %v10058_v10 = vor.u32 %v10056_v28, %v10054_v41  ;;  %v10120_v28 = vshrl.u32 %v18599_v12, 16 }
 0x2f4   : > { %17770 = vmatprep.mubr.bf16.mxu1 %v18565_v36  ;;  %17879 = vmatpush3.bf16.msra.mxu1 %v18583_v11  ;;  %v10048_v11 = vshrl.u32 %v18578_v20, 16  ;;  %v10068_v36 = vshll.u32 %v18585_v45, 16  ;;  %v10062_v24 = vrot.slane %v10060_v33, 1  ;;  %v10096_v20 = vshrl.u32 %v18592_v30, 16 }
 0x2f5   : > { %17880 = vmatprep.subr.bf16.mxu1 %v18590_v34  ;;  %v10818_v33 = vshll.u32 %v18612_v47, 16 }
 0x2f6   : > { %v10050_v9 = vor.u32 %v10048_v11, %v10046_v38  ;;  %v10066_v14 = vor.u32 %v10064_v53, %v10062_v24  ;;  %v10807_v11 = vshrl.u32 %v18611_v49, 16  ;;  %v18608_v53 = vld [vmem:[#allocation2 + $0xac] sm:$0xff]  }
 0x2f8   : > { %17881 = vmatpush3.bf16.msra.mxu1 %v18590_v34  ;;  %v10055_v34 = vsel %vm2618_vm1, %v10050_v9, %v10054_v41  ;;  %v10810_v41 = vshll.u32 %v18611_v49, 16  ;;  %v10815_v9 = vshrl.u32 %v18612_v47, 16 }
 0x2f9   : > { %17823 = vmatmul.mubr.bf16.vlgmr.msra.gmra.mxu0 %v9999_v57  ;;  %17882 = vmatprep.subr.bf16.mxu1 %v18597_v39  ;;  %v10063_v57 = vsel %vm2618_vm1, %v10058_v10, %v10062_v24  ;;  %v18603_v10 = vld [vmem:[#allocation2 + $0xbc] sm:$0xff]  }
 0x2fa   : > { %17826 = vmatprep.mubr.bf16.mxu0 %v10007_v44  ;;  %17935 = vmatpush3.bf16.msra.mxu0 %v21202_v60  ;;  %v10018_v60 = vor.u32 %v10016_v32, %v10014_v17  ;;  %v18586_v44 = vld [vmem:[#allocation2 + $0x84] sm:$0xff]   ;;  %v10080_v32 = vshrl.u32 %v18587_v40, 16 }
 0x2fb   : > { %17771 = vmatmul.mubr.bf16.gmra.mxu1 %v18567_v27  ;;  %17936 = vmatprep.subr.bf16.mxu0 %v18606_v58 }
 0x2fc   : > { %17774 = vmatprep.mubr.bf16.mxu1 %v18570_v8  ;;  %17883 = vmatpush3.bf16.msra.mxu1 %v18597_v39  ;;  %v10023_v59 = vsel %vm2618_vm1, %v10018_v60, %v10022_v35  ;;  %v10070_v39 = vrot.slane %v10068_v36, 1  ;;  %v21325_v8 = vld [vmem:[%s22914_s4 + $0x1f8] sm:$0xff]   ;;  %v10092_v60 = vshll.u32 %v18592_v30, 16 }
 0x2fd   : > { %17884 = vmatprep.subr.bf16.mxu1 %v18605_v31  ;;  %v18600_v36 = vld [vmem:[#allocation2 + $0xb4] sm:$0xff]  }
 0x2fe   : > { %17937 = vmatpush3.bf16.msra.mxu0 %v18606_v58  ;;  %v10076_v58 = vshll.u32 %v18587_v40, 16  ;;  %v10071_v27 = vsel %vm2618_vm1, %v10066_v14, %v10070_v39  ;;  %v10094_v18 = vrot.slane %v10092_v60, 1  ;;  %v18619_v40 = vld [vmem:[#allocation2 + $0x2c] sm:$0xff]   ;;  %v10817_v14 = vrot.slane %v10815_v9, 3  ;;  %v18622_v60 = vld [vmem:[#allocation2 + $0x34] sm:$0xff]  }
 0x2ff   : > { %17938 = vmatprep.subr.bf16.mxu0 %v18609_v61 }
 0x300   : > { %17885 = vmatpush3.bf16.msra.mxu1 %v18605_v31  ;;  %v10084_v31 = vshll.u32 %v18589_v6, 16  ;;  %v10078_v17 = vrot.slane %v10076_v58, 1  ;;  %v10098_v19 = vor.u32 %v10096_v20, %v10094_v18  ;;  %v10820_v58 = vrot.slane %v10818_v33, 4 }
 0x301   : > { %17827 = vmatmul.mubr.bf16.gmra.mxu0 %v10015_v13  ;;  %17998 = vmatprep.subr.bf16.mxu1 %v21296_v29  ;;  %v18591_v13 = vld [vmem:[#allocation2 + $0x94] sm:$0xff]  }
 0x302   : > { %17830 = vmatprep.mubr.bf16.mxu0 %v10023_v59  ;;  %17939 = vmatpush3.bf16.msra.mxu0 %v18609_v61  ;;  %v10074_v61 = vor.u32 %v10072_v3, %v10070_v39  ;;  %v10086_v35 = vrot.slane %v10084_v31, 1  ;;  %v10082_v55 = vor.u32 %v10080_v32, %v10078_v17  ;;  %v10100_v59 = vshll.u32 %v18594_v15, 16 }
 0x303   : > { %17775 = vmatmul.mubr.bf16.gmra.mxu1 %v18572_v51  ;;  %17940 = vmatprep.subr.bf16.mxu0 %v18613_v56  ;;  %v10088_v51 = vshrl.u32 %v18589_v6, 16  ;;  %v10809_v39 = vrot.slane %v10807_v11, 3  ;;  %v10812_v6 = vrot.slane %v10810_v41, 4  ;;  %v10140_v3 = vshll.u32 %v18608_v53, 16 }
 0x304   : > { %17778 = vmatprep.mubr.bf16.mxu1 %v18574_v7  ;;  %v10079_v52 = vsel %vm2618_vm1, %v10074_v61, %v10078_v17  ;;  %v18596_v7 = vld [vmem:[#allocation2 + $0x8c] sm:$0xff]   ;;  %v10833_v32 = vshrl.u32 %v18619_v40, 16 }
 0x305   : > { %v10090_v16 = vor.u32 %v10088_v51, %v10086_v35  ;;  %v10108_v2 = vshll.u32 %v18596_v7, 16  ;;  %v10112_v54 = vshrl.u32 %v18596_v7, 16  ;;  %v10813_v61 = vor.u32 %v10812_v6, %v10809_v39  ;;  %v18624_v51 = vld [vmem:[#allocation2 + $0x3c] sm:$0xff]  }
 0x306   : > { %17941 = vmatpush3.bf16.msra.mxu0 %v18613_v56  ;;  %v10087_v56 = vsel %vm2618_vm1, %v10082_v55, %v10086_v35  ;;  %v10836_v35 = vshll.u32 %v18619_v40, 16  ;;  %v10851_v47 = vshrl.u32 %v18624_v51, 16 }
 0x307   : > { %17942 = vmatprep.subr.bf16.mxu0 %v18616_v50  ;;  %v10095_v22 = vsel %vm2618_vm1, %v10090_v16, %v10094_v18  ;;  %v10142_v18 = vrot.slane %v10140_v3, 1 }
 0x309   : > { %17831 = vmatmul.mubr.bf16.gmra.mxu0 %v10031_v37  ;;  %v18601_v37 = vld [vmem:[#allocation2 + $0x9c] sm:$0xff]  }
 0x30a   : > { %17834 = vmatprep.mubr.bf16.mxu0 %v10039_v42  ;;  %17943 = vmatpush3.bf16.msra.mxu0 %v18616_v50  ;;  %v10102_v50 = vrot.slane %v10100_v59, 1  ;;  %v10104_v42 = vshrl.u32 %v18594_v15, 16  ;;  %v10124_v45 = vshll.u32 %v18601_v37, 16  ;;  %v10821_v15 = vor.u32 %v10820_v58, %v10817_v14  ;;  %v18614_v59 = vld [vmem:[#allocation2 + $0xbc] sm:$0xff]   ;;  %v18635_v58 = vld [vmem:[%s22914_s4 + $0x1a8] sm:$0xff]  }
 0x30b   : > { %17779 = vmatmul.mubr.bf16.gmra.mxu1 %v18577_v63  ;;  %17944 = vmatprep.subr.bf16.mxu0 %v18620_v25  ;;  %v18598_v63 = vld [vmem:[#allocation2 + $0xac] sm:$0xff]  }
 0x30c   : > { %17782 = vmatprep.mubr.bf16.mxu1 %v18579_v46  ;;  %v10103_v21 = vsel %vm2618_vm1, %v10098_v19, %v10102_v50  ;;  %v10110_v46 = vrot.slane %v10108_v2, 1  ;;  %v10106_v38 = vor.u32 %v10104_v42, %v10102_v50  ;;  %v10822_v20 = vsel %vm1137_vm0, %v10813_v61, %v10821_v15 }
 0x30d   : > { %v10835_v50 = vrot.slane %v10833_v32, 3  ;;  %v10144_v2 = vshrl.u32 %v18608_v53, 16  ;;  %v10845_v42 = vshll.u32 %v18622_v60, 16  ;;  %v10160_v53 = vshrl.u32 %v18614_v59, 16 }
 0x30e   : > { %17945 = vmatpush3.bf16.msra.mxu0 %v18620_v25  ;;  %v10116_v25 = vshll.u32 %v18599_v12, 16  ;;  %v10838_v12 = vrot.slane %v10836_v35, 4 }
 0x30f   : > { %17946 = vmatprep.subr.bf16.mxu0 %v18623_v4 }
 0x310   : > { %v10118_v26 = vrot.slane %v10116_v25, 1  ;;  %v10839_v49 = vor.u32 %v10838_v12, %v10835_v50 }
 0x311   : > { %17835 = vmatmul.mubr.bf16.gmra.mxu0 %v10047_v48  ;;  %v10111_v48 = vsel %vm2618_vm1, %v10106_v38, %v10110_v46  ;;  %v21339_v38 = vld [vmem:[#allocation2 + $0x18] sm:$0xff]  }
 0x312   : > { %17838 = vmatprep.mubr.bf16.mxu0 %v10055_v34  ;;  %17947 = vmatpush3.bf16.msra.mxu0 %v18623_v4  ;;  %v18604_v4 = vld [vmem:[#allocation2 + $0xa4] sm:$0xff]   ;;  %v11663_v14 = vshll.u32 %v21339_v38, 16 }
 0x313   : > { %17783 = vmatmul.mubr.bf16.gmra.mxu1 %v18581_v43  ;;  %17948 = vmatprep.subr.bf16.mxu0 %v18627_v5  ;;  %v18615_v34 = vld [vmem:[#allocation2 + $0x24] sm:$0xff]   ;;  %v10132_v24 = vshll.u32 %v18604_v4, 16 }
 0x314   : > { %17786 = vmatprep.mubr.bf16.mxu1 %v18584_v62  ;;  %v10126_v62 = vrot.slane %v10124_v45, 1  ;;  %v10824_v17 = vshrl.u32 %v18615_v34, 16  ;;  %v10827_v30 = vshll.u32 %v18615_v34, 16  ;;  %v10847_v34 = vrot.slane %v10845_v42, 4 }
 0x316   : > { %17949 = vmatpush3.bf16.msra.mxu0 %v18627_v5  ;;  %v10114_v5 = vor.u32 %v10112_v54, %v10110_v46  ;;  %v10826_v7 = vrot.slane %v10824_v17, 3  ;;  %v10829_v16 = vrot.slane %v10827_v30, 4  ;;  %v10854_v46 = vshll.u32 %v18624_v51, 16  ;;  %v21364_v17 = vld [vmem:[#allocation2 + $0x28] sm:$0xff]  }
 0x317   : > { %18062 = vmatprep.subr.bf16.mxu0 %v21325_v8 }
 0x318   : > { %v10119_v43 = vsel %vm2618_vm1, %v10114_v5, %v10118_v26  ;;  %v10830_v25 = vor.u32 %v10829_v16, %v10826_v7  ;;  %v18636_v16 = vld [vmem:[#allocation2 + $0x5c] sm:$0xff]  }
 0x319   : > { %17839 = vmatmul.mubr.bf16.gmra.mxu0 %v10063_v57  ;;  %v10122_v57 = vor.u32 %v10120_v28, %v10118_v26  ;;  %v18629_v26 = vld [vmem:[#allocation2 + $0x44] sm:$0xff]  }
 0x31a   : > { %17842 = vmatprep.mubr.bf16.mxu0 %v10071_v27  ;;  %v10128_v27 = vshrl.u32 %v18601_v37, 16  ;;  %v10842_v37 = vshrl.u32 %v18622_v60, 16  ;;  %v10831_v5 = vsel %vm1137_vm0, %v10821_v15, %v10830_v25  ;;  %v18642_v60 = vld [vmem:[%s22914_s4 + $0x1a0] sm:$0xff]  }
 0x31b   : > { %17787 = vmatmul.mubr.bf16.gmra.mxu1 %v18586_v44  ;;  %v10134_v44 = vrot.slane %v10132_v24, 1  ;;  %v10127_v55 = vsel %vm2618_vm1, %v10122_v57, %v10126_v62  ;;  %v10856_v24 = vrot.slane %v10854_v46, 4 }
 0x31c   : > { %17790 = vmatprep.mubr.bf16.mxu1 %v18588_v0  ;;  %v18610_v0 = vld [vmem:[#allocation2 + $0xb4] sm:$0xff]   ;;  %v10130_v31 = vor.u32 %v10128_v27, %v10126_v62  ;;  %v10853_v62 = vrot.slane %v10851_v47, 3  ;;  %v21360_v27 = vld [vmem:[#allocation2 + $0x20] sm:$0xff]  }
 0x31d   : > { %v10152_v41 = vshrl.u32 %v18610_v0, 16 }
 0x321   : > { %17843 = vmatmul.mubr.bf16.gmra.mxu0 %v10079_v52  ;;  %v10135_v52 = vsel %vm2618_vm1, %v10130_v31, %v10134_v44 }
 0x322   : > { %17846 = vmatprep.mubr.bf16.mxu0 %v10087_v56  ;;  %v18607_v56 = vld [vmem:[#allocation2 + $0xc4] sm:$0xff]  }
 0x323   : > { %17791 = vmatmul.mubr.bf16.gmra.mxu1 %v18591_v13  ;;  %v10148_v13 = vshll.u32 %v18610_v0, 16  ;;  %v10863_v0 = vshll.u32 %v18629_v26, 16 }
 0x324   : > { %17794 = vmatprep.mubr.bf16.mxu1 %v18593_v1  ;;  %v10136_v1 = vshrl.u32 %v18604_v4, 16  ;;  %v18628_v4 = vld [vmem:[%s22914_s4 + $0x1b0] sm:$0xff]  }
 0x325   : > { %v10865_v7 = vrot.slane %v10863_v0, 4 }
 0x326   : > { %v10138_v19 = vor.u32 %v10136_v1, %v10134_v44  ;;  %v10860_v44 = vshrl.u32 %v18629_v26, 16  ;;  %v11668_v1 = vshll.u32 %v21360_v27, 16  ;;  %v10887_v26 = vshrl.u32 %v18636_v16, 16 }
 0x328   : > { %v10143_v54 = vsel %vm2618_vm1, %v10138_v19, %v10142_v18  ;;  %v11670_v46 = vrot.slane %v11668_v1, 1  ;;  %v10889_v0 = vrot.slane %v10887_v26, 3 }
 0x329   : > { %17847 = vmatmul.mubr.bf16.gmra.mxu0 %v10095_v22  ;;  %v10150_v22 = vrot.slane %v10148_v13, 1  ;;  %v11661_v13 = vshrl.u32 %v21339_v38, 16 }
 0x32a   : > { %17850 = vmatprep.mubr.bf16.mxu0 %v10103_v21  ;;  %v10156_v21 = vshll.u32 %v18614_v59, 16  ;;  %v11665_v59 = vrot.slane %v11663_v14, 1  ;;  %v11672_v14 = vshrl.u32 %v21360_v27, 16 }
 0x32b   : > { %17795 = vmatmul.mubr.bf16.gmra.mxu1 %v18595_v23  ;;  %v21337_v23 = vld [vmem:[#allocation2 + $0xc4] sm:$0xff]   ;;  %v10154_v40 = vor.u32 %v10152_v41, %v10150_v22 }
 0x32c   : > { %17798 = vmatprep.mubr.bf16.mxu1 %v18598_v63  ;;  %v10146_v63 = vor.u32 %v10144_v2, %v10142_v18  ;;  %v10164_v9 = vshll.u32 %v21337_v23, 16  ;;  %v10158_v33 = vrot.slane %v10156_v21, 1  ;;  %v10168_v32 = vshrl.u32 %v21337_v23, 16  ;;  %v21381_v21 = vld [vmem:[#allocation2 + $0x30] sm:$0xff]  }
 0x32d   : > { %v10862_v18 = vrot.slane %v10860_v44, 3  ;;  %v11666_v23 = vor.u32 %v11665_v59, %v11661_v13 }
 0x32e   : > { %v10151_v45 = vsel %vm2618_vm1, %v10146_v63, %v10150_v22  ;;  %v10166_v39 = vrot.slane %v10164_v9, 1  ;;  %v10162_v31 = vor.u32 %v10160_v53, %v10158_v33  ;;  %v10159_v15 = vsel %vm2618_vm1, %v10154_v40, %v10158_v33  ;;  %v18649_v63 = vld [vmem:[%s22914_s4 + $0x198] sm:$0xff]  }
 0x32f   : > { %v11676_v22 = vshll.u32 %v21364_v17, 16  ;;  %v10866_v47 = vor.u32 %v10865_v7, %v10862_v18  ;;  %v11684_v33 = vshll.u32 %v21381_v21, 16  ;;  %v11680_v53 = vshrl.u32 %v21364_v17, 16  ;;  %v21427_v18 = vld [vmem:[#allocation2 + $0x48] sm:$0xff]  }
 0x330   : > { %v10170_v2 = vor.u32 %v10168_v32, %v10166_v39  ;;  %v11674_v17 = vor.u32 %v11672_v14, %v11670_v46 }
 0x331   : > { %17851 = vmatmul.mubr.bf16.gmra.mxu0 %v10111_v48  ;;  %v10844_v48 = vrot.slane %v10842_v37, 3  ;;  %v11678_v9 = vrot.slane %v11676_v22, 1 }
 0x332   : > { %17854 = vmatprep.mubr.bf16.mxu0 %v10119_v43  ;;  %v18631_v43 = vld [vmem:[#allocation2 + $0x4c] sm:$0xff]  }
 0x333   : > { %17799 = vmatmul.mubr.bf16.gmra.mxu1 %v18600_v36  ;;  %v10840_v36 = vsel %vm1137_vm0, %v10830_v25, %v10839_v49  ;;  %v10848_v57 = vor.u32 %v10847_v34, %v10844_v48  ;;  %v10869_v30 = vshrl.u32 %v18631_v43, 16  ;;  %v10872_v61 = vshll.u32 %v18631_v43, 16 }
 0x334   : > { %17802 = vmatprep.mubr.bf16.mxu1 %v18603_v10  ;;  %v18621_v10 = vld [vmem:[#allocation2 + $0xcc] ss:$0 sps:$4 sm:$0x11]  }
 0x335   : > { %v10172_v35 = vshll.u32 %v18621_v10, 16  ;;  %v10849_v51 = vsel %vm1137_vm0, %v10839_v49, %v10848_v57  ;;  %v10871_v12 = vrot.slane %v10869_v30, 3  ;;  %v10874_v19 = vrot.slane %v10872_v61, 4 }
 0x336   : > { %v11682_v30 = vor.u32 %v11680_v53, %v11678_v9  ;;  %v11686_v61 = vrot.slane %v11684_v33, 1 }
 0x337   : > { %v10174_v49 = vrot.slane %v10172_v35, 1 }
 0x339   : > { %17855 = vmatmul.mubr.bf16.gmra.mxu0 %v10127_v55  ;;  %v18633_v55 = vld [vmem:[#allocation2 + $0x54] sm:$0xff]   ;;  %v10175_v41 = vsel %vm2618_vm1, %v10170_v2, %v10174_v49 }
 0x33a   : > { %17858 = vmatprep.mubr.bf16.mxu0 %v10135_v52  ;;  %v10167_v52 = vsel %vm2618_vm1, %v10162_v31, %v10166_v39  ;;  %v10878_v37 = vshrl.u32 %v18633_v55, 16  ;;  %v10881_v42 = vshll.u32 %v18633_v55, 16  ;;  %v18640_v39 = vld [vmem:[#allocation2 + $0x6c] sm:$0xff]   ;;  %v21438_v2 = vld [vmem:[#allocation2 + $0x74] sm:$0xff]  }
 0x33b   : > { %17803 = vmatmul.mubr.bf16.gmra.mxu1 %v18607_v56  ;;  %v18663_v55 = vld [vmem:[%s22914_s4 + $0x188] sm:$0xff]   ;;  %v10905_v13 = vshrl.u32 %v18640_v39, 16  ;;  %v10908_v7 = vshll.u32 %v18640_v39, 16  ;;  %v10917_v39 = vshll.u32 %v21438_v2, 16 }
 0x33c   : > { %17886 = vmatprep.mubr.bf16.mxu1 %v10822_v20  ;;  %v10880_v43 = vrot.slane %v10878_v37, 3 }
 0x33d   : > { %v10907_v26 = vrot.slane %v10905_v13, 3  ;;  %v11712_v13 = vshrl.u32 %v21427_v18, 16 }
 0x341   : > { %17859 = vmatmul.mubr.bf16.gmra.mxu0 %v10143_v54  ;;  %v21346_v11 = vpop.f32.mrf.mxu1  ;;  %v10875_v54 = vor.u32 %v10874_v19, %v10871_v12  ;;  %v11688_v19 = vshrl.u32 %v21381_v21, 16 }
 0x342   : > { %17862 = vmatprep.mubr.bf16.mxu0 %v10151_v45  ;;  %v10890_v45 = vshll.u32 %v18636_v16, 16  ;;  %v18672_v16 = vld [vmem:[%s22914_s4 + $0x1f0] sm:$0xff]  }
 0x343   : > { %17887 = vmatmul.mubr.bf16.vlgmr.msra.gmra.mxu1 %v10831_v5  ;;  %v21351_v28 = vpop.f32.mrf.mxu1  ;;  %v11671_v5 = vsel %vm2618_vm1, %v11666_v23, %v11670_v46 }
 0x344   : > { %17890 = vmatprep.mubr.bf16.mxu1 %v10840_v36  ;;  %17999 = vmatpush3.bf16.msra.mxu1 %v21296_v29  ;;  %v10857_v29 = vor.u32 %v10856_v24, %v10853_v62  ;;  %v10883_v36 = vrot.slane %v10881_v42, 4  ;;  %v18638_v62 = vld [vmem:[#allocation2 + $0x64] sm:$0xff]   ;;  %v18656_v24 = vld [vmem:[%s22914_s4 + $0x190] sm:$0xff]   ;;  %v10892_v31 = vrot.slane %v10890_v45, 4  ;;  %v18645_v45 = vld [vmem:[#allocation2 + $0x7c] sm:$0xff]  }
 0x345   : > { %v21354_v6 = vpop.f32.mrf.mxu1  ;;  %18000 = vmatprep.subr.bf16.mxu1 %v18628_v4  ;;  %v10923_v14 = vshrl.u32 %v18645_v45, 16 }
 0x346   : > { %v10858_v20 = vsel %vm1137_vm0, %v10848_v57, %v10857_v29  ;;  %v10867_v10 = vsel %vm1137_vm0, %v10857_v29, %v10866_v47  ;;  %v21412_v29 = vld [vmem:[#allocation2 + $0x40] sm:$0xff]   ;;  %v10884_v32 = vor.u32 %v10883_v36, %v10880_v43  ;;  %v21425_v1 = vor.u32 %v10892_v31, %v10889_v0 }
 0x347   : > { %v21362_v3 = vpop.f32.mrf.mxu1  ;;  %v11700_v49 = vshll.u32 %v21412_v29, 16 }
 0x348   : > { %18001 = vmatpush3.bf16.msra.mxu1 %v18628_v4  ;;  %v21390_v4 = vld [vmem:[#allocation2 + $0x38] sm:$0xff]   ;;  %v10885_v37 = vsel %vm1137_vm0, %v10875_v54, %v10884_v32 }
 0x349   : > { %17863 = vmatmul.mubr.bf16.gmra.mxu0 %v10159_v15  ;;  %v21372_v56 = vpop.f32.mrf.mxu1  ;;  %18002 = vmatprep.subr.bf16.mxu1 %v18635_v58  ;;  %v11692_v35 = vshll.u32 %v21390_v4, 16 }
 0x34a   : > { %17866 = vmatprep.mubr.bf16.mxu0 %v10167_v52  ;;  %v10899_v52 = vshll.u32 %v18638_v62, 16 }
 0x34b   : > { %17891 = vmatmul.mubr.bf16.gmra.mxu1 %v10849_v51  ;;  %v21378_v50 = vpop.f32.mrf.mxu1  ;;  %v11694_v42 = vrot.slane %v11692_v35, 1  ;;  %v11704_v35 = vshrl.u32 %v21412_v29, 16  ;;  %v10919_v29 = vrot.slane %v10917_v39, 4 }
 0x34c   : > { %17894 = vmatprep.mubr.bf16.mxu1 %v10858_v20  ;;  %18003 = vmatpush3.bf16.msra.mxu1 %v18635_v58  ;;  %v10876_v58 = vsel %vm1137_vm0, %v10866_v47, %v10875_v54  ;;  %v11679_v20 = vsel %vm2618_vm1, %v11674_v17, %v11678_v9  ;;  %v10901_v46 = vrot.slane %v10899_v52, 4  ;;  %v10894_v54 = vsel %vm1137_vm0, %v10884_v32, %v21425_v1  ;;  %v21483_v17 = vld [vmem:[#allocation2 + $0x84] sm:$0xff]  }
 0x34d   : > { %v21383_v25 = vpop.f32.mrf.mxu1  ;;  %18004 = vmatprep.subr.bf16.mxu1 %v18642_v60  ;;  %v10910_v9 = vrot.slane %v10908_v7, 4 }
 0x34f   : > { %v21388_v38 = vpop.f32.mrf.mxu1  ;;  %v21479_v31 = vor.u32 %v10910_v9, %v10907_v26  ;;  %v10932_v26 = vshrl.u32 %v21483_v17, 16 }
 0x350   : > { %18005 = vmatpush3.bf16.msra.mxu1 %v18642_v60 }
 0x351   : > { %17867 = vmatmul.mubr.bf16.gmra.mxu0 %v10175_v41  ;;  %v21395_v48 = vpop.f32.mrf.mxu1  ;;  %v17696_v34 = vpop.f32.mrf.mxu0  ;;  %18006 = vmatprep.subr.bf16.mxu1 %v18649_v63 }
 0x352   : > { %17950 = vmatprep.mubr.bf16.mxu0 %v11671_v5  ;;  %v21401_v40 = vadd.f32 %v17696_v34, %v21346_v11  ;;  %v11708_v5 = vshll.u32 %v21427_v18, 16 }
 0x353   : > { %17895 = vmatmul.mubr.bf16.gmra.mxu1 %v10867_v10  ;;  %v21407_v57 = vpop.f32.mrf.mxu1  ;;  %v8830_v44 = vpop.f32.mrf.mxu0  ;;  %v21471_v10 = vld [vmem:[%s22914_s4 + $0x238] sm:$0xff]  }
 0x354   : > { %17898 = vmatprep.mubr.bf16.mxu1 %v10876_v58  ;;  %v21410_v11 = vadd.f32 %v8830_v44, %v21351_v28  ;;  %18007 = vmatpush3.bf16.msra.mxu1 %v18649_v63  ;;  %v10896_v28 = vshrl.u32 %v18638_v62, 16  ;;  %v11696_v63 = vshrl.u32 %v21390_v4, 16  ;;  %v21465_v62 = vld [vmem:[#allocation2 + $0x50] sm:$0xff]   ;;  %v11702_v58 = vrot.slane %v11700_v49, 1 }
 0x355   : > { %v21414_v15 = vpop.f32.mrf.mxu1  ;;  %v17697_v27 = vpop.f32.mrf.mxu0  ;;  %18008 = vmatprep.subr.bf16.mxu1 %v18656_v24  ;;  %v11720_v39 = vshrl.u32 %v21465_v62, 16 }
 0x356   : > { %v21421_v60 = vadd.f32 %v17697_v27, %v21354_v6  ;;  %v11687_v6 = vsel %vm2618_vm1, %v11682_v30, %v11686_v61  ;;  %v10898_v47 = vrot.slane %v10896_v28, 3  ;;  %v11698_v34 = vor.u32 %v11696_v63, %v11694_v42  ;;  %v21481_v30 = vld [vmem:[#allocation2 + $0x58] sm:$0xff]  }
 0x357   : > { %v21423_v59 = vpop.f32.mrf.mxu1  ;;  %v8833_v51 = vpop.f32.mrf.mxu0 }
 0x358   : > { %v21435_v12 = vadd.f32 %v8833_v51, %v21362_v3  ;;  %18009 = vmatpush3.bf16.msra.mxu1 %v18656_v24  ;;  %v18671_v3 = vld [vmem:[%s22914_s4 + $0x180] sm:$0xff]   ;;  %v10914_v24 = vshrl.u32 %v21438_v2, 16  ;;  %v10902_v53 = vor.u32 %v10901_v46, %v10898_v47  ;;  %v11703_v28 = vsel %vm2618_vm1, %v11698_v34, %v11702_v58 }
 0x359   : > { %17951 = vmatmul.mubr.bf16.vlgmr.msra.gmra.mxu0 %v11679_v20  ;;  %v21440_v22 = vpop.f32.mrf.mxu1  ;;  %18010 = vmatprep.subr.bf16.mxu1 %v18663_v55  ;;  %v11716_v51 = vshll.u32 %v21465_v62, 16  ;;  %v10925_v20 = vrot.slane %v10923_v14, 3  ;;  %v11724_v47 = vshll.u32 %v21481_v30, 16  ;;  %v21514_v46 = vld [vmem:[#allocation2 + $0x60] sm:$0xff]   ;;  %v18652_v14 = vld [vmem:[#allocation2 + $0x94] sm:$0xff]  }
 0x35a   : > { %v17700_v23 = vpop.f32.mrf.mxu0  ;;  %17954 = vmatprep.mubr.bf16.mxu0 %v11687_v6  ;;  %18063 = vmatpush3.bf16.msra.mxu0 %v21325_v8  ;;  %v11690_v8 = vor.u32 %v11688_v19, %v11686_v61  ;;  %v10926_v61 = vshll.u32 %v18645_v45, 16  ;;  %v10916_v7 = vrot.slane %v10914_v24, 3  ;;  %v10912_v19 = vsel %vm1137_vm0, %v10902_v53, %v21479_v31 }
 0x35b   : > { %v21449_v21 = vadd.f32 %v17700_v23, %v21372_v56  ;;  %17899 = vmatmul.mubr.bf16.gmra.mxu1 %v10885_v37  ;;  %v21454_v4 = vpop.f32.mrf.mxu1  ;;  %18064 = vmatprep.subr.bf16.mxu0 %v18672_v16  ;;  %v18675_v56 = vld [vmem:[%s22914_s4 + $0x1e8] sm:$0xff]   ;;  %v18682_v23 = vld [vmem:[%s22914_s4 + $0x1d8] sm:$0xff]   ;;  %v11718_v63 = vrot.slane %v11716_v51, 1 }
 0x35c   : > { %v8846_v41 = vpop.f32.mrf.mxu0  ;;  %17902 = vmatprep.mubr.bf16.mxu1 %v10894_v54  ;;  %18011 = vmatpush3.bf16.msra.mxu1 %v18663_v55  ;;  %v11695_v27 = vsel %vm2618_vm1, %v11690_v8, %v11694_v42  ;;  %v11710_v55 = vrot.slane %v11708_v5, 1  ;;  %v10928_v18 = vrot.slane %v10926_v61, 4  ;;  %v11706_v42 = vor.u32 %v11704_v35, %v11702_v58  ;;  %v21525_v8 = vld [vmem:[#allocation2 + $0x68] sm:$0xff]   ;;  %v18654_v35 = vld [vmem:[#allocation2 + $0x9c] sm:$0xff]  }
 0x35d   : > { %v21460_v33 = vadd.f32 %v8846_v41, %v21378_v50  ;;  %v21463_v43 = vpop.f32.mrf.mxu1  ;;  %18012 = vmatprep.subr.bf16.mxu1 %v18671_v3  ;;  %v10920_v54 = vor.u32 %v10919_v29, %v10916_v7  ;;  %v11726_v61 = vrot.slane %v11724_v47, 1  ;;  %v18689_v7 = vld [vmem:[%s22914_s4 + $0x1c8] sm:$0xff]   ;;  %v11740_v29 = vshll.u32 %v21525_v8, 16 }
 0x35e   : > { %v17701_v36 = vpop.f32.mrf.mxu0  ;;  %18065 = vmatpush3.bf16.msra.mxu0 %v18672_v16  ;;  %v18650_v16 = vld [vmem:[#allocation2 + $0x8c] sm:$0xff]   ;;  %v21523_v5 = vor.u32 %v10928_v18, %v10925_v20  ;;  %v10950_v18 = vshrl.u32 %v18652_v14, 16 }
 0x35f   : > { %v21474_v50 = vadd.f32 %v17701_v36, %v21383_v25  ;;  %v21477_v44 = vpop.f32.mrf.mxu1  ;;  %18066 = vmatprep.subr.bf16.mxu0 %v18675_v56  ;;  %v18679_v25 = vld [vmem:[%s22914_s4 + $0x1e0] sm:$0xff]   ;;  %v10941_v41 = vshrl.u32 %v18650_v16, 16  ;;  %v10944_v34 = vshll.u32 %v18650_v16, 16  ;;  %v18686_v36 = vld [vmem:[%s22914_s4 + $0x1d0] sm:$0xff]   ;;  %v11722_v16 = vor.u32 %v11720_v39, %v11718_v63  ;;  %v21574_v39 = vld [vmem:[#allocation2 + $0x78] sm:$0xff]  }
 0x360   : > { %v8849_v0 = vpop.f32.mrf.mxu0  ;;  %18013 = vmatpush3.bf16.msra.mxu1 %v18671_v3  ;;  %v21555_v20 = vld [vmem:[#allocation2 + $0x70] sm:$0xff]  }
 0x361   : > { %v21490_v32 = vadd.f32 %v8849_v0, %v21388_v38  ;;  %17955 = vmatmul.mubr.bf16.gmra.mxu0 %v11695_v27  ;;  %v21494_v52 = vpop.f32.mrf.mxu1  ;;  %18126 = vmatprep.subr.bf16.mxu1 %v21471_v10  ;;  %v10903_v38 = vsel %vm1137_vm0, %v21425_v1, %v10902_v53  ;;  %v11714_v1 = vor.u32 %v11712_v13, %v11710_v55  ;;  %v10934_v27 = vrot.slane %v10932_v26, 3 }
 0x362   : > { %17958 = vmatprep.mubr.bf16.mxu0 %v11703_v28  ;;  %18067 = vmatpush3.bf16.msra.mxu0 %v18675_v56  ;;  %v10943_v28 = vrot.slane %v10941_v41, 3  ;;  %v10930_v13 = vsel %vm1137_vm0, %v10920_v54, %v21523_v5  ;;  %v10962_v26 = vshll.u32 %v18654_v35, 16 }
 0x363   : > { %v17704_v6 = vpop.f32.mrf.mxu0  ;;  %17903 = vmatmul.mubr.bf16.gmra.mxu1 %v10903_v38  ;;  %v21503_v2 = vpop.f32.mrf.mxu1  ;;  %18068 = vmatprep.subr.bf16.mxu0 %v18679_v25  ;;  %v11719_v24 = vsel %vm2618_vm1, %v11714_v1, %v11718_v63  ;;  %v10959_v63 = vshrl.u32 %v18654_v35, 16 }
 0x364   : > { %v21509_v37 = vadd.f32 %v17704_v6, %v21395_v48  ;;  %17906 = vmatprep.mubr.bf16.mxu1 %v10912_v19  ;;  %v10935_v48 = vshll.u32 %v21483_v17, 16  ;;  %v11728_v17 = vshrl.u32 %v21481_v30, 16  ;;  %v10946_v30 = vrot.slane %v10944_v34, 4 }
 0x365   : > { %v8862_v49 = vpop.f32.mrf.mxu0  ;;  %v21511_v3 = vpop.f32.mrf.mxu1 }
 0x366   : > { %v21518_v45 = vadd.f32 %v8862_v49, %v21407_v57  ;;  %18069 = vmatpush3.bf16.msra.mxu0 %v18679_v25  ;;  %v11711_v57 = vsel %vm2618_vm1, %v11706_v42, %v11710_v55  ;;  %v11732_v25 = vshll.u32 %v21514_v46, 16  ;;  %v10937_v62 = vrot.slane %v10935_v48, 4 }
 0x367   : > { %v17705_v9 = vpop.f32.mrf.mxu0  ;;  %v21521_v56 = vpop.f32.mrf.mxu1  ;;  %18070 = vmatprep.subr.bf16.mxu0 %v18682_v23  ;;  %v11730_v38 = vor.u32 %v11728_v17, %v11726_v61  ;;  %v10947_v47 = vor.u32 %v10946_v30, %v10943_v28  ;;  %v11727_v48 = vsel %vm2618_vm1, %v11722_v16, %v11726_v61  ;;  %v18657_v17 = vld [vmem:[#allocation2 + $0xa4] sm:$0xff]   ;;  %v18659_v28 = vld [vmem:[#allocation2 + $0xac] sm:$0xff]  }
 0x368   : > { %v21533_v53 = vadd.f32 %v17705_v9, %v21414_v15  ;;  %v10921_v15 = vsel %vm1137_vm0, %v21479_v31, %v10920_v54  ;;  %v10938_v19 = vor.u32 %v10937_v62, %v10934_v27  ;;  %v11734_v1 = vrot.slane %v11732_v25, 1  ;;  %v18692_v54 = vld [vmem:[%s22914_s4 + $0x1c0] sm:$0xff]  }
 0x369   : > { %17959 = vmatmul.mubr.bf16.gmra.mxu0 %v11711_v57  ;;  %v8865_v58 = vpop.f32.mrf.mxu0  ;;  %v21536_v0 = vpop.f32.mrf.mxu1  ;;  %v11742_v57 = vrot.slane %v11740_v29, 1  ;;  %v11744_v27 = vshrl.u32 %v21525_v8, 16  ;;  %v10964_v62 = vrot.slane %v10962_v26, 4  ;;  %v10971_v29 = vshll.u32 %v18657_v17, 16 }
 0x36a   : > { %17962 = vmatprep.mubr.bf16.mxu0 %v11719_v24  ;;  %v21541_v55 = vadd.f32 %v8865_v58, %v21423_v59  ;;  %18071 = vmatpush3.bf16.msra.mxu0 %v18682_v23  ;;  %v10953_v23 = vshll.u32 %v18652_v14, 16  ;;  %v11735_v41 = vsel %vm2618_vm1, %v11730_v38, %v11734_v1  ;;  %v11748_v24 = vshll.u32 %v21555_v20, 16 }
 0x36b   : > { %17907 = vmatmul.mubr.bf16.gmra.mxu1 %v10921_v15  ;;  %v21547_v51 = vpop.f32.mrf.mxu1  ;;  %18072 = vmatprep.subr.bf16.mxu0 %v18686_v36  ;;  %v10952_v58 = vrot.slane %v10950_v18, 3  ;;  %v10961_v15 = vrot.slane %v10959_v63, 3  ;;  %v10968_v38 = vshrl.u32 %v18657_v17, 16  ;;  %v11752_v26 = vshrl.u32 %v21555_v20, 16 }
 0x36c   : > { %17910 = vmatprep.mubr.bf16.mxu1 %v10930_v13  ;;  %v10955_v61 = vrot.slane %v10953_v23, 4  ;;  %v11746_v13 = vor.u32 %v11744_v27, %v11742_v57  ;;  %v11750_v16 = vrot.slane %v11748_v24, 1  ;;  %v10973_v20 = vrot.slane %v10971_v29, 4  ;;  %v21623_v29 = vld [vmem:[#allocation2 + $0x90] sm:$0xff]  }
 0x36d   : > { %v21552_v31 = vpop.f32.mrf.mxu1  ;;  %v10965_v23 = vor.u32 %v10964_v62, %v10961_v15  ;;  %v18664_v62 = vld [vmem:[#allocation2 + $0xbc] sm:$0xff]  }
 0x36e   : > { %v17708_v59 = vpop.f32.mrf.mxu0  ;;  %18073 = vmatpush3.bf16.msra.mxu0 %v18686_v36  ;;  %v11736_v36 = vshrl.u32 %v21514_v46, 16  ;;  %v10948_v46 = vsel %vm1137_vm0, %v10938_v19, %v10947_v47  ;;  %v10956_v8 = vor.u32 %v10955_v61, %v10952_v58  ;;  %v10970_v58 = vrot.slane %v10968_v38, 3 }
 0x36f   : > { %v21558_v6 = vadd.f32 %v17708_v59, %v21440_v22  ;;  %v21560_v49 = vpop.f32.mrf.mxu1  ;;  %18074 = vmatprep.subr.bf16.mxu0 %v18689_v7  ;;  %v21591_v59 = vld [vmem:[#allocation2 + $0x80] sm:$0xff]  }
 0x370   : > { %v8878_v42 = vpop.f32.mrf.mxu0  ;;  %v10966_v17 = vsel %vm1137_vm0, %v10956_v8, %v10965_v23 }
 0x371   : > { %v21567_v22 = vadd.f32 %v8878_v42, %v21454_v4  ;;  %17963 = vmatmul.mubr.bf16.gmra.mxu0 %v11727_v48  ;;  %v21570_v34 = vpop.f32.mrf.mxu1  ;;  %v10939_v4 = vsel %vm1137_vm0, %v21523_v5, %v10938_v19  ;;  %v11738_v5 = vor.u32 %v11736_v36, %v11734_v1  ;;  %v10980_v42 = vshll.u32 %v18659_v28, 16  ;;  %v21600_v48 = vld [vmem:[#allocation2 + $0x88] sm:$0xff]  }
 0x372   : > { %v17709_v9 = vpop.f32.mrf.mxu0  ;;  %17966 = vmatprep.mubr.bf16.mxu0 %v11735_v41  ;;  %18075 = vmatpush3.bf16.msra.mxu0 %v18689_v7  ;;  %v11756_v7 = vshll.u32 %v21574_v39, 16  ;;  %v18661_v41 = vld [vmem:[#allocation2 + $0xb4] sm:$0xff]   ;;  %v11772_v38 = vshll.u32 %v21600_v48, 16 }
 0x373   : > { %v21577_v14 = vadd.f32 %v17709_v9, %v21463_v43  ;;  %17911 = vmatmul.mubr.bf16.gmra.mxu1 %v10939_v4  ;;  %v21583_v35 = vpop.f32.mrf.mxu1  ;;  %18076 = vmatprep.subr.bf16.mxu0 %v18692_v54  ;;  %v11743_v63 = vsel %vm2618_vm1, %v11738_v5, %v11742_v57  ;;  %v11751_v9 = vsel %vm2618_vm1, %v11746_v13, %v11750_v16  ;;  %v11764_v4 = vshll.u32 %v21591_v59, 16 }
 0x374   : > { %v8881_v25 = vpop.f32.mrf.mxu0  ;;  %17914 = vmatprep.mubr.bf16.mxu1 %v10948_v46  ;;  %v11758_v24 = vrot.slane %v11756_v7, 1  ;;  %v10957_v57 = vsel %vm1137_vm0, %v10947_v47, %v10956_v8  ;;  %v10982_v15 = vrot.slane %v10980_v42, 4  ;;  %v11754_v5 = vor.u32 %v11752_v26, %v11750_v16 }
 0x375   : > { %v21586_v43 = vadd.f32 %v8881_v25, %v21477_v44  ;;  %v21588_v30 = vpop.f32.mrf.mxu1  ;;  %v10977_v44 = vshrl.u32 %v18659_v28, 16  ;;  %v11760_v25 = vshrl.u32 %v21574_v39, 16  ;;  %v11766_v13 = vrot.slane %v11764_v4, 1 }
 0x376   : > { %18077 = vmatpush3.bf16.msra.mxu0 %v18692_v54  ;;  %v10974_v39 = vor.u32 %v10973_v20, %v10970_v58  ;;  %v10998_v16 = vshll.u32 %v18664_v62, 16  ;;  %v11768_v58 = vshrl.u32 %v21591_v59, 16  ;;  %v11776_v20 = vshrl.u32 %v21600_v48, 16 }
 0x377   : > { %v17712_v19 = vpop.f32.mrf.mxu0  ;;  %v21593_v18 = vpop.f32.mrf.mxu1  ;;  %v10979_v27 = vrot.slane %v10977_v44, 3  ;;  %v11762_v47 = vor.u32 %v11760_v25, %v11758_v24  ;;  %v10989_v44 = vshll.u32 %v18661_v41, 16 }
 0x378   : > { %v21596_v1 = vadd.f32 %v17712_v19, %v21494_v52  ;;  %v10986_v19 = vshrl.u32 %v18661_v41, 16  ;;  %v11774_v41 = vrot.slane %v11772_v38, 1  ;;  %v11000_v48 = vrot.slane %v10998_v16, 4 }
 0x379   : > { %17967 = vmatmul.mubr.bf16.gmra.mxu0 %v11743_v63  ;;  %v8894_v54 = vpop.f32.mrf.mxu0  ;;  %v21603_v36 = vpop.f32.mrf.mxu1  ;;  %v10983_v63 = vor.u32 %v10982_v15, %v10979_v27  ;;  %v18666_v27 = vld [vmem:[#allocation2 + $0xc4] sm:$0xff]  }
 0x37a   : > { %17970 = vmatprep.mubr.bf16.mxu0 %v11751_v9  ;;  %v21607_v52 = vadd.f32 %v8894_v54, %v21503_v2  ;;  %v10995_v9 = vshrl.u32 %v18664_v62, 16  ;;  %v11759_v54 = vsel %vm2618_vm1, %v11754_v5, %v11758_v24  ;;  %v10988_v25 = vrot.slane %v10986_v19, 3 }
 0x37b   : > { %v17713_v61 = vpop.f32.mrf.mxu0  ;;  %17915 = vmatmul.mubr.bf16.gmra.mxu1 %v10957_v57  ;;  %v21612_v46 = vpop.f32.mrf.mxu1  ;;  %v10991_v24 = vrot.slane %v10989_v44, 4  ;;  %v10984_v62 = vsel %vm1137_vm0, %v10974_v39, %v10983_v63  ;;  %v11778_v19 = vor.u32 %v11776_v20, %v11774_v41 }
 0x37c   : > { %v21615_v28 = vadd.f32 %v17713_v61, %v21511_v3  ;;  %17918 = vmatprep.mubr.bf16.mxu1 %v10966_v17  ;;  %v18662_v61 = vld [vmem:[#allocation2 + $0x98] sm:$0xff]   ;;  %v10997_v5 = vrot.slane %v10995_v9, 3 }
 0x37d   : > { %v8897_v2 = vpop.f32.mrf.mxu0  ;;  %v21617_v7 = vpop.f32.mrf.mxu1 }
 0x37e   : > { %v21621_v8 = vadd.f32 %v8897_v2, %v21521_v56  ;;  %v11767_v56 = vsel %vm2618_vm1, %v11762_v47, %v11766_v13  ;;  %v11780_v2 = vshll.u32 %v21623_v29, 16  ;;  %v18669_v47 = vld [vmem:[#allocation2 + $0xcc] sm:$0xff]  }
 0x37f   : > { %v17716_v42 = vpop.f32.mrf.mxu0  ;;  %v21625_v3 = vpop.f32.mrf.mxu1 }
 0x380   : > { %v21628_v26 = vadd.f32 %v17716_v42, %v21536_v0  ;;  %v10975_v0 = vsel %vm1137_vm0, %v10965_v23, %v10974_v39  ;;  %v11770_v23 = vor.u32 %v11768_v58, %v11766_v13  ;;  %v11788_v42 = vshll.u32 %v18662_v61, 16 }
 0x381   : > { %17971 = vmatmul.mubr.bf16.gmra.mxu0 %v11759_v54  ;;  %v8910_v4 = vpop.f32.mrf.mxu0  ;;  %v21632_v57 = vpop.f32.mrf.mxu1  ;;  %v10992_v39 = vor.u32 %v10991_v24, %v10988_v25  ;;  %v11782_v9 = vrot.slane %v11780_v2, 1  ;;  %v11792_v24 = vshrl.u32 %v18662_v61, 16 }
 0x382   : > { %23154 = vst [vmem:[#allocation21_spill] sm:$0xff] %v21628_v26  ;;  %17974 = vmatprep.mubr.bf16.mxu0 %v11767_v56  ;;  %v21637_v17 = vadd.f32 %v8910_v4, %v21547_v51  ;;  %v11004_v56 = vshrl.u32 %v18666_v27, 16  ;;  %v11007_v4 = vshll.u32 %v18666_v27, 16  ;;  %v11775_v58 = vsel %vm2618_vm1, %v11770_v23, %v11774_v41  ;;  %v21661_v27 = vld [vmem:[#allocation2 + $0xa8] sm:$0xff]  }
 0x383   : > { %v17717_v15 = vpop.f32.mrf.mxu0  ;;  %17919 = vmatmul.mubr.bf16.gmra.mxu1 %v10975_v0  ;;  %v21642_v59 = vpop.f32.mrf.mxu1  ;;  %v11790_v25 = vrot.slane %v11788_v42, 1  ;;  %v18678_v42 = vld [vmem:[#allocation2 + $0x28] sm:$0xff]  }
 0x384   : > { %23155 = vst [vmem:[#allocation20_spill] sm:$0xff] %v21637_v17  ;;  %v21645_v38 = vadd.f32 %v17717_v15, %v21552_v31  ;;  %17922 = vmatprep.mubr.bf16.mxu1 %v10984_v62  ;;  %v11001_v17 = vor.u32 %v11000_v48, %v10997_v5  ;;  %v21654_v31 = vld [vmem:[#allocation2 + $0xa0] sm:$0xff]   ;;  %v11013_v15 = vshrl.u32 %v18669_v47, 16  ;;  %v11016_v62 = vshll.u32 %v18669_v47, 16 }
 0x385   : > { %v8913_v51 = vpop.f32.mrf.mxu0  ;;  %v21647_v44 = vpop.f32.mrf.mxu1  ;;  %v10993_v5 = vsel %vm1137_vm0, %v10983_v63, %v10992_v39  ;;  %v11006_v48 = vrot.slane %v11004_v56, 3  ;;  %v11009_v47 = vrot.slane %v11007_v4, 4  ;;  %v11796_v23 = vshll.u32 %v21654_v31, 16  ;;  %v18673_v63 = vld [vmem:[#allocation2 + $0xd4] ss:$0 sps:$4 sm:$0xff]  }
 0x386   : > { %23156 = vst [vmem:[#allocation22_spill] sm:$0xff] %v21645_v38  ;;  %v21650_v54 = vadd.f32 %v8913_v51, %v21560_v49  ;;  %v11783_v49 = vsel %vm2618_vm1, %v11778_v19, %v11782_v9  ;;  %v11002_v41 = vsel %vm1137_vm0, %v10992_v39, %v11001_v17  ;;  %v11015_v19 = vrot.slane %v11013_v15, 3 }
 0x387   : > { %v17720_v0 = vpop.f32.mrf.mxu0  ;;  %v21652_v16 = vpop.f32.mrf.mxu1  ;;  %v11018_v61 = vrot.slane %v11016_v62, 4  ;;  %v11794_v4 = vor.u32 %v11792_v24, %v11790_v25  ;;  %v11010_v62 = vor.u32 %v11009_v47, %v11006_v48  ;;  %v21691_v48 = vld [vmem:[#allocation2 + $0xb8] sm:$0xff]  }
 0x388   : > { %23157 = vst [vmem:[#allocation23_spill] sm:$0xff] %v21650_v54  ;;  %v21657_v13 = vadd.f32 %v17720_v0, %v21570_v34 }
 0x389   : > { %17975 = vmatmul.mubr.bf16.gmra.mxu0 %v11775_v58  ;;  %v8926_v20 = vpop.f32.mrf.mxu0 }
 0x38a   : > { %23158 = vst [vmem:[#allocation24_spill] sm:$0xff] %v21657_v13  ;;  %17978 = vmatprep.mubr.bf16.mxu0 %v11783_v49  ;;  %v21664_v2 = vadd.f32 %v8926_v20, %v21583_v35  ;;  %v11784_v35 = vshrl.u32 %v21623_v29, 16  ;;  %v11804_v49 = vshll.u32 %v21661_v27, 16  ;;  %v18677_v20 = vld [vmem:[#allocation2 + $0x20] sm:$0xf8]   ;;  %v21685_v29 = vld [vmem:[#allocation2 + $0xb0] sm:$0xff]  }
 0x38b   : > { %v17721_v34 = vpop.f32.mrf.mxu0  ;;  %v21667_v51 = vpop.f32.mrf.mxu1  ;;  %17923 = vmatmul.mubr.bf16.gmra.mxu1 %v10993_v5  ;;  %v11798_v5 = vrot.slane %v11796_v23, 1  ;;  %v11025_v13 = vshll.u32 %v18673_v63, 16  ;;  %v12487_v47 = vshrl.u32 %v18677_v20, 16  ;;  %v12490_v23 = vshll.u32 %v18677_v20, 16 }
 0x38c   : > { %23159 = vst [vmem:[#allocation25_spill] sm:$0xff] %v21664_v2  ;;  %v21672_v0 = vadd.f32 %v17721_v34, %v21588_v30  ;;  %17926 = vmatprep.mubr.bf16.mxu1 %v11002_v41  ;;  %v11786_v15 = vor.u32 %v11784_v35, %v11782_v9  ;;  %v21683_v30 = vor.u32 %v11018_v61, %v11015_v19  ;;  %v12495_v34 = vshrl.u32 %v18678_v42, 16 }
 0x38d   : > { %v8929_v56 = vpop.f32.mrf.mxu0  ;;  %v21675_v58 = vpop.f32.mrf.mxu1  ;;  %v12498_v41 = vshll.u32 %v18678_v42, 16  ;;  %v11806_v9 = vrot.slane %v11804_v49, 1  ;;  %v11011_v61 = vsel %vm1137_vm0, %v11001_v17, %v11010_v62  ;;  %v11808_v42 = vshrl.u32 %v21661_v27, 16  ;;  %v18681_v27 = vld [vmem:[#allocation2 + $0x30] sm:$0xff]  }
 0x38e   : > { %23160 = vst [vmem:[#allocation8_spill] sm:$0xff] %v21672_v0  ;;  %v21679_v39 = vadd.f32 %v8929_v56, %v21593_v18  ;;  %v11791_v24 = vsel %vm2618_vm1, %v11786_v15, %v11790_v25  ;;  %v11022_v0 = vshrl.u32 %v18673_v63, 16  ;;  %v11799_v18 = vsel %vm2618_vm1, %v11794_v4, %v11798_v5 }
 0x38f   : > { %v21681_v2 = vpop.f32.mrf.mxu1  ;;  %v11800_v25 = vshrl.u32 %v21654_v31, 16  ;;  %v11020_v4 = vsel %vm1137_vm0, %v11010_v62, %v21683_v30  ;;  %v11812_v49 = vshll.u32 %v21685_v29, 16  ;;  %v12497_v20 = vrot.slane %v12495_v34, 3 }
 0x390   : > { %23161 = vst [vmem:[#allocation27_spill] sm:$0xff] %v21679_v39  ;;  %v12500_v15 = vrot.slane %v12498_v41, 4  ;;  %v11024_v31 = vrot.slane %v11022_v0, 3  ;;  %v12489_v62 = vrot.slane %v12487_v47, 3  ;;  %v12492_v38 = vrot.slane %v12490_v23, 4 }
 0x391   : > { %v17724_v54 = vpop.f32.mrf.mxu0  ;;  %17979 = vmatmul.mubr.bf16.gmra.mxu0 %v11791_v24  ;;  %v21689_v56 = vpop.f32.mrf.mxu1  ;;  %v11802_v17 = vor.u32 %v11800_v25, %v11798_v5  ;;  %v11027_v24 = vrot.slane %v11025_v13, 4  ;;  %v11814_v25 = vrot.slane %v11812_v49, 1  ;;  %v12504_v47 = vshrl.u32 %v18681_v27, 16  ;;  %v21724_v49 = vld [vmem:[#allocation2 + $0xc8] sm:$0xff]  }
 0x392   : > { %v21694_v19 = vadd.f32 %v17724_v54, %v21603_v36  ;;  %17982 = vmatprep.mubr.bf16.mxu0 %v11799_v18  ;;  %v18685_v36 = vld [vmem:[#allocation2 + $0x38] sm:$0xff]   ;;  %v12501_v13 = vor.u32 %v12500_v15, %v12497_v20  ;;  %v12507_v23 = vshll.u32 %v18681_v27, 16  ;;  %v11816_v15 = vshrl.u32 %v21685_v29, 16  ;;  %v18688_v29 = vld [vmem:[#allocation2 + $0x40] sm:$0xff]  }
 0x393   : > { %v8942_v35 = vpop.f32.mrf.mxu0  ;;  %v21699_v63 = vpop.f32.mrf.mxu1  ;;  %17927 = vmatmul.mubr.bf16.gmra.mxu1 %v11011_v61  ;;  %v11820_v61 = vshll.u32 %v21691_v48, 16  ;;  %v11807_v41 = vsel %vm2618_vm1, %v11802_v17, %v11806_v9 }
 0x394   : > { %23162 = vst [vmem:[#allocation28_spill] sm:$0xff] %v21694_v19  ;;  %v21705_v54 = vadd.f32 %v8942_v35, %v21612_v46  ;;  %17930 = vmatprep.mubr.bf16.mxu1 %v11020_v4  ;;  %v11810_v19 = vor.u32 %v11808_v42, %v11806_v9  ;;  %v21714_v46 = vld [vmem:[#allocation2 + $0xc0] sm:$0xff]   ;;  %v12513_v35 = vshrl.u32 %v18685_v36, 16  ;;  %v12516_v42 = vshll.u32 %v18685_v36, 16 }
 0x395   : > { %v17725_v18 = vpop.f32.mrf.mxu0  ;;  %v21707_v39 = vpop.f32.mrf.mxu1  ;;  %v11822_v17 = vrot.slane %v11820_v61, 1  ;;  %v11828_v36 = vshll.u32 %v21714_v46, 16 }
 0x396   : > { %23163 = vst [vmem:[#allocation29_spill] sm:$0xff] %v21705_v54  ;;  %v21711_v34 = vadd.f32 %v17725_v18, %v21617_v7  ;;  %v11028_v54 = vor.u32 %v11027_v24, %v11024_v31  ;;  %v11815_v7 = vsel %vm2618_vm1, %v11810_v19, %v11814_v25  ;;  %v12493_v18 = vor.u32 %v12492_v38, %v12489_v62 }
 0x397   : > { %v8945_v5 = vpop.f32.mrf.mxu0  ;;  %v21716_v0 = vpop.f32.mrf.mxu1  ;;  %v11824_v19 = vshrl.u32 %v21691_v48, 16  ;;  %v12515_v27 = vrot.slane %v12513_v35, 3  ;;  %v12518_v61 = vrot.slane %v12516_v42, 4  ;;  %v21743_v48 = vld [vmem:[#allocation2 + $0xd0] sm:$0xff]   ;;  %v11830_v42 = vrot.slane %v11828_v36, 1 }
 0x398   : > { %v21719_v4 = vadd.f32 %v8945_v5, %v21625_v3  ;;  %v11029_v3 = vsel %vm1137_vm0, %v21683_v30, %v11028_v54  ;;  %v12502_v38 = vsel %vm1137_vm0, %v12493_v18, %v12501_v13  ;;  %v12506_v30 = vrot.slane %v12504_v47, 3 }
 0x399   : > { %v17728_v26 = vpop.f32.mrf.mxu0  ;;  %17983 = vmatmul.mubr.bf16.gmra.mxu0 %v11807_v41  ;;  %v21722_v9 = vpop.f32.mrf.mxu1  ;;  %v12509_v54 = vrot.slane %v12507_v23, 4  ;;  %v11818_v41 = vor.u32 %v11816_v15, %v11814_v25  ;;  %v11826_v5 = vor.u32 %v11824_v19, %v11822_v17 }
 0x39a   : > { %v21727_v20 = vadd.f32 %v17728_v26, %v21632_v57  ;;  %17986 = vmatprep.mubr.bf16.mxu0 %v11815_v7  ;;  %v18690_v26 = vld [vmem:[#allocation2 + $0x48] sm:$0xff]  }
 0x39b   : > { %v8958_v31 = vpop.f32.mrf.mxu0  ;;  %v21733_v24 = vpop.f32.mrf.mxu1  ;;  %17931 = vmatmul.mubr.bf16.gmra.mxu1 %v11029_v3  ;;  %v11836_v3 = vshll.u32 %v21724_v49, 16  ;;  %v11823_v47 = vsel %vm2618_vm1, %v11818_v41, %v11822_v17  ;;  %v12531_v25 = vshrl.u32 %v18690_v26, 16  ;;  %v12534_v15 = vshll.u32 %v18690_v26, 16 }
 0x39c   : > { %23164 = vst [vmem:[#allocation30_spill] sm:$0xff] %v21727_v20  ;;  %v21738_v57 = vadd.f32 %v8958_v31, %v21642_v59  ;;  %18014 = vmatprep.mubr.bf16.mxu1 %v12502_v38  ;;  %v11832_v59 = vshrl.u32 %v21714_v46, 16  ;;  %v21752_v31 = vor.u32 %v12518_v61, %v12515_v27  ;;  %v12510_v38 = vor.u32 %v12509_v54, %v12506_v30  ;;  %v18693_v27 = vld [vmem:[%s22914_s4 + $0x230] sm:$0xff]   ;;  %v18687_v30 = vld [vmem:[#allocation2 + $0xd8] ss:$0 sps:$4 sm:$0x11]  }
 0x39d   : > { %v17729_v62 = vpop.f32.mrf.mxu0  ;;  %v21740_v7 = vpop.f32.mrf.mxu1  ;;  %v12525_v20 = vshll.u32 %v18688_v29, 16  ;;  %v11831_v36 = vsel %vm2618_vm1, %v11826_v5, %v11830_v42  ;;  %v11844_v17 = vshll.u32 %v21743_v48, 16  ;;  %v11840_v41 = vshrl.u32 %v21724_v49, 16 }
 0x39e   : > { %23165 = vst [vmem:[#allocation31_spill] sm:$0xff] %v21738_v57  ;;  %v21746_v35 = vadd.f32 %v17729_v62, %v21647_v44  ;;  %v12522_v57 = vshrl.u32 %v18688_v29, 16  ;;  %v11838_v62 = vrot.slane %v11836_v3, 1  ;;  %v12511_v26 = vsel %vm1137_vm0, %v12501_v13, %v12510_v38 }
 0x39f   : > { %v8961_v18 = vpop.f32.mrf.mxu0  ;;  %v21750_v23 = vpop.f32.mrf.mxu1  ;;  %v12520_v5 = vsel %vm1137_vm0, %v12510_v38, %v21752_v31  ;;  %v12533_v3 = vrot.slane %v12531_v25, 3  ;;  %v11848_v25 = vshrl.u32 %v21743_v48, 16 }
 0x3a0   : > { %v21755_v19 = vadd.f32 %v8961_v18, %v21652_v16  ;;  %v11834_v16 = vor.u32 %v11832_v59, %v11830_v42  ;;  %v12536_v18 = vrot.slane %v12534_v15, 4  ;;  %v12524_v13 = vrot.slane %v12522_v57, 3 }
 0x3a1   : > { %v17732_v44 = vpop.f32.mrf.mxu0  ;;  %17987 = vmatmul.mubr.bf16.gmra.mxu0 %v11823_v47  ;;  %v21758_v46 = vpop.f32.mrf.mxu1  ;;  %v18694_v47 = vld [vmem:[#allocation2 + $0x50] sm:$0xff]   ;;  %v12527_v59 = vrot.slane %v12525_v20, 4  ;;  %v11842_v49 = vor.u32 %v11840_v41, %v11838_v62  ;;  %v11852_v20 = vshll.u32 %v18687_v30, 16 }
 0x3a2   : > { %23166 = vst [vmem:[#allocation32_spill] sm:$0xff] %v21755_v19  ;;  %v21765_v61 = vadd.f32 %v17732_v44, %v21667_v51  ;;  %17990 = vmatprep.mubr.bf16.mxu0 %v11831_v36  ;;  %v18696_v19 = vld [vmem:[#allocation2 + $0x58] sm:$0xff]   ;;  %v11846_v36 = vrot.slane %v11844_v17, 1  ;;  %v21789_v17 = vor.u32 %v12536_v18, %v12533_v3 }
 0x3a3   : > { %v8974_v54 = vpop.f32.mrf.mxu0  ;;  %v17760_v29 = vpop.f32.mrf.mxu1  ;;  %18015 = vmatmul.mubr.bf16.vlgmr.msra.gmra.mxu1 %v12511_v26  ;;  %v12549_v48 = vshrl.u32 %v18696_v19, 16 }
 0x3a4   : > { %v21772_v51 = vadd.f32 %v8974_v54, %v21675_v58  ;;  %v21775_v42 = vadd.f32 %v17760_v29, %v21401_v40  ;;  %18018 = vmatprep.mubr.bf16.mxu1 %v12520_v5  ;;  %18127 = vmatpush3.bf16.msra.mxu1 %v21471_v10  ;;  %v18700_v58 = vld [vmem:[%s22914_s4 + $0x228] sm:$0xff]   ;;  %v11839_v40 = vsel %vm2618_vm1, %v11834_v16, %v11838_v62  ;;  %v12540_v54 = vshrl.u32 %v18694_v47, 16 }
 0x3a5   : > { %v17733_v44 = vpop.f32.mrf.mxu0  ;;  %v9456_v26 = vpop.f32.mrf.mxu1  ;;  %18128 = vmatprep.subr.bf16.mxu1 %v18693_v27  ;;  %v12552_v29 = vshll.u32 %v18696_v19, 16  ;;  %v12543_v62 = vshll.u32 %v18694_v47, 16  ;;  %v18707_v19 = vld [vmem:[%s22914_s4 + $0x220] sm:$0xff]  }
 0x3a6   : > { %v21783_v15 = vadd.f32 %v17733_v44, %v21681_v2  ;;  %v21787_v10 = vadd.f32 %v9456_v26, %v21410_v11  ;;  %v12528_v2 = vor.u32 %v12527_v59, %v12524_v13  ;;  %v11847_v11 = vsel %vm2618_vm1, %v11842_v49, %v11846_v36  ;;  %v18701_v26 = vld [vmem:[#allocation2 + $0x68] sm:$0xff]  }
 0x3a7   : > { %v8977_v57 = vpop.f32.mrf.mxu0  ;;  %v17761_v38 = vpop.f32.mrf.mxu1  ;;  %v11850_v44 = vor.u32 %v11848_v25, %v11846_v36  ;;  %v12551_v59 = vrot.slane %v12549_v48, 3  ;;  %v12554_v49 = vrot.slane %v12552_v29, 4  ;;  %v18698_v36 = vld [vmem:[#allocation2 + $0x60] sm:$0xff]   ;;  %v12542_v25 = vrot.slane %v12540_v54, 3 }
 0x3a8   : > { %v21792_v41 = vadd.f32 %v8977_v57, %v21689_v56  ;;  %v21795_v5 = vadd.f32 %v17761_v38, %v21421_v60  ;;  %18129 = vmatpush3.bf16.msra.mxu1 %v18693_v27  ;;  %v11854_v27 = vrot.slane %v11852_v20, 1  ;;  %v12529_v3 = vsel %vm1137_vm0, %v21752_v31, %v12528_v2  ;;  %v18714_v57 = vld [vmem:[%s22914_s4 + $0x218] sm:$0xff]  }
 0x3a9   : > { %v17736_v16 = vpop.f32.mrf.mxu0  ;;  %17991 = vmatmul.mubr.bf16.gmra.mxu0 %v11839_v40  ;;  %v9459_v30 = vpop.f32.mrf.mxu1  ;;  %18130 = vmatprep.subr.bf16.mxu1 %v18700_v58  ;;  %v12538_v13 = vsel %vm1137_vm0, %v12528_v2, %v21789_v17  ;;  %v12545_v40 = vrot.slane %v12543_v62, 4  ;;  %v12555_v54 = vor.u32 %v12554_v49, %v12551_v59  ;;  %v12558_v2 = vshrl.u32 %v18698_v36, 16 }
 0x3aa   : > { %v21802_v56 = vadd.f32 %v17736_v16, %v21699_v63  ;;  %17994 = vmatprep.mubr.bf16.mxu0 %v11847_v11  ;;  %v21805_v60 = vadd.f32 %v9459_v30, %v21435_v12  ;;  %v12570_v62 = vshll.u32 %v18701_v26, 16  ;;  %v18691_v11 = vld [vmem:[#allocation2 + $0x24] sm:$0xff]  }
 0x3ab   : > { %v8990_v18 = vpop.f32.mrf.mxu0  ;;  %v17764_v47 = vpop.f32.mrf.mxu1  ;;  %18019 = vmatmul.mubr.bf16.gmra.mxu1 %v12529_v3  ;;  %v12561_v3 = vshll.u32 %v18698_v36, 16  ;;  %v18703_v36 = vld [vmem:[#allocation2 + $0x70] sm:$0xff]  }
 0x3ac   : > { %v21812_v63 = vadd.f32 %v8990_v18, %v21707_v39  ;;  %v21815_v12 = vadd.f32 %v17764_v47, %v21449_v21  ;;  %18022 = vmatprep.mubr.bf16.mxu1 %v12538_v13  ;;  %18131 = vmatpush3.bf16.msra.mxu1 %v18700_v58  ;;  %v11855_v39 = vsel %vm2618_vm1, %v11850_v44, %v11854_v27  ;;  %v12567_v58 = vshrl.u32 %v18701_v26, 16  ;;  %v18721_v27 = vld [vmem:[%s22914_s4 + $0x210] sm:$0xff]   ;;  %v18705_v26 = vld [vmem:[#allocation2 + $0x78] sm:$0xff]  }
 0x3ad   : > { %v17737_v31 = vpop.f32.mrf.mxu0  ;;  %v9472_v20 = vpop.f32.mrf.mxu1  ;;  %18132 = vmatprep.subr.bf16.mxu1 %v18707_v19  ;;  %v12572_v49 = vrot.slane %v12570_v62, 4  ;;  %v12585_v62 = vshrl.u32 %v18705_v26, 16 }
 0x3ae   : > { %v21821_v38 = vadd.f32 %v17737_v31, %v21716_v0  ;;  %v21825_v48 = vadd.f32 %v9472_v20, %v21460_v33  ;;  %v12546_v0 = vor.u32 %v12545_v40, %v12542_v25  ;;  %v12569_v59 = vrot.slane %v12567_v58, 3  ;;  %v18728_v20 = vld [vmem:[%s22914_s4 + $0x208] sm:$0xff]  }
 0x3af   : > { %v8993_v21 = vpop.f32.mrf.mxu0  ;;  %v17765_v29 = vpop.f32.mrf.mxu1  ;;  %v12563_v40 = vrot.slane %v12561_v3, 4 }
 0x3b0   : > { %v21828_v16 = vadd.f32 %v8993_v21, %v21722_v9  ;;  %v21831_v30 = vadd.f32 %v17765_v29, %v21474_v50  ;;  %18133 = vmatpush3.bf16.msra.mxu1 %v18707_v19  ;;  %v12547_v50 = vsel %vm1137_vm0, %v21789_v17, %v12546_v0  ;;  %v12556_v13 = vsel %vm1137_vm0, %v12546_v0, %v12555_v54  ;;  %v18697_v0 = vld [vmem:[#allocation2 + $0x34] sm:$0xff]  }
 0x3b1   : > { %v17740_v44 = vpop.f32.mrf.mxu0  ;;  %17995 = vmatmul.mubr.bf16.gmra.mxu0 %v11855_v39  ;;  %v9475_v33 = vpop.f32.mrf.mxu1  ;;  %18134 = vmatprep.subr.bf16.mxu1 %v18714_v57  ;;  %v12573_v58 = vor.u32 %v12572_v49, %v12569_v59  ;;  %v12587_v59 = vrot.slane %v12585_v62, 3 }
 0x3b2   : > { %v21837_v18 = vadd.f32 %v17740_v44, %v21733_v24  ;;  %18078 = vmatprep.mubr.bf16.mxu0 %v18691_v11  ;;  %v21840_v9 = vadd.f32 %v9475_v33, %v21490_v32  ;;  %v12560_v32 = vrot.slane %v12558_v2, 3  ;;  %v12576_v2 = vshrl.u32 %v18703_v36, 16 }
 0x3b3   : > { %v9006_v47 = vpop.f32.mrf.mxu0  ;;  %v17768_v19 = vpop.f32.mrf.mxu1  ;;  %18023 = vmatmul.mubr.bf16.gmra.mxu1 %v12547_v50  ;;  %v18735_v50 = vld [vmem:[%s22914_s4 + $0x200] sm:$0xff]  }
 0x3b4   : > { %v21846_v25 = vadd.f32 %v9006_v47, %v21740_v7  ;;  %v21849_v24 = vadd.f32 %v17768_v19, %v21509_v37  ;;  %18026 = vmatprep.mubr.bf16.mxu1 %v12556_v13  ;;  %18135 = vmatpush3.bf16.msra.mxu1 %v18714_v57  ;;  %v18695_v37 = vld [vmem:[#allocation2 + $0x2c] sm:$0xff]   ;;  %v12588_v57 = vshll.u32 %v18705_v26, 16  ;;  %v12564_v44 = vor.u32 %v12563_v40, %v12560_v32 }
 0x3b5   : > { %v17741_v17 = vpop.f32.mrf.mxu0  ;;  %v9488_v31 = vpop.f32.mrf.mxu1  ;;  %18136 = vmatprep.subr.bf16.mxu1 %v18721_v27  ;;  %v18710_v26 = vld [vmem:[#allocation2 + $0x88] sm:$0xff]  }
 0x3b6   : > { %v21855_v39 = vadd.f32 %v17741_v17, %v21750_v23  ;;  %v21858_v7 = vadd.f32 %v9488_v31, %v21518_v45  ;;  %v12579_v23 = vshll.u32 %v18703_v36, 16  ;;  %v12590_v49 = vrot.slane %v12588_v57, 4  ;;  %v18708_v36 = vld [vmem:[#allocation2 + $0x80] sm:$0xff]  }
 0x3b7   : > { %v9009_v21 = vpop.f32.mrf.mxu0  ;;  %v17769_v29 = vpop.f32.mrf.mxu1  ;;  %v12594_v57 = vshrl.u32 %v18708_v36, 16 }
 0x3b8   : > { %v21861_v11 = vadd.f32 %v9009_v21, %v21758_v46  ;;  %v21864_v3 = vadd.f32 %v17769_v29, %v21533_v53  ;;  %18137 = vmatpush3.bf16.msra.mxu1 %v18721_v27  ;;  %v12565_v53 = vsel %vm1137_vm0, %v12555_v54, %v12564_v44  ;;  %v12574_v27 = vsel %vm1137_vm0, %v12564_v44, %v12573_v58  ;;  %v18699_v29 = vld [vmem:[#allocation2 + $0x3c] sm:$0xff]  }
 0x3b9   : > { %v17824_v33 = vpop.f32.mrf.mxu0  ;;  %18079 = vmatmul.mubr.bf16.vlgmr.msra.gmra.mxu0 %v18695_v37  ;;  %v9491_v45 = vpop.f32.mrf.mxu1  ;;  %18138 = vmatprep.subr.bf16.mxu1 %v18728_v20  ;;  %v12581_v40 = vrot.slane %v12579_v23, 4  ;;  %v12591_v62 = vor.u32 %v12590_v49, %v12587_v59  ;;  %v18715_v49 = vld [vmem:[#allocation2 + $0x98] sm:$0xff]  }
 0x3ba   : > { %v21870_v47 = vadd.f32 %v17824_v33, %v21775_v42  ;;  %18082 = vmatprep.mubr.bf16.mxu0 %v18697_v0  ;;  %v21873_v46 = vadd.f32 %v9491_v45, %v21541_v55  ;;  %v12578_v55 = vrot.slane %v12576_v2, 3  ;;  %v12606_v0 = vshll.u32 %v18710_v26, 16 }
 0x3bb   : > { %v10282_v19 = vpop.f32.mrf.mxu0  ;;  %v17772_v13 = vpop.f32.mrf.mxu1  ;;  %18027 = vmatmul.mubr.bf16.gmra.mxu1 %v12565_v53 }
 0x3bc   : > { %v21878_v32 = vadd.f32 %v10282_v19, %v21787_v10  ;;  %v21881_v42 = vadd.f32 %v17772_v13, %v21558_v6  ;;  %18030 = vmatprep.mubr.bf16.mxu1 %v12574_v27  ;;  %18139 = vmatpush3.bf16.msra.mxu1 %v18728_v20  ;;  %v12603_v6 = vshrl.u32 %v18710_v26, 16  ;;  %v18702_v20 = vld [vmem:[#allocation2 + $0x44] sm:$0xff]   ;;  %v12582_v23 = vor.u32 %v12581_v40, %v12578_v55 }
 0x3bd   : > { %v17825_v54 = vpop.f32.mrf.mxu0  ;;  %v9504_v17 = vpop.f32.mrf.mxu1  ;;  %18140 = vmatprep.subr.bf16.mxu1 %v18735_v50  ;;  %v12608_v59 = vrot.slane %v12606_v0, 4  ;;  %v12624_v0 = vshll.u32 %v18715_v49, 16 }
 0x3be   : > { %v21884_v31 = vadd.f32 %v17825_v54, %v21795_v5  ;;  %v21887_v21 = vadd.f32 %v9504_v17, %v21567_v22  ;;  %v12597_v5 = vshll.u32 %v18708_v36, 16  ;;  %v12605_v27 = vrot.slane %v12603_v6, 3 }
 0x3bf   : > { %v10285_v37 = vpop.f32.mrf.mxu0  ;;  %v17773_v10 = vpop.f32.mrf.mxu1  ;;  %v12621_v6 = vshrl.u32 %v18715_v49, 16 }
 0x3c0   : > { %v21890_v2 = vadd.f32 %v10285_v37, %v21805_v60  ;;  %v21893_v44 = vadd.f32 %v17773_v10, %v21577_v14  ;;  %18141 = vmatpush3.bf16.msra.mxu1 %v18735_v50  ;;  %v12583_v60 = vsel %vm1137_vm0, %v12573_v58, %v12582_v23  ;;  %v12592_v14 = vsel %vm1137_vm0, %v12582_v23, %v12591_v62  ;;  %v18712_v50 = vld [vmem:[#allocation2 + $0x90] sm:$0xff]  }
 0x3c1   : > { %v17828_v33 = vpop.f32.mrf.mxu0  ;;  %18083 = vmatmul.mubr.bf16.gmra.mxu0 %v18699_v29  ;;  %v9507_v22 = vpop.f32.mrf.mxu1  ;;  %v12599_v26 = vrot.slane %v12597_v5, 4  ;;  %v18704_v37 = vld [vmem:[#allocation2 + $0x4c] sm:$0xff]   ;;  %v12609_v10 = vor.u32 %v12608_v59, %v12605_v27  ;;  %v18717_v27 = vld [vmem:[#allocation2 + $0xa0] sm:$0xff]  }
 0x3c2   : > { %v21896_v45 = vadd.f32 %v17828_v33, %v21815_v12  ;;  %18086 = vmatprep.mubr.bf16.mxu0 %v18702_v20  ;;  %v21899_v53 = vadd.f32 %v9507_v22, %v21586_v43  ;;  %v12596_v43 = vrot.slane %v12594_v57, 3  ;;  %v18706_v57 = vld [vmem:[#allocation2 + $0x54] sm:$0xff]   ;;  %v18719_v59 = vld [vmem:[#allocation2 + $0xa8] sm:$0xff]  }
 0x3c3   : > { %v10298_v19 = vpop.f32.mrf.mxu0  ;;  %v17776_v13 = vpop.f32.mrf.mxu1  ;;  %18031 = vmatmul.mubr.bf16.gmra.mxu1 %v12583_v60 }
 0x3c4   : > { %v21904_v36 = vadd.f32 %v10298_v19, %v21825_v48  ;;  %v21907_v12 = vadd.f32 %v17776_v13, %v21596_v1  ;;  %18034 = vmatprep.mubr.bf16.mxu1 %v12592_v14  ;;  %v12612_v48 = vshrl.u32 %v18712_v50, 16  ;;  %v12600_v23 = vor.u32 %v12599_v26, %v12596_v43 }
 0x3c5   : > { %v17829_v55 = vpop.f32.mrf.mxu0  ;;  %v9520_v58 = vpop.f32.mrf.mxu1  ;;  %v12623_v13 = vrot.slane %v12621_v6, 3  ;;  %v12626_v14 = vrot.slane %v12624_v0, 4 }
 0x3c6   : > { %v21910_v40 = vadd.f32 %v17829_v55, %v21831_v30  ;;  %v21913_v54 = vadd.f32 %v9520_v58, %v21607_v52  ;;  %v12615_v30 = vshll.u32 %v18712_v50, 16  ;;  %v12601_v60 = vsel %vm1137_vm0, %v12591_v62, %v12600_v23  ;;  %v23168_v58 = vld [vmem:[#allocation20_spill] sm:$0xff] }
 0x3c7   : > { %v10301_v17 = vpop.f32.mrf.mxu0  ;;  %v17777_v29 = vpop.f32.mrf.mxu1  ;;  %v12627_v0 = vor.u32 %v12626_v14, %v12623_v13  ;;  %v23170_v13 = vld [vmem:[#allocation23_spill] sm:$0xff] }
 0x3c8   : > { %v21916_v1 = vadd.f32 %v10301_v17, %v21840_v9  ;;  %v21919_v20 = vadd.f32 %v17777_v29, %v21615_v28  ;;  %v12610_v28 = vsel %vm1137_vm0, %v12600_v23, %v12609_v10  ;;  %v12617_v43 = vrot.slane %v12615_v30, 4  ;;  %v18709_v29 = vld [vmem:[#allocation2 + $0x5c] sm:$0xff]  }
 0x3c9   : > { %v17832_v5 = vpop.f32.mrf.mxu0  ;;  %18087 = vmatmul.mubr.bf16.gmra.mxu0 %v18704_v37  ;;  %v9523_v52 = vpop.f32.mrf.mxu1  ;;  %v12642_v23 = vshll.u32 %v18719_v59, 16  ;;  %v23169_v30 = vld [vmem:[#allocation22_spill] sm:$0xff] }
 0x3ca   : > { %v21922_v33 = vadd.f32 %v17832_v5, %v21849_v24  ;;  %18090 = vmatprep.mubr.bf16.mxu0 %v18706_v57  ;;  %v21925_v22 = vadd.f32 %v9523_v52, %v21621_v8  ;;  %v23167_v24 = vld [vmem:[#allocation21_spill] sm:$0xff]  ;;  %v12614_v8 = vrot.slane %v12612_v48, 3  ;;  %v12639_v57 = vshrl.u32 %v18719_v59, 16  ;;  %v18711_v48 = vld [vmem:[#allocation2 + $0x64] sm:$0xff]  }
 0x3cb   : > { %v10314_v9 = vpop.f32.mrf.mxu0  ;;  %v17780_v19 = vpop.f32.mrf.mxu1  ;;  %18035 = vmatmul.mubr.bf16.gmra.mxu1 %v12601_v60 }
 0x3cc   : > { %v21930_v50 = vadd.f32 %v10314_v9, %v21858_v7  ;;  %v21933_v49 = vadd.f32 %v17780_v19, %v23167_v24  ;;  %18038 = vmatprep.mubr.bf16.mxu1 %v12610_v28  ;;  %v12630_v7 = vshrl.u32 %v18717_v27, 16  ;;  %v12618_v60 = vor.u32 %v12617_v43, %v12614_v8  ;;  %v18724_v43 = vld [vmem:[#allocation2 + $0xb8] sm:$0xff]  }
 0x3cd   : > { %v17833_v26 = vpop.f32.mrf.mxu0  ;;  %v9536_v62 = vpop.f32.mrf.mxu1  ;;  %v12641_v8 = vrot.slane %v12639_v57, 3 }
 0x3ce   : > { %v21936_v55 = vadd.f32 %v17833_v26, %v21864_v3  ;;  %v21939_v17 = vadd.f32 %v9536_v62, %v23168_v58  ;;  %v12633_v3 = vshll.u32 %v18717_v27, 16  ;;  %v12619_v59 = vsel %vm1137_vm0, %v12609_v10, %v12618_v60 }
 0x3cf   : > { %v10317_v37 = vpop.f32.mrf.mxu0  ;;  %v17781_v6 = vpop.f32.mrf.mxu1  ;;  %v12628_v62 = vsel %vm1137_vm0, %v12618_v60, %v12627_v0  ;;  %v12644_v27 = vrot.slane %v12642_v23, 4  ;;  %v18713_v60 = vld [vmem:[#allocation2 + $0x6c] sm:$0xff]  }
 0x3d0   : > { %v21942_v5 = vadd.f32 %v10317_v37, %v21873_v46  ;;  %v21945_v52 = vadd.f32 %v17781_v6, %v23169_v30  ;;  %v18722_v46 = vld [vmem:[#allocation2 + $0xb0] sm:$0xff]   ;;  %v12635_v6 = vrot.slane %v12633_v3, 4 }
 0x3d1   : > { %v17836_v9 = vpop.f32.mrf.mxu0  ;;  %18091 = vmatmul.mubr.bf16.gmra.mxu0 %v18709_v29  ;;  %v9539_v19 = vpop.f32.mrf.mxu1  ;;  %v12632_v29 = vrot.slane %v12630_v7, 3  ;;  %v12648_v57 = vshrl.u32 %v18722_v46, 16  ;;  %v18716_v7 = vld [vmem:[#allocation2 + $0x74] sm:$0xff]  }
 0x3d2   : > { %v21948_v28 = vadd.f32 %v17836_v9, %v21881_v42  ;;  %18094 = vmatprep.mubr.bf16.mxu0 %v18711_v48  ;;  %v21951_v14 = vadd.f32 %v9539_v19, %v23170_v13  ;;  %v23171_v42 = vld [vmem:[#allocation24_spill] sm:$0xff]  ;;  %v23173_v9 = vld [vmem:[#allocation25_spill] sm:$0xff] }
 0x3d3   : > { %v10330_v24 = vpop.f32.mrf.mxu0  ;;  %v17784_v26 = vpop.f32.mrf.mxu1  ;;  %18039 = vmatmul.mubr.bf16.gmra.mxu1 %v12619_v59  ;;  %v12651_v59 = vshll.u32 %v18722_v46, 16  ;;  %v23174_v3 = vld [vmem:[#allocation8_spill] sm:$0xff] }
 0x3d4   : > { %v21956_v58 = vadd.f32 %v10330_v24, %v21887_v21  ;;  %v21959_v37 = vadd.f32 %v17784_v26, %v23171_v42  ;;  %18042 = vmatprep.mubr.bf16.mxu1 %v12628_v62  ;;  %v12645_v21 = vor.u32 %v12644_v27, %v12641_v8  ;;  %v12657_v24 = vshrl.u32 %v18724_v43, 16 }
 0x3d5   : > { %v17837_v48 = vpop.f32.mrf.mxu0  ;;  %v9552_v10 = vpop.f32.mrf.mxu1  ;;  %v12660_v26 = vshll.u32 %v18724_v43, 16  ;;  %v12650_v27 = vrot.slane %v12648_v57, 3 }
 0x3d6   : > { %v21962_v30 = vadd.f32 %v17837_v48, %v21893_v44  ;;  %v21965_v19 = vadd.f32 %v9552_v10, %v23173_v9  ;;  %v12636_v44 = vor.u32 %v12635_v6, %v12632_v29  ;;  %v12659_v29 = vrot.slane %v12657_v24, 3  ;;  %v18718_v24 = vld [vmem:[#allocation2 + $0x7c] sm:$0xff]  }
 0x3d7   : > { %v10333_v23 = vpop.f32.mrf.mxu0  ;;  %v17785_v13 = vpop.f32.mrf.mxu1  ;;  %v12662_v6 = vrot.slane %v12660_v26, 4 }
 0x3d8   : > { %23172 = vst [vmem:[#allocation33_spill] sm:$0xff] %v21962_v30  ;;  %v21968_v62 = vadd.f32 %v10333_v23, %v21899_v53  ;;  %v21971_v42 = vadd.f32 %v17785_v13, %v23174_v3  ;;  %v23176_v30 = vld [vmem:[#allocation27_spill] sm:$0xff]  ;;  %v12637_v46 = vsel %vm1137_vm0, %v12627_v0, %v12636_v44  ;;  %v12646_v23 = vsel %vm1137_vm0, %v12636_v44, %v12645_v21 }
 0x3d9   : > { %v17840_v48 = vpop.f32.mrf.mxu0  ;;  %18095 = vmatmul.mubr.bf16.gmra.mxu0 %v18713_v60  ;;  %v9555_v10 = vpop.f32.mrf.mxu1  ;;  %v12653_v13 = vrot.slane %v12651_v59, 4  ;;  %v18729_v60 = vld [vmem:[#allocation2 + $0xc8] sm:$0xff]  }
 0x3da   : > { %v21974_v9 = vadd.f32 %v17840_v48, %v21907_v12  ;;  %18098 = vmatprep.mubr.bf16.mxu0 %v18716_v7  ;;  %v21977_v8 = vadd.f32 %v9555_v10, %v23176_v30  ;;  %v23178_v12 = vld [vmem:[#allocation28_spill] sm:$0xff]  ;;  %v18726_v30 = vld [vmem:[#allocation2 + $0xc0] sm:$0xff]   ;;  %v23179_v10 = vld [vmem:[#allocation29_spill] sm:$0xff] }
 0x3db   : > { %v10346_v53 = vpop.f32.mrf.mxu0  ;;  %v17788_v43 = vpop.f32.mrf.mxu1  ;;  %18043 = vmatmul.mubr.bf16.gmra.mxu1 %v12637_v46  ;;  %v12654_v44 = vor.u32 %v12653_v13, %v12650_v27 }
 0x3dc   : > { %23175 = vst [vmem:[#allocation34_spill] sm:$0xff] %v21974_v9  ;;  %v21982_v3 = vadd.f32 %v10346_v53, %v21913_v54  ;;  %v21985_v7 = vadd.f32 %v17788_v43, %v23178_v12  ;;  %18046 = vmatprep.mubr.bf16.mxu1 %v12646_v23  ;;  %v12663_v9 = vor.u32 %v12662_v6, %v12659_v29  ;;  %v12675_v54 = vshrl.u32 %v18729_v60, 16  ;;  %v18720_v23 = vld [vmem:[#allocation2 + $0x84] sm:$0xff]  }
 0x3dd   : > { %v17841_v48 = vpop.f32.mrf.mxu0  ;;  %v9568_v0 = vpop.f32.mrf.mxu1  ;;  %v12678_v53 = vshll.u32 %v18729_v60, 16  ;;  %v12655_v13 = vsel %vm1137_vm0, %v12645_v21, %v12654_v44 }
 0x3de   : > { %23177 = vst [vmem:[#allocation35_spill] sm:$0xff] %v21982_v3  ;;  %v21988_v57 = vadd.f32 %v17841_v48, %v21919_v20  ;;  %v21991_v46 = vadd.f32 %v9568_v0, %v23179_v10  ;;  %v12666_v3 = vshrl.u32 %v18726_v30, 16  ;;  %v12669_v20 = vshll.u32 %v18726_v30, 16 }
 0x3df   : > { %v10349_v59 = vpop.f32.mrf.mxu0  ;;  %v17789_v26 = vpop.f32.mrf.mxu1  ;;  %v12677_v60 = vrot.slane %v12675_v54, 3  ;;  %v12680_v30 = vrot.slane %v12678_v53, 4  ;;  %v18723_v53 = vld [vmem:[#allocation2 + $0x8c] sm:$0xff]  }
 0x3e0   : > { %v21994_v43 = vadd.f32 %v10349_v59, %v21925_v22  ;;  %v21997_v12 = vadd.f32 %v17789_v26, %v21711_v34  ;;  %v18731_v22 = vld [vmem:[#allocation2 + $0xd0] sm:$0xff]   ;;  %v12664_v34 = vsel %vm1137_vm0, %v12654_v44, %v12663_v9  ;;  %v18733_v59 = vld [vmem:[#allocation2 + $0xd8] sm:$0xff]  }
 0x3e1   : > { %v17844_v48 = vpop.f32.mrf.mxu0  ;;  %18099 = vmatmul.mubr.bf16.gmra.mxu0 %v18718_v24  ;;  %v9571_v0 = vpop.f32.mrf.mxu1  ;;  %v12684_v44 = vshrl.u32 %v18731_v22, 16 }
 0x3e2   : > { %23180 = vst [vmem:[#allocation36_spill] sm:$0xff] %v21994_v43  ;;  %v22000_v10 = vadd.f32 %v17844_v48, %v21933_v49  ;;  %18102 = vmatprep.mubr.bf16.mxu0 %v18720_v23  ;;  %v22003_v27 = vadd.f32 %v9571_v0, %v21719_v4  ;;  %v23183_v49 = vld [vmem:[#allocation30_spill] sm:$0xff]  ;;  %v12668_v4 = vrot.slane %v12666_v3, 3  ;;  %v12671_v23 = vrot.slane %v12669_v20, 4  ;;  %v18725_v3 = vld [vmem:[#allocation2 + $0x94] sm:$0xff]  }
 0x3e3   : > { %v10362_v29 = vpop.f32.mrf.mxu0  ;;  %v17792_v6 = vpop.f32.mrf.mxu1  ;;  %18047 = vmatmul.mubr.bf16.gmra.mxu1 %v12655_v13  ;;  %v23184_v13 = vld [vmem:[#allocation31_spill] sm:$0xff] }
 0x3e4   : > { %23181 = vst [vmem:[#allocation37_spill] sm:$0xff] %v22000_v10  ;;  %v22008_v24 = vadd.f32 %v10362_v29, %v21939_v17  ;;  %v22011_v26 = vadd.f32 %v17792_v6, %v23183_v49  ;;  %18050 = vmatprep.mubr.bf16.mxu1 %v12664_v34  ;;  %v12681_v17 = vor.u32 %v12680_v30, %v12677_v60  ;;  %v12687_v29 = vshll.u32 %v18731_v22, 16  ;;  %v18736_v49 = vld [vmem:[#allocation2 + $0xe0] ss:$0 sps:$4 sm:$0xff]   ;;  %v23186_v60 = vld [vmem:[#allocation32_spill] sm:$0xff] }
 0x3e5   : > { %v17845_v48 = vpop.f32.mrf.mxu0  ;;  %v9584_v21 = vpop.f32.mrf.mxu1  ;;  %v12696_v6 = vshll.u32 %v18733_v59, 16 }
 0x3e6   : > { %23182 = vst [vmem:[#allocation38_spill] sm:$0xff] %v22008_v24  ;;  %v22014_v0 = vadd.f32 %v17845_v48, %v21945_v52  ;;  %v22017_v10 = vadd.f32 %v9584_v21, %v23184_v13  ;;  %v12693_v24 = vshrl.u32 %v18733_v59, 16  ;;  %v12672_v52 = vor.u32 %v12671_v23, %v12668_v4 }
 0x3e7   : > { %v10365_v54 = vpop.f32.mrf.mxu0  ;;  %v17793_v43 = vpop.f32.mrf.mxu1  ;;  %v12698_v23 = vrot.slane %v12696_v6, 4 }
 0x3e8   : > { %v22020_v34 = vadd.f32 %v10365_v54, %v21951_v14  ;;  %v22023_v20 = vadd.f32 %v17793_v43, %v21746_v35  ;;  %v12673_v30 = vsel %vm1137_vm0, %v12663_v9, %v12672_v52  ;;  %v12686_v14 = vrot.slane %v12684_v44, 3 }
 0x3e9   : > { %v17848_v48 = vpop.f32.mrf.mxu0  ;;  %18103 = vmatmul.mubr.bf16.gmra.mxu0 %v18723_v53  ;;  %v9587_v21 = vpop.f32.mrf.mxu1  ;;  %v12682_v35 = vsel %vm1137_vm0, %v12672_v52, %v12681_v17  ;;  %v12689_v43 = vrot.slane %v12687_v29, 4  ;;  %v12695_v4 = vrot.slane %v12693_v24, 3  ;;  %v18739_v53 = vld [vmem:[#allocation2 + $0x24] sm:$0xff]   ;;  %v18727_v29 = vld [vmem:[#allocation2 + $0x9c] sm:$0xff]  }
 0x3ea   : > { %23185 = vst [vmem:[#allocation39_spill] sm:$0xff] %v22020_v34  ;;  %v22026_v13 = vadd.f32 %v17848_v48, %v21959_v37  ;;  %18106 = vmatprep.mubr.bf16.mxu0 %v18725_v3  ;;  %v22029_v22 = vadd.f32 %v9587_v21, %v23186_v60  ;;  %v12702_v3 = vshrl.u32 %v18736_v49, 16  ;;  %v12705_v48 = vshll.u32 %v18736_v49, 16 }
 0x3eb   : > { %v10378_v59 = vpop.f32.mrf.mxu0  ;;  %v17796_v54 = vpop.f32.mrf.mxu1  ;;  %18051 = vmatmul.mubr.bf16.gmra.mxu1 %v12673_v30  ;;  %v12690_v60 = vor.u32 %v12689_v43, %v12686_v14  ;;  %v13969_v30 = vshll.u32 %v18739_v53, 16 }
 0x3ec   : > { %v22034_v34 = vadd.f32 %v10378_v59, %v21965_v19  ;;  %v22037_v37 = vadd.f32 %v17796_v54, %v21765_v61  ;;  %18054 = vmatprep.mubr.bf16.mxu1 %v12682_v35  ;;  %v12699_v19 = vor.u32 %v12698_v23, %v12695_v4  ;;  %v18730_v59 = vld [vmem:[#allocation2 + $0xa4] sm:$0xff]   ;;  %v12704_v54 = vrot.slane %v12702_v3, 3  ;;  %v18742_v3 = vld [vmem:[#allocation2 + $0x34] sm:$0xff]  }
 0x3ed   : > { %v17849_v9 = vpop.f32.mrf.mxu0  ;;  %v9600_v44 = vpop.f32.mrf.mxu1  ;;  %v12707_v35 = vrot.slane %v12705_v48, 4  ;;  %v13971_v23 = vrot.slane %v13969_v30, 1  ;;  %v18732_v30 = vld [vmem:[#allocation2 + $0xac] sm:$0xff]  }
 0x3ee   : > { %v22040_v21 = vadd.f32 %v17849_v9, %v21971_v42  ;;  %v22043_v52 = vadd.f32 %v9600_v44, %v21772_v51  ;;  %v18740_v51 = vld [vmem:[#allocation2 + $0x2c] sm:$0xff]  }
 0x3ef   : > { %v10381_v24 = vpop.f32.mrf.mxu0  ;;  %v17797_v6 = vpop.f32.mrf.mxu1 }
 0x3f0   : > { %v22046_v61 = vadd.f32 %v10381_v24, %v21977_v8  ;;  %v22049_v49 = vadd.f32 %v17797_v6, %v21783_v15  ;;  %v12691_v8 = vsel %vm1137_vm0, %v12681_v17, %v12690_v60  ;;  %v12700_v15 = vsel %vm1137_vm0, %v12690_v60, %v12699_v19 }
 0x3f1   : > { %v17852_v42 = vpop.f32.mrf.mxu0  ;;  %18107 = vmatmul.mubr.bf16.gmra.mxu0 %v18727_v29  ;;  %v9603_v9 = vpop.f32.mrf.mxu1  ;;  %v13967_v6 = vshrl.u32 %v18739_v53, 16 }
 0x3f2   : > { %v22052_v44 = vadd.f32 %v17852_v42, %v21985_v7  ;;  %18110 = vmatprep.mubr.bf16.mxu0 %v18730_v59  ;;  %v22055_v14 = vadd.f32 %v9603_v9, %v21792_v41  ;;  %v12708_v7 = vor.u32 %v12707_v35, %v12704_v54  ;;  %v13974_v59 = vshll.u32 %v18740_v51, 16 }
 0x3f3   : > { %v10394_v43 = vpop.f32.mrf.mxu0  ;;  %v17800_v4 = vpop.f32.mrf.mxu1  ;;  %18055 = vmatmul.mubr.bf16.gmra.mxu1 %v12691_v8  ;;  %v13982_v8 = vshll.u32 %v18742_v3, 16 }
 0x3f4   : > { %v22060_v48 = vadd.f32 %v10394_v43, %v21991_v46  ;;  %v22063_v24 = vadd.f32 %v17800_v4, %v21802_v56  ;;  %18058 = vmatprep.mubr.bf16.mxu1 %v12700_v15  ;;  %v13972_v46 = vor.u32 %v13971_v23, %v13967_v6  ;;  %v18734_v43 = vld [vmem:[#allocation2 + $0xb4] sm:$0xff]   ;;  %v12709_v53 = vsel %vm1137_vm0, %v12699_v19, %v12708_v7  ;;  %v18746_v19 = vld [vmem:[#allocation2 + $0x44] sm:$0xff]  }
 0x3f5   : > { %v17853_v29 = vpop.f32.mrf.mxu0  ;;  %v9616_v41 = vpop.f32.mrf.mxu1  ;;  %v13976_v4 = vrot.slane %v13974_v59, 1 }
 0x3f6   : > { %v22066_v17 = vadd.f32 %v17853_v29, %v21997_v12  ;;  %v22069_v42 = vadd.f32 %v9616_v41, %v21812_v63  ;;  %v22078_v63 = vld [vmem:[#allocation2 + $0x3c] sm:$0xff]   ;;  %v13984_v41 = vrot.slane %v13982_v8, 1 }
 0x3f7   : > { %v10397_v60 = vpop.f32.mrf.mxu0  ;;  %v17801_v9 = vpop.f32.mrf.mxu1 }
 0x3f8   : > { %v22072_v56 = vadd.f32 %v10397_v60, %v22003_v27  ;;  %v22075_v54 = vadd.f32 %v17801_v9, %v21821_v38  ;;  %v13977_v38 = vsel %vm2618_vm1, %v13972_v46, %v13976_v4  ;;  %v13986_v60 = vshrl.u32 %v18742_v3, 16 }
 0x3f9   : > { %v17856_v35 = vpop.f32.mrf.mxu0  ;;  %18111 = vmatmul.mubr.bf16.gmra.mxu0 %v18732_v30  ;;  %v9619_v12 = vpop.f32.mrf.mxu1  ;;  %v13978_v9 = vshrl.u32 %v18740_v51, 16 }
 0x3fa   : > { %v22081_v15 = vadd.f32 %v17856_v35, %v22011_v26  ;;  %18114 = vmatprep.mubr.bf16.mxu0 %v18734_v43  ;;  %v22084_v23 = vadd.f32 %v9619_v12, %v21828_v16  ;;  %v13990_v16 = vshll.u32 %v22078_v63, 16  ;;  %v18737_v43 = vld [vmem:[#allocation2 + $0xbc] sm:$0xff]   ;;  %v13998_v35 = vshll.u32 %v18746_v19, 16  ;;  %v18738_v12 = vld [vmem:[#allocation2 + $0xc4] sm:$0xff]  }
 0x3fb   : > { %v10410_v27 = vpop.f32.mrf.mxu0  ;;  %v17804_v29 = vpop.f32.mrf.mxu1  ;;  %18059 = vmatmul.mubr.bf16.gmra.mxu1 %v12709_v53  ;;  %v13988_v53 = vor.u32 %v13986_v60, %v13984_v41 }
 0x3fc   : > { %v22088_v7 = vadd.f32 %v10410_v27, %v22017_v10  ;;  %v22091_v6 = vadd.f32 %v17804_v29, %v21837_v18  ;;  %18142 = vmatprep.mubr.bf16.mxu1 %v13977_v38  ;;  %v13980_v27 = vor.u32 %v13978_v9, %v13976_v4  ;;  %v13992_v51 = vrot.slane %v13990_v16, 1  ;;  %v22106_v38 = vld [vmem:[#allocation2 + $0x4c] sm:$0xff]   ;;  %v18748_v9 = vld [vmem:[#allocation2 + $0x54] sm:$0xff]  }
 0x3fd   : > { %v17857_v26 = vpop.f32.mrf.mxu0  ;;  %v9632_v59 = vpop.f32.mrf.mxu1  ;;  %v14000_v60 = vrot.slane %v13998_v35, 1 }
 0x3fe   : > { %v22095_v30 = vadd.f32 %v17857_v26, %v22023_v20  ;;  %v22098_v46 = vadd.f32 %v9632_v59, %v21846_v25 }
 0x3ff   : > { %v10413_v8 = vpop.f32.mrf.mxu0  ;;  %v17805_v10 = vpop.f32.mrf.mxu1 }
 0x400   : > { %v22101_v18 = vadd.f32 %v10413_v8, %v22029_v22  ;;  %v22104_v3 = vadd.f32 %v17805_v10, %v21855_v39  ;;  %v13985_v22 = vsel %vm2618_vm1, %v13980_v27, %v13984_v41  ;;  %v13993_v39 = vsel %vm2618_vm1, %v13988_v53, %v13992_v51 }
 0x401   : > { %v17860_v29 = vpop.f32.mrf.mxu0  ;;  %18115 = vmatmul.mubr.bf16.gmra.mxu0 %v18737_v43  ;;  %v9635_v20 = vpop.f32.mrf.mxu1  ;;  %v14006_v10 = vshll.u32 %v22106_v38, 16  ;;  %v13994_v53 = vshrl.u32 %v22078_v63, 16 }
 0x402   : > { %v22109_v25 = vadd.f32 %v17860_v29, %v22037_v37  ;;  %18118 = vmatprep.mubr.bf16.mxu0 %v18738_v12  ;;  %v22112_v26 = vadd.f32 %v9635_v20, %v21861_v11  ;;  %v14002_v11 = vshrl.u32 %v18746_v19, 16 }
 0x403   : > { %v10426_v59 = vpop.f32.mrf.mxu0  ;;  %v17888_v4 = vpop.f32.mrf.mxu1  ;;  %18143 = vmatmul.mubr.bf16.vlgmr.msra.gmra.mxu1 %v13985_v22  ;;  %v18743_v22 = vld [vmem:[#allocation2 + $0xd4] sm:$0xff]  }
 0x404   : > { %v22117_v16 = vadd.f32 %v10426_v59, %v22043_v52  ;;  %v22120_v8 = vadd.f32 %v17888_v4, %v21870_v47  ;;  %18146 = vmatprep.mubr.bf16.mxu1 %v13993_v39  ;;  %v18741_v52 = vld [vmem:[#allocation2 + $0xcc] sm:$0xff]   ;;  %v14004_v29 = vor.u32 %v14002_v11, %v14000_v60  ;;  %v14014_v47 = vshll.u32 %v18748_v9, 16  ;;  %v18749_v39 = vld [vmem:[#allocation2 + $0x5c] sm:$0xff]  }
 0x405   : > { %v17861_v37 = vpop.f32.mrf.mxu0  ;;  %v11136_v43 = vpop.f32.mrf.mxu1  ;;  %v13996_v59 = vor.u32 %v13994_v53, %v13992_v51  ;;  %v18750_v53 = vld [vmem:[#allocation2 + $0x64] sm:$0xff]  }
 0x406   : > { %v22124_v41 = vadd.f32 %v17861_v37, %v22049_v49  ;;  %v22127_v12 = vadd.f32 %v11136_v43, %v21878_v32  ;;  %v14008_v32 = vrot.slane %v14006_v10, 1  ;;  %v14016_v51 = vrot.slane %v14014_v47, 1 }
 0x407   : > { %v10429_v35 = vpop.f32.mrf.mxu0  ;;  %v17889_v27 = vpop.f32.mrf.mxu1 }
 0x408   : > { %v22131_v20 = vadd.f32 %v10429_v35, %v22055_v14  ;;  %v22134_v19 = vadd.f32 %v17889_v27, %v21884_v31  ;;  %v14001_v14 = vsel %vm2618_vm1, %v13996_v59, %v14000_v60  ;;  %v14009_v31 = vsel %vm2618_vm1, %v14004_v29, %v14008_v32 }
 0x409   : > { %v17864_v49 = vpop.f32.mrf.mxu0  ;;  %18119 = vmatmul.mubr.bf16.gmra.mxu0 %v18741_v52  ;;  %v11139_v4 = vpop.f32.mrf.mxu1  ;;  %v18745_v52 = vld [vmem:[#allocation2 + $0xdc] sm:$0xff]   ;;  %v14018_v27 = vshrl.u32 %v18748_v9, 16  ;;  %v14010_v29 = vshrl.u32 %v22106_v38, 16 }
 0x40a   : > { %v22137_v63 = vadd.f32 %v17864_v49, %v22063_v24  ;;  %18122 = vmatprep.mubr.bf16.mxu0 %v18743_v22  ;;  %v22140_v37 = vadd.f32 %v11139_v4, %v21890_v2  ;;  %v14022_v22 = vshll.u32 %v18749_v39, 16  ;;  %v14030_v4 = vshll.u32 %v18750_v53, 16 }
 0x40b   : > { %v10442_v43 = vpop.f32.mrf.mxu0  ;;  %v17892_v11 = vpop.f32.mrf.mxu1  ;;  %18147 = vmatmul.mubr.bf16.gmra.mxu1 %v14001_v14  ;;  %v14020_v49 = vor.u32 %v14018_v27, %v14016_v51  ;;  %v14012_v9 = vor.u32 %v14010_v29, %v14008_v32  ;;  %v18752_v32 = vld [vmem:[#allocation2 + $0x74] sm:$0xff]  }
 0x40c   : > { %v22145_v35 = vadd.f32 %v10442_v43, %v22069_v42  ;;  %v22148_v10 = vadd.f32 %v17892_v11, %v21896_v45  ;;  %18150 = vmatprep.mubr.bf16.mxu1 %v14009_v31  ;;  %v14024_v11 = vrot.slane %v14022_v22, 1  ;;  %v18751_v31 = vld [vmem:[#allocation2 + $0x6c] sm:$0xff]   ;;  %v14032_v27 = vrot.slane %v14030_v4, 1 }
 0x40d   : > { %v17865_v24 = vpop.f32.mrf.mxu0  ;;  %v11152_v2 = vpop.f32.mrf.mxu1 }
 0x40e   : > { %v22151_v60 = vadd.f32 %v17865_v24, %v22075_v54  ;;  %v22154_v59 = vadd.f32 %v11152_v2, %v21904_v36  ;;  %v14017_v24 = vsel %vm2618_vm1, %v14012_v9, %v14016_v51 }
 0x40f   : > { %v10445_v47 = vpop.f32.mrf.mxu0  ;;  %v17893_v42 = vpop.f32.mrf.mxu1 }
 0x410   : > { %v22158_v45 = vadd.f32 %v10445_v47, %v22084_v23  ;;  %v22161_v14 = vadd.f32 %v17893_v42, %v21910_v40  ;;  %v14025_v40 = vsel %vm2618_vm1, %v14020_v49, %v14024_v11  ;;  %v14038_v47 = vshll.u32 %v18751_v31, 16 }
 0x411   : > { %v17868_v43 = vpop.f32.mrf.mxu0  ;;  %18123 = vmatmul.mubr.bf16.gmra.mxu0 %v18745_v52  ;;  %v11155_v54 = vpop.f32.mrf.mxu1  ;;  %v14026_v49 = vshrl.u32 %v18749_v39, 16 }
 0x412   : > { %v22164_v36 = vadd.f32 %v17868_v43, %v22091_v6  ;;  %v22167_v38 = vadd.f32 %v11155_v54, %v21916_v1  ;;  %v14034_v1 = vshrl.u32 %v18750_v53, 16 }
 0x413   : > { %v10458_v2 = vpop.f32.mrf.mxu0  ;;  %v17896_v23 = vpop.f32.mrf.mxu1  ;;  %18151 = vmatmul.mubr.bf16.gmra.mxu1 %v14017_v24  ;;  %v14028_v24 = vor.u32 %v14026_v49, %v14024_v11 }
 0x414   : > { %v22172_v52 = vadd.f32 %v10458_v2, %v22098_v46  ;;  %v22175_v22 = vadd.f32 %v17896_v23, %v21922_v33  ;;  %18154 = vmatprep.mubr.bf16.mxu1 %v14025_v40  ;;  %v14036_v43 = vor.u32 %v14034_v1, %v14032_v27  ;;  %v14046_v46 = vshll.u32 %v18752_v32, 16  ;;  %v18754_v1 = vld [vmem:[#allocation2 + $0x84] sm:$0xff]  }
 0x415   : > { %v17869_v6 = vpop.f32.mrf.mxu0  ;;  %v11168_v29 = vpop.f32.mrf.mxu1  ;;  %v14040_v23 = vrot.slane %v14038_v47, 1  ;;  %v14033_v39 = vsel %vm2618_vm1, %v14028_v24, %v14032_v27 }
 0x416   : > { %v22178_v51 = vadd.f32 %v17869_v6, %v22104_v3  ;;  %v22181_v42 = vadd.f32 %v11168_v29, %v21930_v50  ;;  %v18753_v3 = vld [vmem:[#allocation2 + $0x7c] sm:$0xff]  }
 0x417   : > { %v10461_v4 = vpop.f32.mrf.mxu0  ;;  %v17897_v9 = vpop.f32.mrf.mxu1 }
 0x418   : > { %v22184_v54 = vadd.f32 %v10461_v4, %v22112_v26  ;;  %v22187_v33 = vadd.f32 %v17897_v9, %v21936_v55  ;;  %v14041_v26 = vsel %vm2618_vm1, %v14036_v43, %v14040_v23  ;;  %v14048_v55 = vrot.slane %v14046_v46, 1 }
 0x419   : > { %v17952_v53 = vpop.f32.mrf.mxu0  ;;  %v11171_v2 = vpop.f32.mrf.mxu1  ;;  %v14054_v4 = vshll.u32 %v18753_v3, 16  ;;  %v14042_v43 = vshrl.u32 %v18751_v31, 16 }
 0x41a   : > { %v22190_v40 = vadd.f32 %v17952_v53, %v22120_v8  ;;  %v22193_v50 = vadd.f32 %v11171_v2, %v21942_v5  ;;  %v14050_v5 = vshrl.u32 %v18752_v32, 16 }
 0x41b   : > { %v11962_v6 = vpop.f32.mrf.mxu0  ;;  %v17900_v29 = vpop.f32.mrf.mxu1  ;;  %18155 = vmatmul.mubr.bf16.gmra.mxu1 %v14033_v39 }
 0x41c   : > { %v22198_v11 = vadd.f32 %v11962_v6, %v22127_v12  ;;  %v22201_v47 = vadd.f32 %v17900_v29, %v21948_v28  ;;  %18158 = vmatprep.mubr.bf16.mxu1 %v14041_v26  ;;  %v14052_v53 = vor.u32 %v14050_v5, %v14048_v55  ;;  %v14062_v12 = vshll.u32 %v18754_v1, 16  ;;  %v23187_v28 = vld [vmem:[#allocation33_spill] sm:$0xff] }
 0x41d   : > { %v17953_v8 = vpop.f32.mrf.mxu0  ;;  %v11184_v49 = vpop.f32.mrf.mxu1  ;;  %v14044_v6 = vor.u32 %v14042_v43, %v14040_v23  ;;  %v14056_v26 = vrot.slane %v14054_v4, 1  ;;  %v23190_v4 = vld [vmem:[#allocation34_spill] sm:$0xff] }
 0x41e   : > { %v22204_v27 = vadd.f32 %v17953_v8, %v22134_v19  ;;  %v22207_v9 = vadd.f32 %v11184_v49, %v21956_v58  ;;  %v18755_v19 = vld [vmem:[#allocation2 + $0x8c] sm:$0xff]  }
 0x41f   : > { %v11965_v46 = vpop.f32.mrf.mxu0  ;;  %v17901_v24 = vpop.f32.mrf.mxu1  ;;  %v14049_v31 = vsel %vm2618_vm1, %v14044_v6, %v14048_v55  ;;  %v23192_v6 = vld [vmem:[#allocation35_spill] sm:$0xff] }
 0x420   : > { %v22210_v2 = vadd.f32 %v11965_v46, %v22140_v37  ;;  %v22213_v39 = vadd.f32 %v17901_v24, %v23187_v28  ;;  %v14057_v37 = vsel %vm2618_vm1, %v14052_v53, %v14056_v26  ;;  %v14064_v46 = vrot.slane %v14062_v12, 1  ;;  %v18756_v24 = vld [vmem:[#allocation2 + $0x94] sm:$0xff]  }
 0x421   : > { %v17956_v32 = vpop.f32.mrf.mxu0  ;;  %v11187_v29 = vpop.f32.mrf.mxu1  ;;  %v14058_v53 = vshrl.u32 %v18753_v3, 16 }
 0x422   : > { %v22216_v8 = vadd.f32 %v17956_v32, %v22148_v10  ;;  %v22219_v58 = vadd.f32 %v11187_v29, %v21968_v62  ;;  %v14066_v62 = vshrl.u32 %v18754_v1, 16  ;;  %v14070_v32 = vshll.u32 %v18755_v19, 16 }
 0x423   : > { %v11978_v49 = vpop.f32.mrf.mxu0  ;;  %v17904_v5 = vpop.f32.mrf.mxu1  ;;  %18159 = vmatmul.mubr.bf16.gmra.mxu1 %v14049_v31 }
 0x424   : > { %23188 = vst [vmem:[#allocation40_spill] sm:$0xff] %v22216_v8  ;;  %v22224_v23 = vadd.f32 %v11978_v49, %v22154_v59  ;;  %v22227_v43 = vadd.f32 %v17904_v5, %v23190_v4  ;;  %18162 = vmatprep.mubr.bf16.mxu1 %v14057_v37  ;;  %v14068_v8 = vor.u32 %v14066_v62, %v14064_v46  ;;  %v14078_v59 = vshll.u32 %v18756_v24, 16 }
 0x425   : > { %v17957_v10 = vpop.f32.mrf.mxu0  ;;  %v11200_v28 = vpop.f32.mrf.mxu1  ;;  %v14060_v37 = vor.u32 %v14058_v53, %v14056_v26 }
 0x426   : > { %23189 = vst [vmem:[#allocation41_spill] sm:$0xff] %v22224_v23  ;;  %v22230_v55 = vadd.f32 %v17957_v10, %v22161_v14  ;;  %v22233_v29 = vadd.f32 %v11200_v28, %v23192_v6  ;;  %v14072_v23 = vrot.slane %v14070_v32, 1  ;;  %v18757_v14 = vld [vmem:[#allocation2 + $0x9c] sm:$0xff]   ;;  %v23194_v28 = vld [vmem:[#allocation36_spill] sm:$0xff] }
 0x427   : > { %v11981_v12 = vpop.f32.mrf.mxu0  ;;  %v17905_v31 = vpop.f32.mrf.mxu1  ;;  %v14065_v62 = vsel %vm2618_vm1, %v14060_v37, %v14064_v46  ;;  %v23196_v32 = vld [vmem:[#allocation37_spill] sm:$0xff]  ;;  %v23198_v37 = vld [vmem:[#allocation38_spill] sm:$0xff] }
 0x428   : > { %23191 = vst [vmem:[#allocation42_spill] sm:$0xff] %v22230_v55  ;;  %v22236_v49 = vadd.f32 %v11981_v12, %v22167_v38  ;;  %v22239_v5 = vadd.f32 %v17905_v31, %v21988_v57  ;;  %v14073_v38 = vsel %vm2618_vm1, %v14068_v8, %v14072_v23  ;;  %v14080_v57 = vrot.slane %v14078_v59, 1  ;;  %v18758_v12 = vld [vmem:[#allocation2 + $0xa4] sm:$0xff]  }
 0x429   : > { %v17960_v1 = vpop.f32.mrf.mxu0  ;;  %v11203_v4 = vpop.f32.mrf.mxu1  ;;  %v14074_v8 = vshrl.u32 %v18755_v19, 16 }
 0x42a   : > { %v22242_v10 = vadd.f32 %v17960_v1, %v22175_v22  ;;  %v22245_v3 = vadd.f32 %v11203_v4, %v23194_v28  ;;  %v14082_v1 = vshrl.u32 %v18756_v24, 16  ;;  %v14086_v4 = vshll.u32 %v18757_v14, 16 }
 0x42b   : > { %v11994_v6 = vpop.f32.mrf.mxu0  ;;  %v17908_v55 = vpop.f32.mrf.mxu1  ;;  %18163 = vmatmul.mubr.bf16.gmra.mxu1 %v14065_v62 }
 0x42c   : > { %23193 = vst [vmem:[#allocation43_spill] sm:$0xff] %v22242_v10  ;;  %v22250_v26 = vadd.f32 %v11994_v6, %v22181_v42  ;;  %v22253_v53 = vadd.f32 %v17908_v55, %v23196_v32  ;;  %18166 = vmatprep.mubr.bf16.mxu1 %v14073_v38  ;;  %v14084_v10 = vor.u32 %v14082_v1, %v14080_v57  ;;  %v14094_v42 = vshll.u32 %v18758_v12, 16 }
 0x42d   : > { %v17961_v22 = vpop.f32.mrf.mxu0  ;;  %v11216_v31 = vpop.f32.mrf.mxu1  ;;  %v14076_v38 = vor.u32 %v14074_v8, %v14072_v23 }
 0x42e   : > { %23195 = vst [vmem:[#allocation44_spill] sm:$0xff] %v22250_v26  ;;  %v22256_v46 = vadd.f32 %v17961_v22, %v22187_v33  ;;  %v22259_v28 = vadd.f32 %v11216_v31, %v23198_v37  ;;  %v14088_v26 = vrot.slane %v14086_v4, 1  ;;  %v18759_v33 = vld [vmem:[#allocation2 + $0xac] sm:$0xff]  }
 0x42f   : > { %v11997_v59 = vpop.f32.mrf.mxu0  ;;  %v17909_v62 = vpop.f32.mrf.mxu1  ;;  %v23199_v31 = vld [vmem:[#allocation39_spill] sm:$0xff]  ;;  %v14081_v1 = vsel %vm2618_vm1, %v14076_v38, %v14080_v57 }
 0x430   : > { %23197 = vst [vmem:[#allocation45_spill] sm:$0xff] %v22256_v46  ;;  %v22262_v6 = vadd.f32 %v11997_v59, %v22193_v50  ;;  %v22265_v55 = vadd.f32 %v17909_v62, %v22014_v0  ;;  %v14089_v50 = vsel %vm2618_vm1, %v14084_v10, %v14088_v26  ;;  %v14096_v0 = vrot.slane %v14094_v42, 1  ;;  %v18760_v59 = vld [vmem:[#allocation2 + $0xb4] sm:$0xff]  }
 0x431   : > { %v17964_v24 = vpop.f32.mrf.mxu0  ;;  %v11219_v32 = vpop.f32.mrf.mxu1  ;;  %v14098_v62 = vshrl.u32 %v18758_v12, 16  ;;  %v14090_v10 = vshrl.u32 %v18757_v14, 16 }
 0x432   : > { %v22268_v22 = vadd.f32 %v17964_v24, %v22201_v47  ;;  %v22271_v19 = vadd.f32 %v11219_v32, %v23199_v31  ;;  %v14102_v24 = vshll.u32 %v18759_v33, 16 }
 0x433   : > { %v12010_v37 = vpop.f32.mrf.mxu0  ;;  %v17912_v46 = vpop.f32.mrf.mxu1  ;;  %18167 = vmatmul.mubr.bf16.gmra.mxu1 %v14081_v1  ;;  %v14100_v31 = vor.u32 %v14098_v62, %v14096_v0 }
 0x434   : > { %v22276_v23 = vadd.f32 %v12010_v37, %v22207_v9  ;;  %v22279_v4 = vadd.f32 %v17912_v46, %v22026_v13  ;;  %18170 = vmatprep.mubr.bf16.mxu1 %v14089_v50  ;;  %v14110_v9 = vshll.u32 %v18760_v59, 16  ;;  %v14092_v46 = vor.u32 %v14090_v10, %v14088_v26 }
 0x435   : > { %v17965_v47 = vpop.f32.mrf.mxu0  ;;  %v11232_v8 = vpop.f32.mrf.mxu1  ;;  %v14104_v50 = vrot.slane %v14102_v24, 1 }
 0x436   : > { %v22282_v57 = vadd.f32 %v17965_v47, %v22213_v39  ;;  %v22285_v38 = vadd.f32 %v11232_v8, %v22034_v34  ;;  %v18761_v39 = vld [vmem:[#allocation2 + $0xbc] sm:$0xff]   ;;  %v14097_v14 = vsel %vm2618_vm1, %v14092_v46, %v14096_v0 }
 0x437   : > { %v12013_v42 = vpop.f32.mrf.mxu0  ;;  %v17913_v32 = vpop.f32.mrf.mxu1 }
 0x438   : > { %v22288_v1 = vadd.f32 %v12013_v42, %v22219_v58  ;;  %v22291_v13 = vadd.f32 %v17913_v32, %v22040_v21  ;;  %v14105_v58 = vsel %vm2618_vm1, %v14100_v31, %v14104_v50  ;;  %v14112_v21 = vrot.slane %v14110_v9, 1  ;;  %v18762_v42 = vld [vmem:[#allocation2 + $0xc4] sm:$0xff]  }
 0x439   : > { %v17968_v12 = vpop.f32.mrf.mxu0  ;;  %v11235_v37 = vpop.f32.mrf.mxu1  ;;  %v14118_v32 = vshll.u32 %v18761_v39, 16  ;;  %v14106_v31 = vshrl.u32 %v18759_v33, 16 }
 0x43a   : > { %v22294_v47 = vadd.f32 %v17968_v12, %v22227_v43  ;;  %v22297_v34 = vadd.f32 %v11235_v37, %v22046_v61  ;;  %v14114_v61 = vshrl.u32 %v18760_v59, 16 }
 0x43b   : > { %v12026_v8 = vpop.f32.mrf.mxu0  ;;  %v17916_v62 = vpop.f32.mrf.mxu1  ;;  %18171 = vmatmul.mubr.bf16.gmra.mxu1 %v14097_v14 }
 0x43c   : > { %v22302_v26 = vadd.f32 %v12026_v8, %v22233_v29  ;;  %v22305_v24 = vadd.f32 %v17916_v62, %v22052_v44  ;;  %18174 = vmatprep.mubr.bf16.mxu1 %v14105_v58  ;;  %v14116_v37 = vor.u32 %v14114_v61, %v14112_v21  ;;  %v14126_v29 = vshll.u32 %v18762_v42, 16 }
 0x43d   : > { %v17969_v43 = vpop.f32.mrf.mxu0  ;;  %v11248_v10 = vpop.f32.mrf.mxu1  ;;  %v14108_v8 = vor.u32 %v14106_v31, %v14104_v50  ;;  %v14120_v58 = vrot.slane %v14118_v32, 1 }
 0x43e   : > { %v22308_v0 = vadd.f32 %v17969_v43, %v22239_v5  ;;  %v22311_v46 = vadd.f32 %v11248_v10, %v22060_v48  ;;  %v18763_v5 = vld [vmem:[#allocation2 + $0xcc] sm:$0xff]  }
 0x43f   : > { %v12029_v9 = vpop.f32.mrf.mxu0  ;;  %v17917_v12 = vpop.f32.mrf.mxu1  ;;  %v14113_v33 = vsel %vm2618_vm1, %v14108_v8, %v14112_v21 }
 0x440   : > { %v22314_v14 = vadd.f32 %v12029_v9, %v22245_v3  ;;  %v22317_v44 = vadd.f32 %v17917_v12, %v22066_v17  ;;  %v14121_v3 = vsel %vm2618_vm1, %v14116_v37, %v14120_v58  ;;  %v14128_v17 = vrot.slane %v14126_v29, 1  ;;  %v18764_v9 = vld [vmem:[#allocation2 + $0xd4] sm:$0xff]  }
 0x441   : > { %v17972_v59 = vpop.f32.mrf.mxu0  ;;  %v11251_v62 = vpop.f32.mrf.mxu1  ;;  %v14134_v12 = vshll.u32 %v18763_v5, 16  ;;  %v14122_v37 = vshrl.u32 %v18761_v39, 16 }
 0x442   : > { %v22320_v43 = vadd.f32 %v17972_v59, %v22253_v53  ;;  %v22323_v48 = vadd.f32 %v11251_v62, %v22072_v56  ;;  %v14130_v56 = vshrl.u32 %v18762_v42, 16 }
 0x443   : > { %v12042_v10 = vpop.f32.mrf.mxu0  ;;  %v17920_v61 = vpop.f32.mrf.mxu1  ;;  %18175 = vmatmul.mubr.bf16.gmra.mxu1 %v14113_v33  ;;  %v18765_v33 = vld [vmem:[#allocation2 + $0xdc] sm:$0xff]   ;;  %v14124_v42 = vor.u32 %v14122_v37, %v14120_v58  ;;  %v18766_v37 = vld [vmem:[#allocation2 + $0xe4] ss:$0 sps:$4 sm:$0x11]  }
 0x444   : > { %v22328_v50 = vadd.f32 %v12042_v10, %v22259_v28  ;;  %v22331_v32 = vadd.f32 %v17920_v61, %v22081_v15  ;;  %18178 = vmatprep.mubr.bf16.mxu1 %v14121_v3  ;;  %v14132_v62 = vor.u32 %v14130_v56, %v14128_v17  ;;  %v14142_v28 = vshll.u32 %v18764_v9, 16 }
 0x445   : > { %v17973_v53 = vpop.f32.mrf.mxu0  ;;  %v11264_v31 = vpop.f32.mrf.mxu1  ;;  %v14129_v39 = vsel %vm2618_vm1, %v14124_v42, %v14128_v17 }
 0x446   : > { %v22334_v21 = vadd.f32 %v17973_v53, %v22265_v55  ;;  %v22337_v8 = vadd.f32 %v11264_v31, %v22088_v7  ;;  %v14136_v55 = vrot.slane %v14134_v12, 1 }
 0x447   : > { %v12045_v29 = vpop.f32.mrf.mxu0  ;;  %v17921_v59 = vpop.f32.mrf.mxu1 }
 0x448   : > { %v22340_v15 = vadd.f32 %v12045_v29, %v22271_v19  ;;  %v22343_v10 = vadd.f32 %v17921_v59, %v22095_v30  ;;  %v14137_v19 = vsel %vm2618_vm1, %v14132_v62, %v14136_v55  ;;  %v14144_v29 = vrot.slane %v14142_v28, 1 }
 0x449   : > { %v17976_v61 = vpop.f32.mrf.mxu0  ;;  %v11267_v3 = vpop.f32.mrf.mxu1  ;;  %v14150_v30 = vshll.u32 %v18765_v33, 16 }
 0x44a   : > { %v22346_v53 = vadd.f32 %v17976_v61, %v22279_v4  ;;  %v22349_v7 = vadd.f32 %v11267_v3, %v22101_v18  ;;  %v14138_v4 = vshrl.u32 %v18763_v5, 16  ;;  %v14146_v61 = vshrl.u32 %v18764_v9, 16 }
 0x44b   : > { %v12058_v31 = vpop.f32.mrf.mxu0  ;;  %v17924_v56 = vpop.f32.mrf.mxu1  ;;  %18179 = vmatmul.mubr.bf16.gmra.mxu1 %v14129_v39  ;;  %v14154_v5 = vshrl.u32 %v18765_v33, 16 }
 0x44c   : > { %23200 = vst [vmem:[#allocation46_spill] sm:$0xff] %v22346_v53  ;;  %v22354_v58 = vadd.f32 %v12058_v31, %v22285_v38  ;;  %v11365_v12 = vadd.f32 %v17924_v56, %v22109_v25  ;;  %18182 = vmatprep.mubr.bf16.mxu1 %v14137_v19  ;;  %v14140_v3 = vor.u32 %v14138_v4, %v14136_v55  ;;  %v14152_v53 = vrot.slane %v14150_v30, 1 }
 0x44d   : > { %v17977_v59 = vpop.f32.mrf.mxu0  ;;  %v11280_v18 = vpop.f32.mrf.mxu1  ;;  %v14148_v39 = vor.u32 %v14146_v61, %v14144_v29  ;;  %v14158_v31 = vshll.u32 %v18766_v37, 16 }
 0x44e   : > { %v22358_v17 = vadd.f32 %v17977_v59, %v22291_v13  ;;  %v11363_v42 = vadd.f32 %v11280_v18, %v22117_v16  ;;  %v14145_v16 = vsel %vm2618_vm1, %v14140_v3, %v14144_v29  ;;  %v14156_v33 = vor.u32 %v14154_v5, %v14152_v53 }
 0x44f   : > { %v12061_v62 = vpop.f32.mrf.mxu0  ;;  %v17925_v28 = vpop.f32.mrf.mxu1  ;;  %v14153_v30 = vsel %vm2618_vm1, %v14148_v39, %v14152_v53  ;;  %v14160_v37 = vrot.slane %v14158_v31, 1 }
 0x450   : > { %v22362_v38 = vadd.f32 %v12061_v62, %v22297_v34  ;;  %v11366_v25 = vadd.f32 %v17925_v28, %v22124_v41 }
 0x451   : > { %v17980_v56 = vpop.f32.mrf.mxu0  ;;  %v11283_v19 = vpop.f32.mrf.mxu1  ;;  %v14161_v62 = vsel %vm2618_vm1, %v14156_v33, %v14160_v37 }
 0x452   : > { %v22366_v9 = vadd.f32 %v17980_v56, %v22305_v24  ;;  %v11364_v13 = vadd.f32 %v11283_v19, %v22131_v20 }
 0x453   : > { %v12074_v55 = vpop.f32.mrf.mxu0  ;;  %v17928_v4 = vpop.f32.mrf.mxu1  ;;  %18183 = vmatmul.mubr.bf16.gmra.mxu1 %v14145_v16 }
 0x454   : > { %v22372_v34 = vadd.f32 %v12074_v55, %v22311_v46  ;;  %v11369_v41 = vadd.f32 %v17928_v4, %v22137_v63  ;;  %18186 = vmatprep.mubr.bf16.mxu1 %v14153_v30 }
 0x455   : > { %v17981_v59 = vpop.f32.mrf.mxu0  ;;  %v11296_v24 = vpop.f32.mrf.mxu1 }
 0x456   : > { %v22376_v18 = vadd.f32 %v17981_v59, %v22317_v44  ;;  %v11367_v20 = vadd.f32 %v11296_v24, %v22145_v35 }
 0x457   : > { %v12077_v29 = vpop.f32.mrf.mxu0  ;;  %v17929_v61 = vpop.f32.mrf.mxu1 }
 0x458   : > { %v22380_v3 = vadd.f32 %v12077_v29, %v22323_v48  ;;  %v11370_v46 = vadd.f32 %v17929_v61, %v22151_v60 }
 0x459   : > { %v17984_v63 = vpop.f32.mrf.mxu0  ;;  %v11299_v28 = vpop.f32.mrf.mxu1 }
 0x45a   : > { %v22385_v53 = vadd.f32 %v17984_v63, %v22331_v32  ;;  %v11368_v39 = vadd.f32 %v11299_v28, %v22158_v45 }
 0x45b   : > { %v12090_v44 = vpop.f32.mrf.mxu0  ;;  %v17932_v5 = vpop.f32.mrf.mxu1  ;;  %18187 = vmatmul.mubr.bf16.gmra.mxu1 %v14161_v62 }
 0x45c   : > { %v22389_v35 = vadd.f32 %v12090_v44, %v22337_v8  ;;  %v11373_v48 = vadd.f32 %v17932_v5, %v22164_v36 }
 0x45d   : > { %v17985_v31 = vpop.f32.mrf.mxu0  ;;  %v11312_v56 = vpop.f32.mrf.mxu1 }
 0x45e   : > { %v22393_v60 = vadd.f32 %v17985_v31, %v22343_v10  ;;  %v11371_v19 = vadd.f32 %v11312_v56, %v22172_v52 }
 0x45f   : > { %v12093_v16 = vpop.f32.mrf.mxu0  ;;  %v17933_v32 = vpop.f32.mrf.mxu1 }
 0x460   : > { %v22397_v55 = vadd.f32 %v12093_v16, %v22349_v7  ;;  %v11374_v45 = vadd.f32 %v17933_v32, %v22178_v51 }
 0x461   : > { %v17988_v4 = vpop.f32.mrf.mxu0  ;;  %v11315_v30 = vpop.f32.mrf.mxu1 }
 0x462   : > { %v22400_v8 = vadd.f32 %v17988_v4, %v11365_v12  ;;  %v11372_v36 = vadd.f32 %v11315_v30, %v22184_v54 }
 0x463   : > { %v12106_v33 = vpop.f32.mrf.mxu0  ;;  %v18016_v37 = vpop.f32.mrf.mxu1 }
 0x464   : > { %v22403_v59 = vadd.f32 %v12106_v33, %v11363_v42  ;;  %v22406_v10 = vadd.f32 %v18016_v37, %v22190_v40 }
 0x465   : > { %v17989_v52 = vpop.f32.mrf.mxu0  ;;  %v12816_v24 = vpop.f32.mrf.mxu1 }
 0x466   : > { %v22408_v29 = vadd.f32 %v17989_v52, %v11366_v25  ;;  %v22411_v7 = vadd.f32 %v12816_v24, %v22198_v11  ;;  %v23201_v11 = vld [vmem:[#allocation40_spill] sm:$0xff] }
 0x467   : > { %v12109_v51 = vpop.f32.mrf.mxu0  ;;  %v18017_v61 = vpop.f32.mrf.mxu1 }
 0x468   : > { %v22413_v12 = vadd.f32 %v12109_v51, %v11364_v13  ;;  %v22416_v54 = vadd.f32 %v18017_v61, %v22204_v27  ;;  %v23202_v27 = vld [vmem:[#allocation41_spill] sm:$0xff]  ;;  %v23204_v61 = vld [vmem:[#allocation43_spill] sm:$0xff] }
 0x469   : > { %v17992_v62 = vpop.f32.mrf.mxu0  ;;  %v12819_v42 = vpop.f32.mrf.mxu1 }
 0x46a   : > { %v22418_v63 = vadd.f32 %v17992_v62, %v11369_v41  ;;  %v22421_v40 = vadd.f32 %v12819_v42, %v22210_v2  ;;  %v23203_v2 = vld [vmem:[#allocation42_spill] sm:$0xff] }
 0x46b   : > { %v12122_v28 = vpop.f32.mrf.mxu0  ;;  %v18020_v25 = vpop.f32.mrf.mxu1 }
 0x46c   : > { %v22423_v44 = vadd.f32 %v12122_v28, %v11367_v20  ;;  %v22426_v5 = vadd.f32 %v18020_v25, %v23201_v11  ;;  %v23205_v25 = vld [vmem:[#allocation44_spill] sm:$0xff] }
 0x46d   : > { %v17993_v31 = vpop.f32.mrf.mxu0  ;;  %v12832_v13 = vpop.f32.mrf.mxu1 }
 0x46e   : > { %v22428_v56 = vadd.f32 %v17993_v31, %v11370_v46  ;;  %v22431_v16 = vadd.f32 %v12832_v13, %v23202_v27 }
 0x46f   : > { %v12125_v32 = vpop.f32.mrf.mxu0  ;;  %v18021_v41 = vpop.f32.mrf.mxu1 }
 0x470   : > { %v22433_v4 = vadd.f32 %v12125_v32, %v11368_v39  ;;  %v22436_v30 = vadd.f32 %v18021_v41, %v23203_v2 }
 0x471   : > { %v17996_v33 = vpop.f32.mrf.mxu0  ;;  %v12835_v20 = vpop.f32.mrf.mxu1 }
 0x472   : > { %v22438_v37 = vadd.f32 %v17996_v33, %v11373_v48  ;;  %v22441_v52 = vadd.f32 %v12835_v20, %v22236_v49  ;;  %v23206_v49 = vld [vmem:[#allocation45_spill] sm:$0xff] }
 0x473   : > { %v12138_v24 = vpop.f32.mrf.mxu0  ;;  %v18024_v46 = vpop.f32.mrf.mxu1 }
 0x474   : > { %v22443_v51 = vadd.f32 %v12138_v24, %v11371_v19  ;;  %v22446_v62 = vadd.f32 %v18024_v46, %v23204_v61 }
 0x475   : > { %v17997_v42 = vpop.f32.mrf.mxu0  ;;  %v12848_v39 = vpop.f32.mrf.mxu1 }
 0x476   : > { %v22448_v28 = vadd.f32 %v17997_v42, %v11374_v45  ;;  %v22451_v11 = vadd.f32 %v12848_v39, %v23205_v25 }
 0x477   : > { %v12141_v31 = vpop.f32.mrf.mxu0  ;;  %v18025_v48 = vpop.f32.mrf.mxu1 }
 0x478   : > { %v22453_v13 = vadd.f32 %v12141_v31, %v11372_v36  ;;  %v22456_v27 = vadd.f32 %v18025_v48, %v23206_v49 }
 0x479   : > { %v22458_v32 = vpop.f32.mrf.mxu0  ;;  %v12851_v19 = vpop.f32.mrf.mxu1 }
 0x47a   : > { %v22461_v41 = vadd.f32 %v12851_v19, %v22262_v6 }
 0x47b   : > { %v22463_v2 = vpop.f32.mrf.mxu0  ;;  %v18028_v45 = vpop.f32.mrf.mxu1 }
 0x47c   : > { %v22466_v33 = vadd.f32 %v18028_v45, %v22268_v22 }
 0x47d   : > { %v22468_v20 = vpop.f32.mrf.mxu0  ;;  %v12864_v24 = vpop.f32.mrf.mxu1 }
 0x47e   : > { %v22471_v36 = vadd.f32 %v12864_v24, %v22276_v23 }
 0x47f   : > { %v22473_v46 = vpop.f32.mrf.mxu0  ;;  %v18029_v61 = vpop.f32.mrf.mxu1 }
 0x480   : > { %v22476_v42 = vadd.f32 %v18029_v61, %v22282_v57 }
 0x481   : > { %v22478_v6 = vpop.f32.mrf.mxu0  ;;  %v12867_v39 = vpop.f32.mrf.mxu1 }
 0x482   : > { %23207 = vst [vmem:[#allocation47_spill] sm:$0xff] %v22476_v42  ;;  %v22481_v25 = vadd.f32 %v12867_v39, %v22288_v1 }
 0x483   : > { %v22483_v22 = vpop.f32.mrf.mxu0  ;;  %v18032_v31 = vpop.f32.mrf.mxu1 }
 0x484   : > { %23208 = vst [vmem:[#allocation48_spill] sm:$0xff] %v22481_v25  ;;  %v22486_v48 = vadd.f32 %v18032_v31, %v22294_v47 }
 0x485   : > { %v22488_v23 = vpop.f32.mrf.mxu0  ;;  %v12880_v49 = vpop.f32.mrf.mxu1 }
 0x486   : > { %23209 = vst [vmem:[#allocation49_spill] sm:$0xff] %v22486_v48  ;;  %v22491_v19 = vadd.f32 %v12880_v49, %v22302_v26 }
 0x487   : > { %v22493_v57 = vpop.f32.mrf.mxu0  ;;  %v18033_v45 = vpop.f32.mrf.mxu1 }
 0x488   : > { %23210 = vst [vmem:[#allocation50_spill] sm:$0xff] %v22491_v19  ;;  %v22496_v24 = vadd.f32 %v18033_v45, %v22308_v0 }
 0x489   : > { %v22498_v1 = vpop.f32.mrf.mxu0  ;;  %v12883_v61 = vpop.f32.mrf.mxu1 }
 0x48a   : > { %23211 = vst [vmem:[#allocation51_spill] sm:$0xff] %v22496_v24  ;;  %v22501_v39 = vadd.f32 %v12883_v61, %v22314_v14 }
 0x48b   : > { %v22503_v47 = vpop.f32.mrf.mxu0  ;;  %v18036_v31 = vpop.f32.mrf.mxu1 }
 0x48c   : > { %23212 = vst [vmem:[#allocation52_spill] sm:$0xff] %v22501_v39  ;;  %v22506_v48 = vadd.f32 %v18036_v31, %v22320_v43  ;;  %v23215_v31 = vld [vmem:[#allocation46_spill] sm:$0xff] }
 0x48d   : > { %v22508_v26 = vpop.f32.mrf.mxu0  ;;  %v12896_v49 = vpop.f32.mrf.mxu1 }
 0x48e   : > { %23213 = vst [vmem:[#allocation53_spill] sm:$0xff] %v22506_v48  ;;  %v22511_v19 = vadd.f32 %v12896_v49, %v22328_v50 }
 0x48f   : > { %v22513_v0 = vpop.f32.mrf.mxu0  ;;  %v18037_v45 = vpop.f32.mrf.mxu1 }
 0x490   : > { %v22516_v24 = vadd.f32 %v18037_v45, %v22334_v21 }
 0x491   : > { %v12899_v14 = vpop.f32.mrf.mxu1  ;;  %v22518_v61 = vpop.f32.mrf.mxu0 }
 0x492   : > { %23214 = vst [vmem:[#allocation54_spill] sm:$0xff] %v22516_v24  ;;  %v22521_v39 = vadd.f32 %v12899_v14, %v22340_v15 }
 0x493   : > { %v18040_v43 = vpop.f32.mrf.mxu1  ;;  %v22526_v42 = vpop.f32.mrf.mxu0 }
 0x494   : > { %v22524_v48 = vadd.f32 %v18040_v43, %v23215_v31 }
 0x495   : > { %v12912_v25 = vpop.f32.mrf.mxu1  ;;  %v22534_v24 = vpop.f32.mrf.mxu0 }
 0x496   : > { %23216 = vst [vmem:[#allocation55_spill] sm:$0xff] %v22524_v48  ;;  %v22529_v50 = vadd.f32 %v12912_v25, %v22354_v58 }
 0x497   : > { %v18041_v49 = vpop.f32.mrf.mxu1  ;;  %v22542_v48 = vpop.f32.mrf.mxu0 }
 0x498   : > { %v22532_v21 = vadd.f32 %v18041_v49, %v22358_v17 }
 0x499   : > { %v12915_v45 = vpop.f32.mrf.mxu1 }
 0x49a   : > { %23217 = vst [vmem:[#allocation56_spill] sm:$0xff] %v22532_v21  ;;  %v22537_v15 = vadd.f32 %v12915_v45, %v22362_v38  ;;  %v22550_v21 = vpop.f32.mrf.mxu0 }
 0x49b   : > { %v18044_v14 = vpop.f32.mrf.mxu1 }
 0x49c   : > { %v22540_v43 = vadd.f32 %v18044_v14, %v22366_v9 }
 0x49d   : > { %v12928_v31 = vpop.f32.mrf.mxu1 }
 0x49e   : > { %23218 = vst [vmem:[#allocation57_spill] sm:$0xff] %v22540_v43  ;;  %v22545_v58 = vadd.f32 %v12928_v31, %v22372_v34  ;;  %v22558_v43 = vpop.f32.mrf.mxu0 }
 0x49f   : > { %v18045_v25 = vpop.f32.mrf.mxu1 }
 0x4a0   : > { %v22548_v17 = vadd.f32 %v18045_v25, %v22376_v18 }
 0x4a1   : > { %v12931_v49 = vpop.f32.mrf.mxu1 }
 0x4a2   : > { %23219 = vst [vmem:[#allocation60_spill] sm:$0xff] %v22548_v17  ;;  %v22553_v38 = vadd.f32 %v12931_v49, %v22380_v3  ;;  %v22566_v17 = vpop.f32.mrf.mxu0 }
 0x4a3   : > { %v18048_v45 = vpop.f32.mrf.mxu1 }
 0x4a4   : > { %v22556_v9 = vadd.f32 %v18048_v45, %v22385_v53 }
 0x4a5   : > { %v12944_v14 = vpop.f32.mrf.mxu1 }
 0x4a6   : > { %23220 = vst [vmem:[#allocation61_spill] sm:$0xff] %v22556_v9  ;;  %v22561_v34 = vadd.f32 %v12944_v14, %v22389_v35  ;;  %v22574_v9 = vpop.f32.mrf.mxu0 }
 0x4a7   : > { %v18049_v31 = vpop.f32.mrf.mxu1 }
 0x4a8   : > { %v22564_v18 = vadd.f32 %v18049_v31, %v22393_v60 }
 0x4a9   : > { %v12947_v25 = vpop.f32.mrf.mxu1 }
 0x4aa   : > { %23221 = vst [vmem:[#allocation62_spill] sm:$0xff] %v22564_v18  ;;  %v22569_v3 = vadd.f32 %v12947_v25, %v22397_v55  ;;  %v22582_v18 = vpop.f32.mrf.mxu0 }
 0x4ab   : > { %v18052_v49 = vpop.f32.mrf.mxu1 }
 0x4ac   : > { %v22572_v53 = vadd.f32 %v18052_v49, %v22400_v8 }
 0x4ad   : > { %v12960_v45 = vpop.f32.mrf.mxu1 }
 0x4ae   : > { %23222 = vst [vmem:[#allocation65_spill] sm:$0xff] %v22572_v53  ;;  %v22577_v35 = vadd.f32 %v12960_v45, %v22403_v59  ;;  %v22590_v53 = vpop.f32.mrf.mxu0 }
 0x4af   : > { %v18053_v14 = vpop.f32.mrf.mxu1 }
 0x4b0   : > { %23223 = vst [vmem:[#allocation66_spill] sm:$0xff] %v22577_v35  ;;  %v22580_v60 = vadd.f32 %v18053_v14, %v22408_v29  ;;  %v18797_v35 = vld [vmem:[%s18919_s12 + $0x30] sm:$0xff]  }
 0x4b1   : > { %v12963_v31 = vpop.f32.mrf.mxu1 }
 0x4b2   : > { %23224 = vst [vmem:[#allocation67_spill] sm:$0xff] %v22580_v60  ;;  %v22585_v55 = vadd.f32 %v12963_v31, %v22413_v12  ;;  %v22598_v60 = vpop.f32.mrf.mxu0 }
 0x4b3   : > { %v18056_v25 = vpop.f32.mrf.mxu1 }
 0x4b4   : > { %23225 = vst [vmem:[#allocation68_spill] sm:$0xff] %v22585_v55  ;;  %v22588_v8 = vadd.f32 %v18056_v25, %v22418_v63 }
 0x4b5   : > { %v12976_v49 = vpop.f32.mrf.mxu1 }
 0x4b6   : > { %23226 = vst [vmem:[#allocation59_spill] sm:$0xff] %v22588_v8  ;;  %v22593_v59 = vadd.f32 %v12976_v49, %v22423_v44  ;;  %v22606_v8 = vpop.f32.mrf.mxu0 }
 0x4b7   : > { %v18057_v45 = vpop.f32.mrf.mxu1 }
 0x4b8   : > { %23227 = vst [vmem:[#allocation64_spill] sm:$0xff] %v22593_v59  ;;  %v22596_v29 = vadd.f32 %v18057_v45, %v22428_v56 }
 0x4b9   : > { %v12979_v14 = vpop.f32.mrf.mxu1 }
 0x4ba   : > { %23228 = vst [vmem:[#allocation71_spill] sm:$0xff] %v22596_v29  ;;  %v22601_v12 = vadd.f32 %v12979_v14, %v22433_v4  ;;  %v13635_v4 = vadd.f32 %v22458_v32, %v22406_v10  ;;  %v22616_v14 = vpop.f32.mrf.mxu0  ;;  %v22631_v10 = vld [vmem:[%s22916_s6] ss:$0 sm:$0xff]  ;;  %v13634_v29 = vadd.f32 %v22473_v46, %v22421_v40 }
 0x4bb   : > { %v18060_v31 = vpop.f32.mrf.mxu1 }
 0x4bc   : > { %23229 = vst [vmem:[#allocation72_spill] sm:$0xff] %v22601_v12  ;;  %v22604_v63 = vadd.f32 %v18060_v31, %v22438_v37  ;;  %v22624_v31 = vld [vmem:[%s22915_s5] ss:$0 sm:$0xff]  ;;  %v18795_v12 = vld [vmem:[%s18919_s12 + $0x18] sm:$0xff]  }
 0x4bd   : > { %v12992_v25 = vpop.f32.mrf.mxu1 }
 0x4be   : > { %23230 = vst [vmem:[#allocation74_spill] sm:$0xff] %v22604_v63  ;;  %v22609_v44 = vadd.f32 %v12992_v25, %v22443_v51 }
 0x4bf   : > { %v18061_v49 = vpop.f32.mrf.mxu1 }
 0x4c0   : > { %23231 = vst [vmem:[#allocation79_spill] sm:$0xff] %v22609_v44  ;;  %v22612_v56 = vadd.f32 %v18061_v49, %v22448_v28  ;;  %v13633_v28 = vadd.f32 %v22463_v2, %v22411_v7  ;;  %v18794_v49 = vld [vmem:[%s18919_s12 + $0x20] sm:$0xff]   ;;  %v14711_v7 = vunpack.c.l.bf16 %v18795_v12 }
 0x4c1   : > { %v12995_v45 = vpop.f32.mrf.mxu1  ;;  %v14714_v55 = vunpack.c.h.bf16 %v18794_v49 }
 0x4c2   : > { %23232 = vst [vmem:[#allocation73_spill] sm:$0xff] %v22612_v56  ;;  %v22619_v37 = vadd.f32 %v12995_v45, %v22453_v13  ;;  %v14713_v56 = vunpack.c.l.bf16 %v18794_v49  ;;  %v13636_v13 = vadd.f32 %v22468_v20, %v22416_v54  ;;  %v22636_v45 = vpop.f32.mrf.mxu0  ;;  %v14712_v49 = vunpack.c.h.bf16 %v18795_v12 }
 0x4c3   : > { %v18144_v51 = vpop.f32.mrf.mxu1 }
 0x4c4   : > { %23233 = vst [vmem:[#allocation80_spill] sm:$0xff] %v22619_v37  ;;  %v14461_v25 = vadd.f32 %v18144_v51, %v13635_v4  ;;  %v22644_v54 = vpop.f32.mrf.mxu0 }
 0x4c5   : > { %v14268_v32 = vpop.f32.mrf.mxu1 }
 0x4c6   : > { %v14611_v37 = vmul.f32 %v22624_v31, %v14461_v25  ;;  %v14459_v44 = vadd.f32 %v14268_v32, %v13633_v28 }
 0x4c7   : > { %v18145_v63 = vpop.f32.mrf.mxu1 }
 0x4c8   : > { %v14665_v2 = vadd.f32 %v22631_v10, %v14611_v37  ;;  %v14609_v4 = vmul.f32 %v22624_v31, %v14459_v44  ;;  %v14462_v51 = vadd.f32 %v18145_v63, %v13636_v13  ;;  %v13639_v37 = vadd.f32 %v22478_v6, %v22426_v5 }
 0x4c9   : > { %v14271_v59 = vpop.f32.mrf.mxu1  ;;  %v13637_v63 = vadd.f32 %v22483_v22, %v22431_v16  ;;  %v14717_v16 = vunpack.c.l.bf16 %v18797_v35 }
 0x4ca   : > { %v14761_v20 = vadd.f32 %v14713_v56, %v14665_v2  ;;  %v14663_v25 = vadd.f32 %v22631_v10, %v14609_v4  ;;  %v14612_v28 = vmul.f32 %v22624_v31, %v14462_v51  ;;  %v14460_v32 = vadd.f32 %v14271_v59, %v13634_v29  ;;  %v22657_v51 = vpop.f32.mrf.mxu0  ;;  %v18796_v59 = vld [vmem:[%s18919_s12 + $0x28] sm:$0xff]  }
 0x4cb   : > { %v18148_v44 = vpop.f32.mrf.mxu1  ;;  %v13640_v4 = vadd.f32 %v22488_v23, %v22436_v30  ;;  %v14715_v29 = vunpack.c.l.bf16 %v18796_v59  ;;  %v13638_v30 = vadd.f32 %v22493_v57, %v22441_v52 }
 0x4cc   : > { %v14759_v40 = vadd.f32 %v14711_v7, %v14663_v25  ;;  %v14666_v46 = vadd.f32 %v22631_v10, %v14612_v28  ;;  %v14610_v56 = vmul.f32 %v22624_v31, %v14460_v32  ;;  %v14465_v13 = vadd.f32 %v18148_v44, %v13639_v37 }
 0x4cd   : > { %v14284_v2 = vpop.f32.mrf.mxu1  ;;  %v14809_v25 = vmax.f32 %v14761_v20, 0.0  ;;  %v14718_v44 = vunpack.c.h.bf16 %v18797_v35  ;;  %v13643_v20 = vadd.f32 %v22498_v1, %v22446_v62  ;;  %v14716_v1 = vunpack.c.h.bf16 %v18796_v59 }
 0x4ce   : > { %v14762_v5 = vadd.f32 %v14714_v55, %v14666_v46  ;;  %v14463_v6 = vadd.f32 %v14284_v2, %v13637_v63  ;;  %v14664_v22 = vadd.f32 %v22631_v10, %v14610_v56  ;;  %v14615_v12 = vmul.f32 %v22624_v31, %v14465_v13  ;;  %v22674_v46 = vpop.f32.mrf.mxu0 }
 0x4cf   : > { %v18149_v7 = vpop.f32.mrf.mxu1  ;;  %v14807_v57 = vmax.f32 %v14759_v40, 0.0  ;;  %v18798_v40 = vld [vmem:[%s18919_s12 + $0x40] sm:$0xff]   ;;  %v13642_v59 = vadd.f32 %v22513_v0, %v22461_v41 }
 0x4d0   : > { %v14810_v28 = vmax.f32 %v14762_v5, 0.0  ;;  %v14613_v37 = vmul.f32 %v22624_v31, %v14463_v6  ;;  %v14466_v32 = vadd.f32 %v18149_v7, %v13640_v4  ;;  %v14760_v23 = vadd.f32 %v14712_v49, %v14664_v22 }
 0x4d1   : > { %v14669_v55 = vadd.f32 %v22631_v10, %v14615_v12  ;;  %v14287_v63 = vpop.f32.mrf.mxu1  ;;  %v13641_v22 = vadd.f32 %v22503_v47, %v22451_v11 }
 0x4d2   : > { %v16303_v56 = vpack.c.bf16 %v14810_v28, %v14809_v25  ;;  %v14667_v35 = vadd.f32 %v22631_v10, %v14613_v37  ;;  %v14616_v52 = vmul.f32 %v22624_v31, %v14466_v32  ;;  %v14808_v13 = vmax.f32 %v14760_v23, 0.0  ;;  %v22686_v37 = vpop.f32.mrf.mxu0 }
 0x4d3   : > { %v14765_v2 = vadd.f32 %v14717_v16, %v14669_v55  ;;  %v14464_v4 = vadd.f32 %v14287_v63, %v13638_v30  ;;  %v18152_v5 = vpop.f32.mrf.mxu1  ;;  %v14721_v28 = vunpack.c.l.bf16 %v18798_v40  ;;  %v13644_v16 = vadd.f32 %v22508_v26, %v22456_v27  ;;  %v18799_v30 = vld [vmem:[%s18919_s12 + $0x38] sm:$0xff]  }
 0x4d4   : > { %16439 = vst [vmem:[%s22669_s10 + $0x8] sm:$0xff] %v16303_v56   ;;  %v14763_v49 = vadd.f32 %v14715_v29, %v14667_v35  ;;  %v14670_v6 = vadd.f32 %v22631_v10, %v14616_v52  ;;  %v14469_v62 = vadd.f32 %v18152_v5, %v13643_v20  ;;  %v16298_v12 = vpack.c.bf16 %v14808_v13, %v14807_v57  ;;  %v22698_v41 = vpop.f32.mrf.mxu0 }
 0x4d5   : > { %v14614_v7 = vmul.f32 %v22624_v31, %v14464_v4  ;;  %v14300_v25 = vpop.f32.mrf.mxu1  ;;  %v14719_v23 = vunpack.c.l.bf16 %v18799_v30  ;;  %v14813_v63 = vmax.f32 %v14765_v2, 0.0  ;;  %v14722_v26 = vunpack.c.h.bf16 %v18798_v40 }
 0x4d6   : > { %v14766_v29 = vadd.f32 %v14718_v44, %v14670_v6  ;;  %v14619_v32 = vmul.f32 %v22624_v31, %v14469_v62  ;;  %16299 = vst [vmem:[%s22669_s10] sm:$0xff] %v16298_v12   ;;  %v14467_v47 = vadd.f32 %v14300_v25, %v13641_v22  ;;  %v13647_v44 = vadd.f32 %v22518_v61, %v22466_v33  ;;  %v18800_v25 = vld [vmem:[%s18919_s12 + $0x50] sm:$0xff]  }
 0x4d7   : > { %v14668_v11 = vadd.f32 %v22631_v10, %v14614_v7  ;;  %v18153_v55 = vpop.f32.mrf.mxu1  ;;  %v14720_v5 = vunpack.c.h.bf16 %v18799_v30  ;;  %v14811_v6 = vmax.f32 %v14763_v49, 0.0  ;;  %v13645_v33 = vadd.f32 %v22526_v42, %v22471_v36  ;;  %v18801_v42 = vld [vmem:[%s18919_s12 + $0x48] sm:$0xff]  }
 0x4d8   : > { %v14814_v20 = vmax.f32 %v14766_v29, 0.0  ;;  %v14673_v56 = vadd.f32 %v22631_v10, %v14619_v32  ;;  %v14470_v27 = vadd.f32 %v18153_v55, %v13644_v16  ;;  %v14617_v52 = vmul.f32 %v22624_v31, %v14467_v47  ;;  %v22708_v29 = vpop.f32.mrf.mxu0  ;;  %v23234_v47 = vld [vmem:[#allocation47_spill] sm:$0xff] }
 0x4d9   : > { %v14764_v35 = vadd.f32 %v14716_v1, %v14668_v11  ;;  %v14303_v57 = vpop.f32.mrf.mxu1  ;;  %v14725_v40 = vunpack.c.l.bf16 %v18800_v25  ;;  %v14723_v11 = vunpack.c.l.bf16 %v18801_v42  ;;  %v13648_v55 = vadd.f32 %v22534_v24, %v23234_v47 }
 0x4da   : > { %v16313_v0 = vpack.c.bf16 %v14814_v20, %v14813_v63  ;;  %v14769_v13 = vadd.f32 %v14721_v28, %v14673_v56  ;;  %v14620_v2 = vmul.f32 %v22624_v31, %v14470_v27  ;;  %v14468_v4 = vadd.f32 %v14303_v57, %v13642_v59  ;;  %v22722_v24 = vpop.f32.mrf.mxu0 }
 0x4db   : > { %v14812_v62 = vmax.f32 %v14764_v35, 0.0  ;;  %v14671_v22 = vadd.f32 %v22631_v10, %v14617_v52  ;;  %v18156_v12 = vpop.f32.mrf.mxu1  ;;  %v23236_v52 = vld [vmem:[#allocation49_spill] sm:$0xff] }
 0x4dc   : > { %16441 = vst [vmem:[%s22669_s10 + $0x18] sm:$0xff] %v16313_v0   ;;  %v14674_v61 = vadd.f32 %v22631_v10, %v14620_v2  ;;  %v14618_v1 = vmul.f32 %v22624_v31, %v14468_v4  ;;  %v14473_v7 = vadd.f32 %v18156_v12, %v13647_v44  ;;  %v14817_v63 = vmax.f32 %v14769_v13, 0.0  ;;  %v22734_v47 = vpop.f32.mrf.mxu0 }
 0x4dd   : > { %v16308_v28 = vpack.c.bf16 %v14812_v62, %v14811_v6  ;;  %v14767_v16 = vadd.f32 %v14719_v23, %v14671_v22  ;;  %v14316_v49 = vpop.f32.mrf.mxu1  ;;  %v13651_v57 = vadd.f32 %v22550_v21, %v23236_v52  ;;  %v14726_v22 = vunpack.c.h.bf16 %v18800_v25  ;;  %v18802_v25 = vld [vmem:[%s18919_s12 + $0x60] sm:$0xff]  }
 0x4de   : > { %v14770_v32 = vadd.f32 %v14722_v26, %v14674_v61  ;;  %v14672_v30 = vadd.f32 %v22631_v10, %v14618_v1  ;;  %v14623_v59 = vmul.f32 %v22624_v31, %v14473_v7  ;;  %v14471_v36 = vadd.f32 %v14316_v49, %v13645_v33  ;;  %v23235_v26 = vld [vmem:[#allocation48_spill] sm:$0xff]  ;;  %v23237_v61 = vld [vmem:[#allocation50_spill] sm:$0xff] }
 0x4df   : > { %16440 = vst [vmem:[%s22669_s10 + $0x10] sm:$0xff] %v16308_v28   ;;  %v18157_v20 = vpop.f32.mrf.mxu1  ;;  %v13646_v35 = vadd.f32 %v22542_v48, %v23235_v26  ;;  %v14815_v0 = vmax.f32 %v14767_v16, 0.0  ;;  %v13649_v21 = vadd.f32 %v22558_v43, %v23237_v61  ;;  %v14724_v16 = vunpack.c.h.bf16 %v18801_v42 }
 0x4e0   : > { %v14818_v56 = vmax.f32 %v14770_v32, 0.0  ;;  %v14768_v27 = vadd.f32 %v14720_v5, %v14672_v30  ;;  %v14677_v23 = vadd.f32 %v22631_v10, %v14623_v59  ;;  %v14621_v44 = vmul.f32 %v22624_v31, %v14471_v36  ;;  %v23238_v59 = vld [vmem:[#allocation51_spill] sm:$0xff] }
 0x4e1   : > { %v14474_v2 = vadd.f32 %v18157_v20, %v13648_v55  ;;  %v14319_v4 = vpop.f32.mrf.mxu1  ;;  %v14729_v30 = vunpack.c.l.bf16 %v18802_v25  ;;  %v13652_v36 = vadd.f32 %v22566_v17, %v23238_v59  ;;  %v14730_v52 = vunpack.c.h.bf16 %v18802_v25 }
 0x4e2   : > { %v16323_v13 = vpack.c.bf16 %v14818_v56, %v14817_v63  ;;  %v14816_v6 = vmax.f32 %v14768_v27, 0.0  ;;  %v14773_v5 = vadd.f32 %v14725_v40, %v14677_v23  ;;  %v14675_v62 = vadd.f32 %v22631_v10, %v14621_v44  ;;  %v18803_v63 = vld [vmem:[%s18919_s12 + $0x58] sm:$0xff]   ;;  %v23239_v23 = vld [vmem:[#allocation52_spill] sm:$0xff] }
 0x4e3   : > { %v14624_v12 = vmul.f32 %v22624_v31, %v14474_v2  ;;  %v14472_v33 = vadd.f32 %v14319_v4, %v13646_v35  ;;  %v18160_v48 = vpop.f32.mrf.mxu1  ;;  %v14728_v20 = vunpack.c.h.bf16 %v18803_v63  ;;  %v13650_v44 = vadd.f32 %v22574_v9, %v23239_v23 }
 0x4e4   : > { %16443 = vst [vmem:[%s22669_s10 + $0x28] sm:$0xff] %v16323_v13   ;;  %v16318_v1 = vpack.c.bf16 %v14816_v6, %v14815_v0  ;;  %v14771_v7 = vadd.f32 %v14723_v11, %v14675_v62  ;;  %v14477_v28 = vadd.f32 %v18160_v48, %v13651_v57  ;;  %v14727_v11 = vunpack.c.l.bf16 %v18803_v63  ;;  %v22744_v13 = vpop.f32.mrf.mxu0 }
 0x4e5   : > { %v14678_v49 = vadd.f32 %v22631_v10, %v14624_v12  ;;  %v14622_v40 = vmul.f32 %v22624_v31, %v14472_v33  ;;  %v14332_v32 = vpop.f32.mrf.mxu1  ;;  %v14821_v57 = vmax.f32 %v14773_v5, 0.0  ;;  %v23240_v12 = vld [vmem:[#allocation53_spill] sm:$0xff] }
 0x4e6   : > { %16442 = vst [vmem:[%s22669_s10 + $0x20] sm:$0xff] %v16318_v1   ;;  %v14627_v43 = vmul.f32 %v22624_v31, %v14477_v28  ;;  %v14475_v55 = vadd.f32 %v14332_v32, %v13649_v21  ;;  %v13655_v33 = vadd.f32 %v22582_v18, %v23240_v12  ;;  %v14819_v48 = vmax.f32 %v14771_v7, 0.0 }
 0x4e7   : > { %v14774_v42 = vadd.f32 %v14726_v22, %v14678_v49  ;;  %v14676_v56 = vadd.f32 %v22631_v10, %v14622_v40  ;;  %v18161_v27 = vpop.f32.mrf.mxu1  ;;  %v13653_v1 = vadd.f32 %v22590_v53, %v22511_v19  ;;  %v22755_v40 = vld [vmem:[%s18919_s12 + $0x68] sm:$0xff]  }
 0x4e8   : > { %v14681_v26 = vadd.f32 %v22631_v10, %v14627_v43  ;;  %v14625_v17 = vmul.f32 %v22624_v31, %v14475_v55  ;;  %v14478_v35 = vadd.f32 %v18161_v27, %v13652_v36  ;;  %v14731_v32 = vunpack.c.l.bf16 %v22755_v40  ;;  %v22761_v36 = vpop.f32.mrf.mxu0  ;;  %v18805_v55 = vld [vmem:[%s18919_s12 + $0x70] sm:$0xff]  }
 0x4e9   : > { %v14822_v0 = vmax.f32 %v14774_v42, 0.0  ;;  %v14772_v2 = vadd.f32 %v14724_v16, %v14676_v56  ;;  %v14335_v4 = vpop.f32.mrf.mxu1  ;;  %v14733_v63 = vunpack.c.l.bf16 %v18805_v55 }
 0x4ea   : > { %v14777_v6 = vadd.f32 %v14729_v30, %v14681_v26  ;;  %v14679_v62 = vadd.f32 %v22631_v10, %v14625_v17  ;;  %v14628_v22 = vmul.f32 %v22624_v31, %v14478_v35  ;;  %v14476_v9 = vadd.f32 %v14335_v4, %v13650_v44  ;;  %v23241_v30 = vld [vmem:[#allocation54_spill] sm:$0xff]  ;;  %v23242_v35 = vld [vmem:[#allocation55_spill] sm:$0xff]  ;;  %v22773_v4 = vpop.f32.mrf.mxu0 }
 0x4eb   : > { %v16333_v61 = vpack.c.bf16 %v14822_v0, %v14821_v57  ;;  %v14820_v21 = vmax.f32 %v14772_v2, 0.0  ;;  %v18164_v5 = vpop.f32.mrf.mxu1  ;;  %v13656_v59 = vadd.f32 %v22598_v60, %v23241_v30  ;;  %v13654_v17 = vadd.f32 %v22606_v8, %v22521_v39 }
 0x4ec   : > { %v14775_v28 = vadd.f32 %v14727_v11, %v14679_v62  ;;  %v14682_v16 = vadd.f32 %v22631_v10, %v14628_v22  ;;  %v14626_v49 = vmul.f32 %v22624_v31, %v14476_v9  ;;  %v14481_v7 = vadd.f32 %v18164_v5, %v13655_v33  ;;  %v18806_v5 = vld [vmem:[%s18919_s12 + $0x80] sm:$0xff]  }
 0x4ed   : > { %16445 = vst [vmem:[%s22669_s10 + $0x38] sm:$0xff] %v16333_v61   ;;  %v16328_v18 = vpack.c.bf16 %v14820_v21, %v14819_v48  ;;  %v14348_v25 = vpop.f32.mrf.mxu1  ;;  %v14734_v11 = vunpack.c.h.bf16 %v18805_v55  ;;  %v14825_v42 = vmax.f32 %v14777_v6, 0.0  ;;  %v13657_v9 = vadd.f32 %v22636_v45, %v22529_v50  ;;  %v22786_v45 = vpop.f32.mrf.mxu0 }
 0x4ee   : > { %v14778_v19 = vadd.f32 %v14730_v52, %v14682_v16  ;;  %v14680_v53 = vadd.f32 %v22631_v10, %v14626_v49  ;;  %v14479_v43 = vadd.f32 %v14348_v25, %v13653_v1  ;;  %v14631_v56 = vmul.f32 %v22624_v31, %v14481_v7  ;;  %v23243_v49 = vld [vmem:[#allocation56_spill] sm:$0xff]  ;;  %v18807_v25 = vld [vmem:[%s18919_s12 + $0x78] sm:$0xff]  }
 0x4ef   : > { %16444 = vst [vmem:[%s22669_s10 + $0x30] sm:$0xff] %v16328_v18   ;;  %v18165_v27 = vpop.f32.mrf.mxu1  ;;  %v13659_v52 = vadd.f32 %v22616_v14, %v23242_v35  ;;  %v14823_v57 = vmax.f32 %v14775_v28, 0.0  ;;  %v14732_v21 = vunpack.c.h.bf16 %v22755_v40  ;;  %v14737_v1 = vunpack.c.l.bf16 %v18806_v5 }
 0x4f0   : > { %v14826_v23 = vmax.f32 %v14778_v19, 0.0  ;;  %v14776_v44 = vadd.f32 %v14728_v20, %v14680_v53  ;;  %v14629_v26 = vmul.f32 %v22624_v31, %v14479_v43  ;;  %v14482_v60 = vadd.f32 %v18165_v27, %v13656_v59 }
 0x4f1   : > { %v14685_v0 = vadd.f32 %v22631_v10, %v14631_v56  ;;  %v14351_v2 = vpop.f32.mrf.mxu1  ;;  %v13660_v50 = vadd.f32 %v22644_v54, %v23243_v49  ;;  %v14735_v30 = vunpack.c.l.bf16 %v18807_v25  ;;  %v14738_v54 = vunpack.c.h.bf16 %v18806_v5 }
 0x4f2   : > { %v16343_v6 = vpack.c.bf16 %v14826_v23, %v14825_v42  ;;  %v14824_v62 = vmax.f32 %v14776_v44, 0.0  ;;  %v14683_v20 = vadd.f32 %v22631_v10, %v14629_v26  ;;  %v14632_v22 = vmul.f32 %v22624_v31, %v14482_v60  ;;  %v23244_v42 = vld [vmem:[#allocation57_spill] sm:$0xff]  ;;  %v22798_v44 = vpop.f32.mrf.mxu0 }
 0x4f3   : > { %v14781_v39 = vadd.f32 %v14733_v63, %v14685_v0  ;;  %v14480_v8 = vadd.f32 %v14351_v2, %v13654_v17  ;;  %v18168_v14 = vpop.f32.mrf.mxu1  ;;  %v13663_v56 = vadd.f32 %v22674_v46, %v23244_v42 }
 0x4f4   : > { %16447 = vst [vmem:[%s22669_s10 + $0x48] sm:$0xff] %v16343_v6   ;;  %v16338_v12 = vpack.c.bf16 %v14824_v62, %v14823_v57  ;;  %v14779_v33 = vadd.f32 %v14731_v32, %v14683_v20  ;;  %v14686_v48 = vadd.f32 %v22631_v10, %v14632_v22  ;;  %v14485_v61 = vadd.f32 %v18168_v14, %v13659_v52  ;;  %v18808_v20 = vld [vmem:[%s18919_s12 + $0x90] sm:$0xff]  }
 0x4f5   : > { %v14630_v28 = vmul.f32 %v22624_v31, %v14480_v8  ;;  %v14364_v16 = vpop.f32.mrf.mxu1  ;;  %v14829_v59 = vmax.f32 %v14781_v39, 0.0  ;;  %v14736_v62 = vunpack.c.h.bf16 %v18807_v25  ;;  %v14741_v22 = vunpack.c.l.bf16 %v18808_v20  ;;  %v23245_v14 = vld [vmem:[#allocation60_spill] sm:$0xff] }
 0x4f6   : > { %16446 = vst [vmem:[%s22669_s10 + $0x40] sm:$0xff] %v16338_v12   ;;  %v14782_v18 = vadd.f32 %v14734_v11, %v14686_v48  ;;  %v14635_v7 = vmul.f32 %v22624_v31, %v14485_v61  ;;  %v14483_v32 = vadd.f32 %v14364_v16, %v13657_v9  ;;  %v13658_v11 = vadd.f32 %v22657_v51, %v22537_v15  ;;  %v18809_v61 = vld [vmem:[%s18919_s12 + $0x88] sm:$0xff]  }
 0x4f7   : > { %v14684_v40 = vadd.f32 %v22631_v10, %v14630_v28  ;;  %v18169_v19 = vpop.f32.mrf.mxu1  ;;  %v14827_v52 = vmax.f32 %v14779_v33, 0.0  ;;  %v13661_v15 = vadd.f32 %v22686_v37, %v22545_v58  ;;  %v13664_v12 = vadd.f32 %v22698_v41, %v23245_v14  ;;  %v22810_v33 = vpop.f32.mrf.mxu0  ;;  %v23248_v14 = vld [vmem:[#allocation65_spill] sm:$0xff] }
 0x4f8   : > { %v14830_v53 = vmax.f32 %v14782_v18, 0.0  ;;  %v14689_v43 = vadd.f32 %v22631_v10, %v14635_v7  ;;  %v14633_v55 = vmul.f32 %v22624_v31, %v14483_v32  ;;  %v14486_v63 = vadd.f32 %v18169_v19, %v13660_v50  ;;  %v23246_v32 = vld [vmem:[#allocation61_spill] sm:$0xff] }
 0x4f9   : > { %v14780_v27 = vadd.f32 %v14732_v21, %v14684_v40  ;;  %v14367_v23 = vpop.f32.mrf.mxu1  ;;  %v14739_v21 = vunpack.c.l.bf16 %v18809_v61  ;;  %v14742_v41 = vunpack.c.h.bf16 %v18808_v20  ;;  %v13662_v7 = vadd.f32 %v22708_v29, %v22553_v38  ;;  %v22822_v40 = vpop.f32.mrf.mxu0 }
 0x4fa   : > { %v16353_v26 = vpack.c.bf16 %v14830_v53, %v14829_v59  ;;  %v14785_v60 = vadd.f32 %v14737_v1, %v14689_v43  ;;  %v14687_v17 = vadd.f32 %v22631_v10, %v14633_v55  ;;  %v14636_v35 = vmul.f32 %v22624_v31, %v14486_v63 }
 0x4fb   : > { %v14828_v57 = vmax.f32 %v14780_v27, 0.0  ;;  %v14484_v0 = vadd.f32 %v14367_v23, %v13658_v11  ;;  %v18172_v2 = vpop.f32.mrf.mxu1  ;;  %v13667_v25 = vadd.f32 %v22722_v24, %v23246_v32  ;;  %v13665_v38 = vadd.f32 %v22734_v47, %v22561_v34  ;;  %v18810_v23 = vld [vmem:[%s18919_s12 + $0xa0] sm:$0xff]   ;;  %v18812_v32 = vld [vmem:[%s18919_s12 + $0xb0] sm:$0xff]  }
 0x4fc   : > { %16449 = vst [vmem:[%s22669_s10 + $0x58] sm:$0xff] %v16353_v26   ;;  %v14783_v51 = vadd.f32 %v14735_v30, %v14687_v17  ;;  %v14690_v46 = vadd.f32 %v22631_v10, %v14636_v35  ;;  %v14489_v6 = vadd.f32 %v18172_v2, %v13663_v56  ;;  %v14833_v5 = vmax.f32 %v14785_v60, 0.0 }
 0x4fd   : > { %v16348_v9 = vpack.c.bf16 %v14828_v57, %v14827_v52  ;;  %v14634_v39 = vmul.f32 %v22624_v31, %v14484_v0  ;;  %v14380_v8 = vpop.f32.mrf.mxu1  ;;  %v14740_v27 = vunpack.c.h.bf16 %v18809_v61  ;;  %v14745_v26 = vunpack.c.l.bf16 %v18810_v23  ;;  %v23247_v52 = vld [vmem:[#allocation62_spill] sm:$0xff]  ;;  %v22834_v0 = vpop.f32.mrf.mxu0 }
 0x4fe   : > { %v14786_v58 = vadd.f32 %v14738_v54, %v14690_v46  ;;  %v14639_v37 = vmul.f32 %v22624_v31, %v14489_v6  ;;  %v14487_v48 = vadd.f32 %v14380_v8, %v13661_v15  ;;  %v14831_v63 = vmax.f32 %v14783_v51, 0.0  ;;  %v18811_v15 = vld [vmem:[%s18919_s12 + $0x98] sm:$0xff]  }
 0x4ff   : > { %16448 = vst [vmem:[%s22669_s10 + $0x50] sm:$0xff] %v16348_v9   ;;  %v14688_v1 = vadd.f32 %v22631_v10, %v14634_v39  ;;  %v18173_v28 = vpop.f32.mrf.mxu1  ;;  %v13668_v57 = vadd.f32 %v22744_v13, %v23247_v52  ;;  %v14743_v51 = vunpack.c.l.bf16 %v18811_v15  ;;  %v14746_v13 = vunpack.c.h.bf16 %v18810_v23 }
 0x500   : > { %v14834_v16 = vmax.f32 %v14786_v58, 0.0  ;;  %v14693_v49 = vadd.f32 %v22631_v10, %v14639_v37  ;;  %v14637_v50 = vmul.f32 %v22624_v31, %v14487_v48  ;;  %v14490_v18 = vadd.f32 %v18173_v28, %v13664_v12  ;;  %v18121_v48 = vpop.f32.mrf.mxu0 }
 0x501   : > { %v14784_v30 = vadd.f32 %v14736_v62, %v14688_v1  ;;  %v14383_v59 = vpop.f32.mrf.mxu1  ;;  %v13666_v8 = vadd.f32 %v22761_v36, %v22569_v3  ;;  %v13671_v12 = vadd.f32 %v22773_v4, %v23248_v14  ;;  %v18814_v14 = vld [vmem:[%s18919_s12 + $0xc0] sm:$0xff]  }
 0x502   : > { %v16363_v19 = vpack.c.bf16 %v14834_v16, %v14833_v5  ;;  %v14789_v53 = vadd.f32 %v14741_v22, %v14693_v49  ;;  %v14691_v43 = vadd.f32 %v22631_v10, %v14637_v50  ;;  %v14640_v55 = vmul.f32 %v22624_v31, %v14490_v18  ;;  %v23249_v18 = vld [vmem:[#allocation66_spill] sm:$0xff] }
 0x503   : > { %v14832_v54 = vmax.f32 %v14784_v30, 0.0  ;;  %v14488_v11 = vadd.f32 %v14383_v59, %v13662_v7  ;;  %v18176_v42 = vpop.f32.mrf.mxu1  ;;  %v13669_v3 = vadd.f32 %v22786_v45, %v23249_v18  ;;  %v14744_v7 = vunpack.c.h.bf16 %v18811_v15 }
 0x504   : > { %16451 = vst [vmem:[%s22669_s10 + $0x68] sm:$0xff] %v16363_v19   ;;  %v14787_v29 = vadd.f32 %v14739_v21, %v14691_v43  ;;  %v14694_v24 = vadd.f32 %v22631_v10, %v14640_v55  ;;  %v14493_v56 = vadd.f32 %v18176_v42, %v13667_v25  ;;  %v14837_v46 = vmax.f32 %v14789_v53, 0.0  ;;  %v23250_v53 = vld [vmem:[#allocation67_spill] sm:$0xff]  ;;  %v13605_v55 = vpop.f32.mrf.mxu0 }
 0x505   : > { %v16358_v60 = vpack.c.bf16 %v14832_v54, %v14831_v63  ;;  %v14638_v17 = vmul.f32 %v22624_v31, %v14488_v11  ;;  %v14396_v35 = vpop.f32.mrf.mxu1  ;;  %v14749_v25 = vunpack.c.l.bf16 %v18812_v32  ;;  %v13672_v43 = vadd.f32 %v22798_v44, %v23250_v53  ;;  %v18813_v11 = vld [vmem:[%s18919_s12 + $0xa8] sm:$0xff]  }
 0x506   : > { %v14790_v34 = vadd.f32 %v14742_v41, %v14694_v24  ;;  %v14643_v47 = vmul.f32 %v22624_v31, %v14493_v56  ;;  %v14491_v2 = vadd.f32 %v14396_v35, %v13665_v38  ;;  %v14835_v28 = vmax.f32 %v14787_v29, 0.0  ;;  %v23252_v35 = vld [vmem:[#allocation59_spill] sm:$0xff] }
 0x507   : > { %16450 = vst [vmem:[%s22669_s10 + $0x60] sm:$0xff] %v16358_v60   ;;  %v14692_v6 = vadd.f32 %v22631_v10, %v14638_v17  ;;  %v18177_v62 = vpop.f32.mrf.mxu1  ;;  %v14747_v42 = vunpack.c.l.bf16 %v18813_v11  ;;  %v14750_v44 = vunpack.c.h.bf16 %v18812_v32  ;;  %v23251_v60 = vld [vmem:[#allocation68_spill] sm:$0xff]  ;;  %v13675_v52 = vadd.f32 %v22822_v40, %v23252_v35 }
 0x508   : > { %v14838_v20 = vmax.f32 %v14790_v34, 0.0  ;;  %v14697_v22 = vadd.f32 %v22631_v10, %v14643_v47  ;;  %v14641_v9 = vmul.f32 %v22624_v31, %v14491_v2  ;;  %v14494_v39 = vadd.f32 %v18177_v62, %v13668_v57  ;;  %v18124_v47 = vpop.f32.mrf.mxu0 }
 0x509   : > { %v14788_v58 = vadd.f32 %v14740_v27, %v14692_v6  ;;  %v14399_v37 = vpop.f32.mrf.mxu1  ;;  %v13670_v17 = vadd.f32 %v22810_v33, %v23251_v60 }
 0x50a   : > { %v16373_v61 = vpack.c.bf16 %v14838_v20, %v14837_v46  ;;  %v14793_v21 = vadd.f32 %v14745_v26, %v14697_v22  ;;  %v14695_v5 = vadd.f32 %v22631_v10, %v14641_v9  ;;  %v14644_v1 = vmul.f32 %v22624_v31, %v14494_v39  ;;  %v23253_v9 = vld [vmem:[#allocation64_spill] sm:$0xff] }
 0x50b   : > { %v14836_v16 = vmax.f32 %v14788_v58, 0.0  ;;  %v14492_v49 = vadd.f32 %v14399_v37, %v13666_v8  ;;  %v18180_v50 = vpop.f32.mrf.mxu1  ;;  %v13673_v33 = vadd.f32 %v22834_v0, %v23253_v9  ;;  %v14748_v8 = vunpack.c.h.bf16 %v18813_v11 }
 0x50c   : > { %16453 = vst [vmem:[%s22669_s10 + $0x78] sm:$0xff] %v16373_v61   ;;  %v14791_v36 = vadd.f32 %v14743_v51, %v14695_v5  ;;  %v14698_v4 = vadd.f32 %v22631_v10, %v14644_v1  ;;  %v14497_v41 = vadd.f32 %v18180_v50, %v13671_v12  ;;  %v14841_v38 = vmax.f32 %v14793_v21, 0.0  ;;  %v23254_v21 = vld [vmem:[#allocation71_spill] sm:$0xff]  ;;  %v13618_v1 = vpop.f32.mrf.mxu0 }
 0x50d   : > { %v16368_v30 = vpack.c.bf16 %v14836_v16, %v14835_v28  ;;  %v14642_v59 = vmul.f32 %v22624_v31, %v14492_v49  ;;  %v14412_v19 = vpop.f32.mrf.mxu1  ;;  %v14753_v12 = vunpack.c.l.bf16 %v18814_v14  ;;  %v13676_v5 = vadd.f32 %v18121_v48, %v23254_v21  ;;  %v18815_v49 = vld [vmem:[%s18919_s12 + $0xb8] sm:$0xff]  }
 0x50e   : > { %v14794_v63 = vadd.f32 %v14746_v13, %v14698_v4  ;;  %v14647_v45 = vmul.f32 %v22624_v31, %v14497_v41  ;;  %v14495_v54 = vadd.f32 %v14412_v19, %v13669_v3  ;;  %v14839_v6 = vmax.f32 %v14791_v36, 0.0 }
 0x50f   : > { %16452 = vst [vmem:[%s22669_s10 + $0x70] sm:$0xff] %v16368_v30   ;;  %v14696_v29 = vadd.f32 %v22631_v10, %v14642_v59  ;;  %v18181_v24 = vpop.f32.mrf.mxu1  ;;  %v14751_v50 = vunpack.c.l.bf16 %v18815_v49  ;;  %v14754_v48 = vunpack.c.h.bf16 %v18814_v14  ;;  %v23256_v59 = vld [vmem:[#allocation74_spill] sm:$0xff]  ;;  %v14752_v60 = vunpack.c.h.bf16 %v18815_v49 }
 0x510   : > { %v14842_v56 = vmax.f32 %v14794_v63, 0.0  ;;  %v14701_v27 = vadd.f32 %v22631_v10, %v14647_v45  ;;  %v14645_v23 = vmul.f32 %v22624_v31, %v14495_v54  ;;  %v14498_v26 = vadd.f32 %v18181_v24, %v13672_v43  ;;  %v18125_v63 = vpop.f32.mrf.mxu0 }
 0x511   : > { %v14792_v57 = vadd.f32 %v14744_v7, %v14696_v29  ;;  %v14415_v34 = vpop.f32.mrf.mxu1  ;;  %v13679_v19 = vadd.f32 %v18124_v47, %v23256_v59  ;;  %v23258_v47 = vld [vmem:[#allocation73_spill] sm:$0xff] }
 0x512   : > { %v16383_v2 = vpack.c.bf16 %v14842_v56, %v14841_v38  ;;  %v14797_v15 = vadd.f32 %v14749_v25, %v14701_v27  ;;  %v14699_v51 = vadd.f32 %v22631_v10, %v14645_v23  ;;  %v14648_v46 = vmul.f32 %v22624_v31, %v14498_v26  ;;  %v23255_v25 = vld [vmem:[#allocation72_spill] sm:$0xff]  ;;  %v23257_v27 = vld [vmem:[#allocation79_spill] sm:$0xff] }
 0x513   : > { %v14840_v62 = vmax.f32 %v14792_v57, 0.0  ;;  %v14496_v20 = vadd.f32 %v14415_v34, %v13670_v17  ;;  %v18184_v22 = vpop.f32.mrf.mxu1  ;;  %v13674_v30 = vadd.f32 %v13605_v55, %v23255_v25  ;;  %v13677_v23 = vadd.f32 %v13618_v1, %v23257_v27  ;;  %v18816_v17 = vld [vmem:[%s18919_s12 + $0xd0] sm:$0xff]  }
 0x514   : > { %16455 = vst [vmem:[%s22669_s10 + $0x88] sm:$0xff] %v16383_v2   ;;  %v14795_v40 = vadd.f32 %v14747_v42, %v14699_v51  ;;  %v14702_v39 = vadd.f32 %v22631_v10, %v14648_v46  ;;  %v14501_v13 = vadd.f32 %v18184_v22, %v13675_v52  ;;  %v14845_v18 = vmax.f32 %v14797_v15, 0.0  ;;  %v13621_v15 = vpop.f32.mrf.mxu0 }
 0x515   : > { %v16378_v58 = vpack.c.bf16 %v14840_v62, %v14839_v6  ;;  %v14646_v37 = vmul.f32 %v22624_v31, %v14496_v20  ;;  %v14428_v61 = vpop.f32.mrf.mxu1  ;;  %v14757_v35 = vunpack.c.l.bf16 %v18816_v17  ;;  %v13680_v2 = vadd.f32 %v18125_v63, %v23258_v47  ;;  %v18817_v62 = vld [vmem:[%s18919_s12 + $0xc8] sm:$0xff]  }
 0x516   : > { %v14798_v28 = vadd.f32 %v14750_v44, %v14702_v39  ;;  %v14651_v0 = vmul.f32 %v22624_v31, %v14501_v13  ;;  %v14499_v16 = vadd.f32 %v14428_v61, %v13673_v33  ;;  %v14843_v38 = vmax.f32 %v14795_v40, 0.0 }
 0x517   : > { %16454 = vst [vmem:[%s22669_s10 + $0x80] sm:$0xff] %v16378_v58   ;;  %v14700_v3 = vadd.f32 %v22631_v10, %v14646_v37  ;;  %v18185_v36 = vpop.f32.mrf.mxu1  ;;  %v14755_v20 = vunpack.c.l.bf16 %v18817_v62  ;;  %v14758_v14 = vunpack.c.h.bf16 %v18816_v17 }
 0x518   : > { %v14846_v4 = vmax.f32 %v14798_v28, 0.0  ;;  %v14705_v41 = vadd.f32 %v22631_v10, %v14651_v0  ;;  %v14649_v7 = vmul.f32 %v22624_v31, %v14499_v16  ;;  %v14502_v32 = vadd.f32 %v18185_v36, %v13676_v5 }
 0x519   : > { %v14796_v53 = vadd.f32 %v14748_v8, %v14700_v3  ;;  %v14431_v43 = vpop.f32.mrf.mxu1  ;;  %v14756_v3 = vunpack.c.h.bf16 %v18817_v62 }
 0x51a   : > { %v16393_v45 = vpack.c.bf16 %v14846_v4, %v14845_v18  ;;  %v14801_v54 = vadd.f32 %v14753_v12, %v14705_v41  ;;  %v14703_v11 = vadd.f32 %v22631_v10, %v14649_v7  ;;  %v14652_v42 = vmul.f32 %v22624_v31, %v14502_v32  ;;  %v23259_v12 = vld [vmem:[#allocation80_spill] sm:$0xff] }
 0x51b   : > { %v14844_v29 = vmax.f32 %v14796_v53, 0.0  ;;  %v14500_v24 = vadd.f32 %v14431_v43, %v13674_v30  ;;  %v18188_v56 = vpop.f32.mrf.mxu1  ;;  %v13678_v58 = vadd.f32 %v13621_v15, %v23259_v12 }
 0x51c   : > { %16457 = vst [vmem:[%s22669_s10 + $0x98] sm:$0xff] %v16393_v45   ;;  %v14799_v55 = vadd.f32 %v14751_v50, %v14703_v11  ;;  %v14706_v26 = vadd.f32 %v22631_v10, %v14652_v42  ;;  %v14505_v44 = vadd.f32 %v18188_v56, %v13679_v19  ;;  %v14849_v22 = vmax.f32 %v14801_v54, 0.0 }
 0x51d   : > { %v16388_v52 = vpack.c.bf16 %v14844_v29, %v14843_v38  ;;  %v14650_v57 = vmul.f32 %v22624_v31, %v14500_v24  ;;  %v14444_v34 = vpop.f32.mrf.mxu1 }
 0x51e   : > { %v14802_v51 = vadd.f32 %v14754_v48, %v14706_v26  ;;  %v14655_v46 = vmul.f32 %v22624_v31, %v14505_v44  ;;  %v14503_v6 = vadd.f32 %v14444_v34, %v13677_v23  ;;  %v14847_v0 = vmax.f32 %v14799_v55, 0.0 }
 0x51f   : > { %16456 = vst [vmem:[%s22669_s10 + $0x90] sm:$0xff] %v16388_v52   ;;  %v14704_v9 = vadd.f32 %v22631_v10, %v14650_v57  ;;  %v18189_v33 = vpop.f32.mrf.mxu1 }
 0x520   : > { %v14850_v40 = vmax.f32 %v14802_v51, 0.0  ;;  %v14709_v39 = vadd.f32 %v22631_v10, %v14655_v46  ;;  %v14653_v13 = vmul.f32 %v22624_v31, %v14503_v6  ;;  %v14506_v8 = vadd.f32 %v18189_v33, %v13680_v2 }
 0x521   : > { %v14800_v37 = vadd.f32 %v14752_v60, %v14704_v9  ;;  %v14447_v61 = vpop.f32.mrf.mxu1 }
 0x522   : > { %v16403_v21 = vpack.c.bf16 %v14850_v40, %v14849_v22  ;;  %v14805_v5 = vadd.f32 %v14757_v35, %v14709_v39  ;;  %v14707_v1 = vadd.f32 %v22631_v10, %v14653_v13  ;;  %v14656_v28 = vmul.f32 %v22624_v31, %v14506_v8 }
 0x523   : > { %v14848_v16 = vmax.f32 %v14800_v37, 0.0  ;;  %v14504_v49 = vadd.f32 %v14447_v61, %v13678_v58 }
 0x524   : > { %16459 = vst [vmem:[%s22669_s10 + $0xa8] sm:$0xff] %v16403_v21   ;;  %v14803_v50 = vadd.f32 %v14755_v20, %v14707_v1  ;;  %v14710_v18 = vadd.f32 %v22631_v10, %v14656_v28  ;;  %v14853_v32 = vmax.f32 %v14805_v5, 0.0 }
 0x525   : > { %v16398_v36 = vpack.c.bf16 %v14848_v16, %v14847_v0  ;;  %v14654_v4 = vmul.f32 %v22624_v31, %v14504_v49 }
 0x526   : > { %v14806_v41 = vadd.f32 %v14758_v14, %v14710_v18  ;;  %v14851_v59 = vmax.f32 %v14803_v50, 0.0 }
 0x527   : > { %16458 = vst [vmem:[%s22669_s10 + $0xa0] sm:$0xff] %v16398_v36   ;;  %v14708_v7 = vadd.f32 %v22631_v10, %v14654_v4 }
 0x528   : > { %v14854_v48 = vmax.f32 %v14806_v41, 0.0 }
 0x529   : > { %v14804_v25 = vadd.f32 %v14756_v3, %v14708_v7 }
 0x52a   : > { %v16413_v30 = vpack.c.bf16 %v14854_v48, %v14853_v32 }
 0x52b   : > { %v14852_v19 = vmax.f32 %v14804_v25, 0.0 }
 0x52c   : > { %16461 = vst [vmem:[%s22669_s10 + $0xb8] sm:$0xff] %v16413_v30  }
 0x52d   : > { %v16408_v53 = vpack.c.bf16 %v14852_v19, %v14851_v59 }
 0x52f   : > { %16460 = vst [vmem:[%s22669_s10 + $0xb0] sm:$0xff] %v16408_v53  }
 0x530 PF: > { %s18_s27 = sadd.s32 1, %s18824_s27  }
 0x531   : > { %p15_p4 = scmp.ge.s32.totalorder %s18_s27, 4  }
 0x533   :  { %17 = sbr.rel (!%p15_p4) target bundleno = 1 (0x1), region = 98 }

</bundles_post_ra>
